<compile_context>
chip_gen: v7x
topology: tpu7x:2x2x1
jax: 0.10.0
libtpu: 0.0.40
codegen_flags: <defaults>
</compile_context>

<pallas_src>
import math

import jax
import jax.numpy as jnp
from jax.experimental import pallas as pl
from jax.experimental.pallas import tpu as pltpu


LEVEL = 5                    # BlockHLA64 == level 5 of the recursive hierarchy
N_BLOCKS = 1 << LEVEL        # 32 leaf Blocks
N_MERGES = N_BLOCKS - 1      # 31 HLA-level merge linears
_HIGHEST = jax.lax.Precision.HIGHEST


# ----------------------------------------------------------------------------
# Fused Pallas kernel: the whole BlockHLA64 forward (per graph) in one call
# ----------------------------------------------------------------------------

def _hla64_kernel(a_ref, a2_ref, x_ref,
                  blk_w_ref, blk_b_ref, mrg_w_ref, mrg_b_ref,
                  o_ref):
    f32, bf16 = jnp.float32, jnp.bfloat16

    a = a_ref[...]        # (N, N)   bf16 — loaded once, reused by all 32 blocks
    a2 = a2_ref[...]      # (N, N)   bf16 — A_hat @ A_hat, precomputed in wrapper
    x0 = x_ref[...]       # (N, out) bf16 — zero-padded node features

    # Trace-time counters: the static level-5 recursion below is fully unrolled,
    # so every block / merge gets a static weight index matching the param
    # builder's traversal order exactly.
    counters = {"block": 0, "merge": 0}

    def block(x_b16):
        i = counters["block"]
        counters["block"] += 1
        # Two independent aggregations (overlap on the MXU), then ONE K=2*out
        # projection against the folded weight  [W1@Wl1 ; W1@W2@Wl2].
        ax = jnp.dot(a, x_b16, preferred_element_type=f32)      # A   @ x
        a2x = jnp.dot(a2, x_b16, preferred_element_type=f32)    # A^2 @ x
        h = jnp.concatenate([ax, a2x], axis=-1).astype(bf16)    # (N, 2*out), cast once
        out = jnp.dot(h, blk_w_ref[i], preferred_element_type=f32) + blk_b_ref[i]
        out = jnp.maximum(out, 0.0)
        return out, out.astype(bf16)        # each activation cast to bf16 exactly once

    def merge(x1_b16, x2_b16):
        j = counters["merge"]
        counters["merge"] += 1
        # relu(cat([x1, x2], -1) @ Wl + b) as a single K=2*out matmul
        h = jnp.concatenate([x1_b16, x2_b16], axis=-1)
        out = jnp.dot(h, mrg_w_ref[j], preferred_element_type=f32) + mrg_b_ref[j]
        out = jnp.maximum(out, 0.0)
        return out, out.astype(bf16)

    def apply_level(level, x_b16):
        if level == 0:
            return block(x_b16)
        _, x1_b16 = apply_level(level - 1, x_b16)       # block1(x)
        _, x2_b16 = apply_level(level - 1, x1_b16)      # block2(block1(x))
        return merge(x1_b16, x2_b16)

    out_f32, _ = apply_level(LEVEL, x0)
    o_ref[...] = out_f32


def _graph_spec(n, f):
    # one graph per grid step; batch dim squeezed away inside the kernel
    return pl.BlockSpec((pl.Squeezed(), n, f), lambda b: (b, 0, 0))


def _full_spec(shape):
    nd = len(shape)
    return pl.BlockSpec(shape, lambda b: (0,) * nd)     # VMEM-resident, constant block


@jax.jit
def hla64_forward(a_hat, x, fused):
    """a_hat: (B,N,N) f32 row-normalized adjacency; x: (B,N,in_dim) f32."""
    blk_w, blk_b, mrg_w, mrg_b = fused
    bsz, n, in_dim = x.shape
    out_dim = blk_w.shape[-1]
    assert in_dim <= out_dim, "feature padding assumes in_dim <= out_dim"
    bf16 = jnp.bfloat16

    # zero-pad node features to out_dim so the (zero-padded) first-block W1
    # reproduces the unpadded product exactly
    x_pad = jnp.zeros((bsz, n, out_dim), jnp.float32).at[:, :, :in_dim].set(x)
    # A^2 in full f32 (HIGHEST) so the fold stays exact; still row-stochastic
    a2 = jnp.einsum("bij,bjk->bik", a_hat, a_hat, precision=_HIGHEST)

    args = (a_hat.astype(bf16), a2.astype(bf16), x_pad.astype(bf16),
            blk_w.astype(bf16), blk_b, mrg_w.astype(bf16), mrg_b)

    return pl.pallas_call(
        _hla64_kernel,
        out_shape=jax.ShapeDtypeStruct((bsz, n, out_dim), jnp.float32),
        grid=(bsz,),
        in_specs=[_graph_spec(n, n),          # A_hat
                  _graph_spec(n, n),          # A_hat^2
                  _graph_spec(n, out_dim),    # x (padded)
                  _full_spec(args[3].shape),  # folded block weights (32, 2*out, out)
                  _full_spec(args[4].shape),  # folded block biases  (32, 1, out)
                  _full_spec(args[5].shape),  # merge weights        (31, 2*out, out)
                  _full_spec(args[6].shape)], # merge biases         (31, 1, out)
        out_specs=_graph_spec(n, out_dim),
        compiler_params=pltpu.CompilerParams(
            dimension_semantics=("parallel",)),          # v7x: graphs across both TCs
    )(*args)


# ----------------------------------------------------------------------------
# Deterministic parameter construction (torch glorot/zeros semantics).
# Returns both the raw (unfolded) weights and the folded stacks, built from the
# SAME draws, in the SAME traversal order the kernel unrolls.
# ----------------------------------------------------------------------------

def glorot_uniform(key, shape):
    stdv = math.sqrt(6.0 / (shape[-2] + shape[-1]))
    return jax.random.uniform(key, shape, jnp.float32, -stdv, stdv)


def _mm(a, b):
    return jnp.matmul(a, b, precision=_HIGHEST)   # true-f32 folds


def make_hla64_params(key, level, in_dim, out_dim):
    raw_bw1, raw_bw2, raw_bwl, raw_bbl, raw_mwl, raw_mbl = [], [], [], [], [], []
    blk_w, blk_b, mrg_w, mrg_b = [], [], [], []

    def build(k, lvl, d_in):
        if lvl == 0:                                       # a leaf Block (2 convs + lin)
            k1, k2, k3 = jax.random.split(k, 3)
            w1 = glorot_uniform(k1, (d_in, out_dim))
            w2 = glorot_uniform(k2, (out_dim, out_dim))
            wl = glorot_uniform(k3, (2 * out_dim, out_dim))
            b1 = jnp.zeros((1, out_dim), jnp.float32)      # conv biases: zeros init
            b2 = jnp.zeros((1, out_dim), jnp.float32)
            bl = jnp.zeros((1, out_dim), jnp.float32)      # block lin bias: zeros init
            raw_bw1.append(w1); raw_bw2.append(w2); raw_bwl.append(wl); raw_bbl.append(bl)
            # ---- fold (exact in f32; bias propagation uses row-stochastic A_hat) ----
            w1p = jnp.zeros((out_dim, out_dim), jnp.float32).at[:d_in, :].set(w1)
            wl1, wl2 = wl[:out_dim], wl[out_dim:]
            wa = _mm(w1p, wl1)                             # (out, out)
            wb = _mm(w1p, _mm(w2, wl2))                    # (out, out)
            b_fused = _mm(b1, wl1) + _mm(_mm(b1, w2) + b2, wl2) + bl
            blk_w.append(jnp.concatenate([wa, wb], axis=0))  # (2*out, out)
            blk_b.append(b_fused)
            return
        k1, k2, k3 = jax.random.split(k, 3)
        build(k1, lvl - 1, d_in)                           # block1 (consumes d_in)
        build(k2, lvl - 1, out_dim)                        # block2 (consumes out_dim)
        wl = glorot_uniform(k3, (2 * out_dim, out_dim))    # this HLA level's merge lin
        bl = jnp.zeros((1, out_dim), jnp.float32)
        raw_mwl.append(wl); raw_mbl.append(bl)
        mrg_w.append(wl); mrg_b.append(bl)

    build(key, level, in_dim)
    raw = (raw_bw1, raw_bw2, raw_bwl, raw_bbl, raw_mwl, raw_mbl)
    fused = (jnp.stack(blk_w), jnp.stack(blk_b), jnp.stack(mrg_w), jnp.stack(mrg_b))
    return raw, fused


def build_a_hat(edge_index, num_nodes):
    src, dst = edge_index[0], edge_index[1]
    a = jnp.zeros((num_nodes, num_nodes), jnp.float32).at[dst, src].add(1.0)
    a = a + jnp.eye(num_nodes, dtype=jnp.float32)          # self loops
    deg = jnp.sum(a, axis=1, keepdims=True)
    return a / deg                                          # mean aggregation (row-stochastic)


# ----------------------------------------------------------------------------
# Pure-JAX references
#   * unfolded, f32  : the original module semantics (gold standard)
#   * folded         : same math/cast points as the kernel (bf16) or f32 to
#                      validate that the weight-chain fold is exact algebra
# ----------------------------------------------------------------------------

def hla64_reference_unfolded_f32(a_hat, x, raw):
    bw1, bw2, bwl, bbl, mwl, mbl = raw
    counters = {"block": 0, "merge": 0}

    def agg(xf):
        return jnp.einsum("bij,bjf->bif", a_hat, xf, precision=_HIGHEST)

    def block(xf):
        i = counters["block"]; counters["block"] += 1
        h1 = jnp.einsum("bnf,fo->bno", agg(xf), bw1[i], precision=_HIGHEST)   # conv1
        h2 = jnp.einsum("bnf,fo->bno", agg(h1), bw2[i], precision=_HIGHEST)   # conv2 (+dropout=id)
        h = jnp.concatenate([h1, h2], axis=-1)
        return jnp.maximum(jnp.einsum("bnf,fo->bno", h, bwl[i], precision=_HIGHEST) + bbl[i], 0.0)

    def merge(x1, x2):
        j = counters["merge"]; counters["merge"] += 1
        h = jnp.concatenate([x1, x2], axis=-1)
        return jnp.maximum(jnp.einsum("bnf,fo->bno", h, mwl[j], precision=_HIGHEST) + mbl[j], 0.0)

    def rec(level, xin):
        if level == 0:
            return block(xin)
        x1 = rec(level - 1, xin)
        x2 = rec(level - 1, x1)
        return merge(x1, x2)

    return rec(LEVEL, x)


def hla64_reference_folded(a_hat, x, fused, compute_dtype):
    blk_w, blk_b, mrg_w, mrg_b = fused
    cd, f32 = compute_dtype, jnp.float32
    bsz, n, in_dim = x.shape
    out_dim = blk_w.shape[-1]

    x_pad = jnp.zeros((bsz, n, out_dim), f32).at[:, :, :in_dim].set(x)
    a2 = jnp.einsum("bij,bjk->bik", a_hat, a_hat, precision=_HIGHEST)

    a_c, a2_c, x0 = a_hat.astype(cd), a2.astype(cd), x_pad.astype(cd)
    bw, mw = blk_w.astype(cd), mrg_w.astype(cd)
    counters = {"block": 0, "merge": 0}

    def block(xc):
        i = counters["block"]; counters["block"] += 1
        ax = jnp.einsum("bij,bjf->bif", a_c, xc, preferred_element_type=f32)
        a2x = jnp.einsum("bij,bjf->bif", a2_c, xc, preferred_element_type=f32)
        h = jnp.concatenate([ax, a2x], axis=-1).astype(cd)
        out = jnp.einsum("bnf,fo->bno", h, bw[i], preferred_element_type=f32) + blk_b[i]
        out = jnp.maximum(out, 0.0)
        return out, out.astype(cd)

    def merge(x1c, x2c):
        j = counters["merge"]; counters["merge"] += 1
        h = jnp.concatenate([x1c, x2c], axis=-1)
        out = jnp.einsum("bnf,fo->bno", h, mw[j], preferred_element_type=f32) + mrg_b[j]
        out = jnp.maximum(out, 0.0)
        return out, out.astype(cd)

    def rec(level, xc):
        if level == 0:
            return block(xc)
        _, x1c = rec(level - 1, xc)
        _, x2c = rec(level - 1, x1c)
        return merge(x1c, x2c)

    out_f32, _ = rec(LEVEL, x0)
    return out_f32


# ----------------------------------------------------------------------------
# Driver
# ----------------------------------------------------------------------------

if __name__ == "__main__":
    key = jax.random.PRNGKey(0)
    k_x, k_e, k_p = jax.random.split(key, 3)

    batch, num_nodes, num_edges = 2, 16, 40
    in_dim, out_dim = 8, 32

    x = jax.random.normal(k_x, (batch, num_nodes, in_dim), jnp.float32)
    edge_index = jax.random.randint(k_e, (batch, 2, num_edges), 0, num_nodes, jnp.int32)
    a_hat = jnp.stack([build_a_hat(edge_index[b], num_nodes) for b in range(batch)])

    raw, fused = make_hla64_params(k_p, level=LEVEL, in_dim=in_dim, out_dim=out_dim)

    out = jax.block_until_ready(hla64_forward(a_hat, x, fused))
    assert out.shape == (batch, num_nodes, out_dim), out.shape
    assert bool(jnp.all(jnp.isfinite(out)))

    # (1) Pallas kernel vs cast-matched folded pure-JAX reference (tight check of
    #     the kernel mechanics: same folded math, same bf16 cast points).
    ref_b = hla64_reference_folded(a_hat, x, fused, jnp.bfloat16)
    s1 = float(jnp.max(jnp.abs(ref_b))) + 1e-6
    assert bool(jnp.allclose(out, ref_b, rtol=1e-2, atol=1e-2 * s1)), (
        float(jnp.max(jnp.abs(out - ref_b))), s1)

    # (2) Folded algebra (f32) vs the original un-folded module semantics (f32):
    #     validates that the weight-chain fold preserves the forward exactly.
    ref_folded_f32 = hla64_reference_folded(a_hat, x, fused, jnp.float32)
    ref_unfolded_f32 = hla64_reference_unfolded_f32(a_hat, x, raw)
    s2 = float(jnp.max(jnp.abs(ref_unfolded_f32))) + 1e-6
    assert bool(jnp.allclose(ref_folded_f32, ref_unfolded_f32,
                             rtol=5e-3, atol=5e-3 * s2)), (
        float(jnp.max(jnp.abs(ref_folded_f32 - ref_unfolded_f32))), s2)

    print("KERNEL_OK")
</pallas_src>

<mosaic_0001>
module attributes {stable_mosaic.version = 11 : i64} {
  func.func @_hla64_kernel(%arg0: i32, %arg1: memref<1x16x16xbf16, #tpu.memory_space<vmem>>, %arg2: memref<1x16x16xbf16, #tpu.memory_space<vmem>>, %arg3: memref<1x16x32xbf16, #tpu.memory_space<vmem>>, %arg4: memref<32x64x32xbf16, #tpu.memory_space<vmem>>, %arg5: memref<32x1x32xf32, #tpu.memory_space<vmem>>, %arg6: memref<31x64x32xbf16, #tpu.memory_space<vmem>>, %arg7: memref<31x1x32xf32, #tpu.memory_space<vmem>>, %arg8: memref<1x16x32xf32, #tpu.memory_space<vmem>>) attributes {dimension_semantics = [#tpu.dimension_semantics<parallel>], iteration_bounds = array<i64: 2>, scalar_prefetch = 0 : i64, scratch_operands = 0 : i64, tpu.core_type = #tpu.core_type<tc>, window_params = [{transform_indices = @transform_0, window_bounds = array<i64: 1, 16, 16>}, {transform_indices = @transform_1, window_bounds = array<i64: 1, 16, 16>}, {transform_indices = @transform_2, window_bounds = array<i64: 1, 16, 32>}, {pipeline_mode = #tpu.pipeline_mode<synchronous>, transform_indices = @transform_3, window_bounds = array<i64: 32, 64, 32>}, {pipeline_mode = #tpu.pipeline_mode<synchronous>, transform_indices = @transform_4, window_bounds = array<i64: 32, 1, 32>}, {pipeline_mode = #tpu.pipeline_mode<synchronous>, transform_indices = @transform_5, window_bounds = array<i64: 31, 64, 32>}, {pipeline_mode = #tpu.pipeline_mode<synchronous>, transform_indices = @transform_6, window_bounds = array<i64: 31, 1, 32>}, {transform_indices = @transform_7, window_bounds = array<i64: 1, 16, 32>}]} {
    %c0 = arith.constant 0 : index
    %c0_0 = arith.constant 0 : index
    %c0_1 = arith.constant 0 : index
    %0 = vector.load %arg1[%c0, %c0_0, %c0_1] : memref<1x16x16xbf16, #tpu.memory_space<vmem>>, vector<1x16x16xbf16>
    %1 = vector.shape_cast %0 : vector<1x16x16xbf16> to vector<16x16xbf16>
    %c0_2 = arith.constant 0 : index
    %c0_3 = arith.constant 0 : index
    %c0_4 = arith.constant 0 : index
    %2 = vector.load %arg2[%c0_2, %c0_3, %c0_4] : memref<1x16x16xbf16, #tpu.memory_space<vmem>>, vector<1x16x16xbf16>
    %3 = vector.shape_cast %2 : vector<1x16x16xbf16> to vector<16x16xbf16>
    %c0_5 = arith.constant 0 : index
    %c0_6 = arith.constant 0 : index
    %c0_7 = arith.constant 0 : index
    %4 = vector.load %arg3[%c0_5, %c0_6, %c0_7] : memref<1x16x32xbf16, #tpu.memory_space<vmem>>, vector<1x16x32xbf16>
    %5 = vector.shape_cast %4 : vector<1x16x32xbf16> to vector<16x32xbf16>
    %cst = arith.constant dense<0.000000e+00> : vector<16x32xf32>
    %6 = tpu.matmul %1, %5, %cst {dimension_numbers = #tpu.dot_dimension_numbers<[1], [0], [0], [1], [0, 0, 1, 1], [], []>} : vector<16x16xbf16>, vector<16x32xbf16>, vector<16x32xf32> -> vector<16x32xf32>
    %cst_8 = arith.constant dense<0.000000e+00> : vector<16x32xf32>
    %7 = tpu.matmul %3, %5, %cst_8 {dimension_numbers = #tpu.dot_dimension_numbers<[1], [0], [0], [1], [0, 0, 1, 1], [], []>} : vector<16x16xbf16>, vector<16x32xbf16>, vector<16x32xf32> -> vector<16x32xf32>
    %8 = tpu.concatenate %6, %7 in 1 : vector<16x32xf32>, vector<16x32xf32> -> vector<16x64xf32>
    %9 = arith.truncf %8 : vector<16x64xf32> to vector<16x64xbf16>
    %c0_9 = arith.constant 0 : index
    %c0_10 = arith.constant 0 : index
    %c0_11 = arith.constant 0 : index
    %10 = vector.load %arg4[%c0_9, %c0_10, %c0_11] : memref<32x64x32xbf16, #tpu.memory_space<vmem>>, vector<1x64x32xbf16>
    %11 = vector.shape_cast %10 : vector<1x64x32xbf16> to vector<64x32xbf16>
    %cst_12 = arith.constant dense<0.000000e+00> : vector<16x32xf32>
    %12 = tpu.matmul %9, %11, %cst_12 {dimension_numbers = #tpu.dot_dimension_numbers<[1], [0], [0], [1], [0, 0, 1, 1], [], []>} : vector<16x64xbf16>, vector<64x32xbf16>, vector<16x32xf32> -> vector<16x32xf32>
    %c0_13 = arith.constant 0 : index
    %c0_14 = arith.constant 0 : index
    %c0_15 = arith.constant 0 : index
    %13 = vector.load %arg5[%c0_13, %c0_14, %c0_15] : memref<32x1x32xf32, #tpu.memory_space<vmem>>, vector<1x1x32xf32>
    %14 = vector.shape_cast %13 : vector<1x1x32xf32> to vector<1x32xf32>
    %15 = vector.broadcast %14 : vector<1x32xf32> to vector<16x32xf32>
    %16 = arith.addf %12, %15 : vector<16x32xf32>
    %cst_16 = arith.constant 0.000000e+00 : f32
    %17 = vector.broadcast %cst_16 : f32 to vector<16x32xf32>
    %18 = arith.maximumf %16, %17 : vector<16x32xf32>
    %19 = arith.truncf %18 : vector<16x32xf32> to vector<16x32xbf16>
    %cst_17 = arith.constant dense<0.000000e+00> : vector<16x32xf32>
    %20 = tpu.matmul %1, %19, %cst_17 {dimension_numbers = #tpu.dot_dimension_numbers<[1], [0], [0], [1], [0, 0, 1, 1], [], []>} : vector<16x16xbf16>, vector<16x32xbf16>, vector<16x32xf32> -> vector<16x32xf32>
    %cst_18 = arith.constant dense<0.000000e+00> : vector<16x32xf32>
    %21 = tpu.matmul %3, %19, %cst_18 {dimension_numbers = #tpu.dot_dimension_numbers<[1], [0], [0], [1], [0, 0, 1, 1], [], []>} : vector<16x16xbf16>, vector<16x32xbf16>, vector<16x32xf32> -> vector<16x32xf32>
    %22 = tpu.concatenate %20, %21 in 1 : vector<16x32xf32>, vector<16x32xf32> -> vector<16x64xf32>
    %23 = arith.truncf %22 : vector<16x64xf32> to vector<16x64xbf16>
    %c1 = arith.constant 1 : index
    %c0_19 = arith.constant 0 : index
    %c0_20 = arith.constant 0 : index
    %24 = vector.load %arg4[%c1, %c0_19, %c0_20] : memref<32x64x32xbf16, #tpu.memory_space<vmem>>, vector<1x64x32xbf16>
    %25 = vector.shape_cast %24 : vector<1x64x32xbf16> to vector<64x32xbf16>
    %cst_21 = arith.constant dense<0.000000e+00> : vector<16x32xf32>
    %26 = tpu.matmul %23, %25, %cst_21 {dimension_numbers = #tpu.dot_dimension_numbers<[1], [0], [0], [1], [0, 0, 1, 1], [], []>} : vector<16x64xbf16>, vector<64x32xbf16>, vector<16x32xf32> -> vector<16x32xf32>
    %c1_22 = arith.constant 1 : index
    %c0_23 = arith.constant 0 : index
    %c0_24 = arith.constant 0 : index
    %27 = vector.load %arg5[%c1_22, %c0_23, %c0_24] : memref<32x1x32xf32, #tpu.memory_space<vmem>>, vector<1x1x32xf32>
    %28 = vector.shape_cast %27 : vector<1x1x32xf32> to vector<1x32xf32>
    %29 = vector.broadcast %28 : vector<1x32xf32> to vector<16x32xf32>
    %30 = arith.addf %26, %29 : vector<16x32xf32>
    %cst_25 = arith.constant 0.000000e+00 : f32
    %31 = vector.broadcast %cst_25 : f32 to vector<16x32xf32>
    %32 = arith.maximumf %30, %31 : vector<16x32xf32>
    %33 = arith.truncf %32 : vector<16x32xf32> to vector<16x32xbf16>
    %34 = tpu.concatenate %19, %33 in 1 : vector<16x32xbf16>, vector<16x32xbf16> -> vector<16x64xbf16>
    %c0_26 = arith.constant 0 : index
    %c0_27 = arith.constant 0 : index
    %c0_28 = arith.constant 0 : index
    %35 = vector.load %arg6[%c0_26, %c0_27, %c0_28] : memref<31x64x32xbf16, #tpu.memory_space<vmem>>, vector<1x64x32xbf16>
    %36 = vector.shape_cast %35 : vector<1x64x32xbf16> to vector<64x32xbf16>
    %cst_29 = arith.constant dense<0.000000e+00> : vector<16x32xf32>
    %37 = tpu.matmul %34, %36, %cst_29 {dimension_numbers = #tpu.dot_dimension_numbers<[1], [0], [0], [1], [0, 0, 1, 1], [], []>} : vector<16x64xbf16>, vector<64x32xbf16>, vector<16x32xf32> -> vector<16x32xf32>
    %c0_30 = arith.constant 0 : index
    %c0_31 = arith.constant 0 : index
    %c0_32 = arith.constant 0 : index
    %38 = vector.load %arg7[%c0_30, %c0_31, %c0_32] : memref<31x1x32xf32, #tpu.memory_space<vmem>>, vector<1x1x32xf32>
    %39 = vector.shape_cast %38 : vector<1x1x32xf32> to vector<1x32xf32>
    %40 = vector.broadcast %39 : vector<1x32xf32> to vector<16x32xf32>
    %41 = arith.addf %37, %40 : vector<16x32xf32>
    %cst_33 = arith.constant 0.000000e+00 : f32
    %42 = vector.broadcast %cst_33 : f32 to vector<16x32xf32>
    %43 = arith.maximumf %41, %42 : vector<16x32xf32>
    %44 = arith.truncf %43 : vector<16x32xf32> to vector<16x32xbf16>
    %cst_34 = arith.constant dense<0.000000e+00> : vector<16x32xf32>
    %45 = tpu.matmul %1, %44, %cst_34 {dimension_numbers = #tpu.dot_dimension_numbers<[1], [0], [0], [1], [0, 0, 1, 1], [], []>} : vector<16x16xbf16>, vector<16x32xbf16>, vector<16x32xf32> -> vector<16x32xf32>
    %cst_35 = arith.constant dense<0.000000e+00> : vector<16x32xf32>
    %46 = tpu.matmul %3, %44, %cst_35 {dimension_numbers = #tpu.dot_dimension_numbers<[1], [0], [0], [1], [0, 0, 1, 1], [], []>} : vector<16x16xbf16>, vector<16x32xbf16>, vector<16x32xf32> -> vector<16x32xf32>
    %47 = tpu.concatenate %45, %46 in 1 : vector<16x32xf32>, vector<16x32xf32> -> vector<16x64xf32>
    %48 = arith.truncf %47 : vector<16x64xf32> to vector<16x64xbf16>
    %c2 = arith.constant 2 : index
    %c0_36 = arith.constant 0 : index
    %c0_37 = arith.constant 0 : index
    %49 = vector.load %arg4[%c2, %c0_36, %c0_37] : memref<32x64x32xbf16, #tpu.memory_space<vmem>>, vector<1x64x32xbf16>
    %50 = vector.shape_cast %49 : vector<1x64x32xbf16> to vector<64x32xbf16>
    %cst_38 = arith.constant dense<0.000000e+00> : vector<16x32xf32>
    %51 = tpu.matmul %48, %50, %cst_38 {dimension_numbers = #tpu.dot_dimension_numbers<[1], [0], [0], [1], [0, 0, 1, 1], [], []>} : vector<16x64xbf16>, vector<64x32xbf16>, vector<16x32xf32> -> vector<16x32xf32>
    %c2_39 = arith.constant 2 : index
    %c0_40 = arith.constant 0 : index
    %c0_41 = arith.constant 0 : index
    %52 = vector.load %arg5[%c2_39, %c0_40, %c0_41] : memref<32x1x32xf32, #tpu.memory_space<vmem>>, vector<1x1x32xf32>
    %53 = vector.shape_cast %52 : vector<1x1x32xf32> to vector<1x32xf32>
    %54 = vector.broadcast %53 : vector<1x32xf32> to vector<16x32xf32>
    %55 = arith.addf %51, %54 : vector<16x32xf32>
    %cst_42 = arith.constant 0.000000e+00 : f32
    %56 = vector.broadcast %cst_42 : f32 to vector<16x32xf32>
    %57 = arith.maximumf %55, %56 : vector<16x32xf32>
    %58 = arith.truncf %57 : vector<16x32xf32> to vector<16x32xbf16>
    %cst_43 = arith.constant dense<0.000000e+00> : vector<16x32xf32>
    %59 = tpu.matmul %1, %58, %cst_43 {dimension_numbers = #tpu.dot_dimension_numbers<[1], [0], [0], [1], [0, 0, 1, 1], [], []>} : vector<16x16xbf16>, vector<16x32xbf16>, vector<16x32xf32> -> vector<16x32xf32>
    %cst_44 = arith.constant dense<0.000000e+00> : vector<16x32xf32>
    %60 = tpu.matmul %3, %58, %cst_44 {dimension_numbers = #tpu.dot_dimension_numbers<[1], [0], [0], [1], [0, 0, 1, 1], [], []>} : vector<16x16xbf16>, vector<16x32xbf16>, vector<16x32xf32> -> vector<16x32xf32>
    %61 = tpu.concatenate %59, %60 in 1 : vector<16x32xf32>, vector<16x32xf32> -> vector<16x64xf32>
    %62 = arith.truncf %61 : vector<16x64xf32> to vector<16x64xbf16>
    %c3 = arith.constant 3 : index
    %c0_45 = arith.constant 0 : index
    %c0_46 = arith.constant 0 : index
    %63 = vector.load %arg4[%c3, %c0_45, %c0_46] : memref<32x64x32xbf16, #tpu.memory_space<vmem>>, vector<1x64x32xbf16>
    %64 = vector.shape_cast %63 : vector<1x64x32xbf16> to vector<64x32xbf16>
    %cst_47 = arith.constant dense<0.000000e+00> : vector<16x32xf32>
    %65 = tpu.matmul %62, %64, %cst_47 {dimension_numbers = #tpu.dot_dimension_numbers<[1], [0], [0], [1], [0, 0, 1, 1], [], []>} : vector<16x64xbf16>, vector<64x32xbf16>, vector<16x32xf32> -> vector<16x32xf32>
    %c3_48 = arith.constant 3 : index
    %c0_49 = arith.constant 0 : index
    %c0_50 = arith.constant 0 : index
    %66 = vector.load %arg5[%c3_48, %c0_49, %c0_50] : memref<32x1x32xf32, #tpu.memory_space<vmem>>, vector<1x1x32xf32>
    %67 = vector.shape_cast %66 : vector<1x1x32xf32> to vector<1x32xf32>
    %68 = vector.broadcast %67 : vector<1x32xf32> to vector<16x32xf32>
    %69 = arith.addf %65, %68 : vector<16x32xf32>
    %cst_51 = arith.constant 0.000000e+00 : f32
    %70 = vector.broadcast %cst_51 : f32 to vector<16x32xf32>
    %71 = arith.maximumf %69, %70 : vector<16x32xf32>
    %72 = arith.truncf %71 : vector<16x32xf32> to vector<16x32xbf16>
    %73 = tpu.concatenate %58, %72 in 1 : vector<16x32xbf16>, vector<16x32xbf16> -> vector<16x64xbf16>
    %c1_52 = arith.constant 1 : index
    %c0_53 = arith.constant 0 : index
    %c0_54 = arith.constant 0 : index
    %74 = vector.load %arg6[%c1_52, %c0_53, %c0_54] : memref<31x64x32xbf16, #tpu.memory_space<vmem>>, vector<1x64x32xbf16>
    %75 = vector.shape_cast %74 : vector<1x64x32xbf16> to vector<64x32xbf16>
    %cst_55 = arith.constant dense<0.000000e+00> : vector<16x32xf32>
    %76 = tpu.matmul %73, %75, %cst_55 {dimension_numbers = #tpu.dot_dimension_numbers<[1], [0], [0], [1], [0, 0, 1, 1], [], []>} : vector<16x64xbf16>, vector<64x32xbf16>, vector<16x32xf32> -> vector<16x32xf32>
    %c1_56 = arith.constant 1 : index
    %c0_57 = arith.constant 0 : index
    %c0_58 = arith.constant 0 : index
    %77 = vector.load %arg7[%c1_56, %c0_57, %c0_58] : memref<31x1x32xf32, #tpu.memory_space<vmem>>, vector<1x1x32xf32>
    %78 = vector.shape_cast %77 : vector<1x1x32xf32> to vector<1x32xf32>
    %79 = vector.broadcast %78 : vector<1x32xf32> to vector<16x32xf32>
    %80 = arith.addf %76, %79 : vector<16x32xf32>
    %cst_59 = arith.constant 0.000000e+00 : f32
    %81 = vector.broadcast %cst_59 : f32 to vector<16x32xf32>
    %82 = arith.maximumf %80, %81 : vector<16x32xf32>
    %83 = arith.truncf %82 : vector<16x32xf32> to vector<16x32xbf16>
    %84 = tpu.concatenate %44, %83 in 1 : vector<16x32xbf16>, vector<16x32xbf16> -> vector<16x64xbf16>
    %c2_60 = arith.constant 2 : index
    %c0_61 = arith.constant 0 : index
    %c0_62 = arith.constant 0 : index
    %85 = vector.load %arg6[%c2_60, %c0_61, %c0_62] : memref<31x64x32xbf16, #tpu.memory_space<vmem>>, vector<1x64x32xbf16>
    %86 = vector.shape_cast %85 : vector<1x64x32xbf16> to vector<64x32xbf16>
    %cst_63 = arith.constant dense<0.000000e+00> : vector<16x32xf32>
    %87 = tpu.matmul %84, %86, %cst_63 {dimension_numbers = #tpu.dot_dimension_numbers<[1], [0], [0], [1], [0, 0, 1, 1], [], []>} : vector<16x64xbf16>, vector<64x32xbf16>, vector<16x32xf32> -> vector<16x32xf32>
    %c2_64 = arith.constant 2 : index
    %c0_65 = arith.constant 0 : index
    %c0_66 = arith.constant 0 : index
    %88 = vector.load %arg7[%c2_64, %c0_65, %c0_66] : memref<31x1x32xf32, #tpu.memory_space<vmem>>, vector<1x1x32xf32>
    %89 = vector.shape_cast %88 : vector<1x1x32xf32> to vector<1x32xf32>
    %90 = vector.broadcast %89 : vector<1x32xf32> to vector<16x32xf32>
    %91 = arith.addf %87, %90 : vector<16x32xf32>
    %cst_67 = arith.constant 0.000000e+00 : f32
    %92 = vector.broadcast %cst_67 : f32 to vector<16x32xf32>
    %93 = arith.maximumf %91, %92 : vector<16x32xf32>
    %94 = arith.truncf %93 : vector<16x32xf32> to vector<16x32xbf16>
    %cst_68 = arith.constant dense<0.000000e+00> : vector<16x32xf32>
    %95 = tpu.matmul %1, %94, %cst_68 {dimension_numbers = #tpu.dot_dimension_numbers<[1], [0], [0], [1], [0, 0, 1, 1], [], []>} : vector<16x16xbf16>, vector<16x32xbf16>, vector<16x32xf32> -> vector<16x32xf32>
    %cst_69 = arith.constant dense<0.000000e+00> : vector<16x32xf32>
    %96 = tpu.matmul %3, %94, %cst_69 {dimension_numbers = #tpu.dot_dimension_numbers<[1], [0], [0], [1], [0, 0, 1, 1], [], []>} : vector<16x16xbf16>, vector<16x32xbf16>, vector<16x32xf32> -> vector<16x32xf32>
    %97 = tpu.concatenate %95, %96 in 1 : vector<16x32xf32>, vector<16x32xf32> -> vector<16x64xf32>
    %98 = arith.truncf %97 : vector<16x64xf32> to vector<16x64xbf16>
    %c4 = arith.constant 4 : index
    %c0_70 = arith.constant 0 : index
    %c0_71 = arith.constant 0 : index
    %99 = vector.load %arg4[%c4, %c0_70, %c0_71] : memref<32x64x32xbf16, #tpu.memory_space<vmem>>, vector<1x64x32xbf16>
    %100 = vector.shape_cast %99 : vector<1x64x32xbf16> to vector<64x32xbf16>
    %cst_72 = arith.constant dense<0.000000e+00> : vector<16x32xf32>
    %101 = tpu.matmul %98, %100, %cst_72 {dimension_numbers = #tpu.dot_dimension_numbers<[1], [0], [0], [1], [0, 0, 1, 1], [], []>} : vector<16x64xbf16>, vector<64x32xbf16>, vector<16x32xf32> -> vector<16x32xf32>
    %c4_73 = arith.constant 4 : index
    %c0_74 = arith.constant 0 : index
    %c0_75 = arith.constant 0 : index
    %102 = vector.load %arg5[%c4_73, %c0_74, %c0_75] : memref<32x1x32xf32, #tpu.memory_space<vmem>>, vector<1x1x32xf32>
    %103 = vector.shape_cast %102 : vector<1x1x32xf32> to vector<1x32xf32>
    %104 = vector.broadcast %103 : vector<1x32xf32> to vector<16x32xf32>
    %105 = arith.addf %101, %104 : vector<16x32xf32>
    %cst_76 = arith.constant 0.000000e+00 : f32
    %106 = vector.broadcast %cst_76 : f32 to vector<16x32xf32>
    %107 = arith.maximumf %105, %106 : vector<16x32xf32>
    %108 = arith.truncf %107 : vector<16x32xf32> to vector<16x32xbf16>
    %cst_77 = arith.constant dense<0.000000e+00> : vector<16x32xf32>
    %109 = tpu.matmul %1, %108, %cst_77 {dimension_numbers = #tpu.dot_dimension_numbers<[1], [0], [0], [1], [0, 0, 1, 1], [], []>} : vector<16x16xbf16>, vector<16x32xbf16>, vector<16x32xf32> -> vector<16x32xf32>
    %cst_78 = arith.constant dense<0.000000e+00> : vector<16x32xf32>
    %110 = tpu.matmul %3, %108, %cst_78 {dimension_numbers = #tpu.dot_dimension_numbers<[1], [0], [0], [1], [0, 0, 1, 1], [], []>} : vector<16x16xbf16>, vector<16x32xbf16>, vector<16x32xf32> -> vector<16x32xf32>
    %111 = tpu.concatenate %109, %110 in 1 : vector<16x32xf32>, vector<16x32xf32> -> vector<16x64xf32>
    %112 = arith.truncf %111 : vector<16x64xf32> to vector<16x64xbf16>
    %c5 = arith.constant 5 : index
    %c0_79 = arith.constant 0 : index
    %c0_80 = arith.constant 0 : index
    %113 = vector.load %arg4[%c5, %c0_79, %c0_80] : memref<32x64x32xbf16, #tpu.memory_space<vmem>>, vector<1x64x32xbf16>
    %114 = vector.shape_cast %113 : vector<1x64x32xbf16> to vector<64x32xbf16>
    %cst_81 = arith.constant dense<0.000000e+00> : vector<16x32xf32>
    %115 = tpu.matmul %112, %114, %cst_81 {dimension_numbers = #tpu.dot_dimension_numbers<[1], [0], [0], [1], [0, 0, 1, 1], [], []>} : vector<16x64xbf16>, vector<64x32xbf16>, vector<16x32xf32> -> vector<16x32xf32>
    %c5_82 = arith.constant 5 : index
    %c0_83 = arith.constant 0 : index
    %c0_84 = arith.constant 0 : index
    %116 = vector.load %arg5[%c5_82, %c0_83, %c0_84] : memref<32x1x32xf32, #tpu.memory_space<vmem>>, vector<1x1x32xf32>
    %117 = vector.shape_cast %116 : vector<1x1x32xf32> to vector<1x32xf32>
    %118 = vector.broadcast %117 : vector<1x32xf32> to vector<16x32xf32>
    %119 = arith.addf %115, %118 : vector<16x32xf32>
    %cst_85 = arith.constant 0.000000e+00 : f32
    %120 = vector.broadcast %cst_85 : f32 to vector<16x32xf32>
    %121 = arith.maximumf %119, %120 : vector<16x32xf32>
    %122 = arith.truncf %121 : vector<16x32xf32> to vector<16x32xbf16>
    %123 = tpu.concatenate %108, %122 in 1 : vector<16x32xbf16>, vector<16x32xbf16> -> vector<16x64xbf16>
    %c3_86 = arith.constant 3 : index
    %c0_87 = arith.constant 0 : index
    %c0_88 = arith.constant 0 : index
    %124 = vector.load %arg6[%c3_86, %c0_87, %c0_88] : memref<31x64x32xbf16, #tpu.memory_space<vmem>>, vector<1x64x32xbf16>
    %125 = vector.shape_cast %124 : vector<1x64x32xbf16> to vector<64x32xbf16>
    %cst_89 = arith.constant dense<0.000000e+00> : vector<16x32xf32>
    %126 = tpu.matmul %123, %125, %cst_89 {dimension_numbers = #tpu.dot_dimension_numbers<[1], [0], [0], [1], [0, 0, 1, 1], [], []>} : vector<16x64xbf16>, vector<64x32xbf16>, vector<16x32xf32> -> vector<16x32xf32>
    %c3_90 = arith.constant 3 : index
    %c0_91 = arith.constant 0 : index
    %c0_92 = arith.constant 0 : index
    %127 = vector.load %arg7[%c3_90, %c0_91, %c0_92] : memref<31x1x32xf32, #tpu.memory_space<vmem>>, vector<1x1x32xf32>
    %128 = vector.shape_cast %127 : vector<1x1x32xf32> to vector<1x32xf32>
    %129 = vector.broadcast %128 : vector<1x32xf32> to vector<16x32xf32>
    %130 = arith.addf %126, %129 : vector<16x32xf32>
    %cst_93 = arith.constant 0.000000e+00 : f32
    %131 = vector.broadcast %cst_93 : f32 to vector<16x32xf32>
    %132 = arith.maximumf %130, %131 : vector<16x32xf32>
    %133 = arith.truncf %132 : vector<16x32xf32> to vector<16x32xbf16>
    %cst_94 = arith.constant dense<0.000000e+00> : vector<16x32xf32>
    %134 = tpu.matmul %1, %133, %cst_94 {dimension_numbers = #tpu.dot_dimension_numbers<[1], [0], [0], [1], [0, 0, 1, 1], [], []>} : vector<16x16xbf16>, vector<16x32xbf16>, vector<16x32xf32> -> vector<16x32xf32>
    %cst_95 = arith.constant dense<0.000000e+00> : vector<16x32xf32>
    %135 = tpu.matmul %3, %133, %cst_95 {dimension_numbers = #tpu.dot_dimension_numbers<[1], [0], [0], [1], [0, 0, 1, 1], [], []>} : vector<16x16xbf16>, vector<16x32xbf16>, vector<16x32xf32> -> vector<16x32xf32>
    %136 = tpu.concatenate %134, %135 in 1 : vector<16x32xf32>, vector<16x32xf32> -> vector<16x64xf32>
    %137 = arith.truncf %136 : vector<16x64xf32> to vector<16x64xbf16>
    %c6 = arith.constant 6 : index
    %c0_96 = arith.constant 0 : index
    %c0_97 = arith.constant 0 : index
    %138 = vector.load %arg4[%c6, %c0_96, %c0_97] : memref<32x64x32xbf16, #tpu.memory_space<vmem>>, vector<1x64x32xbf16>
    %139 = vector.shape_cast %138 : vector<1x64x32xbf16> to vector<64x32xbf16>
    %cst_98 = arith.constant dense<0.000000e+00> : vector<16x32xf32>
    %140 = tpu.matmul %137, %139, %cst_98 {dimension_numbers = #tpu.dot_dimension_numbers<[1], [0], [0], [1], [0, 0, 1, 1], [], []>} : vector<16x64xbf16>, vector<64x32xbf16>, vector<16x32xf32> -> vector<16x32xf32>
    %c6_99 = arith.constant 6 : index
    %c0_100 = arith.constant 0 : index
    %c0_101 = arith.constant 0 : index
    %141 = vector.load %arg5[%c6_99, %c0_100, %c0_101] : memref<32x1x32xf32, #tpu.memory_space<vmem>>, vector<1x1x32xf32>
    %142 = vector.shape_cast %141 : vector<1x1x32xf32> to vector<1x32xf32>
    %143 = vector.broadcast %142 : vector<1x32xf32> to vector<16x32xf32>
    %144 = arith.addf %140, %143 : vector<16x32xf32>
    %cst_102 = arith.constant 0.000000e+00 : f32
    %145 = vector.broadcast %cst_102 : f32 to vector<16x32xf32>
    %146 = arith.maximumf %144, %145 : vector<16x32xf32>
    %147 = arith.truncf %146 : vector<16x32xf32> to vector<16x32xbf16>
    %cst_103 = arith.constant dense<0.000000e+00> : vector<16x32xf32>
    %148 = tpu.matmul %1, %147, %cst_103 {dimension_numbers = #tpu.dot_dimension_numbers<[1], [0], [0], [1], [0, 0, 1, 1], [], []>} : vector<16x16xbf16>, vector<16x32xbf16>, vector<16x32xf32> -> vector<16x32xf32>
    %cst_104 = arith.constant dense<0.000000e+00> : vector<16x32xf32>
    %149 = tpu.matmul %3, %147, %cst_104 {dimension_numbers = #tpu.dot_dimension_numbers<[1], [0], [0], [1], [0, 0, 1, 1], [], []>} : vector<16x16xbf16>, vector<16x32xbf16>, vector<16x32xf32> -> vector<16x32xf32>
    %150 = tpu.concatenate %148, %149 in 1 : vector<16x32xf32>, vector<16x32xf32> -> vector<16x64xf32>
    %151 = arith.truncf %150 : vector<16x64xf32> to vector<16x64xbf16>
    %c7 = arith.constant 7 : index
    %c0_105 = arith.constant 0 : index
    %c0_106 = arith.constant 0 : index
    %152 = vector.load %arg4[%c7, %c0_105, %c0_106] : memref<32x64x32xbf16, #tpu.memory_space<vmem>>, vector<1x64x32xbf16>
    %153 = vector.shape_cast %152 : vector<1x64x32xbf16> to vector<64x32xbf16>
    %cst_107 = arith.constant dense<0.000000e+00> : vector<16x32xf32>
    %154 = tpu.matmul %151, %153, %cst_107 {dimension_numbers = #tpu.dot_dimension_numbers<[1], [0], [0], [1], [0, 0, 1, 1], [], []>} : vector<16x64xbf16>, vector<64x32xbf16>, vector<16x32xf32> -> vector<16x32xf32>
    %c7_108 = arith.constant 7 : index
    %c0_109 = arith.constant 0 : index
    %c0_110 = arith.constant 0 : index
    %155 = vector.load %arg5[%c7_108, %c0_109, %c0_110] : memref<32x1x32xf32, #tpu.memory_space<vmem>>, vector<1x1x32xf32>
    %156 = vector.shape_cast %155 : vector<1x1x32xf32> to vector<1x32xf32>
    %157 = vector.broadcast %156 : vector<1x32xf32> to vector<16x32xf32>
    %158 = arith.addf %154, %157 : vector<16x32xf32>
    %cst_111 = arith.constant 0.000000e+00 : f32
    %159 = vector.broadcast %cst_111 : f32 to vector<16x32xf32>
    %160 = arith.maximumf %158, %159 : vector<16x32xf32>
    %161 = arith.truncf %160 : vector<16x32xf32> to vector<16x32xbf16>
    %162 = tpu.concatenate %147, %161 in 1 : vector<16x32xbf16>, vector<16x32xbf16> -> vector<16x64xbf16>
    %c4_112 = arith.constant 4 : index
    %c0_113 = arith.constant 0 : index
    %c0_114 = arith.constant 0 : index
    %163 = vector.load %arg6[%c4_112, %c0_113, %c0_114] : memref<31x64x32xbf16, #tpu.memory_space<vmem>>, vector<1x64x32xbf16>
    %164 = vector.shape_cast %163 : vector<1x64x32xbf16> to vector<64x32xbf16>
    %cst_115 = arith.constant dense<0.000000e+00> : vector<16x32xf32>
    %165 = tpu.matmul %162, %164, %cst_115 {dimension_numbers = #tpu.dot_dimension_numbers<[1], [0], [0], [1], [0, 0, 1, 1], [], []>} : vector<16x64xbf16>, vector<64x32xbf16>, vector<16x32xf32> -> vector<16x32xf32>
    %c4_116 = arith.constant 4 : index
    %c0_117 = arith.constant 0 : index
    %c0_118 = arith.constant 0 : index
    %166 = vector.load %arg7[%c4_116, %c0_117, %c0_118] : memref<31x1x32xf32, #tpu.memory_space<vmem>>, vector<1x1x32xf32>
    %167 = vector.shape_cast %166 : vector<1x1x32xf32> to vector<1x32xf32>
    %168 = vector.broadcast %167 : vector<1x32xf32> to vector<16x32xf32>
    %169 = arith.addf %165, %168 : vector<16x32xf32>
    %cst_119 = arith.constant 0.000000e+00 : f32
    %170 = vector.broadcast %cst_119 : f32 to vector<16x32xf32>
    %171 = arith.maximumf %169, %170 : vector<16x32xf32>
    %172 = arith.truncf %171 : vector<16x32xf32> to vector<16x32xbf16>
    %173 = tpu.concatenate %133, %172 in 1 : vector<16x32xbf16>, vector<16x32xbf16> -> vector<16x64xbf16>
    %c5_120 = arith.constant 5 : index
    %c0_121 = arith.constant 0 : index
    %c0_122 = arith.constant 0 : index
    %174 = vector.load %arg6[%c5_120, %c0_121, %c0_122] : memref<31x64x32xbf16, #tpu.memory_space<vmem>>, vector<1x64x32xbf16>
    %175 = vector.shape_cast %174 : vector<1x64x32xbf16> to vector<64x32xbf16>
    %cst_123 = arith.constant dense<0.000000e+00> : vector<16x32xf32>
    %176 = tpu.matmul %173, %175, %cst_123 {dimension_numbers = #tpu.dot_dimension_numbers<[1], [0], [0], [1], [0, 0, 1, 1], [], []>} : vector<16x64xbf16>, vector<64x32xbf16>, vector<16x32xf32> -> vector<16x32xf32>
    %c5_124 = arith.constant 5 : index
    %c0_125 = arith.constant 0 : index
    %c0_126 = arith.constant 0 : index
    %177 = vector.load %arg7[%c5_124, %c0_125, %c0_126] : memref<31x1x32xf32, #tpu.memory_space<vmem>>, vector<1x1x32xf32>
    %178 = vector.shape_cast %177 : vector<1x1x32xf32> to vector<1x32xf32>
    %179 = vector.broadcast %178 : vector<1x32xf32> to vector<16x32xf32>
    %180 = arith.addf %176, %179 : vector<16x32xf32>
    %cst_127 = arith.constant 0.000000e+00 : f32
    %181 = vector.broadcast %cst_127 : f32 to vector<16x32xf32>
    %182 = arith.maximumf %180, %181 : vector<16x32xf32>
    %183 = arith.truncf %182 : vector<16x32xf32> to vector<16x32xbf16>
    %184 = tpu.concatenate %94, %183 in 1 : vector<16x32xbf16>, vector<16x32xbf16> -> vector<16x64xbf16>
    %c6_128 = arith.constant 6 : index
    %c0_129 = arith.constant 0 : index
    %c0_130 = arith.constant 0 : index
    %185 = vector.load %arg6[%c6_128, %c0_129, %c0_130] : memref<31x64x32xbf16, #tpu.memory_space<vmem>>, vector<1x64x32xbf16>
    %186 = vector.shape_cast %185 : vector<1x64x32xbf16> to vector<64x32xbf16>
    %cst_131 = arith.constant dense<0.000000e+00> : vector<16x32xf32>
    %187 = tpu.matmul %184, %186, %cst_131 {dimension_numbers = #tpu.dot_dimension_numbers<[1], [0], [0], [1], [0, 0, 1, 1], [], []>} : vector<16x64xbf16>, vector<64x32xbf16>, vector<16x32xf32> -> vector<16x32xf32>
    %c6_132 = arith.constant 6 : index
    %c0_133 = arith.constant 0 : index
    %c0_134 = arith.constant 0 : index
    %188 = vector.load %arg7[%c6_132, %c0_133, %c0_134] : memref<31x1x32xf32, #tpu.memory_space<vmem>>, vector<1x1x32xf32>
    %189 = vector.shape_cast %188 : vector<1x1x32xf32> to vector<1x32xf32>
    %190 = vector.broadcast %189 : vector<1x32xf32> to vector<16x32xf32>
    %191 = arith.addf %187, %190 : vector<16x32xf32>
    %cst_135 = arith.constant 0.000000e+00 : f32
    %192 = vector.broadcast %cst_135 : f32 to vector<16x32xf32>
    %193 = arith.maximumf %191, %192 : vector<16x32xf32>
    %194 = arith.truncf %193 : vector<16x32xf32> to vector<16x32xbf16>
    %cst_136 = arith.constant dense<0.000000e+00> : vector<16x32xf32>
    %195 = tpu.matmul %1, %194, %cst_136 {dimension_numbers = #tpu.dot_dimension_numbers<[1], [0], [0], [1], [0, 0, 1, 1], [], []>} : vector<16x16xbf16>, vector<16x32xbf16>, vector<16x32xf32> -> vector<16x32xf32>
    %cst_137 = arith.constant dense<0.000000e+00> : vector<16x32xf32>
    %196 = tpu.matmul %3, %194, %cst_137 {dimension_numbers = #tpu.dot_dimension_numbers<[1], [0], [0], [1], [0, 0, 1, 1], [], []>} : vector<16x16xbf16>, vector<16x32xbf16>, vector<16x32xf32> -> vector<16x32xf32>
    %197 = tpu.concatenate %195, %196 in 1 : vector<16x32xf32>, vector<16x32xf32> -> vector<16x64xf32>
    %198 = arith.truncf %197 : vector<16x64xf32> to vector<16x64xbf16>
    %c8 = arith.constant 8 : index
    %c0_138 = arith.constant 0 : index
    %c0_139 = arith.constant 0 : index
    %199 = vector.load %arg4[%c8, %c0_138, %c0_139] : memref<32x64x32xbf16, #tpu.memory_space<vmem>>, vector<1x64x32xbf16>
    %200 = vector.shape_cast %199 : vector<1x64x32xbf16> to vector<64x32xbf16>
    %cst_140 = arith.constant dense<0.000000e+00> : vector<16x32xf32>
    %201 = tpu.matmul %198, %200, %cst_140 {dimension_numbers = #tpu.dot_dimension_numbers<[1], [0], [0], [1], [0, 0, 1, 1], [], []>} : vector<16x64xbf16>, vector<64x32xbf16>, vector<16x32xf32> -> vector<16x32xf32>
    %c8_141 = arith.constant 8 : index
    %c0_142 = arith.constant 0 : index
    %c0_143 = arith.constant 0 : index
    %202 = vector.load %arg5[%c8_141, %c0_142, %c0_143] : memref<32x1x32xf32, #tpu.memory_space<vmem>>, vector<1x1x32xf32>
    %203 = vector.shape_cast %202 : vector<1x1x32xf32> to vector<1x32xf32>
    %204 = vector.broadcast %203 : vector<1x32xf32> to vector<16x32xf32>
    %205 = arith.addf %201, %204 : vector<16x32xf32>
    %cst_144 = arith.constant 0.000000e+00 : f32
    %206 = vector.broadcast %cst_144 : f32 to vector<16x32xf32>
    %207 = arith.maximumf %205, %206 : vector<16x32xf32>
    %208 = arith.truncf %207 : vector<16x32xf32> to vector<16x32xbf16>
    %cst_145 = arith.constant dense<0.000000e+00> : vector<16x32xf32>
    %209 = tpu.matmul %1, %208, %cst_145 {dimension_numbers = #tpu.dot_dimension_numbers<[1], [0], [0], [1], [0, 0, 1, 1], [], []>} : vector<16x16xbf16>, vector<16x32xbf16>, vector<16x32xf32> -> vector<16x32xf32>
    %cst_146 = arith.constant dense<0.000000e+00> : vector<16x32xf32>
    %210 = tpu.matmul %3, %208, %cst_146 {dimension_numbers = #tpu.dot_dimension_numbers<[1], [0], [0], [1], [0, 0, 1, 1], [], []>} : vector<16x16xbf16>, vector<16x32xbf16>, vector<16x32xf32> -> vector<16x32xf32>
    %211 = tpu.concatenate %209, %210 in 1 : vector<16x32xf32>, vector<16x32xf32> -> vector<16x64xf32>
    %212 = arith.truncf %211 : vector<16x64xf32> to vector<16x64xbf16>
    %c9 = arith.constant 9 : index
    %c0_147 = arith.constant 0 : index
    %c0_148 = arith.constant 0 : index
    %213 = vector.load %arg4[%c9, %c0_147, %c0_148] : memref<32x64x32xbf16, #tpu.memory_space<vmem>>, vector<1x64x32xbf16>
    %214 = vector.shape_cast %213 : vector<1x64x32xbf16> to vector<64x32xbf16>
    %cst_149 = arith.constant dense<0.000000e+00> : vector<16x32xf32>
    %215 = tpu.matmul %212, %214, %cst_149 {dimension_numbers = #tpu.dot_dimension_numbers<[1], [0], [0], [1], [0, 0, 1, 1], [], []>} : vector<16x64xbf16>, vector<64x32xbf16>, vector<16x32xf32> -> vector<16x32xf32>
    %c9_150 = arith.constant 9 : index
    %c0_151 = arith.constant 0 : index
    %c0_152 = arith.constant 0 : index
    %216 = vector.load %arg5[%c9_150, %c0_151, %c0_152] : memref<32x1x32xf32, #tpu.memory_space<vmem>>, vector<1x1x32xf32>
    %217 = vector.shape_cast %216 : vector<1x1x32xf32> to vector<1x32xf32>
    %218 = vector.broadcast %217 : vector<1x32xf32> to vector<16x32xf32>
    %219 = arith.addf %215, %218 : vector<16x32xf32>
    %cst_153 = arith.constant 0.000000e+00 : f32
    %220 = vector.broadcast %cst_153 : f32 to vector<16x32xf32>
    %221 = arith.maximumf %219, %220 : vector<16x32xf32>
    %222 = arith.truncf %221 : vector<16x32xf32> to vector<16x32xbf16>
    %223 = tpu.concatenate %208, %222 in 1 : vector<16x32xbf16>, vector<16x32xbf16> -> vector<16x64xbf16>
    %c7_154 = arith.constant 7 : index
    %c0_155 = arith.constant 0 : index
    %c0_156 = arith.constant 0 : index
    %224 = vector.load %arg6[%c7_154, %c0_155, %c0_156] : memref<31x64x32xbf16, #tpu.memory_space<vmem>>, vector<1x64x32xbf16>
    %225 = vector.shape_cast %224 : vector<1x64x32xbf16> to vector<64x32xbf16>
    %cst_157 = arith.constant dense<0.000000e+00> : vector<16x32xf32>
    %226 = tpu.matmul %223, %225, %cst_157 {dimension_numbers = #tpu.dot_dimension_numbers<[1], [0], [0], [1], [0, 0, 1, 1], [], []>} : vector<16x64xbf16>, vector<64x32xbf16>, vector<16x32xf32> -> vector<16x32xf32>
    %c7_158 = arith.constant 7 : index
    %c0_159 = arith.constant 0 : index
    %c0_160 = arith.constant 0 : index
    %227 = vector.load %arg7[%c7_158, %c0_159, %c0_160] : memref<31x1x32xf32, #tpu.memory_space<vmem>>, vector<1x1x32xf32>
    %228 = vector.shape_cast %227 : vector<1x1x32xf32> to vector<1x32xf32>
    %229 = vector.broadcast %228 : vector<1x32xf32> to vector<16x32xf32>
    %230 = arith.addf %226, %229 : vector<16x32xf32>
    %cst_161 = arith.constant 0.000000e+00 : f32
    %231 = vector.broadcast %cst_161 : f32 to vector<16x32xf32>
    %232 = arith.maximumf %230, %231 : vector<16x32xf32>
    %233 = arith.truncf %232 : vector<16x32xf32> to vector<16x32xbf16>
    %cst_162 = arith.constant dense<0.000000e+00> : vector<16x32xf32>
    %234 = tpu.matmul %1, %233, %cst_162 {dimension_numbers = #tpu.dot_dimension_numbers<[1], [0], [0], [1], [0, 0, 1, 1], [], []>} : vector<16x16xbf16>, vector<16x32xbf16>, vector<16x32xf32> -> vector<16x32xf32>
    %cst_163 = arith.constant dense<0.000000e+00> : vector<16x32xf32>
    %235 = tpu.matmul %3, %233, %cst_163 {dimension_numbers = #tpu.dot_dimension_numbers<[1], [0], [0], [1], [0, 0, 1, 1], [], []>} : vector<16x16xbf16>, vector<16x32xbf16>, vector<16x32xf32> -> vector<16x32xf32>
    %236 = tpu.concatenate %234, %235 in 1 : vector<16x32xf32>, vector<16x32xf32> -> vector<16x64xf32>
    %237 = arith.truncf %236 : vector<16x64xf32> to vector<16x64xbf16>
    %c10 = arith.constant 10 : index
    %c0_164 = arith.constant 0 : index
    %c0_165 = arith.constant 0 : index
    %238 = vector.load %arg4[%c10, %c0_164, %c0_165] : memref<32x64x32xbf16, #tpu.memory_space<vmem>>, vector<1x64x32xbf16>
    %239 = vector.shape_cast %238 : vector<1x64x32xbf16> to vector<64x32xbf16>
    %cst_166 = arith.constant dense<0.000000e+00> : vector<16x32xf32>
    %240 = tpu.matmul %237, %239, %cst_166 {dimension_numbers = #tpu.dot_dimension_numbers<[1], [0], [0], [1], [0, 0, 1, 1], [], []>} : vector<16x64xbf16>, vector<64x32xbf16>, vector<16x32xf32> -> vector<16x32xf32>
    %c10_167 = arith.constant 10 : index
    %c0_168 = arith.constant 0 : index
    %c0_169 = arith.constant 0 : index
    %241 = vector.load %arg5[%c10_167, %c0_168, %c0_169] : memref<32x1x32xf32, #tpu.memory_space<vmem>>, vector<1x1x32xf32>
    %242 = vector.shape_cast %241 : vector<1x1x32xf32> to vector<1x32xf32>
    %243 = vector.broadcast %242 : vector<1x32xf32> to vector<16x32xf32>
    %244 = arith.addf %240, %243 : vector<16x32xf32>
    %cst_170 = arith.constant 0.000000e+00 : f32
    %245 = vector.broadcast %cst_170 : f32 to vector<16x32xf32>
    %246 = arith.maximumf %244, %245 : vector<16x32xf32>
    %247 = arith.truncf %246 : vector<16x32xf32> to vector<16x32xbf16>
    %cst_171 = arith.constant dense<0.000000e+00> : vector<16x32xf32>
    %248 = tpu.matmul %1, %247, %cst_171 {dimension_numbers = #tpu.dot_dimension_numbers<[1], [0], [0], [1], [0, 0, 1, 1], [], []>} : vector<16x16xbf16>, vector<16x32xbf16>, vector<16x32xf32> -> vector<16x32xf32>
    %cst_172 = arith.constant dense<0.000000e+00> : vector<16x32xf32>
    %249 = tpu.matmul %3, %247, %cst_172 {dimension_numbers = #tpu.dot_dimension_numbers<[1], [0], [0], [1], [0, 0, 1, 1], [], []>} : vector<16x16xbf16>, vector<16x32xbf16>, vector<16x32xf32> -> vector<16x32xf32>
    %250 = tpu.concatenate %248, %249 in 1 : vector<16x32xf32>, vector<16x32xf32> -> vector<16x64xf32>
    %251 = arith.truncf %250 : vector<16x64xf32> to vector<16x64xbf16>
    %c11 = arith.constant 11 : index
    %c0_173 = arith.constant 0 : index
    %c0_174 = arith.constant 0 : index
    %252 = vector.load %arg4[%c11, %c0_173, %c0_174] : memref<32x64x32xbf16, #tpu.memory_space<vmem>>, vector<1x64x32xbf16>
    %253 = vector.shape_cast %252 : vector<1x64x32xbf16> to vector<64x32xbf16>
    %cst_175 = arith.constant dense<0.000000e+00> : vector<16x32xf32>
    %254 = tpu.matmul %251, %253, %cst_175 {dimension_numbers = #tpu.dot_dimension_numbers<[1], [0], [0], [1], [0, 0, 1, 1], [], []>} : vector<16x64xbf16>, vector<64x32xbf16>, vector<16x32xf32> -> vector<16x32xf32>
    %c11_176 = arith.constant 11 : index
    %c0_177 = arith.constant 0 : index
    %c0_178 = arith.constant 0 : index
    %255 = vector.load %arg5[%c11_176, %c0_177, %c0_178] : memref<32x1x32xf32, #tpu.memory_space<vmem>>, vector<1x1x32xf32>
    %256 = vector.shape_cast %255 : vector<1x1x32xf32> to vector<1x32xf32>
    %257 = vector.broadcast %256 : vector<1x32xf32> to vector<16x32xf32>
    %258 = arith.addf %254, %257 : vector<16x32xf32>
    %cst_179 = arith.constant 0.000000e+00 : f32
    %259 = vector.broadcast %cst_179 : f32 to vector<16x32xf32>
    %260 = arith.maximumf %258, %259 : vector<16x32xf32>
    %261 = arith.truncf %260 : vector<16x32xf32> to vector<16x32xbf16>
    %262 = tpu.concatenate %247, %261 in 1 : vector<16x32xbf16>, vector<16x32xbf16> -> vector<16x64xbf16>
    %c8_180 = arith.constant 8 : index
    %c0_181 = arith.constant 0 : index
    %c0_182 = arith.constant 0 : index
    %263 = vector.load %arg6[%c8_180, %c0_181, %c0_182] : memref<31x64x32xbf16, #tpu.memory_space<vmem>>, vector<1x64x32xbf16>
    %264 = vector.shape_cast %263 : vector<1x64x32xbf16> to vector<64x32xbf16>
    %cst_183 = arith.constant dense<0.000000e+00> : vector<16x32xf32>
    %265 = tpu.matmul %262, %264, %cst_183 {dimension_numbers = #tpu.dot_dimension_numbers<[1], [0], [0], [1], [0, 0, 1, 1], [], []>} : vector<16x64xbf16>, vector<64x32xbf16>, vector<16x32xf32> -> vector<16x32xf32>
    %c8_184 = arith.constant 8 : index
    %c0_185 = arith.constant 0 : index
    %c0_186 = arith.constant 0 : index
    %266 = vector.load %arg7[%c8_184, %c0_185, %c0_186] : memref<31x1x32xf32, #tpu.memory_space<vmem>>, vector<1x1x32xf32>
    %267 = vector.shape_cast %266 : vector<1x1x32xf32> to vector<1x32xf32>
    %268 = vector.broadcast %267 : vector<1x32xf32> to vector<16x32xf32>
    %269 = arith.addf %265, %268 : vector<16x32xf32>
    %cst_187 = arith.constant 0.000000e+00 : f32
    %270 = vector.broadcast %cst_187 : f32 to vector<16x32xf32>
    %271 = arith.maximumf %269, %270 : vector<16x32xf32>
    %272 = arith.truncf %271 : vector<16x32xf32> to vector<16x32xbf16>
    %273 = tpu.concatenate %233, %272 in 1 : vector<16x32xbf16>, vector<16x32xbf16> -> vector<16x64xbf16>
    %c9_188 = arith.constant 9 : index
    %c0_189 = arith.constant 0 : index
    %c0_190 = arith.constant 0 : index
    %274 = vector.load %arg6[%c9_188, %c0_189, %c0_190] : memref<31x64x32xbf16, #tpu.memory_space<vmem>>, vector<1x64x32xbf16>
    %275 = vector.shape_cast %274 : vector<1x64x32xbf16> to vector<64x32xbf16>
    %cst_191 = arith.constant dense<0.000000e+00> : vector<16x32xf32>
    %276 = tpu.matmul %273, %275, %cst_191 {dimension_numbers = #tpu.dot_dimension_numbers<[1], [0], [0], [1], [0, 0, 1, 1], [], []>} : vector<16x64xbf16>, vector<64x32xbf16>, vector<16x32xf32> -> vector<16x32xf32>
    %c9_192 = arith.constant 9 : index
    %c0_193 = arith.constant 0 : index
    %c0_194 = arith.constant 0 : index
    %277 = vector.load %arg7[%c9_192, %c0_193, %c0_194] : memref<31x1x32xf32, #tpu.memory_space<vmem>>, vector<1x1x32xf32>
    %278 = vector.shape_cast %277 : vector<1x1x32xf32> to vector<1x32xf32>
    %279 = vector.broadcast %278 : vector<1x32xf32> to vector<16x32xf32>
    %280 = arith.addf %276, %279 : vector<16x32xf32>
    %cst_195 = arith.constant 0.000000e+00 : f32
    %281 = vector.broadcast %cst_195 : f32 to vector<16x32xf32>
    %282 = arith.maximumf %280, %281 : vector<16x32xf32>
    %283 = arith.truncf %282 : vector<16x32xf32> to vector<16x32xbf16>
    %cst_196 = arith.constant dense<0.000000e+00> : vector<16x32xf32>
    %284 = tpu.matmul %1, %283, %cst_196 {dimension_numbers = #tpu.dot_dimension_numbers<[1], [0], [0], [1], [0, 0, 1, 1], [], []>} : vector<16x16xbf16>, vector<16x32xbf16>, vector<16x32xf32> -> vector<16x32xf32>
    %cst_197 = arith.constant dense<0.000000e+00> : vector<16x32xf32>
    %285 = tpu.matmul %3, %283, %cst_197 {dimension_numbers = #tpu.dot_dimension_numbers<[1], [0], [0], [1], [0, 0, 1, 1], [], []>} : vector<16x16xbf16>, vector<16x32xbf16>, vector<16x32xf32> -> vector<16x32xf32>
    %286 = tpu.concatenate %284, %285 in 1 : vector<16x32xf32>, vector<16x32xf32> -> vector<16x64xf32>
    %287 = arith.truncf %286 : vector<16x64xf32> to vector<16x64xbf16>
    %c12 = arith.constant 12 : index
    %c0_198 = arith.constant 0 : index
    %c0_199 = arith.constant 0 : index
    %288 = vector.load %arg4[%c12, %c0_198, %c0_199] : memref<32x64x32xbf16, #tpu.memory_space<vmem>>, vector<1x64x32xbf16>
    %289 = vector.shape_cast %288 : vector<1x64x32xbf16> to vector<64x32xbf16>
    %cst_200 = arith.constant dense<0.000000e+00> : vector<16x32xf32>
    %290 = tpu.matmul %287, %289, %cst_200 {dimension_numbers = #tpu.dot_dimension_numbers<[1], [0], [0], [1], [0, 0, 1, 1], [], []>} : vector<16x64xbf16>, vector<64x32xbf16>, vector<16x32xf32> -> vector<16x32xf32>
    %c12_201 = arith.constant 12 : index
    %c0_202 = arith.constant 0 : index
    %c0_203 = arith.constant 0 : index
    %291 = vector.load %arg5[%c12_201, %c0_202, %c0_203] : memref<32x1x32xf32, #tpu.memory_space<vmem>>, vector<1x1x32xf32>
    %292 = vector.shape_cast %291 : vector<1x1x32xf32> to vector<1x32xf32>
    %293 = vector.broadcast %292 : vector<1x32xf32> to vector<16x32xf32>
    %294 = arith.addf %290, %293 : vector<16x32xf32>
    %cst_204 = arith.constant 0.000000e+00 : f32
    %295 = vector.broadcast %cst_204 : f32 to vector<16x32xf32>
    %296 = arith.maximumf %294, %295 : vector<16x32xf32>
    %297 = arith.truncf %296 : vector<16x32xf32> to vector<16x32xbf16>
    %cst_205 = arith.constant dense<0.000000e+00> : vector<16x32xf32>
    %298 = tpu.matmul %1, %297, %cst_205 {dimension_numbers = #tpu.dot_dimension_numbers<[1], [0], [0], [1], [0, 0, 1, 1], [], []>} : vector<16x16xbf16>, vector<16x32xbf16>, vector<16x32xf32> -> vector<16x32xf32>
    %cst_206 = arith.constant dense<0.000000e+00> : vector<16x32xf32>
    %299 = tpu.matmul %3, %297, %cst_206 {dimension_numbers = #tpu.dot_dimension_numbers<[1], [0], [0], [1], [0, 0, 1, 1], [], []>} : vector<16x16xbf16>, vector<16x32xbf16>, vector<16x32xf32> -> vector<16x32xf32>
    %300 = tpu.concatenate %298, %299 in 1 : vector<16x32xf32>, vector<16x32xf32> -> vector<16x64xf32>
    %301 = arith.truncf %300 : vector<16x64xf32> to vector<16x64xbf16>
    %c13 = arith.constant 13 : index
    %c0_207 = arith.constant 0 : index
    %c0_208 = arith.constant 0 : index
    %302 = vector.load %arg4[%c13, %c0_207, %c0_208] : memref<32x64x32xbf16, #tpu.memory_space<vmem>>, vector<1x64x32xbf16>
    %303 = vector.shape_cast %302 : vector<1x64x32xbf16> to vector<64x32xbf16>
    %cst_209 = arith.constant dense<0.000000e+00> : vector<16x32xf32>
    %304 = tpu.matmul %301, %303, %cst_209 {dimension_numbers = #tpu.dot_dimension_numbers<[1], [0], [0], [1], [0, 0, 1, 1], [], []>} : vector<16x64xbf16>, vector<64x32xbf16>, vector<16x32xf32> -> vector<16x32xf32>
    %c13_210 = arith.constant 13 : index
    %c0_211 = arith.constant 0 : index
    %c0_212 = arith.constant 0 : index
    %305 = vector.load %arg5[%c13_210, %c0_211, %c0_212] : memref<32x1x32xf32, #tpu.memory_space<vmem>>, vector<1x1x32xf32>
    %306 = vector.shape_cast %305 : vector<1x1x32xf32> to vector<1x32xf32>
    %307 = vector.broadcast %306 : vector<1x32xf32> to vector<16x32xf32>
    %308 = arith.addf %304, %307 : vector<16x32xf32>
    %cst_213 = arith.constant 0.000000e+00 : f32
    %309 = vector.broadcast %cst_213 : f32 to vector<16x32xf32>
    %310 = arith.maximumf %308, %309 : vector<16x32xf32>
    %311 = arith.truncf %310 : vector<16x32xf32> to vector<16x32xbf16>
    %312 = tpu.concatenate %297, %311 in 1 : vector<16x32xbf16>, vector<16x32xbf16> -> vector<16x64xbf16>
    %c10_214 = arith.constant 10 : index
    %c0_215 = arith.constant 0 : index
    %c0_216 = arith.constant 0 : index
    %313 = vector.load %arg6[%c10_214, %c0_215, %c0_216] : memref<31x64x32xbf16, #tpu.memory_space<vmem>>, vector<1x64x32xbf16>
    %314 = vector.shape_cast %313 : vector<1x64x32xbf16> to vector<64x32xbf16>
    %cst_217 = arith.constant dense<0.000000e+00> : vector<16x32xf32>
    %315 = tpu.matmul %312, %314, %cst_217 {dimension_numbers = #tpu.dot_dimension_numbers<[1], [0], [0], [1], [0, 0, 1, 1], [], []>} : vector<16x64xbf16>, vector<64x32xbf16>, vector<16x32xf32> -> vector<16x32xf32>
    %c10_218 = arith.constant 10 : index
    %c0_219 = arith.constant 0 : index
    %c0_220 = arith.constant 0 : index
    %316 = vector.load %arg7[%c10_218, %c0_219, %c0_220] : memref<31x1x32xf32, #tpu.memory_space<vmem>>, vector<1x1x32xf32>
    %317 = vector.shape_cast %316 : vector<1x1x32xf32> to vector<1x32xf32>
    %318 = vector.broadcast %317 : vector<1x32xf32> to vector<16x32xf32>
    %319 = arith.addf %315, %318 : vector<16x32xf32>
    %cst_221 = arith.constant 0.000000e+00 : f32
    %320 = vector.broadcast %cst_221 : f32 to vector<16x32xf32>
    %321 = arith.maximumf %319, %320 : vector<16x32xf32>
    %322 = arith.truncf %321 : vector<16x32xf32> to vector<16x32xbf16>
    %cst_222 = arith.constant dense<0.000000e+00> : vector<16x32xf32>
    %323 = tpu.matmul %1, %322, %cst_222 {dimension_numbers = #tpu.dot_dimension_numbers<[1], [0], [0], [1], [0, 0, 1, 1], [], []>} : vector<16x16xbf16>, vector<16x32xbf16>, vector<16x32xf32> -> vector<16x32xf32>
    %cst_223 = arith.constant dense<0.000000e+00> : vector<16x32xf32>
    %324 = tpu.matmul %3, %322, %cst_223 {dimension_numbers = #tpu.dot_dimension_numbers<[1], [0], [0], [1], [0, 0, 1, 1], [], []>} : vector<16x16xbf16>, vector<16x32xbf16>, vector<16x32xf32> -> vector<16x32xf32>
    %325 = tpu.concatenate %323, %324 in 1 : vector<16x32xf32>, vector<16x32xf32> -> vector<16x64xf32>
    %326 = arith.truncf %325 : vector<16x64xf32> to vector<16x64xbf16>
    %c14 = arith.constant 14 : index
    %c0_224 = arith.constant 0 : index
    %c0_225 = arith.constant 0 : index
    %327 = vector.load %arg4[%c14, %c0_224, %c0_225] : memref<32x64x32xbf16, #tpu.memory_space<vmem>>, vector<1x64x32xbf16>
    %328 = vector.shape_cast %327 : vector<1x64x32xbf16> to vector<64x32xbf16>
    %cst_226 = arith.constant dense<0.000000e+00> : vector<16x32xf32>
    %329 = tpu.matmul %326, %328, %cst_226 {dimension_numbers = #tpu.dot_dimension_numbers<[1], [0], [0], [1], [0, 0, 1, 1], [], []>} : vector<16x64xbf16>, vector<64x32xbf16>, vector<16x32xf32> -> vector<16x32xf32>
    %c14_227 = arith.constant 14 : index
    %c0_228 = arith.constant 0 : index
    %c0_229 = arith.constant 0 : index
    %330 = vector.load %arg5[%c14_227, %c0_228, %c0_229] : memref<32x1x32xf32, #tpu.memory_space<vmem>>, vector<1x1x32xf32>
    %331 = vector.shape_cast %330 : vector<1x1x32xf32> to vector<1x32xf32>
    %332 = vector.broadcast %331 : vector<1x32xf32> to vector<16x32xf32>
    %333 = arith.addf %329, %332 : vector<16x32xf32>
    %cst_230 = arith.constant 0.000000e+00 : f32
    %334 = vector.broadcast %cst_230 : f32 to vector<16x32xf32>
    %335 = arith.maximumf %333, %334 : vector<16x32xf32>
    %336 = arith.truncf %335 : vector<16x32xf32> to vector<16x32xbf16>
    %cst_231 = arith.constant dense<0.000000e+00> : vector<16x32xf32>
    %337 = tpu.matmul %1, %336, %cst_231 {dimension_numbers = #tpu.dot_dimension_numbers<[1], [0], [0], [1], [0, 0, 1, 1], [], []>} : vector<16x16xbf16>, vector<16x32xbf16>, vector<16x32xf32> -> vector<16x32xf32>
    %cst_232 = arith.constant dense<0.000000e+00> : vector<16x32xf32>
    %338 = tpu.matmul %3, %336, %cst_232 {dimension_numbers = #tpu.dot_dimension_numbers<[1], [0], [0], [1], [0, 0, 1, 1], [], []>} : vector<16x16xbf16>, vector<16x32xbf16>, vector<16x32xf32> -> vector<16x32xf32>
    %339 = tpu.concatenate %337, %338 in 1 : vector<16x32xf32>, vector<16x32xf32> -> vector<16x64xf32>
    %340 = arith.truncf %339 : vector<16x64xf32> to vector<16x64xbf16>
    %c15 = arith.constant 15 : index
    %c0_233 = arith.constant 0 : index
    %c0_234 = arith.constant 0 : index
    %341 = vector.load %arg4[%c15, %c0_233, %c0_234] : memref<32x64x32xbf16, #tpu.memory_space<vmem>>, vector<1x64x32xbf16>
    %342 = vector.shape_cast %341 : vector<1x64x32xbf16> to vector<64x32xbf16>
    %cst_235 = arith.constant dense<0.000000e+00> : vector<16x32xf32>
    %343 = tpu.matmul %340, %342, %cst_235 {dimension_numbers = #tpu.dot_dimension_numbers<[1], [0], [0], [1], [0, 0, 1, 1], [], []>} : vector<16x64xbf16>, vector<64x32xbf16>, vector<16x32xf32> -> vector<16x32xf32>
    %c15_236 = arith.constant 15 : index
    %c0_237 = arith.constant 0 : index
    %c0_238 = arith.constant 0 : index
    %344 = vector.load %arg5[%c15_236, %c0_237, %c0_238] : memref<32x1x32xf32, #tpu.memory_space<vmem>>, vector<1x1x32xf32>
    %345 = vector.shape_cast %344 : vector<1x1x32xf32> to vector<1x32xf32>
    %346 = vector.broadcast %345 : vector<1x32xf32> to vector<16x32xf32>
    %347 = arith.addf %343, %346 : vector<16x32xf32>
    %cst_239 = arith.constant 0.000000e+00 : f32
    %348 = vector.broadcast %cst_239 : f32 to vector<16x32xf32>
    %349 = arith.maximumf %347, %348 : vector<16x32xf32>
    %350 = arith.truncf %349 : vector<16x32xf32> to vector<16x32xbf16>
    %351 = tpu.concatenate %336, %350 in 1 : vector<16x32xbf16>, vector<16x32xbf16> -> vector<16x64xbf16>
    %c11_240 = arith.constant 11 : index
    %c0_241 = arith.constant 0 : index
    %c0_242 = arith.constant 0 : index
    %352 = vector.load %arg6[%c11_240, %c0_241, %c0_242] : memref<31x64x32xbf16, #tpu.memory_space<vmem>>, vector<1x64x32xbf16>
    %353 = vector.shape_cast %352 : vector<1x64x32xbf16> to vector<64x32xbf16>
    %cst_243 = arith.constant dense<0.000000e+00> : vector<16x32xf32>
    %354 = tpu.matmul %351, %353, %cst_243 {dimension_numbers = #tpu.dot_dimension_numbers<[1], [0], [0], [1], [0, 0, 1, 1], [], []>} : vector<16x64xbf16>, vector<64x32xbf16>, vector<16x32xf32> -> vector<16x32xf32>
    %c11_244 = arith.constant 11 : index
    %c0_245 = arith.constant 0 : index
    %c0_246 = arith.constant 0 : index
    %355 = vector.load %arg7[%c11_244, %c0_245, %c0_246] : memref<31x1x32xf32, #tpu.memory_space<vmem>>, vector<1x1x32xf32>
    %356 = vector.shape_cast %355 : vector<1x1x32xf32> to vector<1x32xf32>
    %357 = vector.broadcast %356 : vector<1x32xf32> to vector<16x32xf32>
    %358 = arith.addf %354, %357 : vector<16x32xf32>
    %cst_247 = arith.constant 0.000000e+00 : f32
    %359 = vector.broadcast %cst_247 : f32 to vector<16x32xf32>
    %360 = arith.maximumf %358, %359 : vector<16x32xf32>
    %361 = arith.truncf %360 : vector<16x32xf32> to vector<16x32xbf16>
    %362 = tpu.concatenate %322, %361 in 1 : vector<16x32xbf16>, vector<16x32xbf16> -> vector<16x64xbf16>
    %c12_248 = arith.constant 12 : index
    %c0_249 = arith.constant 0 : index
    %c0_250 = arith.constant 0 : index
    %363 = vector.load %arg6[%c12_248, %c0_249, %c0_250] : memref<31x64x32xbf16, #tpu.memory_space<vmem>>, vector<1x64x32xbf16>
    %364 = vector.shape_cast %363 : vector<1x64x32xbf16> to vector<64x32xbf16>
    %cst_251 = arith.constant dense<0.000000e+00> : vector<16x32xf32>
    %365 = tpu.matmul %362, %364, %cst_251 {dimension_numbers = #tpu.dot_dimension_numbers<[1], [0], [0], [1], [0, 0, 1, 1], [], []>} : vector<16x64xbf16>, vector<64x32xbf16>, vector<16x32xf32> -> vector<16x32xf32>
    %c12_252 = arith.constant 12 : index
    %c0_253 = arith.constant 0 : index
    %c0_254 = arith.constant 0 : index
    %366 = vector.load %arg7[%c12_252, %c0_253, %c0_254] : memref<31x1x32xf32, #tpu.memory_space<vmem>>, vector<1x1x32xf32>
    %367 = vector.shape_cast %366 : vector<1x1x32xf32> to vector<1x32xf32>
    %368 = vector.broadcast %367 : vector<1x32xf32> to vector<16x32xf32>
    %369 = arith.addf %365, %368 : vector<16x32xf32>
    %cst_255 = arith.constant 0.000000e+00 : f32
    %370 = vector.broadcast %cst_255 : f32 to vector<16x32xf32>
    %371 = arith.maximumf %369, %370 : vector<16x32xf32>
    %372 = arith.truncf %371 : vector<16x32xf32> to vector<16x32xbf16>
    %373 = tpu.concatenate %283, %372 in 1 : vector<16x32xbf16>, vector<16x32xbf16> -> vector<16x64xbf16>
    %c13_256 = arith.constant 13 : index
    %c0_257 = arith.constant 0 : index
    %c0_258 = arith.constant 0 : index
    %374 = vector.load %arg6[%c13_256, %c0_257, %c0_258] : memref<31x64x32xbf16, #tpu.memory_space<vmem>>, vector<1x64x32xbf16>
    %375 = vector.shape_cast %374 : vector<1x64x32xbf16> to vector<64x32xbf16>
    %cst_259 = arith.constant dense<0.000000e+00> : vector<16x32xf32>
    %376 = tpu.matmul %373, %375, %cst_259 {dimension_numbers = #tpu.dot_dimension_numbers<[1], [0], [0], [1], [0, 0, 1, 1], [], []>} : vector<16x64xbf16>, vector<64x32xbf16>, vector<16x32xf32> -> vector<16x32xf32>
    %c13_260 = arith.constant 13 : index
    %c0_261 = arith.constant 0 : index
    %c0_262 = arith.constant 0 : index
    %377 = vector.load %arg7[%c13_260, %c0_261, %c0_262] : memref<31x1x32xf32, #tpu.memory_space<vmem>>, vector<1x1x32xf32>
    %378 = vector.shape_cast %377 : vector<1x1x32xf32> to vector<1x32xf32>
    %379 = vector.broadcast %378 : vector<1x32xf32> to vector<16x32xf32>
    %380 = arith.addf %376, %379 : vector<16x32xf32>
    %cst_263 = arith.constant 0.000000e+00 : f32
    %381 = vector.broadcast %cst_263 : f32 to vector<16x32xf32>
    %382 = arith.maximumf %380, %381 : vector<16x32xf32>
    %383 = arith.truncf %382 : vector<16x32xf32> to vector<16x32xbf16>
    %384 = tpu.concatenate %194, %383 in 1 : vector<16x32xbf16>, vector<16x32xbf16> -> vector<16x64xbf16>
    %c14_264 = arith.constant 14 : index
    %c0_265 = arith.constant 0 : index
    %c0_266 = arith.constant 0 : index
    %385 = vector.load %arg6[%c14_264, %c0_265, %c0_266] : memref<31x64x32xbf16, #tpu.memory_space<vmem>>, vector<1x64x32xbf16>
    %386 = vector.shape_cast %385 : vector<1x64x32xbf16> to vector<64x32xbf16>
    %cst_267 = arith.constant dense<0.000000e+00> : vector<16x32xf32>
    %387 = tpu.matmul %384, %386, %cst_267 {dimension_numbers = #tpu.dot_dimension_numbers<[1], [0], [0], [1], [0, 0, 1, 1], [], []>} : vector<16x64xbf16>, vector<64x32xbf16>, vector<16x32xf32> -> vector<16x32xf32>
    %c14_268 = arith.constant 14 : index
    %c0_269 = arith.constant 0 : index
    %c0_270 = arith.constant 0 : index
    %388 = vector.load %arg7[%c14_268, %c0_269, %c0_270] : memref<31x1x32xf32, #tpu.memory_space<vmem>>, vector<1x1x32xf32>
    %389 = vector.shape_cast %388 : vector<1x1x32xf32> to vector<1x32xf32>
    %390 = vector.broadcast %389 : vector<1x32xf32> to vector<16x32xf32>
    %391 = arith.addf %387, %390 : vector<16x32xf32>
    %cst_271 = arith.constant 0.000000e+00 : f32
    %392 = vector.broadcast %cst_271 : f32 to vector<16x32xf32>
    %393 = arith.maximumf %391, %392 : vector<16x32xf32>
    %394 = arith.truncf %393 : vector<16x32xf32> to vector<16x32xbf16>
    %cst_272 = arith.constant dense<0.000000e+00> : vector<16x32xf32>
    %395 = tpu.matmul %1, %394, %cst_272 {dimension_numbers = #tpu.dot_dimension_numbers<[1], [0], [0], [1], [0, 0, 1, 1], [], []>} : vector<16x16xbf16>, vector<16x32xbf16>, vector<16x32xf32> -> vector<16x32xf32>
    %cst_273 = arith.constant dense<0.000000e+00> : vector<16x32xf32>
    %396 = tpu.matmul %3, %394, %cst_273 {dimension_numbers = #tpu.dot_dimension_numbers<[1], [0], [0], [1], [0, 0, 1, 1], [], []>} : vector<16x16xbf16>, vector<16x32xbf16>, vector<16x32xf32> -> vector<16x32xf32>
    %397 = tpu.concatenate %395, %396 in 1 : vector<16x32xf32>, vector<16x32xf32> -> vector<16x64xf32>
    %398 = arith.truncf %397 : vector<16x64xf32> to vector<16x64xbf16>
    %c16 = arith.constant 16 : index
    %c0_274 = arith.constant 0 : index
    %c0_275 = arith.constant 0 : index
    %399 = vector.load %arg4[%c16, %c0_274, %c0_275] : memref<32x64x32xbf16, #tpu.memory_space<vmem>>, vector<1x64x32xbf16>
    %400 = vector.shape_cast %399 : vector<1x64x32xbf16> to vector<64x32xbf16>
    %cst_276 = arith.constant dense<0.000000e+00> : vector<16x32xf32>
    %401 = tpu.matmul %398, %400, %cst_276 {dimension_numbers = #tpu.dot_dimension_numbers<[1], [0], [0], [1], [0, 0, 1, 1], [], []>} : vector<16x64xbf16>, vector<64x32xbf16>, vector<16x32xf32> -> vector<16x32xf32>
    %c16_277 = arith.constant 16 : index
    %c0_278 = arith.constant 0 : index
    %c0_279 = arith.constant 0 : index
    %402 = vector.load %arg5[%c16_277, %c0_278, %c0_279] : memref<32x1x32xf32, #tpu.memory_space<vmem>>, vector<1x1x32xf32>
    %403 = vector.shape_cast %402 : vector<1x1x32xf32> to vector<1x32xf32>
    %404 = vector.broadcast %403 : vector<1x32xf32> to vector<16x32xf32>
    %405 = arith.addf %401, %404 : vector<16x32xf32>
    %cst_280 = arith.constant 0.000000e+00 : f32
    %406 = vector.broadcast %cst_280 : f32 to vector<16x32xf32>
    %407 = arith.maximumf %405, %406 : vector<16x32xf32>
    %408 = arith.truncf %407 : vector<16x32xf32> to vector<16x32xbf16>
    %cst_281 = arith.constant dense<0.000000e+00> : vector<16x32xf32>
    %409 = tpu.matmul %1, %408, %cst_281 {dimension_numbers = #tpu.dot_dimension_numbers<[1], [0], [0], [1], [0, 0, 1, 1], [], []>} : vector<16x16xbf16>, vector<16x32xbf16>, vector<16x32xf32> -> vector<16x32xf32>
    %cst_282 = arith.constant dense<0.000000e+00> : vector<16x32xf32>
    %410 = tpu.matmul %3, %408, %cst_282 {dimension_numbers = #tpu.dot_dimension_numbers<[1], [0], [0], [1], [0, 0, 1, 1], [], []>} : vector<16x16xbf16>, vector<16x32xbf16>, vector<16x32xf32> -> vector<16x32xf32>
    %411 = tpu.concatenate %409, %410 in 1 : vector<16x32xf32>, vector<16x32xf32> -> vector<16x64xf32>
    %412 = arith.truncf %411 : vector<16x64xf32> to vector<16x64xbf16>
    %c17 = arith.constant 17 : index
    %c0_283 = arith.constant 0 : index
    %c0_284 = arith.constant 0 : index
    %413 = vector.load %arg4[%c17, %c0_283, %c0_284] : memref<32x64x32xbf16, #tpu.memory_space<vmem>>, vector<1x64x32xbf16>
    %414 = vector.shape_cast %413 : vector<1x64x32xbf16> to vector<64x32xbf16>
    %cst_285 = arith.constant dense<0.000000e+00> : vector<16x32xf32>
    %415 = tpu.matmul %412, %414, %cst_285 {dimension_numbers = #tpu.dot_dimension_numbers<[1], [0], [0], [1], [0, 0, 1, 1], [], []>} : vector<16x64xbf16>, vector<64x32xbf16>, vector<16x32xf32> -> vector<16x32xf32>
    %c17_286 = arith.constant 17 : index
    %c0_287 = arith.constant 0 : index
    %c0_288 = arith.constant 0 : index
    %416 = vector.load %arg5[%c17_286, %c0_287, %c0_288] : memref<32x1x32xf32, #tpu.memory_space<vmem>>, vector<1x1x32xf32>
    %417 = vector.shape_cast %416 : vector<1x1x32xf32> to vector<1x32xf32>
    %418 = vector.broadcast %417 : vector<1x32xf32> to vector<16x32xf32>
    %419 = arith.addf %415, %418 : vector<16x32xf32>
    %cst_289 = arith.constant 0.000000e+00 : f32
    %420 = vector.broadcast %cst_289 : f32 to vector<16x32xf32>
    %421 = arith.maximumf %419, %420 : vector<16x32xf32>
    %422 = arith.truncf %421 : vector<16x32xf32> to vector<16x32xbf16>
    %423 = tpu.concatenate %408, %422 in 1 : vector<16x32xbf16>, vector<16x32xbf16> -> vector<16x64xbf16>
    %c15_290 = arith.constant 15 : index
    %c0_291 = arith.constant 0 : index
    %c0_292 = arith.constant 0 : index
    %424 = vector.load %arg6[%c15_290, %c0_291, %c0_292] : memref<31x64x32xbf16, #tpu.memory_space<vmem>>, vector<1x64x32xbf16>
    %425 = vector.shape_cast %424 : vector<1x64x32xbf16> to vector<64x32xbf16>
    %cst_293 = arith.constant dense<0.000000e+00> : vector<16x32xf32>
    %426 = tpu.matmul %423, %425, %cst_293 {dimension_numbers = #tpu.dot_dimension_numbers<[1], [0], [0], [1], [0, 0, 1, 1], [], []>} : vector<16x64xbf16>, vector<64x32xbf16>, vector<16x32xf32> -> vector<16x32xf32>
    %c15_294 = arith.constant 15 : index
    %c0_295 = arith.constant 0 : index
    %c0_296 = arith.constant 0 : index
    %427 = vector.load %arg7[%c15_294, %c0_295, %c0_296] : memref<31x1x32xf32, #tpu.memory_space<vmem>>, vector<1x1x32xf32>
    %428 = vector.shape_cast %427 : vector<1x1x32xf32> to vector<1x32xf32>
    %429 = vector.broadcast %428 : vector<1x32xf32> to vector<16x32xf32>
    %430 = arith.addf %426, %429 : vector<16x32xf32>
    %cst_297 = arith.constant 0.000000e+00 : f32
    %431 = vector.broadcast %cst_297 : f32 to vector<16x32xf32>
    %432 = arith.maximumf %430, %431 : vector<16x32xf32>
    %433 = arith.truncf %432 : vector<16x32xf32> to vector<16x32xbf16>
    %cst_298 = arith.constant dense<0.000000e+00> : vector<16x32xf32>
    %434 = tpu.matmul %1, %433, %cst_298 {dimension_numbers = #tpu.dot_dimension_numbers<[1], [0], [0], [1], [0, 0, 1, 1], [], []>} : vector<16x16xbf16>, vector<16x32xbf16>, vector<16x32xf32> -> vector<16x32xf32>
    %cst_299 = arith.constant dense<0.000000e+00> : vector<16x32xf32>
    %435 = tpu.matmul %3, %433, %cst_299 {dimension_numbers = #tpu.dot_dimension_numbers<[1], [0], [0], [1], [0, 0, 1, 1], [], []>} : vector<16x16xbf16>, vector<16x32xbf16>, vector<16x32xf32> -> vector<16x32xf32>
    %436 = tpu.concatenate %434, %435 in 1 : vector<16x32xf32>, vector<16x32xf32> -> vector<16x64xf32>
    %437 = arith.truncf %436 : vector<16x64xf32> to vector<16x64xbf16>
    %c18 = arith.constant 18 : index
    %c0_300 = arith.constant 0 : index
    %c0_301 = arith.constant 0 : index
    %438 = vector.load %arg4[%c18, %c0_300, %c0_301] : memref<32x64x32xbf16, #tpu.memory_space<vmem>>, vector<1x64x32xbf16>
    %439 = vector.shape_cast %438 : vector<1x64x32xbf16> to vector<64x32xbf16>
    %cst_302 = arith.constant dense<0.000000e+00> : vector<16x32xf32>
    %440 = tpu.matmul %437, %439, %cst_302 {dimension_numbers = #tpu.dot_dimension_numbers<[1], [0], [0], [1], [0, 0, 1, 1], [], []>} : vector<16x64xbf16>, vector<64x32xbf16>, vector<16x32xf32> -> vector<16x32xf32>
    %c18_303 = arith.constant 18 : index
    %c0_304 = arith.constant 0 : index
    %c0_305 = arith.constant 0 : index
    %441 = vector.load %arg5[%c18_303, %c0_304, %c0_305] : memref<32x1x32xf32, #tpu.memory_space<vmem>>, vector<1x1x32xf32>
    %442 = vector.shape_cast %441 : vector<1x1x32xf32> to vector<1x32xf32>
    %443 = vector.broadcast %442 : vector<1x32xf32> to vector<16x32xf32>
    %444 = arith.addf %440, %443 : vector<16x32xf32>
    %cst_306 = arith.constant 0.000000e+00 : f32
    %445 = vector.broadcast %cst_306 : f32 to vector<16x32xf32>
    %446 = arith.maximumf %444, %445 : vector<16x32xf32>
    %447 = arith.truncf %446 : vector<16x32xf32> to vector<16x32xbf16>
    %cst_307 = arith.constant dense<0.000000e+00> : vector<16x32xf32>
    %448 = tpu.matmul %1, %447, %cst_307 {dimension_numbers = #tpu.dot_dimension_numbers<[1], [0], [0], [1], [0, 0, 1, 1], [], []>} : vector<16x16xbf16>, vector<16x32xbf16>, vector<16x32xf32> -> vector<16x32xf32>
    %cst_308 = arith.constant dense<0.000000e+00> : vector<16x32xf32>
    %449 = tpu.matmul %3, %447, %cst_308 {dimension_numbers = #tpu.dot_dimension_numbers<[1], [0], [0], [1], [0, 0, 1, 1], [], []>} : vector<16x16xbf16>, vector<16x32xbf16>, vector<16x32xf32> -> vector<16x32xf32>
    %450 = tpu.concatenate %448, %449 in 1 : vector<16x32xf32>, vector<16x32xf32> -> vector<16x64xf32>
    %451 = arith.truncf %450 : vector<16x64xf32> to vector<16x64xbf16>
    %c19 = arith.constant 19 : index
    %c0_309 = arith.constant 0 : index
    %c0_310 = arith.constant 0 : index
    %452 = vector.load %arg4[%c19, %c0_309, %c0_310] : memref<32x64x32xbf16, #tpu.memory_space<vmem>>, vector<1x64x32xbf16>
    %453 = vector.shape_cast %452 : vector<1x64x32xbf16> to vector<64x32xbf16>
    %cst_311 = arith.constant dense<0.000000e+00> : vector<16x32xf32>
    %454 = tpu.matmul %451, %453, %cst_311 {dimension_numbers = #tpu.dot_dimension_numbers<[1], [0], [0], [1], [0, 0, 1, 1], [], []>} : vector<16x64xbf16>, vector<64x32xbf16>, vector<16x32xf32> -> vector<16x32xf32>
    %c19_312 = arith.constant 19 : index
    %c0_313 = arith.constant 0 : index
    %c0_314 = arith.constant 0 : index
    %455 = vector.load %arg5[%c19_312, %c0_313, %c0_314] : memref<32x1x32xf32, #tpu.memory_space<vmem>>, vector<1x1x32xf32>
    %456 = vector.shape_cast %455 : vector<1x1x32xf32> to vector<1x32xf32>
    %457 = vector.broadcast %456 : vector<1x32xf32> to vector<16x32xf32>
    %458 = arith.addf %454, %457 : vector<16x32xf32>
    %cst_315 = arith.constant 0.000000e+00 : f32
    %459 = vector.broadcast %cst_315 : f32 to vector<16x32xf32>
    %460 = arith.maximumf %458, %459 : vector<16x32xf32>
    %461 = arith.truncf %460 : vector<16x32xf32> to vector<16x32xbf16>
    %462 = tpu.concatenate %447, %461 in 1 : vector<16x32xbf16>, vector<16x32xbf16> -> vector<16x64xbf16>
    %c16_316 = arith.constant 16 : index
    %c0_317 = arith.constant 0 : index
    %c0_318 = arith.constant 0 : index
    %463 = vector.load %arg6[%c16_316, %c0_317, %c0_318] : memref<31x64x32xbf16, #tpu.memory_space<vmem>>, vector<1x64x32xbf16>
    %464 = vector.shape_cast %463 : vector<1x64x32xbf16> to vector<64x32xbf16>
    %cst_319 = arith.constant dense<0.000000e+00> : vector<16x32xf32>
    %465 = tpu.matmul %462, %464, %cst_319 {dimension_numbers = #tpu.dot_dimension_numbers<[1], [0], [0], [1], [0, 0, 1, 1], [], []>} : vector<16x64xbf16>, vector<64x32xbf16>, vector<16x32xf32> -> vector<16x32xf32>
    %c16_320 = arith.constant 16 : index
    %c0_321 = arith.constant 0 : index
    %c0_322 = arith.constant 0 : index
    %466 = vector.load %arg7[%c16_320, %c0_321, %c0_322] : memref<31x1x32xf32, #tpu.memory_space<vmem>>, vector<1x1x32xf32>
    %467 = vector.shape_cast %466 : vector<1x1x32xf32> to vector<1x32xf32>
    %468 = vector.broadcast %467 : vector<1x32xf32> to vector<16x32xf32>
    %469 = arith.addf %465, %468 : vector<16x32xf32>
    %cst_323 = arith.constant 0.000000e+00 : f32
    %470 = vector.broadcast %cst_323 : f32 to vector<16x32xf32>
    %471 = arith.maximumf %469, %470 : vector<16x32xf32>
    %472 = arith.truncf %471 : vector<16x32xf32> to vector<16x32xbf16>
    %473 = tpu.concatenate %433, %472 in 1 : vector<16x32xbf16>, vector<16x32xbf16> -> vector<16x64xbf16>
    %c17_324 = arith.constant 17 : index
    %c0_325 = arith.constant 0 : index
    %c0_326 = arith.constant 0 : index
    %474 = vector.load %arg6[%c17_324, %c0_325, %c0_326] : memref<31x64x32xbf16, #tpu.memory_space<vmem>>, vector<1x64x32xbf16>
    %475 = vector.shape_cast %474 : vector<1x64x32xbf16> to vector<64x32xbf16>
    %cst_327 = arith.constant dense<0.000000e+00> : vector<16x32xf32>
    %476 = tpu.matmul %473, %475, %cst_327 {dimension_numbers = #tpu.dot_dimension_numbers<[1], [0], [0], [1], [0, 0, 1, 1], [], []>} : vector<16x64xbf16>, vector<64x32xbf16>, vector<16x32xf32> -> vector<16x32xf32>
    %c17_328 = arith.constant 17 : index
    %c0_329 = arith.constant 0 : index
    %c0_330 = arith.constant 0 : index
    %477 = vector.load %arg7[%c17_328, %c0_329, %c0_330] : memref<31x1x32xf32, #tpu.memory_space<vmem>>, vector<1x1x32xf32>
    %478 = vector.shape_cast %477 : vector<1x1x32xf32> to vector<1x32xf32>
    %479 = vector.broadcast %478 : vector<1x32xf32> to vector<16x32xf32>
    %480 = arith.addf %476, %479 : vector<16x32xf32>
    %cst_331 = arith.constant 0.000000e+00 : f32
    %481 = vector.broadcast %cst_331 : f32 to vector<16x32xf32>
    %482 = arith.maximumf %480, %481 : vector<16x32xf32>
    %483 = arith.truncf %482 : vector<16x32xf32> to vector<16x32xbf16>
    %cst_332 = arith.constant dense<0.000000e+00> : vector<16x32xf32>
    %484 = tpu.matmul %1, %483, %cst_332 {dimension_numbers = #tpu.dot_dimension_numbers<[1], [0], [0], [1], [0, 0, 1, 1], [], []>} : vector<16x16xbf16>, vector<16x32xbf16>, vector<16x32xf32> -> vector<16x32xf32>
    %cst_333 = arith.constant dense<0.000000e+00> : vector<16x32xf32>
    %485 = tpu.matmul %3, %483, %cst_333 {dimension_numbers = #tpu.dot_dimension_numbers<[1], [0], [0], [1], [0, 0, 1, 1], [], []>} : vector<16x16xbf16>, vector<16x32xbf16>, vector<16x32xf32> -> vector<16x32xf32>
    %486 = tpu.concatenate %484, %485 in 1 : vector<16x32xf32>, vector<16x32xf32> -> vector<16x64xf32>
    %487 = arith.truncf %486 : vector<16x64xf32> to vector<16x64xbf16>
    %c20 = arith.constant 20 : index
    %c0_334 = arith.constant 0 : index
    %c0_335 = arith.constant 0 : index
    %488 = vector.load %arg4[%c20, %c0_334, %c0_335] : memref<32x64x32xbf16, #tpu.memory_space<vmem>>, vector<1x64x32xbf16>
    %489 = vector.shape_cast %488 : vector<1x64x32xbf16> to vector<64x32xbf16>
    %cst_336 = arith.constant dense<0.000000e+00> : vector<16x32xf32>
    %490 = tpu.matmul %487, %489, %cst_336 {dimension_numbers = #tpu.dot_dimension_numbers<[1], [0], [0], [1], [0, 0, 1, 1], [], []>} : vector<16x64xbf16>, vector<64x32xbf16>, vector<16x32xf32> -> vector<16x32xf32>
    %c20_337 = arith.constant 20 : index
    %c0_338 = arith.constant 0 : index
    %c0_339 = arith.constant 0 : index
    %491 = vector.load %arg5[%c20_337, %c0_338, %c0_339] : memref<32x1x32xf32, #tpu.memory_space<vmem>>, vector<1x1x32xf32>
    %492 = vector.shape_cast %491 : vector<1x1x32xf32> to vector<1x32xf32>
    %493 = vector.broadcast %492 : vector<1x32xf32> to vector<16x32xf32>
    %494 = arith.addf %490, %493 : vector<16x32xf32>
    %cst_340 = arith.constant 0.000000e+00 : f32
    %495 = vector.broadcast %cst_340 : f32 to vector<16x32xf32>
    %496 = arith.maximumf %494, %495 : vector<16x32xf32>
    %497 = arith.truncf %496 : vector<16x32xf32> to vector<16x32xbf16>
    %cst_341 = arith.constant dense<0.000000e+00> : vector<16x32xf32>
    %498 = tpu.matmul %1, %497, %cst_341 {dimension_numbers = #tpu.dot_dimension_numbers<[1], [0], [0], [1], [0, 0, 1, 1], [], []>} : vector<16x16xbf16>, vector<16x32xbf16>, vector<16x32xf32> -> vector<16x32xf32>
    %cst_342 = arith.constant dense<0.000000e+00> : vector<16x32xf32>
    %499 = tpu.matmul %3, %497, %cst_342 {dimension_numbers = #tpu.dot_dimension_numbers<[1], [0], [0], [1], [0, 0, 1, 1], [], []>} : vector<16x16xbf16>, vector<16x32xbf16>, vector<16x32xf32> -> vector<16x32xf32>
    %500 = tpu.concatenate %498, %499 in 1 : vector<16x32xf32>, vector<16x32xf32> -> vector<16x64xf32>
    %501 = arith.truncf %500 : vector<16x64xf32> to vector<16x64xbf16>
    %c21 = arith.constant 21 : index
    %c0_343 = arith.constant 0 : index
    %c0_344 = arith.constant 0 : index
    %502 = vector.load %arg4[%c21, %c0_343, %c0_344] : memref<32x64x32xbf16, #tpu.memory_space<vmem>>, vector<1x64x32xbf16>
    %503 = vector.shape_cast %502 : vector<1x64x32xbf16> to vector<64x32xbf16>
    %cst_345 = arith.constant dense<0.000000e+00> : vector<16x32xf32>
    %504 = tpu.matmul %501, %503, %cst_345 {dimension_numbers = #tpu.dot_dimension_numbers<[1], [0], [0], [1], [0, 0, 1, 1], [], []>} : vector<16x64xbf16>, vector<64x32xbf16>, vector<16x32xf32> -> vector<16x32xf32>
    %c21_346 = arith.constant 21 : index
    %c0_347 = arith.constant 0 : index
    %c0_348 = arith.constant 0 : index
    %505 = vector.load %arg5[%c21_346, %c0_347, %c0_348] : memref<32x1x32xf32, #tpu.memory_space<vmem>>, vector<1x1x32xf32>
    %506 = vector.shape_cast %505 : vector<1x1x32xf32> to vector<1x32xf32>
    %507 = vector.broadcast %506 : vector<1x32xf32> to vector<16x32xf32>
    %508 = arith.addf %504, %507 : vector<16x32xf32>
    %cst_349 = arith.constant 0.000000e+00 : f32
    %509 = vector.broadcast %cst_349 : f32 to vector<16x32xf32>
    %510 = arith.maximumf %508, %509 : vector<16x32xf32>
    %511 = arith.truncf %510 : vector<16x32xf32> to vector<16x32xbf16>
    %512 = tpu.concatenate %497, %511 in 1 : vector<16x32xbf16>, vector<16x32xbf16> -> vector<16x64xbf16>
    %c18_350 = arith.constant 18 : index
    %c0_351 = arith.constant 0 : index
    %c0_352 = arith.constant 0 : index
    %513 = vector.load %arg6[%c18_350, %c0_351, %c0_352] : memref<31x64x32xbf16, #tpu.memory_space<vmem>>, vector<1x64x32xbf16>
    %514 = vector.shape_cast %513 : vector<1x64x32xbf16> to vector<64x32xbf16>
    %cst_353 = arith.constant dense<0.000000e+00> : vector<16x32xf32>
    %515 = tpu.matmul %512, %514, %cst_353 {dimension_numbers = #tpu.dot_dimension_numbers<[1], [0], [0], [1], [0, 0, 1, 1], [], []>} : vector<16x64xbf16>, vector<64x32xbf16>, vector<16x32xf32> -> vector<16x32xf32>
    %c18_354 = arith.constant 18 : index
    %c0_355 = arith.constant 0 : index
    %c0_356 = arith.constant 0 : index
    %516 = vector.load %arg7[%c18_354, %c0_355, %c0_356] : memref<31x1x32xf32, #tpu.memory_space<vmem>>, vector<1x1x32xf32>
    %517 = vector.shape_cast %516 : vector<1x1x32xf32> to vector<1x32xf32>
    %518 = vector.broadcast %517 : vector<1x32xf32> to vector<16x32xf32>
    %519 = arith.addf %515, %518 : vector<16x32xf32>
    %cst_357 = arith.constant 0.000000e+00 : f32
    %520 = vector.broadcast %cst_357 : f32 to vector<16x32xf32>
    %521 = arith.maximumf %519, %520 : vector<16x32xf32>
    %522 = arith.truncf %521 : vector<16x32xf32> to vector<16x32xbf16>
    %cst_358 = arith.constant dense<0.000000e+00> : vector<16x32xf32>
    %523 = tpu.matmul %1, %522, %cst_358 {dimension_numbers = #tpu.dot_dimension_numbers<[1], [0], [0], [1], [0, 0, 1, 1], [], []>} : vector<16x16xbf16>, vector<16x32xbf16>, vector<16x32xf32> -> vector<16x32xf32>
    %cst_359 = arith.constant dense<0.000000e+00> : vector<16x32xf32>
    %524 = tpu.matmul %3, %522, %cst_359 {dimension_numbers = #tpu.dot_dimension_numbers<[1], [0], [0], [1], [0, 0, 1, 1], [], []>} : vector<16x16xbf16>, vector<16x32xbf16>, vector<16x32xf32> -> vector<16x32xf32>
    %525 = tpu.concatenate %523, %524 in 1 : vector<16x32xf32>, vector<16x32xf32> -> vector<16x64xf32>
    %526 = arith.truncf %525 : vector<16x64xf32> to vector<16x64xbf16>
    %c22 = arith.constant 22 : index
    %c0_360 = arith.constant 0 : index
    %c0_361 = arith.constant 0 : index
    %527 = vector.load %arg4[%c22, %c0_360, %c0_361] : memref<32x64x32xbf16, #tpu.memory_space<vmem>>, vector<1x64x32xbf16>
    %528 = vector.shape_cast %527 : vector<1x64x32xbf16> to vector<64x32xbf16>
    %cst_362 = arith.constant dense<0.000000e+00> : vector<16x32xf32>
    %529 = tpu.matmul %526, %528, %cst_362 {dimension_numbers = #tpu.dot_dimension_numbers<[1], [0], [0], [1], [0, 0, 1, 1], [], []>} : vector<16x64xbf16>, vector<64x32xbf16>, vector<16x32xf32> -> vector<16x32xf32>
    %c22_363 = arith.constant 22 : index
    %c0_364 = arith.constant 0 : index
    %c0_365 = arith.constant 0 : index
    %530 = vector.load %arg5[%c22_363, %c0_364, %c0_365] : memref<32x1x32xf32, #tpu.memory_space<vmem>>, vector<1x1x32xf32>
    %531 = vector.shape_cast %530 : vector<1x1x32xf32> to vector<1x32xf32>
    %532 = vector.broadcast %531 : vector<1x32xf32> to vector<16x32xf32>
    %533 = arith.addf %529, %532 : vector<16x32xf32>
    %cst_366 = arith.constant 0.000000e+00 : f32
    %534 = vector.broadcast %cst_366 : f32 to vector<16x32xf32>
    %535 = arith.maximumf %533, %534 : vector<16x32xf32>
    %536 = arith.truncf %535 : vector<16x32xf32> to vector<16x32xbf16>
    %cst_367 = arith.constant dense<0.000000e+00> : vector<16x32xf32>
    %537 = tpu.matmul %1, %536, %cst_367 {dimension_numbers = #tpu.dot_dimension_numbers<[1], [0], [0], [1], [0, 0, 1, 1], [], []>} : vector<16x16xbf16>, vector<16x32xbf16>, vector<16x32xf32> -> vector<16x32xf32>
    %cst_368 = arith.constant dense<0.000000e+00> : vector<16x32xf32>
    %538 = tpu.matmul %3, %536, %cst_368 {dimension_numbers = #tpu.dot_dimension_numbers<[1], [0], [0], [1], [0, 0, 1, 1], [], []>} : vector<16x16xbf16>, vector<16x32xbf16>, vector<16x32xf32> -> vector<16x32xf32>
    %539 = tpu.concatenate %537, %538 in 1 : vector<16x32xf32>, vector<16x32xf32> -> vector<16x64xf32>
    %540 = arith.truncf %539 : vector<16x64xf32> to vector<16x64xbf16>
    %c23 = arith.constant 23 : index
    %c0_369 = arith.constant 0 : index
    %c0_370 = arith.constant 0 : index
    %541 = vector.load %arg4[%c23, %c0_369, %c0_370] : memref<32x64x32xbf16, #tpu.memory_space<vmem>>, vector<1x64x32xbf16>
    %542 = vector.shape_cast %541 : vector<1x64x32xbf16> to vector<64x32xbf16>
    %cst_371 = arith.constant dense<0.000000e+00> : vector<16x32xf32>
    %543 = tpu.matmul %540, %542, %cst_371 {dimension_numbers = #tpu.dot_dimension_numbers<[1], [0], [0], [1], [0, 0, 1, 1], [], []>} : vector<16x64xbf16>, vector<64x32xbf16>, vector<16x32xf32> -> vector<16x32xf32>
    %c23_372 = arith.constant 23 : index
    %c0_373 = arith.constant 0 : index
    %c0_374 = arith.constant 0 : index
    %544 = vector.load %arg5[%c23_372, %c0_373, %c0_374] : memref<32x1x32xf32, #tpu.memory_space<vmem>>, vector<1x1x32xf32>
    %545 = vector.shape_cast %544 : vector<1x1x32xf32> to vector<1x32xf32>
    %546 = vector.broadcast %545 : vector<1x32xf32> to vector<16x32xf32>
    %547 = arith.addf %543, %546 : vector<16x32xf32>
    %cst_375 = arith.constant 0.000000e+00 : f32
    %548 = vector.broadcast %cst_375 : f32 to vector<16x32xf32>
    %549 = arith.maximumf %547, %548 : vector<16x32xf32>
    %550 = arith.truncf %549 : vector<16x32xf32> to vector<16x32xbf16>
    %551 = tpu.concatenate %536, %550 in 1 : vector<16x32xbf16>, vector<16x32xbf16> -> vector<16x64xbf16>
    %c19_376 = arith.constant 19 : index
    %c0_377 = arith.constant 0 : index
    %c0_378 = arith.constant 0 : index
    %552 = vector.load %arg6[%c19_376, %c0_377, %c0_378] : memref<31x64x32xbf16, #tpu.memory_space<vmem>>, vector<1x64x32xbf16>
    %553 = vector.shape_cast %552 : vector<1x64x32xbf16> to vector<64x32xbf16>
    %cst_379 = arith.constant dense<0.000000e+00> : vector<16x32xf32>
    %554 = tpu.matmul %551, %553, %cst_379 {dimension_numbers = #tpu.dot_dimension_numbers<[1], [0], [0], [1], [0, 0, 1, 1], [], []>} : vector<16x64xbf16>, vector<64x32xbf16>, vector<16x32xf32> -> vector<16x32xf32>
    %c19_380 = arith.constant 19 : index
    %c0_381 = arith.constant 0 : index
    %c0_382 = arith.constant 0 : index
    %555 = vector.load %arg7[%c19_380, %c0_381, %c0_382] : memref<31x1x32xf32, #tpu.memory_space<vmem>>, vector<1x1x32xf32>
    %556 = vector.shape_cast %555 : vector<1x1x32xf32> to vector<1x32xf32>
    %557 = vector.broadcast %556 : vector<1x32xf32> to vector<16x32xf32>
    %558 = arith.addf %554, %557 : vector<16x32xf32>
    %cst_383 = arith.constant 0.000000e+00 : f32
    %559 = vector.broadcast %cst_383 : f32 to vector<16x32xf32>
    %560 = arith.maximumf %558, %559 : vector<16x32xf32>
    %561 = arith.truncf %560 : vector<16x32xf32> to vector<16x32xbf16>
    %562 = tpu.concatenate %522, %561 in 1 : vector<16x32xbf16>, vector<16x32xbf16> -> vector<16x64xbf16>
    %c20_384 = arith.constant 20 : index
    %c0_385 = arith.constant 0 : index
    %c0_386 = arith.constant 0 : index
    %563 = vector.load %arg6[%c20_384, %c0_385, %c0_386] : memref<31x64x32xbf16, #tpu.memory_space<vmem>>, vector<1x64x32xbf16>
    %564 = vector.shape_cast %563 : vector<1x64x32xbf16> to vector<64x32xbf16>
    %cst_387 = arith.constant dense<0.000000e+00> : vector<16x32xf32>
    %565 = tpu.matmul %562, %564, %cst_387 {dimension_numbers = #tpu.dot_dimension_numbers<[1], [0], [0], [1], [0, 0, 1, 1], [], []>} : vector<16x64xbf16>, vector<64x32xbf16>, vector<16x32xf32> -> vector<16x32xf32>
    %c20_388 = arith.constant 20 : index
    %c0_389 = arith.constant 0 : index
    %c0_390 = arith.constant 0 : index
    %566 = vector.load %arg7[%c20_388, %c0_389, %c0_390] : memref<31x1x32xf32, #tpu.memory_space<vmem>>, vector<1x1x32xf32>
    %567 = vector.shape_cast %566 : vector<1x1x32xf32> to vector<1x32xf32>
    %568 = vector.broadcast %567 : vector<1x32xf32> to vector<16x32xf32>
    %569 = arith.addf %565, %568 : vector<16x32xf32>
    %cst_391 = arith.constant 0.000000e+00 : f32
    %570 = vector.broadcast %cst_391 : f32 to vector<16x32xf32>
    %571 = arith.maximumf %569, %570 : vector<16x32xf32>
    %572 = arith.truncf %571 : vector<16x32xf32> to vector<16x32xbf16>
    %573 = tpu.concatenate %483, %572 in 1 : vector<16x32xbf16>, vector<16x32xbf16> -> vector<16x64xbf16>
    %c21_392 = arith.constant 21 : index
    %c0_393 = arith.constant 0 : index
    %c0_394 = arith.constant 0 : index
    %574 = vector.load %arg6[%c21_392, %c0_393, %c0_394] : memref<31x64x32xbf16, #tpu.memory_space<vmem>>, vector<1x64x32xbf16>
    %575 = vector.shape_cast %574 : vector<1x64x32xbf16> to vector<64x32xbf16>
    %cst_395 = arith.constant dense<0.000000e+00> : vector<16x32xf32>
    %576 = tpu.matmul %573, %575, %cst_395 {dimension_numbers = #tpu.dot_dimension_numbers<[1], [0], [0], [1], [0, 0, 1, 1], [], []>} : vector<16x64xbf16>, vector<64x32xbf16>, vector<16x32xf32> -> vector<16x32xf32>
    %c21_396 = arith.constant 21 : index
    %c0_397 = arith.constant 0 : index
    %c0_398 = arith.constant 0 : index
    %577 = vector.load %arg7[%c21_396, %c0_397, %c0_398] : memref<31x1x32xf32, #tpu.memory_space<vmem>>, vector<1x1x32xf32>
    %578 = vector.shape_cast %577 : vector<1x1x32xf32> to vector<1x32xf32>
    %579 = vector.broadcast %578 : vector<1x32xf32> to vector<16x32xf32>
    %580 = arith.addf %576, %579 : vector<16x32xf32>
    %cst_399 = arith.constant 0.000000e+00 : f32
    %581 = vector.broadcast %cst_399 : f32 to vector<16x32xf32>
    %582 = arith.maximumf %580, %581 : vector<16x32xf32>
    %583 = arith.truncf %582 : vector<16x32xf32> to vector<16x32xbf16>
    %cst_400 = arith.constant dense<0.000000e+00> : vector<16x32xf32>
    %584 = tpu.matmul %1, %583, %cst_400 {dimension_numbers = #tpu.dot_dimension_numbers<[1], [0], [0], [1], [0, 0, 1, 1], [], []>} : vector<16x16xbf16>, vector<16x32xbf16>, vector<16x32xf32> -> vector<16x32xf32>
    %cst_401 = arith.constant dense<0.000000e+00> : vector<16x32xf32>
    %585 = tpu.matmul %3, %583, %cst_401 {dimension_numbers = #tpu.dot_dimension_numbers<[1], [0], [0], [1], [0, 0, 1, 1], [], []>} : vector<16x16xbf16>, vector<16x32xbf16>, vector<16x32xf32> -> vector<16x32xf32>
    %586 = tpu.concatenate %584, %585 in 1 : vector<16x32xf32>, vector<16x32xf32> -> vector<16x64xf32>
    %587 = arith.truncf %586 : vector<16x64xf32> to vector<16x64xbf16>
    %c24 = arith.constant 24 : index
    %c0_402 = arith.constant 0 : index
    %c0_403 = arith.constant 0 : index
    %588 = vector.load %arg4[%c24, %c0_402, %c0_403] : memref<32x64x32xbf16, #tpu.memory_space<vmem>>, vector<1x64x32xbf16>
    %589 = vector.shape_cast %588 : vector<1x64x32xbf16> to vector<64x32xbf16>
    %cst_404 = arith.constant dense<0.000000e+00> : vector<16x32xf32>
    %590 = tpu.matmul %587, %589, %cst_404 {dimension_numbers = #tpu.dot_dimension_numbers<[1], [0], [0], [1], [0, 0, 1, 1], [], []>} : vector<16x64xbf16>, vector<64x32xbf16>, vector<16x32xf32> -> vector<16x32xf32>
    %c24_405 = arith.constant 24 : index
    %c0_406 = arith.constant 0 : index
    %c0_407 = arith.constant 0 : index
    %591 = vector.load %arg5[%c24_405, %c0_406, %c0_407] : memref<32x1x32xf32, #tpu.memory_space<vmem>>, vector<1x1x32xf32>
    %592 = vector.shape_cast %591 : vector<1x1x32xf32> to vector<1x32xf32>
    %593 = vector.broadcast %592 : vector<1x32xf32> to vector<16x32xf32>
    %594 = arith.addf %590, %593 : vector<16x32xf32>
    %cst_408 = arith.constant 0.000000e+00 : f32
    %595 = vector.broadcast %cst_408 : f32 to vector<16x32xf32>
    %596 = arith.maximumf %594, %595 : vector<16x32xf32>
    %597 = arith.truncf %596 : vector<16x32xf32> to vector<16x32xbf16>
    %cst_409 = arith.constant dense<0.000000e+00> : vector<16x32xf32>
    %598 = tpu.matmul %1, %597, %cst_409 {dimension_numbers = #tpu.dot_dimension_numbers<[1], [0], [0], [1], [0, 0, 1, 1], [], []>} : vector<16x16xbf16>, vector<16x32xbf16>, vector<16x32xf32> -> vector<16x32xf32>
    %cst_410 = arith.constant dense<0.000000e+00> : vector<16x32xf32>
    %599 = tpu.matmul %3, %597, %cst_410 {dimension_numbers = #tpu.dot_dimension_numbers<[1], [0], [0], [1], [0, 0, 1, 1], [], []>} : vector<16x16xbf16>, vector<16x32xbf16>, vector<16x32xf32> -> vector<16x32xf32>
    %600 = tpu.concatenate %598, %599 in 1 : vector<16x32xf32>, vector<16x32xf32> -> vector<16x64xf32>
    %601 = arith.truncf %600 : vector<16x64xf32> to vector<16x64xbf16>
    %c25 = arith.constant 25 : index
    %c0_411 = arith.constant 0 : index
    %c0_412 = arith.constant 0 : index
    %602 = vector.load %arg4[%c25, %c0_411, %c0_412] : memref<32x64x32xbf16, #tpu.memory_space<vmem>>, vector<1x64x32xbf16>
    %603 = vector.shape_cast %602 : vector<1x64x32xbf16> to vector<64x32xbf16>
    %cst_413 = arith.constant dense<0.000000e+00> : vector<16x32xf32>
    %604 = tpu.matmul %601, %603, %cst_413 {dimension_numbers = #tpu.dot_dimension_numbers<[1], [0], [0], [1], [0, 0, 1, 1], [], []>} : vector<16x64xbf16>, vector<64x32xbf16>, vector<16x32xf32> -> vector<16x32xf32>
    %c25_414 = arith.constant 25 : index
    %c0_415 = arith.constant 0 : index
    %c0_416 = arith.constant 0 : index
    %605 = vector.load %arg5[%c25_414, %c0_415, %c0_416] : memref<32x1x32xf32, #tpu.memory_space<vmem>>, vector<1x1x32xf32>
    %606 = vector.shape_cast %605 : vector<1x1x32xf32> to vector<1x32xf32>
    %607 = vector.broadcast %606 : vector<1x32xf32> to vector<16x32xf32>
    %608 = arith.addf %604, %607 : vector<16x32xf32>
    %cst_417 = arith.constant 0.000000e+00 : f32
    %609 = vector.broadcast %cst_417 : f32 to vector<16x32xf32>
    %610 = arith.maximumf %608, %609 : vector<16x32xf32>
    %611 = arith.truncf %610 : vector<16x32xf32> to vector<16x32xbf16>
    %612 = tpu.concatenate %597, %611 in 1 : vector<16x32xbf16>, vector<16x32xbf16> -> vector<16x64xbf16>
    %c22_418 = arith.constant 22 : index
    %c0_419 = arith.constant 0 : index
    %c0_420 = arith.constant 0 : index
    %613 = vector.load %arg6[%c22_418, %c0_419, %c0_420] : memref<31x64x32xbf16, #tpu.memory_space<vmem>>, vector<1x64x32xbf16>
    %614 = vector.shape_cast %613 : vector<1x64x32xbf16> to vector<64x32xbf16>
    %cst_421 = arith.constant dense<0.000000e+00> : vector<16x32xf32>
    %615 = tpu.matmul %612, %614, %cst_421 {dimension_numbers = #tpu.dot_dimension_numbers<[1], [0], [0], [1], [0, 0, 1, 1], [], []>} : vector<16x64xbf16>, vector<64x32xbf16>, vector<16x32xf32> -> vector<16x32xf32>
    %c22_422 = arith.constant 22 : index
    %c0_423 = arith.constant 0 : index
    %c0_424 = arith.constant 0 : index
    %616 = vector.load %arg7[%c22_422, %c0_423, %c0_424] : memref<31x1x32xf32, #tpu.memory_space<vmem>>, vector<1x1x32xf32>
    %617 = vector.shape_cast %616 : vector<1x1x32xf32> to vector<1x32xf32>
    %618 = vector.broadcast %617 : vector<1x32xf32> to vector<16x32xf32>
    %619 = arith.addf %615, %618 : vector<16x32xf32>
    %cst_425 = arith.constant 0.000000e+00 : f32
    %620 = vector.broadcast %cst_425 : f32 to vector<16x32xf32>
    %621 = arith.maximumf %619, %620 : vector<16x32xf32>
    %622 = arith.truncf %621 : vector<16x32xf32> to vector<16x32xbf16>
    %cst_426 = arith.constant dense<0.000000e+00> : vector<16x32xf32>
    %623 = tpu.matmul %1, %622, %cst_426 {dimension_numbers = #tpu.dot_dimension_numbers<[1], [0], [0], [1], [0, 0, 1, 1], [], []>} : vector<16x16xbf16>, vector<16x32xbf16>, vector<16x32xf32> -> vector<16x32xf32>
    %cst_427 = arith.constant dense<0.000000e+00> : vector<16x32xf32>
    %624 = tpu.matmul %3, %622, %cst_427 {dimension_numbers = #tpu.dot_dimension_numbers<[1], [0], [0], [1], [0, 0, 1, 1], [], []>} : vector<16x16xbf16>, vector<16x32xbf16>, vector<16x32xf32> -> vector<16x32xf32>
    %625 = tpu.concatenate %623, %624 in 1 : vector<16x32xf32>, vector<16x32xf32> -> vector<16x64xf32>
    %626 = arith.truncf %625 : vector<16x64xf32> to vector<16x64xbf16>
    %c26 = arith.constant 26 : index
    %c0_428 = arith.constant 0 : index
    %c0_429 = arith.constant 0 : index
    %627 = vector.load %arg4[%c26, %c0_428, %c0_429] : memref<32x64x32xbf16, #tpu.memory_space<vmem>>, vector<1x64x32xbf16>
    %628 = vector.shape_cast %627 : vector<1x64x32xbf16> to vector<64x32xbf16>
    %cst_430 = arith.constant dense<0.000000e+00> : vector<16x32xf32>
    %629 = tpu.matmul %626, %628, %cst_430 {dimension_numbers = #tpu.dot_dimension_numbers<[1], [0], [0], [1], [0, 0, 1, 1], [], []>} : vector<16x64xbf16>, vector<64x32xbf16>, vector<16x32xf32> -> vector<16x32xf32>
    %c26_431 = arith.constant 26 : index
    %c0_432 = arith.constant 0 : index
    %c0_433 = arith.constant 0 : index
    %630 = vector.load %arg5[%c26_431, %c0_432, %c0_433] : memref<32x1x32xf32, #tpu.memory_space<vmem>>, vector<1x1x32xf32>
    %631 = vector.shape_cast %630 : vector<1x1x32xf32> to vector<1x32xf32>
    %632 = vector.broadcast %631 : vector<1x32xf32> to vector<16x32xf32>
    %633 = arith.addf %629, %632 : vector<16x32xf32>
    %cst_434 = arith.constant 0.000000e+00 : f32
    %634 = vector.broadcast %cst_434 : f32 to vector<16x32xf32>
    %635 = arith.maximumf %633, %634 : vector<16x32xf32>
    %636 = arith.truncf %635 : vector<16x32xf32> to vector<16x32xbf16>
    %cst_435 = arith.constant dense<0.000000e+00> : vector<16x32xf32>
    %637 = tpu.matmul %1, %636, %cst_435 {dimension_numbers = #tpu.dot_dimension_numbers<[1], [0], [0], [1], [0, 0, 1, 1], [], []>} : vector<16x16xbf16>, vector<16x32xbf16>, vector<16x32xf32> -> vector<16x32xf32>
    %cst_436 = arith.constant dense<0.000000e+00> : vector<16x32xf32>
    %638 = tpu.matmul %3, %636, %cst_436 {dimension_numbers = #tpu.dot_dimension_numbers<[1], [0], [0], [1], [0, 0, 1, 1], [], []>} : vector<16x16xbf16>, vector<16x32xbf16>, vector<16x32xf32> -> vector<16x32xf32>
    %639 = tpu.concatenate %637, %638 in 1 : vector<16x32xf32>, vector<16x32xf32> -> vector<16x64xf32>
    %640 = arith.truncf %639 : vector<16x64xf32> to vector<16x64xbf16>
    %c27 = arith.constant 27 : index
    %c0_437 = arith.constant 0 : index
    %c0_438 = arith.constant 0 : index
    %641 = vector.load %arg4[%c27, %c0_437, %c0_438] : memref<32x64x32xbf16, #tpu.memory_space<vmem>>, vector<1x64x32xbf16>
    %642 = vector.shape_cast %641 : vector<1x64x32xbf16> to vector<64x32xbf16>
    %cst_439 = arith.constant dense<0.000000e+00> : vector<16x32xf32>
    %643 = tpu.matmul %640, %642, %cst_439 {dimension_numbers = #tpu.dot_dimension_numbers<[1], [0], [0], [1], [0, 0, 1, 1], [], []>} : vector<16x64xbf16>, vector<64x32xbf16>, vector<16x32xf32> -> vector<16x32xf32>
    %c27_440 = arith.constant 27 : index
    %c0_441 = arith.constant 0 : index
    %c0_442 = arith.constant 0 : index
    %644 = vector.load %arg5[%c27_440, %c0_441, %c0_442] : memref<32x1x32xf32, #tpu.memory_space<vmem>>, vector<1x1x32xf32>
    %645 = vector.shape_cast %644 : vector<1x1x32xf32> to vector<1x32xf32>
    %646 = vector.broadcast %645 : vector<1x32xf32> to vector<16x32xf32>
    %647 = arith.addf %643, %646 : vector<16x32xf32>
    %cst_443 = arith.constant 0.000000e+00 : f32
    %648 = vector.broadcast %cst_443 : f32 to vector<16x32xf32>
    %649 = arith.maximumf %647, %648 : vector<16x32xf32>
    %650 = arith.truncf %649 : vector<16x32xf32> to vector<16x32xbf16>
    %651 = tpu.concatenate %636, %650 in 1 : vector<16x32xbf16>, vector<16x32xbf16> -> vector<16x64xbf16>
    %c23_444 = arith.constant 23 : index
    %c0_445 = arith.constant 0 : index
    %c0_446 = arith.constant 0 : index
    %652 = vector.load %arg6[%c23_444, %c0_445, %c0_446] : memref<31x64x32xbf16, #tpu.memory_space<vmem>>, vector<1x64x32xbf16>
    %653 = vector.shape_cast %652 : vector<1x64x32xbf16> to vector<64x32xbf16>
    %cst_447 = arith.constant dense<0.000000e+00> : vector<16x32xf32>
    %654 = tpu.matmul %651, %653, %cst_447 {dimension_numbers = #tpu.dot_dimension_numbers<[1], [0], [0], [1], [0, 0, 1, 1], [], []>} : vector<16x64xbf16>, vector<64x32xbf16>, vector<16x32xf32> -> vector<16x32xf32>
    %c23_448 = arith.constant 23 : index
    %c0_449 = arith.constant 0 : index
    %c0_450 = arith.constant 0 : index
    %655 = vector.load %arg7[%c23_448, %c0_449, %c0_450] : memref<31x1x32xf32, #tpu.memory_space<vmem>>, vector<1x1x32xf32>
    %656 = vector.shape_cast %655 : vector<1x1x32xf32> to vector<1x32xf32>
    %657 = vector.broadcast %656 : vector<1x32xf32> to vector<16x32xf32>
    %658 = arith.addf %654, %657 : vector<16x32xf32>
    %cst_451 = arith.constant 0.000000e+00 : f32
    %659 = vector.broadcast %cst_451 : f32 to vector<16x32xf32>
    %660 = arith.maximumf %658, %659 : vector<16x32xf32>
    %661 = arith.truncf %660 : vector<16x32xf32> to vector<16x32xbf16>
    %662 = tpu.concatenate %622, %661 in 1 : vector<16x32xbf16>, vector<16x32xbf16> -> vector<16x64xbf16>
    %c24_452 = arith.constant 24 : index
    %c0_453 = arith.constant 0 : index
    %c0_454 = arith.constant 0 : index
    %663 = vector.load %arg6[%c24_452, %c0_453, %c0_454] : memref<31x64x32xbf16, #tpu.memory_space<vmem>>, vector<1x64x32xbf16>
    %664 = vector.shape_cast %663 : vector<1x64x32xbf16> to vector<64x32xbf16>
    %cst_455 = arith.constant dense<0.000000e+00> : vector<16x32xf32>
    %665 = tpu.matmul %662, %664, %cst_455 {dimension_numbers = #tpu.dot_dimension_numbers<[1], [0], [0], [1], [0, 0, 1, 1], [], []>} : vector<16x64xbf16>, vector<64x32xbf16>, vector<16x32xf32> -> vector<16x32xf32>
    %c24_456 = arith.constant 24 : index
    %c0_457 = arith.constant 0 : index
    %c0_458 = arith.constant 0 : index
    %666 = vector.load %arg7[%c24_456, %c0_457, %c0_458] : memref<31x1x32xf32, #tpu.memory_space<vmem>>, vector<1x1x32xf32>
    %667 = vector.shape_cast %666 : vector<1x1x32xf32> to vector<1x32xf32>
    %668 = vector.broadcast %667 : vector<1x32xf32> to vector<16x32xf32>
    %669 = arith.addf %665, %668 : vector<16x32xf32>
    %cst_459 = arith.constant 0.000000e+00 : f32
    %670 = vector.broadcast %cst_459 : f32 to vector<16x32xf32>
    %671 = arith.maximumf %669, %670 : vector<16x32xf32>
    %672 = arith.truncf %671 : vector<16x32xf32> to vector<16x32xbf16>
    %cst_460 = arith.constant dense<0.000000e+00> : vector<16x32xf32>
    %673 = tpu.matmul %1, %672, %cst_460 {dimension_numbers = #tpu.dot_dimension_numbers<[1], [0], [0], [1], [0, 0, 1, 1], [], []>} : vector<16x16xbf16>, vector<16x32xbf16>, vector<16x32xf32> -> vector<16x32xf32>
    %cst_461 = arith.constant dense<0.000000e+00> : vector<16x32xf32>
    %674 = tpu.matmul %3, %672, %cst_461 {dimension_numbers = #tpu.dot_dimension_numbers<[1], [0], [0], [1], [0, 0, 1, 1], [], []>} : vector<16x16xbf16>, vector<16x32xbf16>, vector<16x32xf32> -> vector<16x32xf32>
    %675 = tpu.concatenate %673, %674 in 1 : vector<16x32xf32>, vector<16x32xf32> -> vector<16x64xf32>
    %676 = arith.truncf %675 : vector<16x64xf32> to vector<16x64xbf16>
    %c28 = arith.constant 28 : index
    %c0_462 = arith.constant 0 : index
    %c0_463 = arith.constant 0 : index
    %677 = vector.load %arg4[%c28, %c0_462, %c0_463] : memref<32x64x32xbf16, #tpu.memory_space<vmem>>, vector<1x64x32xbf16>
    %678 = vector.shape_cast %677 : vector<1x64x32xbf16> to vector<64x32xbf16>
    %cst_464 = arith.constant dense<0.000000e+00> : vector<16x32xf32>
    %679 = tpu.matmul %676, %678, %cst_464 {dimension_numbers = #tpu.dot_dimension_numbers<[1], [0], [0], [1], [0, 0, 1, 1], [], []>} : vector<16x64xbf16>, vector<64x32xbf16>, vector<16x32xf32> -> vector<16x32xf32>
    %c28_465 = arith.constant 28 : index
    %c0_466 = arith.constant 0 : index
    %c0_467 = arith.constant 0 : index
    %680 = vector.load %arg5[%c28_465, %c0_466, %c0_467] : memref<32x1x32xf32, #tpu.memory_space<vmem>>, vector<1x1x32xf32>
    %681 = vector.shape_cast %680 : vector<1x1x32xf32> to vector<1x32xf32>
    %682 = vector.broadcast %681 : vector<1x32xf32> to vector<16x32xf32>
    %683 = arith.addf %679, %682 : vector<16x32xf32>
    %cst_468 = arith.constant 0.000000e+00 : f32
    %684 = vector.broadcast %cst_468 : f32 to vector<16x32xf32>
    %685 = arith.maximumf %683, %684 : vector<16x32xf32>
    %686 = arith.truncf %685 : vector<16x32xf32> to vector<16x32xbf16>
    %cst_469 = arith.constant dense<0.000000e+00> : vector<16x32xf32>
    %687 = tpu.matmul %1, %686, %cst_469 {dimension_numbers = #tpu.dot_dimension_numbers<[1], [0], [0], [1], [0, 0, 1, 1], [], []>} : vector<16x16xbf16>, vector<16x32xbf16>, vector<16x32xf32> -> vector<16x32xf32>
    %cst_470 = arith.constant dense<0.000000e+00> : vector<16x32xf32>
    %688 = tpu.matmul %3, %686, %cst_470 {dimension_numbers = #tpu.dot_dimension_numbers<[1], [0], [0], [1], [0, 0, 1, 1], [], []>} : vector<16x16xbf16>, vector<16x32xbf16>, vector<16x32xf32> -> vector<16x32xf32>
    %689 = tpu.concatenate %687, %688 in 1 : vector<16x32xf32>, vector<16x32xf32> -> vector<16x64xf32>
    %690 = arith.truncf %689 : vector<16x64xf32> to vector<16x64xbf16>
    %c29 = arith.constant 29 : index
    %c0_471 = arith.constant 0 : index
    %c0_472 = arith.constant 0 : index
    %691 = vector.load %arg4[%c29, %c0_471, %c0_472] : memref<32x64x32xbf16, #tpu.memory_space<vmem>>, vector<1x64x32xbf16>
    %692 = vector.shape_cast %691 : vector<1x64x32xbf16> to vector<64x32xbf16>
    %cst_473 = arith.constant dense<0.000000e+00> : vector<16x32xf32>
    %693 = tpu.matmul %690, %692, %cst_473 {dimension_numbers = #tpu.dot_dimension_numbers<[1], [0], [0], [1], [0, 0, 1, 1], [], []>} : vector<16x64xbf16>, vector<64x32xbf16>, vector<16x32xf32> -> vector<16x32xf32>
    %c29_474 = arith.constant 29 : index
    %c0_475 = arith.constant 0 : index
    %c0_476 = arith.constant 0 : index
    %694 = vector.load %arg5[%c29_474, %c0_475, %c0_476] : memref<32x1x32xf32, #tpu.memory_space<vmem>>, vector<1x1x32xf32>
    %695 = vector.shape_cast %694 : vector<1x1x32xf32> to vector<1x32xf32>
    %696 = vector.broadcast %695 : vector<1x32xf32> to vector<16x32xf32>
    %697 = arith.addf %693, %696 : vector<16x32xf32>
    %cst_477 = arith.constant 0.000000e+00 : f32
    %698 = vector.broadcast %cst_477 : f32 to vector<16x32xf32>
    %699 = arith.maximumf %697, %698 : vector<16x32xf32>
    %700 = arith.truncf %699 : vector<16x32xf32> to vector<16x32xbf16>
    %701 = tpu.concatenate %686, %700 in 1 : vector<16x32xbf16>, vector<16x32xbf16> -> vector<16x64xbf16>
    %c25_478 = arith.constant 25 : index
    %c0_479 = arith.constant 0 : index
    %c0_480 = arith.constant 0 : index
    %702 = vector.load %arg6[%c25_478, %c0_479, %c0_480] : memref<31x64x32xbf16, #tpu.memory_space<vmem>>, vector<1x64x32xbf16>
    %703 = vector.shape_cast %702 : vector<1x64x32xbf16> to vector<64x32xbf16>
    %cst_481 = arith.constant dense<0.000000e+00> : vector<16x32xf32>
    %704 = tpu.matmul %701, %703, %cst_481 {dimension_numbers = #tpu.dot_dimension_numbers<[1], [0], [0], [1], [0, 0, 1, 1], [], []>} : vector<16x64xbf16>, vector<64x32xbf16>, vector<16x32xf32> -> vector<16x32xf32>
    %c25_482 = arith.constant 25 : index
    %c0_483 = arith.constant 0 : index
    %c0_484 = arith.constant 0 : index
    %705 = vector.load %arg7[%c25_482, %c0_483, %c0_484] : memref<31x1x32xf32, #tpu.memory_space<vmem>>, vector<1x1x32xf32>
    %706 = vector.shape_cast %705 : vector<1x1x32xf32> to vector<1x32xf32>
    %707 = vector.broadcast %706 : vector<1x32xf32> to vector<16x32xf32>
    %708 = arith.addf %704, %707 : vector<16x32xf32>
    %cst_485 = arith.constant 0.000000e+00 : f32
    %709 = vector.broadcast %cst_485 : f32 to vector<16x32xf32>
    %710 = arith.maximumf %708, %709 : vector<16x32xf32>
    %711 = arith.truncf %710 : vector<16x32xf32> to vector<16x32xbf16>
    %cst_486 = arith.constant dense<0.000000e+00> : vector<16x32xf32>
    %712 = tpu.matmul %1, %711, %cst_486 {dimension_numbers = #tpu.dot_dimension_numbers<[1], [0], [0], [1], [0, 0, 1, 1], [], []>} : vector<16x16xbf16>, vector<16x32xbf16>, vector<16x32xf32> -> vector<16x32xf32>
    %cst_487 = arith.constant dense<0.000000e+00> : vector<16x32xf32>
    %713 = tpu.matmul %3, %711, %cst_487 {dimension_numbers = #tpu.dot_dimension_numbers<[1], [0], [0], [1], [0, 0, 1, 1], [], []>} : vector<16x16xbf16>, vector<16x32xbf16>, vector<16x32xf32> -> vector<16x32xf32>
    %714 = tpu.concatenate %712, %713 in 1 : vector<16x32xf32>, vector<16x32xf32> -> vector<16x64xf32>
    %715 = arith.truncf %714 : vector<16x64xf32> to vector<16x64xbf16>
    %c30 = arith.constant 30 : index
    %c0_488 = arith.constant 0 : index
    %c0_489 = arith.constant 0 : index
    %716 = vector.load %arg4[%c30, %c0_488, %c0_489] : memref<32x64x32xbf16, #tpu.memory_space<vmem>>, vector<1x64x32xbf16>
    %717 = vector.shape_cast %716 : vector<1x64x32xbf16> to vector<64x32xbf16>
    %cst_490 = arith.constant dense<0.000000e+00> : vector<16x32xf32>
    %718 = tpu.matmul %715, %717, %cst_490 {dimension_numbers = #tpu.dot_dimension_numbers<[1], [0], [0], [1], [0, 0, 1, 1], [], []>} : vector<16x64xbf16>, vector<64x32xbf16>, vector<16x32xf32> -> vector<16x32xf32>
    %c30_491 = arith.constant 30 : index
    %c0_492 = arith.constant 0 : index
    %c0_493 = arith.constant 0 : index
    %719 = vector.load %arg5[%c30_491, %c0_492, %c0_493] : memref<32x1x32xf32, #tpu.memory_space<vmem>>, vector<1x1x32xf32>
    %720 = vector.shape_cast %719 : vector<1x1x32xf32> to vector<1x32xf32>
    %721 = vector.broadcast %720 : vector<1x32xf32> to vector<16x32xf32>
    %722 = arith.addf %718, %721 : vector<16x32xf32>
    %cst_494 = arith.constant 0.000000e+00 : f32
    %723 = vector.broadcast %cst_494 : f32 to vector<16x32xf32>
    %724 = arith.maximumf %722, %723 : vector<16x32xf32>
    %725 = arith.truncf %724 : vector<16x32xf32> to vector<16x32xbf16>
    %cst_495 = arith.constant dense<0.000000e+00> : vector<16x32xf32>
    %726 = tpu.matmul %1, %725, %cst_495 {dimension_numbers = #tpu.dot_dimension_numbers<[1], [0], [0], [1], [0, 0, 1, 1], [], []>} : vector<16x16xbf16>, vector<16x32xbf16>, vector<16x32xf32> -> vector<16x32xf32>
    %cst_496 = arith.constant dense<0.000000e+00> : vector<16x32xf32>
    %727 = tpu.matmul %3, %725, %cst_496 {dimension_numbers = #tpu.dot_dimension_numbers<[1], [0], [0], [1], [0, 0, 1, 1], [], []>} : vector<16x16xbf16>, vector<16x32xbf16>, vector<16x32xf32> -> vector<16x32xf32>
    %728 = tpu.concatenate %726, %727 in 1 : vector<16x32xf32>, vector<16x32xf32> -> vector<16x64xf32>
    %729 = arith.truncf %728 : vector<16x64xf32> to vector<16x64xbf16>
    %c31 = arith.constant 31 : index
    %c0_497 = arith.constant 0 : index
    %c0_498 = arith.constant 0 : index
    %730 = vector.load %arg4[%c31, %c0_497, %c0_498] : memref<32x64x32xbf16, #tpu.memory_space<vmem>>, vector<1x64x32xbf16>
    %731 = vector.shape_cast %730 : vector<1x64x32xbf16> to vector<64x32xbf16>
    %cst_499 = arith.constant dense<0.000000e+00> : vector<16x32xf32>
    %732 = tpu.matmul %729, %731, %cst_499 {dimension_numbers = #tpu.dot_dimension_numbers<[1], [0], [0], [1], [0, 0, 1, 1], [], []>} : vector<16x64xbf16>, vector<64x32xbf16>, vector<16x32xf32> -> vector<16x32xf32>
    %c31_500 = arith.constant 31 : index
    %c0_501 = arith.constant 0 : index
    %c0_502 = arith.constant 0 : index
    %733 = vector.load %arg5[%c31_500, %c0_501, %c0_502] : memref<32x1x32xf32, #tpu.memory_space<vmem>>, vector<1x1x32xf32>
    %734 = vector.shape_cast %733 : vector<1x1x32xf32> to vector<1x32xf32>
    %735 = vector.broadcast %734 : vector<1x32xf32> to vector<16x32xf32>
    %736 = arith.addf %732, %735 : vector<16x32xf32>
    %cst_503 = arith.constant 0.000000e+00 : f32
    %737 = vector.broadcast %cst_503 : f32 to vector<16x32xf32>
    %738 = arith.maximumf %736, %737 : vector<16x32xf32>
    %739 = arith.truncf %738 : vector<16x32xf32> to vector<16x32xbf16>
    %740 = tpu.concatenate %725, %739 in 1 : vector<16x32xbf16>, vector<16x32xbf16> -> vector<16x64xbf16>
    %c26_504 = arith.constant 26 : index
    %c0_505 = arith.constant 0 : index
    %c0_506 = arith.constant 0 : index
    %741 = vector.load %arg6[%c26_504, %c0_505, %c0_506] : memref<31x64x32xbf16, #tpu.memory_space<vmem>>, vector<1x64x32xbf16>
    %742 = vector.shape_cast %741 : vector<1x64x32xbf16> to vector<64x32xbf16>
    %cst_507 = arith.constant dense<0.000000e+00> : vector<16x32xf32>
    %743 = tpu.matmul %740, %742, %cst_507 {dimension_numbers = #tpu.dot_dimension_numbers<[1], [0], [0], [1], [0, 0, 1, 1], [], []>} : vector<16x64xbf16>, vector<64x32xbf16>, vector<16x32xf32> -> vector<16x32xf32>
    %c26_508 = arith.constant 26 : index
    %c0_509 = arith.constant 0 : index
    %c0_510 = arith.constant 0 : index
    %744 = vector.load %arg7[%c26_508, %c0_509, %c0_510] : memref<31x1x32xf32, #tpu.memory_space<vmem>>, vector<1x1x32xf32>
    %745 = vector.shape_cast %744 : vector<1x1x32xf32> to vector<1x32xf32>
    %746 = vector.broadcast %745 : vector<1x32xf32> to vector<16x32xf32>
    %747 = arith.addf %743, %746 : vector<16x32xf32>
    %cst_511 = arith.constant 0.000000e+00 : f32
    %748 = vector.broadcast %cst_511 : f32 to vector<16x32xf32>
    %749 = arith.maximumf %747, %748 : vector<16x32xf32>
    %750 = arith.truncf %749 : vector<16x32xf32> to vector<16x32xbf16>
    %751 = tpu.concatenate %711, %750 in 1 : vector<16x32xbf16>, vector<16x32xbf16> -> vector<16x64xbf16>
    %c27_512 = arith.constant 27 : index
    %c0_513 = arith.constant 0 : index
    %c0_514 = arith.constant 0 : index
    %752 = vector.load %arg6[%c27_512, %c0_513, %c0_514] : memref<31x64x32xbf16, #tpu.memory_space<vmem>>, vector<1x64x32xbf16>
    %753 = vector.shape_cast %752 : vector<1x64x32xbf16> to vector<64x32xbf16>
    %cst_515 = arith.constant dense<0.000000e+00> : vector<16x32xf32>
    %754 = tpu.matmul %751, %753, %cst_515 {dimension_numbers = #tpu.dot_dimension_numbers<[1], [0], [0], [1], [0, 0, 1, 1], [], []>} : vector<16x64xbf16>, vector<64x32xbf16>, vector<16x32xf32> -> vector<16x32xf32>
    %c27_516 = arith.constant 27 : index
    %c0_517 = arith.constant 0 : index
    %c0_518 = arith.constant 0 : index
    %755 = vector.load %arg7[%c27_516, %c0_517, %c0_518] : memref<31x1x32xf32, #tpu.memory_space<vmem>>, vector<1x1x32xf32>
    %756 = vector.shape_cast %755 : vector<1x1x32xf32> to vector<1x32xf32>
    %757 = vector.broadcast %756 : vector<1x32xf32> to vector<16x32xf32>
    %758 = arith.addf %754, %757 : vector<16x32xf32>
    %cst_519 = arith.constant 0.000000e+00 : f32
    %759 = vector.broadcast %cst_519 : f32 to vector<16x32xf32>
    %760 = arith.maximumf %758, %759 : vector<16x32xf32>
    %761 = arith.truncf %760 : vector<16x32xf32> to vector<16x32xbf16>
    %762 = tpu.concatenate %672, %761 in 1 : vector<16x32xbf16>, vector<16x32xbf16> -> vector<16x64xbf16>
    %c28_520 = arith.constant 28 : index
    %c0_521 = arith.constant 0 : index
    %c0_522 = arith.constant 0 : index
    %763 = vector.load %arg6[%c28_520, %c0_521, %c0_522] : memref<31x64x32xbf16, #tpu.memory_space<vmem>>, vector<1x64x32xbf16>
    %764 = vector.shape_cast %763 : vector<1x64x32xbf16> to vector<64x32xbf16>
    %cst_523 = arith.constant dense<0.000000e+00> : vector<16x32xf32>
    %765 = tpu.matmul %762, %764, %cst_523 {dimension_numbers = #tpu.dot_dimension_numbers<[1], [0], [0], [1], [0, 0, 1, 1], [], []>} : vector<16x64xbf16>, vector<64x32xbf16>, vector<16x32xf32> -> vector<16x32xf32>
    %c28_524 = arith.constant 28 : index
    %c0_525 = arith.constant 0 : index
    %c0_526 = arith.constant 0 : index
    %766 = vector.load %arg7[%c28_524, %c0_525, %c0_526] : memref<31x1x32xf32, #tpu.memory_space<vmem>>, vector<1x1x32xf32>
    %767 = vector.shape_cast %766 : vector<1x1x32xf32> to vector<1x32xf32>
    %768 = vector.broadcast %767 : vector<1x32xf32> to vector<16x32xf32>
    %769 = arith.addf %765, %768 : vector<16x32xf32>
    %cst_527 = arith.constant 0.000000e+00 : f32
    %770 = vector.broadcast %cst_527 : f32 to vector<16x32xf32>
    %771 = arith.maximumf %769, %770 : vector<16x32xf32>
    %772 = arith.truncf %771 : vector<16x32xf32> to vector<16x32xbf16>
    %773 = tpu.concatenate %583, %772 in 1 : vector<16x32xbf16>, vector<16x32xbf16> -> vector<16x64xbf16>
    %c29_528 = arith.constant 29 : index
    %c0_529 = arith.constant 0 : index
    %c0_530 = arith.constant 0 : index
    %774 = vector.load %arg6[%c29_528, %c0_529, %c0_530] : memref<31x64x32xbf16, #tpu.memory_space<vmem>>, vector<1x64x32xbf16>
    %775 = vector.shape_cast %774 : vector<1x64x32xbf16> to vector<64x32xbf16>
    %cst_531 = arith.constant dense<0.000000e+00> : vector<16x32xf32>
    %776 = tpu.matmul %773, %775, %cst_531 {dimension_numbers = #tpu.dot_dimension_numbers<[1], [0], [0], [1], [0, 0, 1, 1], [], []>} : vector<16x64xbf16>, vector<64x32xbf16>, vector<16x32xf32> -> vector<16x32xf32>
    %c29_532 = arith.constant 29 : index
    %c0_533 = arith.constant 0 : index
    %c0_534 = arith.constant 0 : index
    %777 = vector.load %arg7[%c29_532, %c0_533, %c0_534] : memref<31x1x32xf32, #tpu.memory_space<vmem>>, vector<1x1x32xf32>
    %778 = vector.shape_cast %777 : vector<1x1x32xf32> to vector<1x32xf32>
    %779 = vector.broadcast %778 : vector<1x32xf32> to vector<16x32xf32>
    %780 = arith.addf %776, %779 : vector<16x32xf32>
    %cst_535 = arith.constant 0.000000e+00 : f32
    %781 = vector.broadcast %cst_535 : f32 to vector<16x32xf32>
    %782 = arith.maximumf %780, %781 : vector<16x32xf32>
    %783 = arith.truncf %782 : vector<16x32xf32> to vector<16x32xbf16>
    %784 = tpu.concatenate %394, %783 in 1 : vector<16x32xbf16>, vector<16x32xbf16> -> vector<16x64xbf16>
    %c30_536 = arith.constant 30 : index
    %c0_537 = arith.constant 0 : index
    %c0_538 = arith.constant 0 : index
    %785 = vector.load %arg6[%c30_536, %c0_537, %c0_538] : memref<31x64x32xbf16, #tpu.memory_space<vmem>>, vector<1x64x32xbf16>
    %786 = vector.shape_cast %785 : vector<1x64x32xbf16> to vector<64x32xbf16>
    %cst_539 = arith.constant dense<0.000000e+00> : vector<16x32xf32>
    %787 = tpu.matmul %784, %786, %cst_539 {dimension_numbers = #tpu.dot_dimension_numbers<[1], [0], [0], [1], [0, 0, 1, 1], [], []>} : vector<16x64xbf16>, vector<64x32xbf16>, vector<16x32xf32> -> vector<16x32xf32>
    %c30_540 = arith.constant 30 : index
    %c0_541 = arith.constant 0 : index
    %c0_542 = arith.constant 0 : index
    %788 = vector.load %arg7[%c30_540, %c0_541, %c0_542] : memref<31x1x32xf32, #tpu.memory_space<vmem>>, vector<1x1x32xf32>
    %789 = vector.shape_cast %788 : vector<1x1x32xf32> to vector<1x32xf32>
    %790 = vector.broadcast %789 : vector<1x32xf32> to vector<16x32xf32>
    %791 = arith.addf %787, %790 : vector<16x32xf32>
    %cst_543 = arith.constant 0.000000e+00 : f32
    %792 = vector.broadcast %cst_543 : f32 to vector<16x32xf32>
    %793 = arith.maximumf %791, %792 : vector<16x32xf32>
    %c0_544 = arith.constant 0 : index
    %c0_545 = arith.constant 0 : index
    %c0_546 = arith.constant 0 : index
    %794 = vector.load %arg8[%c0_544, %c0_545, %c0_546] : memref<1x16x32xf32, #tpu.memory_space<vmem>>, vector<1x16x32xf32>
    %795 = vector.shape_cast %794 : vector<1x16x32xf32> to vector<16x32xf32>
    %796 = vector.shape_cast %793 : vector<16x32xf32> to vector<1x16x32xf32>
    tpu.vector_store %arg8[%c0_544, %c0_545, %c0_546], %796 {strides = array<i32>} : memref<1x16x32xf32, #tpu.memory_space<vmem>>, vector<1x16x32xf32>,
    return
  }
  func.func @transform_0(%arg0: i32) -> (i32, i32, i32) {
    %c0_i32 = arith.constant 0 : i32
    %c0_i32_0 = arith.constant 0 : i32
    %c0_i32_1 = arith.constant 0 : i32
    return %arg0, %c0_i32, %c0_i32_0 : i32, i32, i32
  }
  func.func @transform_1(%arg0: i32) -> (i32, i32, i32) {
    %c0_i32 = arith.constant 0 : i32
    %c0_i32_0 = arith.constant 0 : i32
    %c0_i32_1 = arith.constant 0 : i32
    return %arg0, %c0_i32, %c0_i32_0 : i32, i32, i32
  }
  func.func @transform_2(%arg0: i32) -> (i32, i32, i32) {
    %c0_i32 = arith.constant 0 : i32
    %c0_i32_0 = arith.constant 0 : i32
    %c0_i32_1 = arith.constant 0 : i32
    return %arg0, %c0_i32, %c0_i32_0 : i32, i32, i32
  }
  func.func @transform_3(%arg0: i32) -> (i32, i32, i32) {
    %c0_i32 = arith.constant 0 : i32
    %c0_i32_0 = arith.constant 0 : i32
    %c0_i32_1 = arith.constant 0 : i32
    %c0_i32_2 = arith.constant 0 : i32
    return %c0_i32, %c0_i32_0, %c0_i32_1 : i32, i32, i32
  }
  func.func @transform_4(%arg0: i32) -> (i32, i32, i32) {
    %c0_i32 = arith.constant 0 : i32
    %c0_i32_0 = arith.constant 0 : i32
    %c0_i32_1 = arith.constant 0 : i32
    %c0_i32_2 = arith.constant 0 : i32
    return %c0_i32, %c0_i32_0, %c0_i32_1 : i32, i32, i32
  }
  func.func @transform_5(%arg0: i32) -> (i32, i32, i32) {
    %c0_i32 = arith.constant 0 : i32
    %c0_i32_0 = arith.constant 0 : i32
    %c0_i32_1 = arith.constant 0 : i32
    %c0_i32_2 = arith.constant 0 : i32
    return %c0_i32, %c0_i32_0, %c0_i32_1 : i32, i32, i32
  }
  func.func @transform_6(%arg0: i32) -> (i32, i32, i32) {
    %c0_i32 = arith.constant 0 : i32
    %c0_i32_0 = arith.constant 0 : i32
    %c0_i32_1 = arith.constant 0 : i32
    %c0_i32_2 = arith.constant 0 : i32
    return %c0_i32, %c0_i32_0, %c0_i32_1 : i32, i32, i32
  }
  func.func @transform_7(%arg0: i32) -> (i32, i32, i32) {
    %c0_i32 = arith.constant 0 : i32
    %c0_i32_0 = arith.constant 0 : i32
    %c0_i32_1 = arith.constant 0 : i32
    return %arg0, %c0_i32, %c0_i32_0 : i32, i32, i32
  }
}

</mosaic_0001>

<bundles_post_ra>
// kernel: hla64_forward.1
= control target key start
LH: loop header
LB: loop body
LE: loop exit
PB: predicated region body
PF: predicated region fallthrough
CT: control target
= control target key end

     0   :  { %12 = vsyncpa [#allocation3], 0  ;;  %s14453_s0 = inlined_call_operand.vmem [shape: bf16[2,16,16], index: 0, kind: input, shape index: {}]   ;;  %s14454_s1 = inlined_call_operand.vmem [shape: bf16[2,16,16], index: 1, kind: input, shape index: {}]   ;;  %s14455_s2 = inlined_call_operand.vmem [shape: bf16[2,16,32], index: 2, kind: input, shape index: {}]   ;;  %s14456_s3 = inlined_call_operand.vmem [shape: bf16[32,64,32], index: 3, kind: input, shape index: {}]   ;;  %s14457_s4 = inlined_call_operand.vmem [shape: f32[32,1,32], index: 4, kind: input, shape index: {}]   ;;  %s14458_s5 = inlined_call_operand.vmem [shape: bf16[31,64,32], index: 5, kind: input, shape index: {}]   ;;  %s14459_s6 = inlined_call_operand.vmem [shape: f32[31,1,32], index: 6, kind: input, shape index: {}]   ;;  %s14460_s7 = inlined_call_operand.hbm [shape: f32[2,16,32], index: 7, kind: output, shape index: {}]  }
   0x1   :  { %14 = vsyncpa [#allocation3 + $0x1], 0  ;;  %s12295_s24 = smov 0   ;;  %s12297_s25 = smov 0  }
   0x2   :  { %s12299_s26 = smov 0   ;;  %s12301_s27 = smov 0  }
   0x3 LB: > { %s12316_s28 = sadd.s32 4294967295, %s12247_s27   ;;  %s9121_s29 = sadd.s32 4294967294, %s12247_s27   ;;  %s12247_s27 = sphi %s12301_s27, %s14466_s27   ;;  %s12243_s26 = sphi %s12299_s26, %s14465_s26   ;;  %s12239_s25 = sphi %s12297_s25, %s14464_s25   ;;  %s12235_s24 = sphi %s12295_s24, %s14463_s24  }
   0x4   : > { %s12320_s30 = sadd.s32 1, %s12247_s27   ;;  %s189_s8 = sadd.s32 1, %s12243_s26 }
   0x5   : > { %s186_s9 = ssub.s32 %s12247_s27, %s12320_s30  ;;  %p199_p0 = scmp.ne.s32.totalorder %s12243_s26, %s12239_s25 }
   0x6   : > { %p187_p1 = scmp.eq.s32.totalorder %s186_s9, 0  ;;  %p200_p2 = scmp.eq.s32.totalorder %s12316_s28, 1 }
   0x7   : > { %p205_p3 = scmp.ne.s32.totalorder %s12239_s25, %s12235_s24  ;;  %p206_p4 = scmp.eq.s32.totalorder %s9121_s29, 1 }
   0x8   : > { %s12331_s10 = scalar_select %p187_p1, %s12243_s26, %s189_s8  }
   0x9   : > { %p12333_p5 = por %p200_p2, %p199_p0  ;;  %p12337_p6 = por %p206_p4, %p205_p3 }
   0xa   : > { %p9124_p7 = scmp.ge.s32.totalorder %s12247_s27, 1  ;;  %p260_p8 = scmp.lt.s32.totalorder %s12247_s27, 3 }
   0xc   : > { %p261_p9 = pnand %p9124_p7, %p260_p8 }
   0xd   : > { %p302_p10 = scmp.lt.s32.totalorder (!%p261_p9), %s12316_s28, 1  ;;  %v12249_v0 = vmov (!%p261_p9), 0.0   ;;  %vm12250_vm0 = vmmov (!%p261_p9), 0   ;;  %vm335_vm1 = vcmask (!%p261_p9), 130048   ;;  %v11925_v4 = vld [vmem:[%s14456_s3] sm:$0xff] (!%p261_p9)   ;;  %v11926_v5 = vld [vmem:[%s14456_s3 + $0x8] sm:$0xff] (!%p261_p9)  }
   0xe   : > { %264 = sbr.rel (%p261_p9) target bundleno = 28512 (0x6f60), region = 48  ;;  %10584 = vmatprep.subr.bf16.mxu1 (!%p261_p9), %v12249_v0  ;;  %10586 = vmatprep.mubr.msk.bf16.mxu1 (!%p261_p9), %vm12250_vm0, %v12249_v0  ;;  %v11927_v6 = vld [vmem:[%s14456_s3 + $0x10] sm:$0xff] (!%p261_p9)   ;;  %v11928_v7 = vld [vmem:[%s14456_s3 + $0x18] sm:$0xff] (!%p261_p9)   ;;  %s12251_s19 = smov (!%p261_p9), 32   ;;  %vm437_vm2 = vcmask (!%p261_p9), 261120   ;;  %vm480_vm3 = vcmask (!%p261_p9), 523264  }
   0xf   : > { %10578 = vmatprep.subr.bf16.mxu0 (!%p261_p9), %v12249_v0  ;;  %10580 = vmatprep.mubr.msk.bf16.mxu0 (!%p261_p9), %vm12250_vm0, %v12249_v0  ;;  %v9137_v23 = vld [vmem:[%s14457_s4] ss:$0 sm:$0xff] (!%p261_p9)  ;;  %v11930_v36 = vld [vmem:[%s14456_s3 + $0x28] sm:$0xff] (!%p261_p9)   ;;  %v11931_v37 = vld [vmem:[%s14456_s3 + $0x30] sm:$0xff] (!%p261_p9)   ;;  %s299_s21 = sand.u32 (!%p261_p9), 1, %s12239_s25   ;;  %s10134_s8 = sshll.u32 (!%p261_p9), %s12316_s28, 8 }
  0x10   : > { %v11929_v35 = vld [vmem:[%s14456_s3 + $0x20] sm:$0xff] (!%p261_p9)   ;;  %v11932_v39 = vld [vmem:[%s14456_s3 + $0x38] sm:$0xff] (!%p261_p9)   ;;  %v11934_v55 = vld [vmem:[%s14458_s5 + $0x8] sm:$0xff] (!%p261_p9)   ;;  %s9125_s22 = sshll.u32 (!%p261_p9), %s299_s21, 4  ;;  %s12252_s15 = smov (!%p261_p9), [#allocation2]  }
  0x11   : > { %v11933_v54 = vld [vmem:[%s14458_s5] sm:$0xff] (!%p261_p9)   ;;  %v11935_v56 = vld [vmem:[%s14458_s5 + $0x10] sm:$0xff] (!%p261_p9)   ;;  %v11936_v57 = vld [vmem:[%s14458_s5 + $0x18] sm:$0xff] (!%p261_p9)   ;;  %s301_s29 = scalar_lea.vmem (!%p261_p9), [#allocation2], %s9125_s22  ;;  %s12189_s16 = sshll.u32 (!%p261_p9), %s12252_s15, 4  ;;  %s12190_s16 = int_to_ptr.vmem [resolvable:$false] %s12189_s16 }
  0x12   : > { %v9154_v58 = vld [vmem:[%s14457_s4 + $0x1] ss:$0 sm:$0xff] (!%p261_p9)  ;;  %s12191_s18 = scalar_lea.vmem (!%p261_p9), %s12190_s16, 512 }
  0x15   : > { %s303_s13 = scalar_select %p302_p10, %s12316_s28, 1 }
  0x16   : > { %s14412_s28 = scalar_lea.sflag [#allocation3], %s299_s21 }
  0x17   : > { %s10131_s14 = sshll.u32 %s303_s13, 3  ;;  %s14408_s13 = scalar_lea.hbm %s14460_s7, %s10134_s8 }
  0x18   : > { %s12354_s17 = scalar_lea.vmem %s14453_s0, %s10131_s14  ;;  %s12359_s20 = scalar_lea.vmem %s14454_s1, %s10131_s14 }
  0x19   : > { %s316_s23 = scalar_lea.vmem %s14455_s2, %s10131_s14  ;;  %v11922_v1 = vld [vmem:[%s12354_s17] sm:$0xff]  }
  0x1a   : > { %v11923_v2 = vld [vmem:[%s316_s23] sm:$0xff]  }
  0x1b   : > { %v11924_v3 = vld [vmem:[%s12359_s20] sm:$0xff]   ;;  %10585 = vmatpush3.bf16.msra.mxu1 %v11923_v2  ;;  %10579 = vmatpush3.bf16.msra.mxu0 %v11923_v2 }
  0x1c   : > { %10590 = vmatprep.subr.bf16.mxu0 %v12249_v0  ;;  %10602 = vmatprep.subr.bf16.mxu1 %v12249_v0  ;;  %v12404_v33 = vld [vmem:[%s12354_s17] sm:$0xff]  }
  0x1d   : > { %v12413_v34 = vld [vmem:[%s12359_s20] sm:$0xff]  }
  0x1e   : > { %10587 = vmatmul.mubr.msk.bf16.vlgmr.msra.gmra.mrb[0].mxu1 %vm335_vm1, %v11924_v3  ;;  %10581 = vmatmul.mubr.msk.bf16.vlgmr.msra.gmra.mrb[0].mxu0 %vm335_vm1, %v11922_v1 }
  0x1f   : > { %10598 = vmatprep.mubr.msk.bf16.mxu0 %vm12250_vm0, %v12249_v0  ;;  %10604 = vmatprep.mubr.msk.bf16.mxu1 %vm12250_vm0, %v12249_v0 }
  0x20   : > { %10591 = vmatpush3.bf16.msra.mxu0 %v11925_v4 }
  0x21   : > { %10592 = vmatprep.subr.bf16.mxu0 %v12249_v0 }
  0x24   : > { %10593 = vmatpush3.bf16.msra.mxu0 %v11926_v5 }
  0x25   : > { %10594 = vmatprep.subr.bf16.mxu0 %v12249_v0 }
  0x28   : > { %10595 = vmatpush3.bf16.msra.mxu0 %v11927_v6 }
  0x29   : > { %10596 = vmatprep.subr.bf16.mxu0 %v12249_v0 }
  0x2c   : > { %10597 = vmatpush3.bf16.msra.mxu0 %v11928_v7  ;;  %v9160_v7 = vld [vmem:[%s14459_s6] ss:$0 sm:$0xff] }
  0x2d   : > { %10614 = vmatprep.subr.bf16.mxu0 %v12249_v0 }
  0xf1   : > { %v422_v8 = vpop.f32.mrb[0].mxu1  ;;  %v373_v9 = vpop.f32.mrb[0].mxu0 }
  0xf2   : > { %v10588_v10 = vpop.f32.mrb[1].mxu1  ;;  %v10582_v11 = vpop.f32.mrb[1].mxu0 }
  0xf3   : > { %v425_v12 = vpop.f32.mrb[2].mxu1  ;;  %v376_v13 = vpop.f32.mrb[2].mxu0 }
  0xf4   : > { %v10589_v14 = vpop.f32.mrb[3].mxu1  ;;  %v11762_v15 = vpack.i.bf16 %v425_v12, %v422_v8  ;;  %v10583_v16 = vpop.f32.mrb[3].mxu0 }
  0xf6   : > { %11763 = vrot.lane.b32.xlu0 %v11762_v15, %s12251_s19 }
 0x168   : > { %v11764_v17 = vpop.permute.xlu0 %11763 }
 0x169   : > { %v11766_v18 = vunpack.i.h.bf16 %v11764_v17  ;;  %v11765_v19 = vunpack.i.l.bf16 %v11764_v17  ;;  %v11937_v17 = vld [vmem:[%s14456_s3 + $0x40] sm:$0xff]  }
 0x16b   : > { %v438_v20 = vsel %vm437_vm2, %v373_v9, %v11765_v19  ;;  %v439_v21 = vsel %vm437_vm2, %v376_v13, %v11766_v18  ;;  %v11938_v18 = vld [vmem:[%s14456_s3 + $0x48] sm:$0xff]   ;;  %v11939_v19 = vld [vmem:[%s14456_s3 + $0x50] sm:$0xff]  }
 0x16c   : > { %v440_v22 = vpack.c.bf16 %v439_v21, %v438_v20  ;;  %v11940_v20 = vld [vmem:[%s14456_s3 + $0x58] sm:$0xff]  }
 0x16e   : > { %10599 = vmatmul.mubr.msk.bf16.vlgmr.msra.gmra.mrb[4].mxu0 %vm480_vm3, %v440_v22 }
 0x16f   : > { %10622 = vmatprep.mubr.msk.bf16.mxu0 %vm12250_vm0, %v12249_v0  ;;  %10615 = vmatpush3.bf16.msra.mxu0 %v11929_v35 }
 0x170   : > { %10616 = vmatprep.subr.bf16.mxu0 %v12249_v0 }
 0x173   : > { %10617 = vmatpush3.bf16.msra.mxu0 %v11930_v36 }
 0x174   : > { %10618 = vmatprep.subr.bf16.mxu0 %v12249_v0 }
 0x177   : > { %10619 = vmatpush3.bf16.msra.mxu0 %v11931_v37 }
 0x178   : > { %10620 = vmatprep.subr.bf16.mxu0 %v12249_v0 }
 0x17b   : > { %10621 = vmatpush3.bf16.msra.mxu0 %v11932_v39 }
 0x17c   : > { %10638 = vmatprep.subr.bf16.mxu0 %v12249_v0 }
 0x241   : > { %v518_v24 = vpop.f32.mrb[4].mxu0 }
 0x242   : > { %v519_v25 = vadd.f32 %v9137_v23, %v518_v24  ;;  %v10600_v26 = vpop.f32.mrb[5].mxu0 }
 0x243   : > { %v521_v27 = vpop.f32.mrb[6].mxu0 }
 0x244   : > { %v522_v28 = vadd.f32 %v9137_v23, %v521_v27  ;;  %v10601_v29 = vpop.f32.mrb[7].mxu0  ;;  %v525_v30 = vmax.f32 %v519_v25, 0.0 }
 0x246   : > { %v526_v31 = vmax.f32 %v522_v28, 0.0 }
 0x248   : > { %v12399_v32 = vpack.c.bf16 %v526_v31, %v525_v30 }
 0x24a   : > { %10603 = vmatpush3.bf16.msra.mxu1 %v12399_v32 }
 0x24b   : > { %10608 = vmatprep.subr.bf16.mxu1 %v12249_v0 }
 0x24d   : > { %10605 = vmatmul.mubr.msk.bf16.vlgmr.msra.gmra.mrb[4].mxu1 %vm335_vm1, %v12404_v33 }
 0x24e   : > { %10609 = vmatpush3.bf16.msra.mxu1 %v12399_v32  ;;  %10610 = vmatprep.mubr.msk.bf16.mxu1 %vm12250_vm0, %v12249_v0 }
 0x24f   : > { %10626 = vmatprep.subr.bf16.mxu1 %v12249_v0 }
 0x255   : > { %10611 = vmatmul.mubr.msk.bf16.vlgmr.msra.gmra.mrb[8].mxu1 %vm335_vm1, %v12413_v34 }
 0x256   : > { %10634 = vmatprep.mubr.msk.bf16.mxu1 %vm12250_vm0, %v12249_v0  ;;  %10627 = vmatpush3.bf16.msra.mxu1 %v11933_v54 }
 0x257   : > { %10628 = vmatprep.subr.bf16.mxu1 %v12249_v0 }
 0x25a   : > { %10629 = vmatpush3.bf16.msra.mxu1 %v11934_v55 }
 0x25b   : > { %10630 = vmatprep.subr.bf16.mxu1 %v12249_v0 }
 0x25e   : > { %10631 = vmatpush3.bf16.msra.mxu1 %v11935_v56 }
 0x25f   : > { %10632 = vmatprep.subr.bf16.mxu1 %v12249_v0 }
 0x262   : > { %10633 = vmatpush3.bf16.msra.mxu1 %v11936_v57 }
 0x263   : > { %10644 = vmatprep.subr.bf16.mxu1 %v12249_v0 }
 0x320   : > { %v562_v38 = vpop.f32.mrb[4].mxu1 }
 0x321   : > { %v10606_v40 = vpop.f32.mrb[5].mxu1 }
 0x322   : > { %v565_v41 = vpop.f32.mrb[6].mxu1 }
 0x323   : > { %v10607_v42 = vpop.f32.mrb[7].mxu1 }
 0x328   : > { %v603_v43 = vpop.f32.mrb[8].mxu1 }
 0x329   : > { %v10612_v44 = vpop.f32.mrb[9].mxu1 }
 0x32a   : > { %v606_v45 = vpop.f32.mrb[10].mxu1 }
 0x32b   : > { %v11767_v46 = vpack.i.bf16 %v606_v45, %v603_v43  ;;  %v10613_v47 = vpop.f32.mrb[11].mxu1 }
 0x32d   : > { %11768 = vrot.lane.b32.xlu0 %v11767_v46, %s12251_s19 }
 0x39f   : > { %v11769_v48 = vpop.permute.xlu0 %11768 }
 0x3a0   : > { %v11771_v49 = vunpack.i.h.bf16 %v11769_v48  ;;  %v11770_v50 = vunpack.i.l.bf16 %v11769_v48  ;;  %v11941_v48 = vld [vmem:[%s14456_s3 + $0x60] sm:$0xff]  }
 0x3a2   : > { %v619_v51 = vsel %vm437_vm2, %v565_v41, %v11771_v49  ;;  %v618_v52 = vsel %vm437_vm2, %v562_v38, %v11770_v50  ;;  %v9177_v38 = vld [vmem:[%s14457_s4 + $0x2] ss:$0 sm:$0xff]  ;;  %v11942_v49 = vld [vmem:[%s14456_s3 + $0x68] sm:$0xff]   ;;  %v11943_v50 = vld [vmem:[%s14456_s3 + $0x70] sm:$0xff]  }
 0x3a3   : > { %v620_v53 = vpack.c.bf16 %v619_v51, %v618_v52  ;;  %v11944_v52 = vld [vmem:[%s14456_s3 + $0x78] sm:$0xff]  }
 0x3a5   : > { %10623 = vmatmul.mubr.msk.bf16.vlgmr.msra.gmra.mrb[8].mxu0 %vm480_vm3, %v620_v53 }
 0x3a6   : > { %10640 = vmatprep.mubr.msk.bf16.mxu0 %vm12250_vm0, %v12249_v0 }
 0x478   : > { %v699_v59 = vpop.f32.mrb[8].mxu0 }
 0x479   : > { %v700_v60 = vadd.f32 %v9154_v58, %v699_v59  ;;  %v10624_v61 = vpop.f32.mrb[9].mxu0 }
 0x47a   : > { %v702_v62 = vpop.f32.mrb[10].mxu0 }
 0x47b   : > { %v703_v63 = vadd.f32 %v9154_v58, %v702_v62  ;;  %v10625_v1 = vpop.f32.mrb[11].mxu0  ;;  %v706_v2 = vmax.f32 %v700_v60, 0.0 }
 0x47d   : > { %v707_v3 = vmax.f32 %v703_v63, 0.0 }
 0x47f   : > { %v708_v4 = vpack.c.bf16 %v707_v3, %v706_v2 }
 0x481   : > { %710 = vrot.lane.b32.xlu1 %v708_v4, %s12251_s19  ;;  %v11945_v4 = vld [vmem:[%s14458_s5 + $0x20] sm:$0xff]  }
 0x4f3   : > { %v711_v5 = vpop.permute.xlu1 %710 }
 0x4f4   : > { %v714_v6 = vsel %vm437_vm2, %v12399_v32, %v711_v5  ;;  %v11946_v5 = vld [vmem:[%s14458_s5 + $0x28] sm:$0xff]  }
 0x4f5   : > { %10635 = vmatmul.mubr.msk.bf16.vlgmr.msra.gmra.mrb[12].mxu1 %vm480_vm3, %v714_v6  ;;  %v11947_v6 = vld [vmem:[%s14458_s5 + $0x30] sm:$0xff]  }
 0x4f6   : > { %10646 = vmatprep.mubr.msk.bf16.mxu1 %vm12250_vm0, %v12249_v0 }
 0x5c8   : > { %v790_v8 = vpop.f32.mrb[12].mxu1 }
 0x5c9   : > { %v791_v9 = vadd.f32 %v9160_v7, %v790_v8  ;;  %v10636_v10 = vpop.f32.mrb[13].mxu1  ;;  %v9194_v8 = vld [vmem:[%s14457_s4 + $0x3] ss:$0 sm:$0xff] }
 0x5ca   : > { %v793_v11 = vpop.f32.mrb[14].mxu1 }
 0x5cb   : > { %v794_v12 = vadd.f32 %v9160_v7, %v793_v11  ;;  %v10637_v13 = vpop.f32.mrb[15].mxu1  ;;  %v797_v14 = vmax.f32 %v791_v9, 0.0  ;;  %v11948_v7 = vld [vmem:[%s14458_s5 + $0x38] sm:$0xff]  }
 0x5cd   : > { %v798_v15 = vmax.f32 %v794_v12, 0.0 }
 0x5cf   : > { %v12469_v16 = vpack.c.bf16 %v798_v15, %v797_v14 }
 0x5d1   : > { %10639 = vmatpush3.bf16.msra.mxu0 %v12469_v16  ;;  %10645 = vmatpush3.bf16.msra.mxu1 %v12469_v16 }
 0x5d2   : > { %10650 = vmatprep.subr.bf16.mxu0 %v12249_v0  ;;  %10662 = vmatprep.subr.bf16.mxu1 %v12249_v0 }
 0x5d4   : > { %10647 = vmatmul.mubr.msk.bf16.vlgmr.msra.gmra.mrb[16].mxu1 %vm335_vm1, %v12413_v34  ;;  %10641 = vmatmul.mubr.msk.bf16.vlgmr.msra.gmra.mrb[12].mxu0 %vm335_vm1, %v12404_v33 }
 0x5d5   : > { %10658 = vmatprep.mubr.msk.bf16.mxu0 %vm12250_vm0, %v12249_v0  ;;  %10664 = vmatprep.mubr.msk.bf16.mxu1 %vm12250_vm0, %v12249_v0 }
 0x5d6   : > { %10651 = vmatpush3.bf16.msra.mxu0 %v11937_v17 }
 0x5d7   : > { %10652 = vmatprep.subr.bf16.mxu0 %v12249_v0 }
 0x5da   : > { %10653 = vmatpush3.bf16.msra.mxu0 %v11938_v18 }
 0x5db   : > { %10654 = vmatprep.subr.bf16.mxu0 %v12249_v0 }
 0x5de   : > { %10655 = vmatpush3.bf16.msra.mxu0 %v11939_v19 }
 0x5df   : > { %10656 = vmatprep.subr.bf16.mxu0 %v12249_v0 }
 0x5e2   : > { %10657 = vmatpush3.bf16.msra.mxu0 %v11940_v20 }
 0x5e3   : > { %10674 = vmatprep.subr.bf16.mxu0 %v12249_v0 }
 0x6a7   : > { %v875_v21 = vpop.f32.mrb[16].mxu1  ;;  %v834_v22 = vpop.f32.mrb[12].mxu0 }
 0x6a8   : > { %v10648_v23 = vpop.f32.mrb[17].mxu1  ;;  %v10642_v24 = vpop.f32.mrb[13].mxu0 }
 0x6a9   : > { %v878_v25 = vpop.f32.mrb[18].mxu1  ;;  %v837_v26 = vpop.f32.mrb[14].mxu0  ;;  %v11951_v23 = vld [vmem:[%s14458_s5 + $0x50] sm:$0xff]   ;;  %v11952_v24 = vld [vmem:[%s14458_s5 + $0x58] sm:$0xff]  }
 0x6aa   : > { %v11772_v27 = vpack.i.bf16 %v878_v25, %v875_v21  ;;  %v10649_v28 = vpop.f32.mrb[19].mxu1  ;;  %v10643_v29 = vpop.f32.mrb[15].mxu0  ;;  %v11949_v21 = vld [vmem:[%s14458_s5 + $0x40] sm:$0xff]  }
 0x6ab   : > { %v9209_v25 = vld [vmem:[%s14459_s6 + $0x1] ss:$0 sm:$0xff] }
 0x6ac   : > { %11773 = vrot.lane.b32.xlu1 %v11772_v27, %s12251_s19 }
 0x71e   : > { %v11774_v30 = vpop.permute.xlu1 %11773 }
 0x71f   : > { %v11776_v31 = vunpack.i.h.bf16 %v11774_v30  ;;  %v11775_v32 = vunpack.i.l.bf16 %v11774_v30 }
 0x721   : > { %v890_v35 = vsel %vm437_vm2, %v834_v22, %v11775_v32  ;;  %v891_v36 = vsel %vm437_vm2, %v837_v26, %v11776_v31  ;;  %v11950_v22 = vld [vmem:[%s14458_s5 + $0x48] sm:$0xff]  }
 0x722   : > { %v892_v37 = vpack.c.bf16 %v891_v36, %v890_v35 }
 0x724   : > { %10659 = vmatmul.mubr.msk.bf16.vlgmr.msra.gmra.mrb[16].mxu0 %vm480_vm3, %v892_v37 }
 0x725   : > { %10682 = vmatprep.mubr.msk.bf16.mxu0 %vm12250_vm0, %v12249_v0  ;;  %10675 = vmatpush3.bf16.msra.mxu0 %v11941_v48 }
 0x726   : > { %10676 = vmatprep.subr.bf16.mxu0 %v12249_v0 }
 0x729   : > { %10677 = vmatpush3.bf16.msra.mxu0 %v11942_v49  ;;  %v11954_v49 = vld [vmem:[%s14456_s3 + $0x88] sm:$0xff]  }
 0x72a   : > { %10678 = vmatprep.subr.bf16.mxu0 %v12249_v0 }
 0x72d   : > { %10679 = vmatpush3.bf16.msra.mxu0 %v11943_v50  ;;  %v11955_v50 = vld [vmem:[%s14456_s3 + $0x90] sm:$0xff]  }
 0x72e   : > { %10680 = vmatprep.subr.bf16.mxu0 %v12249_v0 }
 0x731   : > { %10681 = vmatpush3.bf16.msra.mxu0 %v11944_v52  ;;  %v11956_v52 = vld [vmem:[%s14456_s3 + $0x98] sm:$0xff]  }
 0x732   : > { %10698 = vmatprep.subr.bf16.mxu0 %v12249_v0 }
 0x7f7   : > { %v971_v39 = vpop.f32.mrb[16].mxu0 }
 0x7f8   : > { %v972_v40 = vadd.f32 %v9177_v38, %v971_v39  ;;  %v10660_v41 = vpop.f32.mrb[17].mxu0  ;;  %v9224_v39 = vld [vmem:[%s14459_s6 + $0x2] ss:$0 sm:$0xff] }
 0x7f9   : > { %v974_v42 = vpop.f32.mrb[18].mxu0 }
 0x7fa   : > { %v975_v43 = vadd.f32 %v9177_v38, %v974_v42  ;;  %v10661_v44 = vpop.f32.mrb[19].mxu0  ;;  %v978_v45 = vmax.f32 %v972_v40, 0.0 }
 0x7fc   : > { %v979_v46 = vmax.f32 %v975_v43, 0.0 }
 0x7fe   : > { %v12508_v47 = vpack.c.bf16 %v979_v46, %v978_v45 }
 0x800   : > { %10663 = vmatpush3.bf16.msra.mxu1 %v12508_v47 }
 0x801   : > { %10668 = vmatprep.subr.bf16.mxu1 %v12249_v0 }
 0x803   : > { %10665 = vmatmul.mubr.msk.bf16.vlgmr.msra.gmra.mrb[20].mxu1 %vm335_vm1, %v12404_v33 }
 0x804   : > { %10669 = vmatpush3.bf16.msra.mxu1 %v12508_v47  ;;  %10670 = vmatprep.mubr.msk.bf16.mxu1 %vm12250_vm0, %v12249_v0 }
 0x805   : > { %10686 = vmatprep.subr.bf16.mxu1 %v12249_v0 }
 0x80b   : > { %10671 = vmatmul.mubr.msk.bf16.vlgmr.msra.gmra.mrb[24].mxu1 %vm335_vm1, %v12413_v34 }
 0x80c   : > { %10694 = vmatprep.mubr.msk.bf16.mxu1 %vm12250_vm0, %v12249_v0  ;;  %10687 = vmatpush3.bf16.msra.mxu1 %v11945_v4  ;;  %v9241_v4 = vld [vmem:[%s14457_s4 + $0x4] ss:$0 sm:$0xff] }
 0x80d   : > { %10688 = vmatprep.subr.bf16.mxu1 %v12249_v0 }
 0x810   : > { %10689 = vmatpush3.bf16.msra.mxu1 %v11946_v5 }
 0x811   : > { %10690 = vmatprep.subr.bf16.mxu1 %v12249_v0 }
 0x814   : > { %10691 = vmatpush3.bf16.msra.mxu1 %v11947_v6 }
 0x815   : > { %10692 = vmatprep.subr.bf16.mxu1 %v12249_v0 }
 0x818   : > { %10693 = vmatpush3.bf16.msra.mxu1 %v11948_v7 }
 0x819   : > { %10710 = vmatprep.subr.bf16.mxu1 %v12249_v0 }
 0x8d6   : > { %v1015_v51 = vpop.f32.mrb[20].mxu1 }
 0x8d7   : > { %v10666_v53 = vpop.f32.mrb[21].mxu1 }
 0x8d8   : > { %v1018_v54 = vpop.f32.mrb[22].mxu1 }
 0x8d9   : > { %v10667_v55 = vpop.f32.mrb[23].mxu1 }
 0x8de   : > { %v1056_v56 = vpop.f32.mrb[24].mxu1 }
 0x8df   : > { %v10672_v57 = vpop.f32.mrb[25].mxu1 }
 0x8e0   : > { %v1059_v58 = vpop.f32.mrb[26].mxu1 }
 0x8e1   : > { %v11777_v59 = vpack.i.bf16 %v1059_v58, %v1056_v56  ;;  %v10673_v60 = vpop.f32.mrb[27].mxu1 }
 0x8e3   : > { %11778 = vrot.lane.b32.xlu0 %v11777_v59, %s12251_s19 }
 0x955   : > { %v11779_v61 = vpop.permute.xlu0 %11778 }
 0x956   : > { %v11781_v62 = vunpack.i.h.bf16 %v11779_v61  ;;  %v11780_v63 = vunpack.i.l.bf16 %v11779_v61 }
 0x958   : > { %v1072_v1 = vsel %vm437_vm2, %v1018_v54, %v11781_v62  ;;  %v1071_v2 = vsel %vm437_vm2, %v1015_v51, %v11780_v63 }
 0x959   : > { %v1073_v3 = vpack.c.bf16 %v1072_v1, %v1071_v2 }
 0x95b   : > { %10683 = vmatmul.mubr.msk.bf16.vlgmr.msra.gmra.mrb[20].mxu0 %vm480_vm3, %v1073_v3 }
 0x95c   : > { %10706 = vmatprep.mubr.msk.bf16.mxu0 %vm12250_vm0, %v12249_v0  ;;  %10699 = vmatpush3.bf16.msra.mxu0 %v11949_v21 }
 0x95d   : > { %10700 = vmatprep.subr.bf16.mxu0 %v12249_v0 }
 0x960   : > { %10701 = vmatpush3.bf16.msra.mxu0 %v11950_v22 }
 0x961   : > { %10702 = vmatprep.subr.bf16.mxu0 %v12249_v0 }
 0x964   : > { %10703 = vmatpush3.bf16.msra.mxu0 %v11951_v23 }
 0x965   : > { %10704 = vmatprep.subr.bf16.mxu0 %v12249_v0 }
 0x968   : > { %10705 = vmatpush3.bf16.msra.mxu0 %v11952_v24 }
 0x969   : > { %10722 = vmatprep.subr.bf16.mxu0 %v12249_v0 }
 0xa2e   : > { %v1152_v9 = vpop.f32.mrb[20].mxu0 }
 0xa2f   : > { %v1153_v10 = vadd.f32 %v9194_v8, %v1152_v9  ;;  %v10684_v11 = vpop.f32.mrb[21].mxu0 }
 0xa30   : > { %v1155_v12 = vpop.f32.mrb[22].mxu0 }
 0xa31   : > { %v1156_v13 = vadd.f32 %v9194_v8, %v1155_v12  ;;  %v10685_v14 = vpop.f32.mrb[23].mxu0  ;;  %v1159_v15 = vmax.f32 %v1153_v10, 0.0 }
 0xa32   : > { %v11957_v14 = vld [vmem:[%s14456_s3 + $0xa0] sm:$0xff]  }
 0xa33   : > { %v1160_v17 = vmax.f32 %v1156_v13, 0.0 }
 0xa35   : > { %v1161_v18 = vpack.c.bf16 %v1160_v17, %v1159_v15  ;;  %v11958_v15 = vld [vmem:[%s14456_s3 + $0xa8] sm:$0xff]   ;;  %v11959_v17 = vld [vmem:[%s14456_s3 + $0xb0] sm:$0xff]  }
 0xa37   : > { %1163 = vrot.lane.b32.xlu1 %v1161_v18, %s12251_s19 }
 0xaa9   : > { %v1164_v19 = vpop.permute.xlu1 %1163 }
 0xaaa   : > { %v1167_v20 = vsel %vm437_vm2, %v12508_v47, %v1164_v19  ;;  %v11960_v19 = vld [vmem:[%s14456_s3 + $0xb8] sm:$0xff]  }
 0xaab   : > { %10695 = vmatmul.mubr.msk.bf16.vlgmr.msra.gmra.mrb[28].mxu1 %vm480_vm3, %v1167_v20 }
 0xaac   : > { %10712 = vmatprep.mubr.msk.bf16.mxu1 %vm12250_vm0, %v12249_v0 }
 0xb7e   : > { %v1245_v26 = vpop.f32.mrb[28].mxu1 }
 0xb7f   : > { %v1246_v27 = vadd.f32 %v9209_v25, %v1245_v26  ;;  %v10696_v28 = vpop.f32.mrb[29].mxu1 }
 0xb80   : > { %v1248_v29 = vpop.f32.mrb[30].mxu1 }
 0xb81   : > { %v1249_v30 = vadd.f32 %v9209_v25, %v1248_v29  ;;  %v10697_v31 = vpop.f32.mrb[31].mxu1  ;;  %v1252_v32 = vmax.f32 %v1246_v27, 0.0 }
 0xb83   : > { %v1253_v35 = vmax.f32 %v1249_v30, 0.0 }
 0xb85   : > { %v1254_v36 = vpack.c.bf16 %v1253_v35, %v1252_v32 }
 0xb87   : > { %1256 = vrot.lane.b32.xlu0 %v1254_v36, %s12251_s19  ;;  %v11961_v36 = vld [vmem:[%s14458_s5 + $0x60] sm:$0xff]  }
 0xbf9   : > { %v1257_v37 = vpop.permute.xlu0 %1256 }
 0xbfa   : > { %v1260_v38 = vsel %vm437_vm2, %v12469_v16, %v1257_v37  ;;  %v11953_v16 = vld [vmem:[%s14456_s3 + $0x80] sm:$0xff]   ;;  %v11962_v37 = vld [vmem:[%s14458_s5 + $0x68] sm:$0xff]  }
 0xbfb   : > { %10707 = vmatmul.mubr.msk.bf16.vlgmr.msra.gmra.mrb[24].mxu0 %vm480_vm3, %v1260_v38  ;;  %v11963_v38 = vld [vmem:[%s14458_s5 + $0x70] sm:$0xff]  }
 0xbfc   : > { %10730 = vmatprep.mubr.msk.bf16.mxu0 %vm12250_vm0, %v12249_v0  ;;  %10723 = vmatpush3.bf16.msra.mxu0 %v11953_v16 }
 0xbfd   : > { %10724 = vmatprep.subr.bf16.mxu0 %v12249_v0 }
 0xc00   : > { %10725 = vmatpush3.bf16.msra.mxu0 %v11954_v49 }
 0xc01   : > { %10726 = vmatprep.subr.bf16.mxu0 %v12249_v0 }
 0xc04   : > { %10727 = vmatpush3.bf16.msra.mxu0 %v11955_v50 }
 0xc05   : > { %10728 = vmatprep.subr.bf16.mxu0 %v12249_v0 }
 0xc08   : > { %10729 = vmatpush3.bf16.msra.mxu0 %v11956_v52  ;;  %v9273_v52 = vld [vmem:[%s14459_s6 + $0x3] ss:$0 sm:$0xff] }
 0xc09   : > { %10746 = vmatprep.subr.bf16.mxu0 %v12249_v0 }
 0xcce   : > { %v1338_v40 = vpop.f32.mrb[24].mxu0 }
 0xccf   : > { %v1339_v41 = vadd.f32 %v9224_v39, %v1338_v40  ;;  %v10708_v42 = vpop.f32.mrb[25].mxu0  ;;  %v9258_v40 = vld [vmem:[%s14457_s4 + $0x5] ss:$0 sm:$0xff] }
 0xcd0   : > { %v1341_v43 = vpop.f32.mrb[26].mxu0 }
 0xcd1   : > { %v1342_v44 = vadd.f32 %v9224_v39, %v1341_v43  ;;  %v10709_v45 = vpop.f32.mrb[27].mxu0  ;;  %v1345_v46 = vmax.f32 %v1339_v41, 0.0  ;;  %v11964_v39 = vld [vmem:[%s14458_s5 + $0x78] sm:$0xff]  }
 0xcd3   : > { %v1346_v47 = vmax.f32 %v1342_v44, 0.0 }
 0xcd5   : > { %v12597_v48 = vpack.c.bf16 %v1346_v47, %v1345_v46 }
 0xcd7   : > { %10711 = vmatpush3.bf16.msra.mxu1 %v12597_v48 }
 0xcd8   : > { %10716 = vmatprep.subr.bf16.mxu1 %v12249_v0 }
 0xcda   : > { %10713 = vmatmul.mubr.msk.bf16.vlgmr.msra.gmra.mrb[32].mxu1 %vm335_vm1, %v12404_v33 }
 0xcdb   : > { %10717 = vmatpush3.bf16.msra.mxu1 %v12597_v48  ;;  %10718 = vmatprep.mubr.msk.bf16.mxu1 %vm12250_vm0, %v12249_v0 }
 0xcdc   : > { %10734 = vmatprep.subr.bf16.mxu1 %v12249_v0 }
 0xce2   : > { %10719 = vmatmul.mubr.msk.bf16.vlgmr.msra.gmra.mrb[36].mxu1 %vm335_vm1, %v12413_v34 }
 0xce3   : > { %10736 = vmatprep.mubr.msk.bf16.mxu1 %vm12250_vm0, %v12249_v0 }
 0xdad   : > { %v1382_v51 = vpop.f32.mrb[32].mxu1 }
 0xdae   : > { %v10714_v53 = vpop.f32.mrb[33].mxu1 }
 0xdaf   : > { %v1385_v54 = vpop.f32.mrb[34].mxu1 }
 0xdb0   : > { %v10715_v55 = vpop.f32.mrb[35].mxu1 }
 0xdb5   : > { %v1423_v56 = vpop.f32.mrb[36].mxu1 }
 0xdb6   : > { %v10720_v57 = vpop.f32.mrb[37].mxu1 }
 0xdb7   : > { %v1426_v58 = vpop.f32.mrb[38].mxu1 }
 0xdb8   : > { %v11782_v59 = vpack.i.bf16 %v1426_v58, %v1423_v56  ;;  %v10721_v60 = vpop.f32.mrb[39].mxu1 }
 0xdba   : > { %11783 = vrot.lane.b32.xlu1 %v11782_v59, %s12251_s19 }
 0xe2c   : > { %v11784_v61 = vpop.permute.xlu1 %11783 }
 0xe2d   : > { %v11786_v62 = vunpack.i.h.bf16 %v11784_v61  ;;  %v11785_v63 = vunpack.i.l.bf16 %v11784_v61 }
 0xe2f   : > { %v1439_v1 = vsel %vm437_vm2, %v1385_v54, %v11786_v62  ;;  %v1438_v2 = vsel %vm437_vm2, %v1382_v51, %v11785_v63  ;;  %v11965_v62 = vld [vmem:[%s14456_s3 + $0xc0] sm:$0xff]   ;;  %v11966_v63 = vld [vmem:[%s14456_s3 + $0xc8] sm:$0xff]  }
 0xe30   : > { %v1440_v3 = vpack.c.bf16 %v1439_v1, %v1438_v2  ;;  %v11967_v1 = vld [vmem:[%s14456_s3 + $0xd0] sm:$0xff]   ;;  %v11968_v2 = vld [vmem:[%s14456_s3 + $0xd8] sm:$0xff]  }
 0xe32   : > { %10731 = vmatmul.mubr.msk.bf16.vlgmr.msra.gmra.mrb[28].mxu0 %vm480_vm3, %v1440_v3 }
 0xe33   : > { %10754 = vmatprep.mubr.msk.bf16.mxu0 %vm12250_vm0, %v12249_v0  ;;  %10747 = vmatpush3.bf16.msra.mxu0 %v11957_v14 }
 0xe34   : > { %10748 = vmatprep.subr.bf16.mxu0 %v12249_v0 }
 0xe37   : > { %10749 = vmatpush3.bf16.msra.mxu0 %v11958_v15 }
 0xe38   : > { %10750 = vmatprep.subr.bf16.mxu0 %v12249_v0 }
 0xe3b   : > { %10751 = vmatpush3.bf16.msra.mxu0 %v11959_v17 }
 0xe3c   : > { %10752 = vmatprep.subr.bf16.mxu0 %v12249_v0 }
 0xe3f   : > { %10753 = vmatpush3.bf16.msra.mxu0 %v11960_v19  ;;  %v9290_v19 = vld [vmem:[%s14457_s4 + $0x6] ss:$0 sm:$0xff] }
 0xe40   : > { %10770 = vmatprep.subr.bf16.mxu0 %v12249_v0 }
 0xf05   : > { %v1519_v5 = vpop.f32.mrb[28].mxu0 }
 0xf06   : > { %v1520_v6 = vadd.f32 %v9241_v4, %v1519_v5  ;;  %v10732_v7 = vpop.f32.mrb[29].mxu0 }
 0xf07   : > { %v1522_v8 = vpop.f32.mrb[30].mxu0 }
 0xf08   : > { %v1523_v9 = vadd.f32 %v9241_v4, %v1522_v8  ;;  %v10733_v10 = vpop.f32.mrb[31].mxu0  ;;  %v1526_v11 = vmax.f32 %v1520_v6, 0.0 }
 0xf0a   : > { %v1527_v12 = vmax.f32 %v1523_v9, 0.0 }
 0xf0c   : > { %v12636_v13 = vpack.c.bf16 %v1527_v12, %v1526_v11 }
 0xf0e   : > { %10735 = vmatpush3.bf16.msra.mxu1 %v12636_v13 }
 0xf0f   : > { %10740 = vmatprep.subr.bf16.mxu1 %v12249_v0 }
 0xf11   : > { %10737 = vmatmul.mubr.msk.bf16.vlgmr.msra.gmra.mrb[40].mxu1 %vm335_vm1, %v12404_v33 }
 0xf12   : > { %10741 = vmatpush3.bf16.msra.mxu1 %v12636_v13  ;;  %10742 = vmatprep.mubr.msk.bf16.mxu1 %vm12250_vm0, %v12249_v0 }
 0xf13   : > { %10758 = vmatprep.subr.bf16.mxu1 %v12249_v0 }
 0xf19   : > { %10743 = vmatmul.mubr.msk.bf16.vlgmr.msra.gmra.mrb[44].mxu1 %vm335_vm1, %v12413_v34 }
 0xf1a   : > { %10766 = vmatprep.mubr.msk.bf16.mxu1 %vm12250_vm0, %v12249_v0  ;;  %10759 = vmatpush3.bf16.msra.mxu1 %v11961_v36 }
 0xf1b   : > { %10760 = vmatprep.subr.bf16.mxu1 %v12249_v0 }
 0xf1e   : > { %10761 = vmatpush3.bf16.msra.mxu1 %v11962_v37 }
 0xf1f   : > { %10762 = vmatprep.subr.bf16.mxu1 %v12249_v0 }
 0xf22   : > { %10763 = vmatpush3.bf16.msra.mxu1 %v11963_v38 }
 0xf23   : > { %10764 = vmatprep.subr.bf16.mxu1 %v12249_v0 }
 0xf26   : > { %10765 = vmatpush3.bf16.msra.mxu1 %v11964_v39 }
 0xf27   : > { %10776 = vmatprep.subr.bf16.mxu1 %v12249_v0 }
 0xfe4   : > { %v1563_v18 = vpop.f32.mrb[40].mxu1 }
 0xfe5   : > { %v10738_v20 = vpop.f32.mrb[41].mxu1 }
 0xfe6   : > { %v1566_v21 = vpop.f32.mrb[42].mxu1 }
 0xfe7   : > { %v10739_v22 = vpop.f32.mrb[43].mxu1 }
 0xfec   : > { %v1604_v23 = vpop.f32.mrb[44].mxu1 }
 0xfed   : > { %v10744_v24 = vpop.f32.mrb[45].mxu1 }
 0xfee   : > { %v1607_v25 = vpop.f32.mrb[46].mxu1 }
 0xfef   : > { %v11787_v26 = vpack.i.bf16 %v1607_v25, %v1604_v23  ;;  %v10745_v27 = vpop.f32.mrb[47].mxu1 }
 0xff1   : > { %11788 = vrot.lane.b32.xlu0 %v11787_v26, %s12251_s19 }
0x1063   : > { %v11789_v28 = vpop.permute.xlu0 %11788 }
0x1064   : > { %v11791_v29 = vunpack.i.h.bf16 %v11789_v28  ;;  %v11790_v30 = vunpack.i.l.bf16 %v11789_v28 }
0x1066   : > { %v1620_v31 = vsel %vm437_vm2, %v1566_v21, %v11791_v29  ;;  %v1619_v32 = vsel %vm437_vm2, %v1563_v18, %v11790_v30  ;;  %v11969_v29 = vld [vmem:[%s14456_s3 + $0xe0] sm:$0xff]   ;;  %v11971_v30 = vld [vmem:[%s14456_s3 + $0xf0] sm:$0xff]  }
0x1067   : > { %v1621_v35 = vpack.c.bf16 %v1620_v31, %v1619_v32  ;;  %v11972_v31 = vld [vmem:[%s14456_s3 + $0xf8] sm:$0xff]  }
0x1069   : > { %10755 = vmatmul.mubr.msk.bf16.vlgmr.msra.gmra.mrb[32].mxu0 %vm480_vm3, %v1621_v35 }
0x106a   : > { %10772 = vmatprep.mubr.msk.bf16.mxu0 %vm12250_vm0, %v12249_v0 }
0x113c   : > { %v1700_v41 = vpop.f32.mrb[32].mxu0 }
0x113d   : > { %v1701_v42 = vadd.f32 %v9258_v40, %v1700_v41  ;;  %v10756_v43 = vpop.f32.mrb[33].mxu0 }
0x113e   : > { %v1703_v44 = vpop.f32.mrb[34].mxu0 }
0x113f   : > { %v1704_v45 = vadd.f32 %v9258_v40, %v1703_v44  ;;  %v10757_v46 = vpop.f32.mrb[35].mxu0  ;;  %v1707_v47 = vmax.f32 %v1701_v42, 0.0 }
0x1141   : > { %v1708_v16 = vmax.f32 %v1704_v45, 0.0 }
0x1143   : > { %v1709_v49 = vpack.c.bf16 %v1708_v16, %v1707_v47  ;;  %v11973_v16 = vld [vmem:[%s14458_s5 + $0x80] sm:$0xff]  }
0x1145   : > { %1711 = vrot.lane.b32.xlu1 %v1709_v49, %s12251_s19  ;;  %v11974_v49 = vld [vmem:[%s14458_s5 + $0x88] sm:$0xff]  }
0x11b7   : > { %v1712_v50 = vpop.permute.xlu1 %1711 }
0x11b8   : > { %v1715_v51 = vsel %vm437_vm2, %v12636_v13, %v1712_v50  ;;  %v11975_v50 = vld [vmem:[%s14458_s5 + $0x90] sm:$0xff]  }
0x11b9   : > { %10767 = vmatmul.mubr.msk.bf16.vlgmr.msra.gmra.mrb[48].mxu1 %vm480_vm3, %v1715_v51  ;;  %v11976_v51 = vld [vmem:[%s14458_s5 + $0x98] sm:$0xff]  }
0x11ba   : > { %10778 = vmatprep.mubr.msk.bf16.mxu1 %vm12250_vm0, %v12249_v0 }
0x128c   : > { %v1793_v53 = vpop.f32.mrb[48].mxu1 }
0x128d   : > { %v1794_v54 = vadd.f32 %v9273_v52, %v1793_v53  ;;  %v10768_v55 = vpop.f32.mrb[49].mxu1 }
0x128e   : > { %v1796_v56 = vpop.f32.mrb[50].mxu1 }
0x128f   : > { %v1797_v57 = vadd.f32 %v9273_v52, %v1796_v56  ;;  %v10769_v58 = vpop.f32.mrb[51].mxu1  ;;  %v1800_v59 = vmax.f32 %v1794_v54, 0.0  ;;  %v9307_v52 = vld [vmem:[%s14457_s4 + $0x7] ss:$0 sm:$0xff] }
0x1291   : > { %v1801_v60 = vmax.f32 %v1797_v57, 0.0 }
0x1293   : > { %v12700_v61 = vpack.c.bf16 %v1801_v60, %v1800_v59 }
0x1295   : > { %10771 = vmatpush3.bf16.msra.mxu0 %v12700_v61  ;;  %10777 = vmatpush3.bf16.msra.mxu1 %v12700_v61 }
0x1296   : > { %10782 = vmatprep.subr.bf16.mxu0 %v12249_v0  ;;  %10794 = vmatprep.subr.bf16.mxu1 %v12249_v0 }
0x1298   : > { %10779 = vmatmul.mubr.msk.bf16.vlgmr.msra.gmra.mrb[52].mxu1 %vm335_vm1, %v12413_v34  ;;  %10773 = vmatmul.mubr.msk.bf16.vlgmr.msra.gmra.mrb[36].mxu0 %vm335_vm1, %v12404_v33 }
0x1299   : > { %10790 = vmatprep.mubr.msk.bf16.mxu0 %vm12250_vm0, %v12249_v0  ;;  %10796 = vmatprep.mubr.msk.bf16.mxu1 %vm12250_vm0, %v12249_v0 }
0x129a   : > { %10783 = vmatpush3.bf16.msra.mxu0 %v11965_v62 }
0x129b   : > { %10784 = vmatprep.subr.bf16.mxu0 %v12249_v0 }
0x129e   : > { %10785 = vmatpush3.bf16.msra.mxu0 %v11966_v63 }
0x129f   : > { %10786 = vmatprep.subr.bf16.mxu0 %v12249_v0 }
0x12a2   : > { %10787 = vmatpush3.bf16.msra.mxu0 %v11967_v1 }
0x12a3   : > { %10788 = vmatprep.subr.bf16.mxu0 %v12249_v0 }
0x12a6   : > { %10789 = vmatpush3.bf16.msra.mxu0 %v11968_v2  ;;  %v11977_v2 = vld [vmem:[%s14458_s5 + $0xa0] sm:$0xff]  }
0x12a7   : > { %10806 = vmatprep.subr.bf16.mxu0 %v12249_v0 }
0x136b   : > { %v1878_v3 = vpop.f32.mrb[52].mxu1  ;;  %v1837_v4 = vpop.f32.mrb[36].mxu0 }
0x136c   : > { %v10780_v5 = vpop.f32.mrb[53].mxu1  ;;  %v10774_v6 = vpop.f32.mrb[37].mxu0 }
0x136d   : > { %v1881_v7 = vpop.f32.mrb[54].mxu1  ;;  %v1840_v8 = vpop.f32.mrb[38].mxu0  ;;  %v11980_v5 = vld [vmem:[%s14458_s5 + $0xb8] sm:$0xff]   ;;  %v9322_v6 = vld [vmem:[%s14459_s6 + $0x4] ss:$0 sm:$0xff] }
0x136e   : > { %v11792_v9 = vpack.i.bf16 %v1881_v7, %v1878_v3  ;;  %v10781_v10 = vpop.f32.mrb[55].mxu1  ;;  %v10775_v11 = vpop.f32.mrb[39].mxu0  ;;  %v11978_v3 = vld [vmem:[%s14458_s5 + $0xa8] sm:$0xff]  }
0x1370   : > { %11793 = vrot.lane.b32.xlu0 %v11792_v9, %s12251_s19 }
0x13e2   : > { %v11794_v12 = vpop.permute.xlu0 %11793 }
0x13e3   : > { %v11796_v13 = vunpack.i.h.bf16 %v11794_v12  ;;  %v11795_v14 = vunpack.i.l.bf16 %v11794_v12 }
0x13e5   : > { %v1893_v15 = vsel %vm437_vm2, %v1837_v4, %v11795_v14  ;;  %v1894_v17 = vsel %vm437_vm2, %v1840_v8, %v11796_v13  ;;  %v11979_v4 = vld [vmem:[%s14458_s5 + $0xb0] sm:$0xff]  }
0x13e6   : > { %v1895_v18 = vpack.c.bf16 %v1894_v17, %v1893_v15 }
0x13e8   : > { %10791 = vmatmul.mubr.msk.bf16.vlgmr.msra.gmra.mrb[40].mxu0 %vm480_vm3, %v1895_v18 }
0x13e9   : > { %10814 = vmatprep.mubr.msk.bf16.mxu0 %vm12250_vm0, %v12249_v0  ;;  %10807 = vmatpush3.bf16.msra.mxu0 %v11969_v29 }
0x13ea   : > { %10808 = vmatprep.subr.bf16.mxu0 %v12249_v0 }
0x14bb   : > { %v1974_v20 = vpop.f32.mrb[40].mxu0 }
0x14bc   : > { %v1975_v21 = vadd.f32 %v9290_v19, %v1974_v20  ;;  %v10792_v22 = vpop.f32.mrb[41].mxu0  ;;  %v11982_v20 = vld [vmem:[%s14458_s5 + $0xc8] sm:$0xff]  }
0x14bd   : > { %v1977_v23 = vpop.f32.mrb[42].mxu0  ;;  %v9337_v22 = vld [vmem:[%s14459_s6 + $0x5] ss:$0 sm:$0xff] }
0x14be   : > { %v1978_v24 = vadd.f32 %v9290_v19, %v1977_v23  ;;  %v10793_v25 = vpop.f32.mrb[43].mxu0  ;;  %v1981_v26 = vmax.f32 %v1975_v21, 0.0  ;;  %v11981_v19 = vld [vmem:[%s14458_s5 + $0xc0] sm:$0xff]   ;;  %v11984_v21 = vld [vmem:[%s14458_s5 + $0xd8] sm:$0xff]  }
0x14c0   : > { %v1982_v27 = vmax.f32 %v1978_v24, 0.0 }
0x14c2   : > { %v12739_v28 = vpack.c.bf16 %v1982_v27, %v1981_v26 }
0x14c4   : > { %10795 = vmatpush3.bf16.msra.mxu1 %v12739_v28 }
0x14c5   : > { %10800 = vmatprep.subr.bf16.mxu1 %v12249_v0 }
0x14c7   : > { %10797 = vmatmul.mubr.msk.bf16.vlgmr.msra.gmra.mrb[56].mxu1 %vm335_vm1, %v12404_v33  ;;  %v11970_v33 = vld [vmem:[%s14456_s3 + $0xe8] sm:$0xff]  }
0x14c8   : > { %10801 = vmatpush3.bf16.msra.mxu1 %v12739_v28  ;;  %10802 = vmatprep.mubr.msk.bf16.mxu1 %vm12250_vm0, %v12249_v0 }
0x14c9   : > { %10818 = vmatprep.subr.bf16.mxu1 %v12249_v0  ;;  %10809 = vmatpush3.bf16.msra.mxu0 %v11970_v33 }
0x14ca   : > { %10810 = vmatprep.subr.bf16.mxu0 %v12249_v0 }
0x14cd   : > { %10811 = vmatpush3.bf16.msra.mxu0 %v11971_v30 }
0x14ce   : > { %10812 = vmatprep.subr.bf16.mxu0 %v12249_v0 }
0x14cf   : > { %10803 = vmatmul.mubr.msk.bf16.vlgmr.msra.gmra.mrb[60].mxu1 %vm335_vm1, %v12413_v34 }
0x14d0   : > { %10826 = vmatprep.mubr.msk.bf16.mxu1 %vm12250_vm0, %v12249_v0  ;;  %10819 = vmatpush3.bf16.msra.mxu1 %v11973_v16  ;;  %v11988_v16 = vld [vmem:[%s14456_s3 + $0x118] sm:$0xff]  }
0x14d1   : > { %10813 = vmatpush3.bf16.msra.mxu0 %v11972_v31  ;;  %10820 = vmatprep.subr.bf16.mxu1 %v12249_v0 }
0x14d2   : > { %10830 = vmatprep.subr.bf16.mxu0 %v12249_v0 }
0x14d4   : > { %10821 = vmatpush3.bf16.msra.mxu1 %v11974_v49 }
0x14d5   : > { %10822 = vmatprep.subr.bf16.mxu1 %v12249_v0 }
0x14d8   : > { %10823 = vmatpush3.bf16.msra.mxu1 %v11975_v50 }
0x14d9   : > { %10824 = vmatprep.subr.bf16.mxu1 %v12249_v0 }
0x14dc   : > { %10825 = vmatpush3.bf16.msra.mxu1 %v11976_v51 }
0x14dd   : > { %10842 = vmatprep.subr.bf16.mxu1 %v12249_v0 }
0x159a   : > { %v2018_v34 = vpop.f32.mrb[56].mxu1 }
0x159b   : > { %v10798_v32 = vpop.f32.mrb[57].mxu1 }
0x159c   : > { %v2021_v35 = vpop.f32.mrb[58].mxu1  ;;  %v9352_v32 = vld [vmem:[%s14459_s6 + $0x6] ss:$0 sm:$0xff] }
0x159d   : > { %v10799_v36 = vpop.f32.mrb[59].mxu1 }
0x15a2   : > { %v2059_v37 = vpop.f32.mrb[60].mxu1 }
0x15a3   : > { %v10804_v38 = vpop.f32.mrb[61].mxu1 }
0x15a4   : > { %v2062_v39 = vpop.f32.mrb[62].mxu1 }
0x15a5   : > { %v11797_v40 = vpack.i.bf16 %v2062_v39, %v2059_v37  ;;  %v10805_v41 = vpop.f32.mrb[63].mxu1 }
0x15a7   : > { %11798 = vrot.lane.b32.xlu1 %v11797_v40, %s12251_s19 }
0x1619   : > { %v11799_v42 = vpop.permute.xlu1 %11798 }
0x161a   : > { %v11801_v43 = vunpack.i.h.bf16 %v11799_v42  ;;  %v11800_v44 = vunpack.i.l.bf16 %v11799_v42 }
0x161c   : > { %v2075_v45 = vsel %vm437_vm2, %v2021_v35, %v11801_v43  ;;  %v2074_v46 = vsel %vm437_vm2, %v2018_v34, %v11800_v44  ;;  %v12860_v43 = vld [vmem:[%s12359_s20] sm:$0xff]  }
0x161d   : > { %v2076_v47 = vpack.c.bf16 %v2075_v45, %v2074_v46  ;;  %v12865_v44 = vld [vmem:[%s12354_s17] sm:$0xff]   ;;  %v11986_v46 = vld [vmem:[%s14456_s3 + $0x108] sm:$0xff]  }
0x161e   : > { %v11985_v45 = vld [vmem:[%s14456_s3 + $0x100] sm:$0xff]  }
0x161f   : > { %10815 = vmatmul.mubr.msk.bf16.vlgmr.msra.gmra.mrb[44].mxu0 %vm480_vm3, %v2076_v47  ;;  %v11987_v47 = vld [vmem:[%s14456_s3 + $0x110] sm:$0xff]  }
0x1620   : > { %10838 = vmatprep.mubr.msk.bf16.mxu0 %vm12250_vm0, %v12249_v0  ;;  %10831 = vmatpush3.bf16.msra.mxu0 %v11977_v2  ;;  %v9369_v2 = vld [vmem:[%s14457_s4 + $0x8] ss:$0 sm:$0xff] }
0x1621   : > { %10832 = vmatprep.subr.bf16.mxu0 %v12249_v0 }
0x1624   : > { %10833 = vmatpush3.bf16.msra.mxu0 %v11978_v3 }
0x1625   : > { %10834 = vmatprep.subr.bf16.mxu0 %v12249_v0 }
0x1628   : > { %10835 = vmatpush3.bf16.msra.mxu0 %v11979_v4 }
0x1629   : > { %10836 = vmatprep.subr.bf16.mxu0 %v12249_v0 }
0x162c   : > { %10837 = vmatpush3.bf16.msra.mxu0 %v11980_v5 }
0x162d   : > { %10854 = vmatprep.subr.bf16.mxu0 %v12249_v0 }
0x16f2   : > { %v2155_v53 = vpop.f32.mrb[44].mxu0 }
0x16f3   : > { %v2156_v54 = vadd.f32 %v9307_v52, %v2155_v53  ;;  %v10816_v55 = vpop.f32.mrb[45].mxu0 }
0x16f4   : > { %v2158_v56 = vpop.f32.mrb[46].mxu0 }
0x16f5   : > { %v2159_v57 = vadd.f32 %v9307_v52, %v2158_v56  ;;  %v10817_v58 = vpop.f32.mrb[47].mxu0  ;;  %v2162_v59 = vmax.f32 %v2156_v54, 0.0 }
0x16f7   : > { %v2163_v60 = vmax.f32 %v2159_v57, 0.0 }
0x16f9   : > { %v2164_v62 = vpack.c.bf16 %v2163_v60, %v2162_v59 }
0x16fb   : > { %2166 = vrot.lane.b32.xlu0 %v2164_v62, %s12251_s19 }
0x176d   : > { %v2167_v63 = vpop.permute.xlu0 %2166 }
0x176e   : > { %v2170_v1 = vsel %vm437_vm2, %v12739_v28, %v2167_v63 }
0x176f   : > { %10827 = vmatmul.mubr.msk.bf16.vlgmr.msra.gmra.mrb[64].mxu1 %vm480_vm3, %v2170_v1 }
0x1770   : > { %10850 = vmatprep.mubr.msk.bf16.mxu1 %vm12250_vm0, %v12249_v0  ;;  %10843 = vmatpush3.bf16.msra.mxu1 %v11981_v19 }
0x1771   : > { %10844 = vmatprep.subr.bf16.mxu1 %v12249_v0 }
0x1774   : > { %10845 = vmatpush3.bf16.msra.mxu1 %v11982_v20 }
0x1775   : > { %10846 = vmatprep.subr.bf16.mxu1 %v12249_v0 }
0x1842   : > { %v2248_v7 = vpop.f32.mrb[64].mxu1 }
0x1843   : > { %v2249_v8 = vadd.f32 %v9322_v6, %v2248_v7  ;;  %v10828_v9 = vpop.f32.mrb[65].mxu1 }
0x1844   : > { %v2251_v10 = vpop.f32.mrb[66].mxu1 }
0x1845   : > { %v2252_v11 = vadd.f32 %v9322_v6, %v2251_v10  ;;  %v10829_v12 = vpop.f32.mrb[67].mxu1  ;;  %v2255_v13 = vmax.f32 %v2249_v8, 0.0 }
0x1846   : > { %v11989_v12 = vld [vmem:[%s14456_s3 + $0x120] sm:$0xff]  }
0x1847   : > { %v2256_v14 = vmax.f32 %v2252_v11, 0.0 }
0x1849   : > { %v2257_v15 = vpack.c.bf16 %v2256_v14, %v2255_v13  ;;  %v11990_v13 = vld [vmem:[%s14456_s3 + $0x128] sm:$0xff]   ;;  %v11991_v14 = vld [vmem:[%s14456_s3 + $0x130] sm:$0xff]  }
0x184b   : > { %2259 = vrot.lane.b32.xlu1 %v2257_v15, %s12251_s19 }
0x18bd   : > { %v2260_v17 = vpop.permute.xlu1 %2259 }
0x18be   : > { %v2263_v18 = vsel %vm437_vm2, %v12700_v61, %v2260_v17  ;;  %v11983_v61 = vld [vmem:[%s14458_s5 + $0xd0] sm:$0xff]   ;;  %v11992_v17 = vld [vmem:[%s14456_s3 + $0x138] sm:$0xff]  }
0x18bf   : > { %10839 = vmatmul.mubr.msk.bf16.vlgmr.msra.gmra.mrb[48].mxu0 %vm480_vm3, %v2263_v18  ;;  %10847 = vmatpush3.bf16.msra.mxu1 %v11983_v61 }
0x18c0   : > { %10856 = vmatprep.mubr.msk.bf16.mxu0 %vm12250_vm0, %v12249_v0  ;;  %10848 = vmatprep.subr.bf16.mxu1 %v12249_v0 }
0x18c3   : > { %10849 = vmatpush3.bf16.msra.mxu1 %v11984_v21 }
0x18c4   : > { %10860 = vmatprep.subr.bf16.mxu1 %v12249_v0 }
0x1992   : > { %v2341_v23 = vpop.f32.mrb[48].mxu0 }
0x1993   : > { %v2342_v24 = vadd.f32 %v9337_v22, %v2341_v23  ;;  %v10840_v25 = vpop.f32.mrb[49].mxu0 }
0x1994   : > { %v2344_v26 = vpop.f32.mrb[50].mxu0 }
0x1995   : > { %v2345_v27 = vadd.f32 %v9337_v22, %v2344_v26  ;;  %v10841_v28 = vpop.f32.mrb[51].mxu0  ;;  %v2348_v29 = vmax.f32 %v2342_v24, 0.0 }
0x1997   : > { %v2349_v33 = vmax.f32 %v2345_v27, 0.0 }
0x1999   : > { %v2350_v30 = vpack.c.bf16 %v2349_v33, %v2348_v29 }
0x199b   : > { %2352 = vrot.lane.b32.xlu0 %v2350_v30, %s12251_s19  ;;  %v11993_v30 = vld [vmem:[%s14458_s5 + $0xe0] sm:$0xff]  }
0x1a0d   : > { %v2353_v34 = vpop.permute.xlu0 %2352 }
0x1a0e   : > { %v2356_v31 = vsel %vm437_vm2, %v12597_v48, %v2353_v34  ;;  %v11994_v34 = vld [vmem:[%s14458_s5 + $0xe8] sm:$0xff]  }
0x1a0f   : > { %10851 = vmatmul.mubr.msk.bf16.vlgmr.msra.gmra.mrb[68].mxu1 %vm480_vm3, %v2356_v31  ;;  %v11995_v31 = vld [vmem:[%s14458_s5 + $0xf0] sm:$0xff]  }
0x1a10   : > { %10862 = vmatprep.mubr.msk.bf16.mxu1 %vm12250_vm0, %v12249_v0 }
0x1ae2   : > { %v2434_v35 = vpop.f32.mrb[68].mxu1 }
0x1ae3   : > { %v2435_v36 = vadd.f32 %v9352_v32, %v2434_v35  ;;  %v10852_v37 = vpop.f32.mrb[69].mxu1  ;;  %v9386_v35 = vld [vmem:[%s14457_s4 + $0x9] ss:$0 sm:$0xff] }
0x1ae4   : > { %v2437_v38 = vpop.f32.mrb[70].mxu1 }
0x1ae5   : > { %v2438_v39 = vadd.f32 %v9352_v32, %v2437_v38  ;;  %v10853_v40 = vpop.f32.mrb[71].mxu1  ;;  %v2441_v41 = vmax.f32 %v2435_v36, 0.0  ;;  %v11996_v32 = vld [vmem:[%s14458_s5 + $0xf8] sm:$0xff]  }
0x1ae7   : > { %v2442_v42 = vmax.f32 %v2438_v39, 0.0 }
0x1ae9   : > { %v12853_v48 = vpack.c.bf16 %v2442_v42, %v2441_v41 }
0x1aeb   : > { %10855 = vmatpush3.bf16.msra.mxu0 %v12853_v48  ;;  %10861 = vmatpush3.bf16.msra.mxu1 %v12853_v48 }
0x1aec   : > { %10866 = vmatprep.subr.bf16.mxu0 %v12249_v0  ;;  %10878 = vmatprep.subr.bf16.mxu1 %v12249_v0 }
0x1aee   : > { %10863 = vmatmul.mubr.msk.bf16.vlgmr.msra.gmra.mrb[72].mxu1 %vm335_vm1, %v12860_v43  ;;  %10857 = vmatmul.mubr.msk.bf16.vlgmr.msra.gmra.mrb[52].mxu0 %vm335_vm1, %v12865_v44 }
0x1aef   : > { %10874 = vmatprep.mubr.msk.bf16.mxu0 %vm12250_vm0, %v12249_v0  ;;  %10880 = vmatprep.mubr.msk.bf16.mxu1 %vm12250_vm0, %v12249_v0 }
0x1af0   : > { %10867 = vmatpush3.bf16.msra.mxu0 %v11985_v45 }
0x1af1   : > { %10868 = vmatprep.subr.bf16.mxu0 %v12249_v0 }
0x1af4   : > { %10869 = vmatpush3.bf16.msra.mxu0 %v11986_v46 }
0x1af5   : > { %10870 = vmatprep.subr.bf16.mxu0 %v12249_v0 }
0x1af8   : > { %10871 = vmatpush3.bf16.msra.mxu0 %v11987_v47 }
0x1af9   : > { %10872 = vmatprep.subr.bf16.mxu0 %v12249_v0 }
0x1afc   : > { %10873 = vmatpush3.bf16.msra.mxu0 %v11988_v16 }
0x1afd   : > { %10890 = vmatprep.subr.bf16.mxu0 %v12249_v0 }
0x1bc1   : > { %v2519_v49 = vpop.f32.mrb[72].mxu1  ;;  %v2478_v50 = vpop.f32.mrb[52].mxu0 }
0x1bc2   : > { %v10864_v51 = vpop.f32.mrb[73].mxu1  ;;  %v10858_v52 = vpop.f32.mrb[53].mxu0 }
0x1bc3   : > { %v2522_v53 = vpop.f32.mrb[74].mxu1  ;;  %v2481_v54 = vpop.f32.mrb[54].mxu0 }
0x1bc4   : > { %v11802_v55 = vpack.i.bf16 %v2522_v53, %v2519_v49  ;;  %v10865_v56 = vpop.f32.mrb[75].mxu1  ;;  %v10859_v57 = vpop.f32.mrb[55].mxu0  ;;  %v9401_v49 = vld [vmem:[%s14459_s6 + $0x7] ss:$0 sm:$0xff] }
0x1bc6   : > { %11803 = vrot.lane.b32.xlu1 %v11802_v55, %s12251_s19 }
0x1c38   : > { %v11804_v58 = vpop.permute.xlu1 %11803 }
0x1c39   : > { %v11806_v59 = vunpack.i.h.bf16 %v11804_v58  ;;  %v11805_v60 = vunpack.i.l.bf16 %v11804_v58 }
0x1c3b   : > { %v2534_v62 = vsel %vm437_vm2, %v2478_v50, %v11805_v60  ;;  %v2535_v63 = vsel %vm437_vm2, %v2481_v54, %v11806_v59  ;;  %v11997_v59 = vld [vmem:[%s14456_s3 + $0x140] sm:$0xff]   ;;  %v11998_v60 = vld [vmem:[%s14456_s3 + $0x148] sm:$0xff]  }
0x1c3c   : > { %v2536_v1 = vpack.c.bf16 %v2535_v63, %v2534_v62  ;;  %v11999_v62 = vld [vmem:[%s14456_s3 + $0x150] sm:$0xff]   ;;  %v12000_v63 = vld [vmem:[%s14456_s3 + $0x158] sm:$0xff]  }
0x1c3e   : > { %10875 = vmatmul.mubr.msk.bf16.vlgmr.msra.gmra.mrb[56].mxu0 %vm480_vm3, %v2536_v1 }
0x1c3f   : > { %10898 = vmatprep.mubr.msk.bf16.mxu0 %vm12250_vm0, %v12249_v0  ;;  %10891 = vmatpush3.bf16.msra.mxu0 %v11989_v12 }
0x1c40   : > { %10892 = vmatprep.subr.bf16.mxu0 %v12249_v0 }
0x1c43   : > { %10893 = vmatpush3.bf16.msra.mxu0 %v11990_v13 }
0x1c44   : > { %10894 = vmatprep.subr.bf16.mxu0 %v12249_v0 }
0x1c47   : > { %10895 = vmatpush3.bf16.msra.mxu0 %v11991_v14 }
0x1c48   : > { %10896 = vmatprep.subr.bf16.mxu0 %v12249_v0 }
0x1c4b   : > { %10897 = vmatpush3.bf16.msra.mxu0 %v11992_v17  ;;  %v9418_v17 = vld [vmem:[%s14457_s4 + $0xa] ss:$0 sm:$0xff] }
0x1c4c   : > { %10914 = vmatprep.subr.bf16.mxu0 %v12249_v0 }
0x1d11   : > { %v2615_v3 = vpop.f32.mrb[56].mxu0 }
0x1d12   : > { %v2616_v4 = vadd.f32 %v9369_v2, %v2615_v3  ;;  %v10876_v5 = vpop.f32.mrb[57].mxu0 }
0x1d13   : > { %v2618_v6 = vpop.f32.mrb[58].mxu0 }
0x1d14   : > { %v2619_v7 = vadd.f32 %v9369_v2, %v2618_v6  ;;  %v10877_v8 = vpop.f32.mrb[59].mxu0  ;;  %v2622_v9 = vmax.f32 %v2616_v4, 0.0 }
0x1d16   : > { %v2623_v10 = vmax.f32 %v2619_v7, 0.0 }
0x1d18   : > { %v12898_v11 = vpack.c.bf16 %v2623_v10, %v2622_v9 }
0x1d1a   : > { %10879 = vmatpush3.bf16.msra.mxu1 %v12898_v11 }
0x1d1b   : > { %10884 = vmatprep.subr.bf16.mxu1 %v12249_v0 }
0x1d1d   : > { %10881 = vmatmul.mubr.msk.bf16.vlgmr.msra.gmra.mrb[76].mxu1 %vm335_vm1, %v12865_v44 }
0x1d1e   : > { %10885 = vmatpush3.bf16.msra.mxu1 %v12898_v11  ;;  %10886 = vmatprep.mubr.msk.bf16.mxu1 %vm12250_vm0, %v12249_v0 }
0x1d1f   : > { %10902 = vmatprep.subr.bf16.mxu1 %v12249_v0 }
0x1d25   : > { %10887 = vmatmul.mubr.msk.bf16.vlgmr.msra.gmra.mrb[80].mxu1 %vm335_vm1, %v12860_v43 }
0x1d26   : > { %10910 = vmatprep.mubr.msk.bf16.mxu1 %vm12250_vm0, %v12249_v0  ;;  %10903 = vmatpush3.bf16.msra.mxu1 %v11993_v30 }
0x1d27   : > { %10904 = vmatprep.subr.bf16.mxu1 %v12249_v0 }
0x1d2a   : > { %10905 = vmatpush3.bf16.msra.mxu1 %v11994_v34 }
0x1d2b   : > { %10906 = vmatprep.subr.bf16.mxu1 %v12249_v0 }
0x1d2e   : > { %10907 = vmatpush3.bf16.msra.mxu1 %v11995_v31 }
0x1d2f   : > { %10908 = vmatprep.subr.bf16.mxu1 %v12249_v0 }
0x1d32   : > { %10909 = vmatpush3.bf16.msra.mxu1 %v11996_v32 }
0x1d33   : > { %10920 = vmatprep.subr.bf16.mxu1 %v12249_v0 }
0x1df0   : > { %v2659_v15 = vpop.f32.mrb[76].mxu1 }
0x1df1   : > { %v10882_v18 = vpop.f32.mrb[77].mxu1 }
0x1df2   : > { %v2662_v19 = vpop.f32.mrb[78].mxu1 }
0x1df3   : > { %v10883_v20 = vpop.f32.mrb[79].mxu1 }
0x1df8   : > { %v2700_v61 = vpop.f32.mrb[80].mxu1 }
0x1df9   : > { %v10888_v21 = vpop.f32.mrb[81].mxu1 }
0x1dfa   : > { %v2703_v22 = vpop.f32.mrb[82].mxu1 }
0x1dfb   : > { %v11807_v23 = vpack.i.bf16 %v2703_v22, %v2700_v61  ;;  %v10889_v24 = vpop.f32.mrb[83].mxu1 }
0x1dfd   : > { %11808 = vrot.lane.b32.xlu0 %v11807_v23, %s12251_s19 }
0x1e6f   : > { %v11809_v25 = vpop.permute.xlu0 %11808 }
0x1e70   : > { %v11811_v26 = vunpack.i.h.bf16 %v11809_v25  ;;  %v11810_v27 = vunpack.i.l.bf16 %v11809_v25 }
0x1e72   : > { %v2716_v28 = vsel %vm437_vm2, %v2662_v19, %v11811_v26  ;;  %v2715_v29 = vsel %vm437_vm2, %v2659_v15, %v11810_v27  ;;  %v12001_v26 = vld [vmem:[%s14456_s3 + $0x160] sm:$0xff]   ;;  %v12002_v27 = vld [vmem:[%s14456_s3 + $0x168] sm:$0xff]  }
0x1e73   : > { %v2717_v33 = vpack.c.bf16 %v2716_v28, %v2715_v29  ;;  %v12003_v28 = vld [vmem:[%s14456_s3 + $0x170] sm:$0xff]  }
0x1e75   : > { %10899 = vmatmul.mubr.msk.bf16.vlgmr.msra.gmra.mrb[60].mxu0 %vm480_vm3, %v2717_v33  ;;  %v12004_v33 = vld [vmem:[%s14456_s3 + $0x178] sm:$0xff]  }
0x1e76   : > { %10916 = vmatprep.mubr.msk.bf16.mxu0 %vm12250_vm0, %v12249_v0 }
0x1f48   : > { %v2796_v36 = vpop.f32.mrb[60].mxu0 }
0x1f49   : > { %v2797_v37 = vadd.f32 %v9386_v35, %v2796_v36  ;;  %v10900_v38 = vpop.f32.mrb[61].mxu0 }
0x1f4a   : > { %v2799_v39 = vpop.f32.mrb[62].mxu0 }
0x1f4b   : > { %v2800_v40 = vadd.f32 %v9386_v35, %v2799_v39  ;;  %v10901_v41 = vpop.f32.mrb[63].mxu0  ;;  %v2803_v42 = vmax.f32 %v2797_v37, 0.0 }
0x1f4d   : > { %v2804_v45 = vmax.f32 %v2800_v40, 0.0 }
0x1f4f   : > { %v2805_v46 = vpack.c.bf16 %v2804_v45, %v2803_v42 }
0x1f51   : > { %2807 = vrot.lane.b32.xlu1 %v2805_v46, %s12251_s19 }
0x1fc3   : > { %v2808_v47 = vpop.permute.xlu1 %2807 }
0x1fc4   : > { %v2811_v16 = vsel %vm437_vm2, %v12898_v11, %v2808_v47  ;;  %v12005_v47 = vld [vmem:[%s14458_s5 + $0x100] sm:$0xff]  }
0x1fc5   : > { %10911 = vmatmul.mubr.msk.bf16.vlgmr.msra.gmra.mrb[84].mxu1 %vm480_vm3, %v2811_v16  ;;  %v12006_v16 = vld [vmem:[%s14458_s5 + $0x108] sm:$0xff]  }
0x1fc6   : > { %10922 = vmatprep.mubr.msk.bf16.mxu1 %vm12250_vm0, %v12249_v0 }
0x2098   : > { %v2889_v50 = vpop.f32.mrb[84].mxu1 }
0x2099   : > { %v2890_v51 = vadd.f32 %v9401_v49, %v2889_v50  ;;  %v10912_v52 = vpop.f32.mrb[85].mxu1  ;;  %v12008_v50 = vld [vmem:[%s14458_s5 + $0x118] sm:$0xff]  }
0x209a   : > { %v2892_v53 = vpop.f32.mrb[86].mxu1 }
0x209b   : > { %v2893_v54 = vadd.f32 %v9401_v49, %v2892_v53  ;;  %v10913_v55 = vpop.f32.mrb[87].mxu1  ;;  %v2896_v56 = vmax.f32 %v2890_v51, 0.0  ;;  %v12007_v49 = vld [vmem:[%s14458_s5 + $0x110] sm:$0xff]   ;;  %v9435_v51 = vld [vmem:[%s14457_s4 + $0xb] ss:$0 sm:$0xff] }
0x209d   : > { %v2897_v57 = vmax.f32 %v2893_v54, 0.0 }
0x209f   : > { %v12962_v58 = vpack.c.bf16 %v2897_v57, %v2896_v56 }
0x20a1   : > { %10915 = vmatpush3.bf16.msra.mxu0 %v12962_v58  ;;  %10921 = vmatpush3.bf16.msra.mxu1 %v12962_v58 }
0x20a2   : > { %10926 = vmatprep.subr.bf16.mxu0 %v12249_v0  ;;  %10938 = vmatprep.subr.bf16.mxu1 %v12249_v0 }
0x20a4   : > { %10923 = vmatmul.mubr.msk.bf16.vlgmr.msra.gmra.mrb[88].mxu1 %vm335_vm1, %v12860_v43  ;;  %10917 = vmatmul.mubr.msk.bf16.vlgmr.msra.gmra.mrb[64].mxu0 %vm335_vm1, %v12865_v44 }
0x20a5   : > { %10934 = vmatprep.mubr.msk.bf16.mxu0 %vm12250_vm0, %v12249_v0  ;;  %10940 = vmatprep.mubr.msk.bf16.mxu1 %vm12250_vm0, %v12249_v0 }
0x20a6   : > { %10927 = vmatpush3.bf16.msra.mxu0 %v11997_v59 }
0x20a7   : > { %10928 = vmatprep.subr.bf16.mxu0 %v12249_v0 }
0x20aa   : > { %10929 = vmatpush3.bf16.msra.mxu0 %v11998_v60 }
0x20ab   : > { %10930 = vmatprep.subr.bf16.mxu0 %v12249_v0 }
0x20ae   : > { %10931 = vmatpush3.bf16.msra.mxu0 %v11999_v62 }
0x20af   : > { %10932 = vmatprep.subr.bf16.mxu0 %v12249_v0 }
0x20b2   : > { %10933 = vmatpush3.bf16.msra.mxu0 %v12000_v63 }
0x20b3   : > { %10950 = vmatprep.subr.bf16.mxu0 %v12249_v0 }
0x2177   : > { %v2974_v1 = vpop.f32.mrb[88].mxu1  ;;  %v2933_v2 = vpop.f32.mrb[64].mxu0 }
0x2178   : > { %v10924_v3 = vpop.f32.mrb[89].mxu1  ;;  %v10918_v4 = vpop.f32.mrb[65].mxu0 }
0x2179   : > { %v2977_v5 = vpop.f32.mrb[90].mxu1  ;;  %v2936_v6 = vpop.f32.mrb[66].mxu0  ;;  %v12010_v3 = vld [vmem:[%s14458_s5 + $0x128] sm:$0xff]   ;;  %v12011_v4 = vld [vmem:[%s14458_s5 + $0x130] sm:$0xff]  }
0x217a   : > { %v11812_v7 = vpack.i.bf16 %v2977_v5, %v2974_v1  ;;  %v10925_v8 = vpop.f32.mrb[91].mxu1  ;;  %v10919_v9 = vpop.f32.mrb[67].mxu0  ;;  %v12012_v5 = vld [vmem:[%s14458_s5 + $0x138] sm:$0xff]  }
0x217c   : > { %11813 = vrot.lane.b32.xlu0 %v11812_v7, %s12251_s19 }
0x21ee   : > { %v11814_v10 = vpop.permute.xlu0 %11813 }
0x21ef   : > { %v11816_v11 = vunpack.i.h.bf16 %v11814_v10  ;;  %v11815_v12 = vunpack.i.l.bf16 %v11814_v10 }
0x21f1   : > { %v2989_v13 = vsel %vm437_vm2, %v2933_v2, %v11815_v12  ;;  %v2990_v14 = vsel %vm437_vm2, %v2936_v6, %v11816_v11  ;;  %v12009_v2 = vld [vmem:[%s14458_s5 + $0x120] sm:$0xff]   ;;  %v9450_v6 = vld [vmem:[%s14459_s6 + $0x8] ss:$0 sm:$0xff] }
0x21f2   : > { %v2991_v15 = vpack.c.bf16 %v2990_v14, %v2989_v13 }
0x21f4   : > { %10935 = vmatmul.mubr.msk.bf16.vlgmr.msra.gmra.mrb[68].mxu0 %vm480_vm3, %v2991_v15 }
0x21f5   : > { %10958 = vmatprep.mubr.msk.bf16.mxu0 %vm12250_vm0, %v12249_v0  ;;  %10951 = vmatpush3.bf16.msra.mxu0 %v12001_v26 }
0x21f6   : > { %10952 = vmatprep.subr.bf16.mxu0 %v12249_v0 }
0x21f9   : > { %10953 = vmatpush3.bf16.msra.mxu0 %v12002_v27 }
0x21fa   : > { %10954 = vmatprep.subr.bf16.mxu0 %v12249_v0 }
0x21fd   : > { %10955 = vmatpush3.bf16.msra.mxu0 %v12003_v28  ;;  %v12014_v28 = vld [vmem:[%s14456_s3 + $0x188] sm:$0xff]  }
0x21fe   : > { %10956 = vmatprep.subr.bf16.mxu0 %v12249_v0 }
0x2201   : > { %10957 = vmatpush3.bf16.msra.mxu0 %v12004_v33 }
0x2202   : > { %10974 = vmatprep.subr.bf16.mxu0 %v12249_v0 }
0x22c7   : > { %v3070_v18 = vpop.f32.mrb[68].mxu0 }
0x22c8   : > { %v3071_v19 = vadd.f32 %v9418_v17, %v3070_v18  ;;  %v10936_v20 = vpop.f32.mrb[69].mxu0 }
0x22c9   : > { %v3073_v61 = vpop.f32.mrb[70].mxu0 }
0x22ca   : > { %v3074_v21 = vadd.f32 %v9418_v17, %v3073_v61  ;;  %v10937_v22 = vpop.f32.mrb[71].mxu0  ;;  %v3077_v23 = vmax.f32 %v3071_v19, 0.0  ;;  %v9465_v19 = vld [vmem:[%s14459_s6 + $0x9] ss:$0 sm:$0xff] }
0x22cc   : > { %v3078_v24 = vmax.f32 %v3074_v21, 0.0 }
0x22ce   : > { %v13001_v25 = vpack.c.bf16 %v3078_v24, %v3077_v23 }
0x22d0   : > { %10939 = vmatpush3.bf16.msra.mxu1 %v13001_v25 }
0x22d1   : > { %10944 = vmatprep.subr.bf16.mxu1 %v12249_v0 }
0x22d3   : > { %10941 = vmatmul.mubr.msk.bf16.vlgmr.msra.gmra.mrb[92].mxu1 %vm335_vm1, %v12865_v44 }
0x22d4   : > { %10945 = vmatpush3.bf16.msra.mxu1 %v13001_v25  ;;  %10946 = vmatprep.mubr.msk.bf16.mxu1 %vm12250_vm0, %v12249_v0 }
0x22d5   : > { %10962 = vmatprep.subr.bf16.mxu1 %v12249_v0 }
0x22db   : > { %10947 = vmatmul.mubr.msk.bf16.vlgmr.msra.gmra.mrb[96].mxu1 %vm335_vm1, %v12860_v43 }
0x22dc   : > { %10970 = vmatprep.mubr.msk.bf16.mxu1 %vm12250_vm0, %v12249_v0  ;;  %10963 = vmatpush3.bf16.msra.mxu1 %v12005_v47 }
0x22dd   : > { %10964 = vmatprep.subr.bf16.mxu1 %v12249_v0 }
0x22e0   : > { %10965 = vmatpush3.bf16.msra.mxu1 %v12006_v16  ;;  %v9482_v16 = vld [vmem:[%s14457_s4 + $0xc] ss:$0 sm:$0xff] }
0x22e1   : > { %10966 = vmatprep.subr.bf16.mxu1 %v12249_v0 }
0x22e4   : > { %10967 = vmatpush3.bf16.msra.mxu1 %v12007_v49 }
0x22e5   : > { %10968 = vmatprep.subr.bf16.mxu1 %v12249_v0 }
0x22e8   : > { %10969 = vmatpush3.bf16.msra.mxu1 %v12008_v50 }
0x22e9   : > { %10986 = vmatprep.subr.bf16.mxu1 %v12249_v0 }
0x23a6   : > { %v3114_v29 = vpop.f32.mrb[92].mxu1 }
0x23a7   : > { %v10942_v30 = vpop.f32.mrb[93].mxu1 }
0x23a8   : > { %v3117_v34 = vpop.f32.mrb[94].mxu1  ;;  %v12016_v30 = vld [vmem:[%s14456_s3 + $0x198] sm:$0xff]  }
0x23a9   : > { %v10943_v31 = vpop.f32.mrb[95].mxu1 }
0x23ae   : > { %v3155_v32 = vpop.f32.mrb[96].mxu1 }
0x23af   : > { %v10948_v35 = vpop.f32.mrb[97].mxu1 }
0x23b0   : > { %v3158_v36 = vpop.f32.mrb[98].mxu1 }
0x23b1   : > { %v11817_v37 = vpack.i.bf16 %v3158_v36, %v3155_v32  ;;  %v10949_v38 = vpop.f32.mrb[99].mxu1 }
0x23b3   : > { %11818 = vrot.lane.b32.xlu1 %v11817_v37, %s12251_s19 }
0x2425   : > { %v11819_v39 = vpop.permute.xlu1 %11818 }
0x2426   : > { %v11821_v40 = vunpack.i.h.bf16 %v11819_v39  ;;  %v11820_v41 = vunpack.i.l.bf16 %v11819_v39 }
0x2428   : > { %v3171_v42 = vsel %vm437_vm2, %v3117_v34, %v11821_v40  ;;  %v3170_v45 = vsel %vm437_vm2, %v3114_v29, %v11820_v41  ;;  %v12015_v29 = vld [vmem:[%s14456_s3 + $0x190] sm:$0xff]  }
0x2429   : > { %v3172_v46 = vpack.c.bf16 %v3171_v42, %v3170_v45 }
0x242b   : > { %10959 = vmatmul.mubr.msk.bf16.vlgmr.msra.gmra.mrb[72].mxu0 %vm480_vm3, %v3172_v46 }
0x242c   : > { %10982 = vmatprep.mubr.msk.bf16.mxu0 %vm12250_vm0, %v12249_v0  ;;  %10975 = vmatpush3.bf16.msra.mxu0 %v12009_v2 }
0x242d   : > { %10976 = vmatprep.subr.bf16.mxu0 %v12249_v0 }
0x2430   : > { %10977 = vmatpush3.bf16.msra.mxu0 %v12010_v3 }
0x2431   : > { %10978 = vmatprep.subr.bf16.mxu0 %v12249_v0 }
0x2434   : > { %10979 = vmatpush3.bf16.msra.mxu0 %v12011_v4 }
0x2435   : > { %10980 = vmatprep.subr.bf16.mxu0 %v12249_v0 }
0x2438   : > { %10981 = vmatpush3.bf16.msra.mxu0 %v12012_v5 }
0x2439   : > { %10998 = vmatprep.subr.bf16.mxu0 %v12249_v0 }
0x24fe   : > { %v3251_v52 = vpop.f32.mrb[72].mxu0 }
0x24ff   : > { %v3252_v53 = vadd.f32 %v9435_v51, %v3251_v52  ;;  %v10960_v54 = vpop.f32.mrb[73].mxu0 }
0x2500   : > { %v3254_v55 = vpop.f32.mrb[74].mxu0 }
0x2501   : > { %v3255_v56 = vadd.f32 %v9435_v51, %v3254_v55  ;;  %v10961_v57 = vpop.f32.mrb[75].mxu0  ;;  %v3258_v59 = vmax.f32 %v3252_v53, 0.0 }
0x2503   : > { %v3259_v60 = vmax.f32 %v3255_v56, 0.0 }
0x2505   : > { %v3260_v62 = vpack.c.bf16 %v3259_v60, %v3258_v59  ;;  %v12017_v59 = vld [vmem:[%s14456_s3 + $0x1a0] sm:$0xff]   ;;  %v12018_v60 = vld [vmem:[%s14456_s3 + $0x1a8] sm:$0xff]  }
0x2507   : > { %3262 = vrot.lane.b32.xlu0 %v3260_v62, %s12251_s19  ;;  %v12019_v62 = vld [vmem:[%s14456_s3 + $0x1b0] sm:$0xff]  }
0x2579   : > { %v3263_v63 = vpop.permute.xlu0 %3262 }
0x257a   : > { %v3266_v1 = vsel %vm437_vm2, %v13001_v25, %v3263_v63 }
0x257b   : > { %10971 = vmatmul.mubr.msk.bf16.vlgmr.msra.gmra.mrb[100].mxu1 %vm480_vm3, %v3266_v1  ;;  %v12020_v1 = vld [vmem:[%s14456_s3 + $0x1b8] sm:$0xff]  }
0x257c   : > { %10988 = vmatprep.mubr.msk.bf16.mxu1 %vm12250_vm0, %v12249_v0 }
0x264e   : > { %v3344_v7 = vpop.f32.mrb[100].mxu1 }
0x264f   : > { %v3345_v8 = vadd.f32 %v9450_v6, %v3344_v7  ;;  %v10972_v9 = vpop.f32.mrb[101].mxu1 }
0x2650   : > { %v3347_v10 = vpop.f32.mrb[102].mxu1 }
0x2651   : > { %v3348_v11 = vadd.f32 %v9450_v6, %v3347_v10  ;;  %v10973_v12 = vpop.f32.mrb[103].mxu1  ;;  %v3351_v13 = vmax.f32 %v3345_v8, 0.0 }
0x2653   : > { %v3352_v14 = vmax.f32 %v3348_v11, 0.0 }
0x2655   : > { %v3353_v15 = vpack.c.bf16 %v3352_v14, %v3351_v13 }
0x2657   : > { %3355 = vrot.lane.b32.xlu1 %v3353_v15, %s12251_s19 }
0x26c9   : > { %v3356_v17 = vpop.permute.xlu1 %3355 }
0x26ca   : > { %v3359_v18 = vsel %vm437_vm2, %v12962_v58, %v3356_v17  ;;  %v12013_v58 = vld [vmem:[%s14456_s3 + $0x180] sm:$0xff]  }
0x26cb   : > { %10983 = vmatmul.mubr.msk.bf16.vlgmr.msra.gmra.mrb[76].mxu0 %vm480_vm3, %v3359_v18  ;;  %v12021_v17 = vld [vmem:[%s14458_s5 + $0x140] sm:$0xff]   ;;  %v12022_v18 = vld [vmem:[%s14458_s5 + $0x148] sm:$0xff]  }
0x26cc   : > { %11006 = vmatprep.mubr.msk.bf16.mxu0 %vm12250_vm0, %v12249_v0  ;;  %10999 = vmatpush3.bf16.msra.mxu0 %v12013_v58 }
0x26cd   : > { %11000 = vmatprep.subr.bf16.mxu0 %v12249_v0 }
0x26d0   : > { %11001 = vmatpush3.bf16.msra.mxu0 %v12014_v28 }
0x26d1   : > { %11002 = vmatprep.subr.bf16.mxu0 %v12249_v0 }
0x26d4   : > { %11003 = vmatpush3.bf16.msra.mxu0 %v12015_v29 }
0x26d5   : > { %11004 = vmatprep.subr.bf16.mxu0 %v12249_v0 }
0x26d8   : > { %11005 = vmatpush3.bf16.msra.mxu0 %v12016_v30 }
0x26d9   : > { %11022 = vmatprep.subr.bf16.mxu0 %v12249_v0 }
0x279e   : > { %v3437_v20 = vpop.f32.mrb[76].mxu0 }
0x279f   : > { %v3438_v61 = vadd.f32 %v9465_v19, %v3437_v20  ;;  %v10984_v21 = vpop.f32.mrb[77].mxu0  ;;  %v12024_v20 = vld [vmem:[%s14458_s5 + $0x158] sm:$0xff]  }
0x27a0   : > { %v3440_v22 = vpop.f32.mrb[78].mxu0 }
0x27a1   : > { %v3441_v23 = vadd.f32 %v9465_v19, %v3440_v22  ;;  %v10985_v24 = vpop.f32.mrb[79].mxu0  ;;  %v3444_v25 = vmax.f32 %v3438_v61, 0.0  ;;  %v12023_v19 = vld [vmem:[%s14458_s5 + $0x150] sm:$0xff]   ;;  %v9499_v61 = vld [vmem:[%s14457_s4 + $0xd] ss:$0 sm:$0xff] }
0x27a3   : > { %v3445_v26 = vmax.f32 %v3441_v23, 0.0 }
0x27a5   : > { %v13090_v27 = vpack.c.bf16 %v3445_v26, %v3444_v25 }
0x27a7   : > { %10987 = vmatpush3.bf16.msra.mxu1 %v13090_v27 }
0x27a8   : > { %10992 = vmatprep.subr.bf16.mxu1 %v12249_v0 }
0x27aa   : > { %10989 = vmatmul.mubr.msk.bf16.vlgmr.msra.gmra.mrb[104].mxu1 %vm335_vm1, %v12865_v44 }
0x27ab   : > { %10993 = vmatpush3.bf16.msra.mxu1 %v13090_v27  ;;  %10994 = vmatprep.mubr.msk.bf16.mxu1 %vm12250_vm0, %v12249_v0 }
0x27ac   : > { %11010 = vmatprep.subr.bf16.mxu1 %v12249_v0 }
0x27b2   : > { %10995 = vmatmul.mubr.msk.bf16.vlgmr.msra.gmra.mrb[108].mxu1 %vm335_vm1, %v12860_v43 }
0x27b3   : > { %11012 = vmatprep.mubr.msk.bf16.mxu1 %vm12250_vm0, %v12249_v0 }
0x287d   : > { %v3481_v33 = vpop.f32.mrb[104].mxu1 }
0x287e   : > { %v10990_v34 = vpop.f32.mrb[105].mxu1 }
0x287f   : > { %v3484_v31 = vpop.f32.mrb[106].mxu1  ;;  %v9514_v34 = vld [vmem:[%s14459_s6 + $0xa] ss:$0 sm:$0xff] }
0x2880   : > { %v10991_v32 = vpop.f32.mrb[107].mxu1 }
0x2885   : > { %v3522_v35 = vpop.f32.mrb[108].mxu1 }
0x2886   : > { %v10996_v36 = vpop.f32.mrb[109].mxu1 }
0x2887   : > { %v3525_v37 = vpop.f32.mrb[110].mxu1 }
0x2888   : > { %v11822_v38 = vpack.i.bf16 %v3525_v37, %v3522_v35  ;;  %v10997_v39 = vpop.f32.mrb[111].mxu1 }
0x288a   : > { %11823 = vrot.lane.b32.xlu0 %v11822_v38, %s12251_s19 }
0x28fc   : > { %v11824_v40 = vpop.permute.xlu0 %11823 }
0x28fd   : > { %v11826_v41 = vunpack.i.h.bf16 %v11824_v40  ;;  %v11825_v42 = vunpack.i.l.bf16 %v11824_v40 }
0x28ff   : > { %v3538_v45 = vsel %vm437_vm2, %v3484_v31, %v11826_v41  ;;  %v3537_v46 = vsel %vm437_vm2, %v3481_v33, %v11825_v42  ;;  %v12025_v42 = vld [vmem:[%s14456_s3 + $0x1c0] sm:$0xff]  }
0x2900   : > { %v3539_v47 = vpack.c.bf16 %v3538_v45, %v3537_v46  ;;  %v12026_v45 = vld [vmem:[%s14456_s3 + $0x1c8] sm:$0xff]   ;;  %v12027_v46 = vld [vmem:[%s14456_s3 + $0x1d0] sm:$0xff]  }
0x2902   : > { %11007 = vmatmul.mubr.msk.bf16.vlgmr.msra.gmra.mrb[80].mxu0 %vm480_vm3, %v3539_v47  ;;  %v12028_v47 = vld [vmem:[%s14456_s3 + $0x1d8] sm:$0xff]  }
0x2903   : > { %11030 = vmatprep.mubr.msk.bf16.mxu0 %vm12250_vm0, %v12249_v0  ;;  %11023 = vmatpush3.bf16.msra.mxu0 %v12017_v59 }
0x2904   : > { %11024 = vmatprep.subr.bf16.mxu0 %v12249_v0 }
0x2907   : > { %11025 = vmatpush3.bf16.msra.mxu0 %v12018_v60 }
0x2908   : > { %11026 = vmatprep.subr.bf16.mxu0 %v12249_v0 }
0x290b   : > { %11027 = vmatpush3.bf16.msra.mxu0 %v12019_v62 }
0x290c   : > { %11028 = vmatprep.subr.bf16.mxu0 %v12249_v0 }
0x290f   : > { %11029 = vmatpush3.bf16.msra.mxu0 %v12020_v1 }
0x2910   : > { %11046 = vmatprep.subr.bf16.mxu0 %v12249_v0 }
0x29d5   : > { %v3618_v49 = vpop.f32.mrb[80].mxu0 }
0x29d6   : > { %v3619_v50 = vadd.f32 %v9482_v16, %v3618_v49  ;;  %v11008_v51 = vpop.f32.mrb[81].mxu0 }
0x29d7   : > { %v3621_v52 = vpop.f32.mrb[82].mxu0 }
0x29d8   : > { %v3622_v53 = vadd.f32 %v9482_v16, %v3621_v52  ;;  %v11009_v54 = vpop.f32.mrb[83].mxu0  ;;  %v3625_v55 = vmax.f32 %v3619_v50, 0.0 }
0x29da   : > { %v3626_v56 = vmax.f32 %v3622_v53, 0.0 }
0x29dc   : > { %v13129_v57 = vpack.c.bf16 %v3626_v56, %v3625_v55 }
0x29de   : > { %11011 = vmatpush3.bf16.msra.mxu1 %v13129_v57 }
0x29df   : > { %11016 = vmatprep.subr.bf16.mxu1 %v12249_v0 }
0x29e1   : > { %11013 = vmatmul.mubr.msk.bf16.vlgmr.msra.gmra.mrb[112].mxu1 %vm335_vm1, %v12865_v44 }
0x29e2   : > { %11017 = vmatpush3.bf16.msra.mxu1 %v13129_v57  ;;  %11018 = vmatprep.mubr.msk.bf16.mxu1 %vm12250_vm0, %v12249_v0 }
0x29e3   : > { %11034 = vmatprep.subr.bf16.mxu1 %v12249_v0 }
0x29e9   : > { %11019 = vmatmul.mubr.msk.bf16.vlgmr.msra.gmra.mrb[116].mxu1 %vm335_vm1, %v12860_v43 }
0x29ea   : > { %11042 = vmatprep.mubr.msk.bf16.mxu1 %vm12250_vm0, %v12249_v0  ;;  %11035 = vmatpush3.bf16.msra.mxu1 %v12021_v17 }
0x29eb   : > { %11036 = vmatprep.subr.bf16.mxu1 %v12249_v0 }
0x29ee   : > { %11037 = vmatpush3.bf16.msra.mxu1 %v12022_v18 }
0x29ef   : > { %11038 = vmatprep.subr.bf16.mxu1 %v12249_v0 }
0x29f2   : > { %11039 = vmatpush3.bf16.msra.mxu1 %v12023_v19 }
0x29f3   : > { %11040 = vmatprep.subr.bf16.mxu1 %v12249_v0 }
0x29f6   : > { %11041 = vmatpush3.bf16.msra.mxu1 %v12024_v20 }
0x29f7   : > { %11052 = vmatprep.subr.bf16.mxu1 %v12249_v0 }
0x2ab4   : > { %v3662_v63 = vpop.f32.mrb[112].mxu1 }
0x2ab5   : > { %v11014_v2 = vpop.f32.mrb[113].mxu1 }
0x2ab6   : > { %v3665_v3 = vpop.f32.mrb[114].mxu1  ;;  %v9531_v2 = vld [vmem:[%s14457_s4 + $0xe] ss:$0 sm:$0xff] }
0x2ab7   : > { %v11015_v4 = vpop.f32.mrb[115].mxu1 }
0x2abc   : > { %v3703_v5 = vpop.f32.mrb[116].mxu1 }
0x2abd   : > { %v11020_v6 = vpop.f32.mrb[117].mxu1 }
0x2abe   : > { %v3706_v7 = vpop.f32.mrb[118].mxu1 }
0x2abf   : > { %v11827_v8 = vpack.i.bf16 %v3706_v7, %v3703_v5  ;;  %v11021_v9 = vpop.f32.mrb[119].mxu1 }
0x2ac1   : > { %11828 = vrot.lane.b32.xlu1 %v11827_v8, %s12251_s19 }
0x2b33   : > { %v11829_v10 = vpop.permute.xlu1 %11828 }
0x2b34   : > { %v11831_v11 = vunpack.i.h.bf16 %v11829_v10  ;;  %v11830_v12 = vunpack.i.l.bf16 %v11829_v10 }
0x2b36   : > { %v3719_v13 = vsel %vm437_vm2, %v3665_v3, %v11831_v11  ;;  %v3718_v14 = vsel %vm437_vm2, %v3662_v63, %v11830_v12  ;;  %v12029_v12 = vld [vmem:[%s14456_s3 + $0x1e0] sm:$0xff]  }
0x2b37   : > { %v3720_v15 = vpack.c.bf16 %v3719_v13, %v3718_v14  ;;  %v12031_v13 = vld [vmem:[%s14456_s3 + $0x1f0] sm:$0xff]   ;;  %v12032_v14 = vld [vmem:[%s14456_s3 + $0x1f8] sm:$0xff]  }
0x2b39   : > { %11031 = vmatmul.mubr.msk.bf16.vlgmr.msra.gmra.mrb[84].mxu0 %vm480_vm3, %v3720_v15 }
0x2b3a   : > { %11048 = vmatprep.mubr.msk.bf16.mxu0 %vm12250_vm0, %v12249_v0 }
0x2c0c   : > { %v3799_v21 = vpop.f32.mrb[84].mxu0 }
0x2c0d   : > { %v3800_v22 = vadd.f32 %v9499_v61, %v3799_v21  ;;  %v11032_v23 = vpop.f32.mrb[85].mxu0 }
0x2c0e   : > { %v3802_v24 = vpop.f32.mrb[86].mxu0 }
0x2c0f   : > { %v3803_v25 = vadd.f32 %v9499_v61, %v3802_v24  ;;  %v11033_v26 = vpop.f32.mrb[87].mxu0  ;;  %v3806_v58 = vmax.f32 %v3800_v22, 0.0 }
0x2c11   : > { %v3807_v28 = vmax.f32 %v3803_v25, 0.0 }
0x2c13   : > { %v3808_v29 = vpack.c.bf16 %v3807_v28, %v3806_v58 }
0x2c15   : > { %3810 = vrot.lane.b32.xlu0 %v3808_v29, %s12251_s19  ;;  %v12033_v29 = vld [vmem:[%s14458_s5 + $0x160] sm:$0xff]  }
0x2c87   : > { %v3811_v33 = vpop.permute.xlu0 %3810 }
0x2c88   : > { %v3814_v30 = vsel %vm437_vm2, %v13129_v57, %v3811_v33  ;;  %v12034_v33 = vld [vmem:[%s14458_s5 + $0x168] sm:$0xff]  }
0x2c89   : > { %11043 = vmatmul.mubr.msk.bf16.vlgmr.msra.gmra.mrb[120].mxu1 %vm480_vm3, %v3814_v30  ;;  %v12035_v30 = vld [vmem:[%s14458_s5 + $0x170] sm:$0xff]  }
0x2c8a   : > { %11054 = vmatprep.mubr.msk.bf16.mxu1 %vm12250_vm0, %v12249_v0 }
0x2d5c   : > { %v3892_v31 = vpop.f32.mrb[120].mxu1 }
0x2d5d   : > { %v3893_v32 = vadd.f32 %v9514_v34, %v3892_v31  ;;  %v11044_v35 = vpop.f32.mrb[121].mxu1  ;;  %v9548_v31 = vld [vmem:[%s14457_s4 + $0xf] ss:$0 sm:$0xff] }
0x2d5e   : > { %v3895_v36 = vpop.f32.mrb[122].mxu1 }
0x2d5f   : > { %v3896_v37 = vadd.f32 %v9514_v34, %v3895_v36  ;;  %v11045_v38 = vpop.f32.mrb[123].mxu1  ;;  %v3899_v39 = vmax.f32 %v3893_v32, 0.0  ;;  %v12036_v34 = vld [vmem:[%s14458_s5 + $0x178] sm:$0xff]  }
0x2d61   : > { %v3900_v40 = vmax.f32 %v3896_v37, 0.0 }
0x2d63   : > { %v13193_v41 = vpack.c.bf16 %v3900_v40, %v3899_v39 }
0x2d65   : > { %11047 = vmatpush3.bf16.msra.mxu0 %v13193_v41  ;;  %11053 = vmatpush3.bf16.msra.mxu1 %v13193_v41 }
0x2d66   : > { %11058 = vmatprep.subr.bf16.mxu0 %v12249_v0  ;;  %11070 = vmatprep.subr.bf16.mxu1 %v12249_v0 }
0x2d68   : > { %11055 = vmatmul.mubr.msk.bf16.vlgmr.msra.gmra.mrb[124].mxu1 %vm335_vm1, %v12860_v43  ;;  %11049 = vmatmul.mubr.msk.bf16.vlgmr.msra.gmra.mrb[88].mxu0 %vm335_vm1, %v12865_v44 }
0x2d69   : > { %11066 = vmatprep.mubr.msk.bf16.mxu0 %vm12250_vm0, %v12249_v0  ;;  %11072 = vmatprep.mubr.msk.bf16.mxu1 %vm12250_vm0, %v12249_v0 }
0x2d6a   : > { %11059 = vmatpush3.bf16.msra.mxu0 %v12025_v42 }
0x2d6b   : > { %11060 = vmatprep.subr.bf16.mxu0 %v12249_v0 }
0x2d6e   : > { %11061 = vmatpush3.bf16.msra.mxu0 %v12026_v45 }
0x2d6f   : > { %11062 = vmatprep.subr.bf16.mxu0 %v12249_v0 }
0x2d72   : > { %11063 = vmatpush3.bf16.msra.mxu0 %v12027_v46 }
0x2d73   : > { %11064 = vmatprep.subr.bf16.mxu0 %v12249_v0 }
0x2d76   : > { %11065 = vmatpush3.bf16.msra.mxu0 %v12028_v47 }
0x2d77   : > { %11082 = vmatprep.subr.bf16.mxu0 %v12249_v0 }
0x2e3b   : > { %v3977_v16 = vpop.f32.mrb[124].mxu1  ;;  %v3936_v49 = vpop.f32.mrb[88].mxu0 }
0x2e3c   : > { %v11056_v50 = vpop.f32.mrb[125].mxu1  ;;  %v11050_v51 = vpop.f32.mrb[89].mxu0 }
0x2e3d   : > { %v3980_v52 = vpop.f32.mrb[126].mxu1  ;;  %v3939_v53 = vpop.f32.mrb[90].mxu0  ;;  %v12039_v50 = vld [vmem:[%s14458_s5 + $0x190] sm:$0xff]   ;;  %v12040_v51 = vld [vmem:[%s14458_s5 + $0x198] sm:$0xff]  }
0x2e3e   : > { %v11832_v54 = vpack.i.bf16 %v3980_v52, %v3977_v16  ;;  %v11057_v55 = vpop.f32.mrb[127].mxu1  ;;  %v11051_v56 = vpop.f32.mrb[91].mxu0  ;;  %v12037_v16 = vld [vmem:[%s14458_s5 + $0x180] sm:$0xff]   ;;  %v9563_v52 = vld [vmem:[%s14459_s6 + $0xb] ss:$0 sm:$0xff] }
0x2e40   : > { %11833 = vrot.lane.b32.xlu1 %v11832_v54, %s12251_s19 }
0x2eb2   : > { %v11834_v57 = vpop.permute.xlu1 %11833 }
0x2eb3   : > { %v11836_v59 = vunpack.i.h.bf16 %v11834_v57  ;;  %v11835_v60 = vunpack.i.l.bf16 %v11834_v57 }
0x2eb5   : > { %v3992_v62 = vsel %vm437_vm2, %v3936_v49, %v11835_v60  ;;  %v3993_v63 = vsel %vm437_vm2, %v3939_v53, %v11836_v59  ;;  %v12038_v49 = vld [vmem:[%s14458_s5 + $0x188] sm:$0xff]  }
0x2eb6   : > { %v3994_v1 = vpack.c.bf16 %v3993_v63, %v3992_v62 }
0x2eb8   : > { %11067 = vmatmul.mubr.msk.bf16.vlgmr.msra.gmra.mrb[92].mxu0 %vm480_vm3, %v3994_v1 }
0x2eb9   : > { %11090 = vmatprep.mubr.msk.bf16.mxu0 %vm12250_vm0, %v12249_v0  ;;  %11083 = vmatpush3.bf16.msra.mxu0 %v12029_v12 }
0x2eba   : > { %11084 = vmatprep.subr.bf16.mxu0 %v12249_v0 }
0x2f8b   : > { %v4073_v3 = vpop.f32.mrb[92].mxu0 }
0x2f8c   : > { %v4074_v4 = vadd.f32 %v9531_v2, %v4073_v3  ;;  %v11068_v5 = vpop.f32.mrb[93].mxu0  ;;  %v12041_v3 = vld [vmem:[%s14458_s5 + $0x1a0] sm:$0xff]  }
0x2f8d   : > { %v4076_v6 = vpop.f32.mrb[94].mxu0  ;;  %v12044_v5 = vld [vmem:[%s14458_s5 + $0x1b8] sm:$0xff]  }
0x2f8e   : > { %v4077_v7 = vadd.f32 %v9531_v2, %v4076_v6  ;;  %v11069_v8 = vpop.f32.mrb[95].mxu0  ;;  %v4080_v9 = vmax.f32 %v4074_v4, 0.0  ;;  %v12042_v4 = vld [vmem:[%s14458_s5 + $0x1a8] sm:$0xff]  }
0x2f8f   : > { %v9578_v6 = vld [vmem:[%s14459_s6 + $0xc] ss:$0 sm:$0xff] }
0x2f90   : > { %v4081_v10 = vmax.f32 %v4077_v7, 0.0 }
0x2f92   : > { %v13232_v11 = vpack.c.bf16 %v4081_v10, %v4080_v9 }
0x2f94   : > { %11071 = vmatpush3.bf16.msra.mxu1 %v13232_v11 }
0x2f95   : > { %11076 = vmatprep.subr.bf16.mxu1 %v12249_v0 }
0x2f97   : > { %11073 = vmatmul.mubr.msk.bf16.vlgmr.msra.gmra.mrb[128].mxu1 %vm335_vm1, %v12865_v44  ;;  %v12030_v44 = vld [vmem:[%s14456_s3 + $0x1e8] sm:$0xff]  }
0x2f98   : > { %11077 = vmatpush3.bf16.msra.mxu1 %v13232_v11  ;;  %11078 = vmatprep.mubr.msk.bf16.mxu1 %vm12250_vm0, %v12249_v0 }
0x2f99   : > { %11094 = vmatprep.subr.bf16.mxu1 %v12249_v0  ;;  %11085 = vmatpush3.bf16.msra.mxu0 %v12030_v44 }
0x2f9a   : > { %11086 = vmatprep.subr.bf16.mxu0 %v12249_v0 }
0x2f9d   : > { %11087 = vmatpush3.bf16.msra.mxu0 %v12031_v13 }
0x2f9e   : > { %11088 = vmatprep.subr.bf16.mxu0 %v12249_v0 }
0x2f9f   : > { %11079 = vmatmul.mubr.msk.bf16.vlgmr.msra.gmra.mrb[132].mxu1 %vm335_vm1, %v12860_v43 }
0x2fa0   : > { %11102 = vmatprep.mubr.msk.bf16.mxu1 %vm12250_vm0, %v12249_v0  ;;  %11095 = vmatpush3.bf16.msra.mxu1 %v12033_v29 }
0x2fa1   : > { %11089 = vmatpush3.bf16.msra.mxu0 %v12032_v14  ;;  %11096 = vmatprep.subr.bf16.mxu1 %v12249_v0 }
0x2fa2   : > { %11106 = vmatprep.subr.bf16.mxu0 %v12249_v0 }
0x2fa4   : > { %11097 = vmatpush3.bf16.msra.mxu1 %v12034_v33 }
0x2fa5   : > { %11098 = vmatprep.subr.bf16.mxu1 %v12249_v0 }
0x2fa8   : > { %11099 = vmatpush3.bf16.msra.mxu1 %v12035_v30  ;;  %v9608_v30 = vld [vmem:[%s14459_s6 + $0xe] ss:$0 sm:$0xff] }
0x2fa9   : > { %11100 = vmatprep.subr.bf16.mxu1 %v12249_v0 }
0x2fac   : > { %11101 = vmatpush3.bf16.msra.mxu1 %v12036_v34 }
0x2fad   : > { %11118 = vmatprep.subr.bf16.mxu1 %v12249_v0 }
0x306a   : > { %v4117_v43 = vpop.f32.mrb[128].mxu1 }
0x306b   : > { %v11074_v15 = vpop.f32.mrb[129].mxu1 }
0x306c   : > { %v4120_v17 = vpop.f32.mrb[130].mxu1 }
0x306d   : > { %v11075_v18 = vpop.f32.mrb[131].mxu1 }
0x306e   : > { %v12046_v18 = vld [vmem:[%s14458_s5 + $0x1c8] sm:$0xff]  }
0x3072   : > { %v4158_v19 = vpop.f32.mrb[132].mxu1 }
0x3073   : > { %v11080_v20 = vpop.f32.mrb[133].mxu1 }
0x3074   : > { %v4161_v61 = vpop.f32.mrb[134].mxu1  ;;  %v9593_v20 = vld [vmem:[%s14459_s6 + $0xd] ss:$0 sm:$0xff] }
0x3075   : > { %v11837_v21 = vpack.i.bf16 %v4161_v61, %v4158_v19  ;;  %v11081_v22 = vpop.f32.mrb[135].mxu1  ;;  %v12048_v19 = vld [vmem:[%s14458_s5 + $0x1d8] sm:$0xff]  }
0x3077   : > { %11838 = vrot.lane.b32.xlu0 %v11837_v21, %s12251_s19 }
0x30e9   : > { %v11839_v23 = vpop.permute.xlu0 %11838 }
0x30ea   : > { %v11841_v24 = vunpack.i.h.bf16 %v11839_v23  ;;  %v11840_v25 = vunpack.i.l.bf16 %v11839_v23 }
0x30ec   : > { %v4174_v26 = vsel %vm437_vm2, %v4120_v17, %v11841_v24  ;;  %v4173_v58 = vsel %vm437_vm2, %v4117_v43, %v11840_v25  ;;  %v12045_v17 = vld [vmem:[%s14458_s5 + $0x1c0] sm:$0xff]  }
0x30ed   : > { %v4175_v28 = vpack.c.bf16 %v4174_v26, %v4173_v58 }
0x30ef   : > { %11091 = vmatmul.mubr.msk.bf16.vlgmr.msra.gmra.mrb[96].mxu0 %vm480_vm3, %v4175_v28 }
0x30f0   : > { %11114 = vmatprep.mubr.msk.bf16.mxu0 %vm12250_vm0, %v12249_v0  ;;  %11107 = vmatpush3.bf16.msra.mxu0 %v12037_v16 }
0x30f1   : > { %11108 = vmatprep.subr.bf16.mxu0 %v12249_v0 }
0x30f4   : > { %11109 = vmatpush3.bf16.msra.mxu0 %v12038_v49  ;;  %v12052_v49 = vld [vmem:[%s14456_s3 + $0x218] sm:$0xff]  }
0x30f5   : > { %11110 = vmatprep.subr.bf16.mxu0 %v12249_v0 }
0x30f8   : > { %11111 = vmatpush3.bf16.msra.mxu0 %v12039_v50 }
0x30f9   : > { %11112 = vmatprep.subr.bf16.mxu0 %v12249_v0 }
0x30fc   : > { %11113 = vmatpush3.bf16.msra.mxu0 %v12040_v51 }
0x30fd   : > { %11130 = vmatprep.subr.bf16.mxu0 %v12249_v0 }
0x31c2   : > { %v4254_v32 = vpop.f32.mrb[96].mxu0 }
0x31c3   : > { %v4255_v35 = vadd.f32 %v9548_v31, %v4254_v32  ;;  %v11092_v36 = vpop.f32.mrb[97].mxu0 }
0x31c4   : > { %v4257_v37 = vpop.f32.mrb[98].mxu0 }
0x31c5   : > { %v4258_v38 = vadd.f32 %v9548_v31, %v4257_v37  ;;  %v11093_v39 = vpop.f32.mrb[99].mxu0  ;;  %v4261_v40 = vmax.f32 %v4255_v35, 0.0 }
0x31c7   : > { %v4262_v42 = vmax.f32 %v4258_v38, 0.0 }
0x31c9   : > { %v4263_v45 = vpack.c.bf16 %v4262_v42, %v4261_v40  ;;  %v13385_v42 = vld [vmem:[%s12359_s20] sm:$0xff]  }
0x31cb   : > { %4265 = vrot.lane.b32.xlu1 %v4263_v45, %s12251_s19  ;;  %v12049_v45 = vld [vmem:[%s14456_s3 + $0x200] sm:$0xff]  }
0x323d   : > { %v4266_v46 = vpop.permute.xlu1 %4265 }
0x323e   : > { %v4269_v47 = vsel %vm437_vm2, %v13232_v11, %v4266_v46  ;;  %v12050_v46 = vld [vmem:[%s14456_s3 + $0x208] sm:$0xff]  }
0x323f   : > { %11103 = vmatmul.mubr.msk.bf16.vlgmr.msra.gmra.mrb[136].mxu1 %vm480_vm3, %v4269_v47  ;;  %v12051_v47 = vld [vmem:[%s14456_s3 + $0x210] sm:$0xff]  }
0x3240   : > { %11126 = vmatprep.mubr.msk.bf16.mxu1 %vm12250_vm0, %v12249_v0  ;;  %11119 = vmatpush3.bf16.msra.mxu1 %v12041_v3  ;;  %v9625_v3 = vld [vmem:[%s14457_s4 + $0x10] ss:$0 sm:$0xff] }
0x3241   : > { %11120 = vmatprep.subr.bf16.mxu1 %v12249_v0 }
0x3244   : > { %11121 = vmatpush3.bf16.msra.mxu1 %v12042_v4 }
0x3245   : > { %11122 = vmatprep.subr.bf16.mxu1 %v12249_v0 }
0x3312   : > { %v4347_v53 = vpop.f32.mrb[136].mxu1 }
0x3313   : > { %v4348_v54 = vadd.f32 %v9563_v52, %v4347_v53  ;;  %v11104_v55 = vpop.f32.mrb[137].mxu1 }
0x3314   : > { %v4350_v56 = vpop.f32.mrb[138].mxu1 }
0x3315   : > { %v4351_v57 = vadd.f32 %v9563_v52, %v4350_v56  ;;  %v11105_v59 = vpop.f32.mrb[139].mxu1  ;;  %v4354_v60 = vmax.f32 %v4348_v54, 0.0 }
0x3317   : > { %v4355_v62 = vmax.f32 %v4351_v57, 0.0 }
0x3319   : > { %v4356_v63 = vpack.c.bf16 %v4355_v62, %v4354_v60 }
0x331b   : > { %4358 = vrot.lane.b32.xlu0 %v4356_v63, %s12251_s19 }
0x338d   : > { %v4359_v1 = vpop.permute.xlu0 %4358 }
0x338e   : > { %v4362_v2 = vsel %vm437_vm2, %v13193_v41, %v4359_v1  ;;  %v12043_v41 = vld [vmem:[%s14458_s5 + $0x1b0] sm:$0xff]  }
0x338f   : > { %11115 = vmatmul.mubr.msk.bf16.vlgmr.msra.gmra.mrb[100].mxu0 %vm480_vm3, %v4362_v2  ;;  %11123 = vmatpush3.bf16.msra.mxu1 %v12043_v41 }
0x3390   : > { %11138 = vmatprep.mubr.msk.bf16.mxu0 %vm12250_vm0, %v12249_v0  ;;  %11124 = vmatprep.subr.bf16.mxu1 %v12249_v0 }
0x3391   : > { %11131 = vmatpush3.bf16.msra.mxu0 %v12045_v17 }
0x3392   : > { %11132 = vmatprep.subr.bf16.mxu0 %v12249_v0 }
0x3393   : > { %11125 = vmatpush3.bf16.msra.mxu1 %v12044_v5 }
0x3394   : > { %11142 = vmatprep.subr.bf16.mxu1 %v12249_v0 }
0x3395   : > { %11133 = vmatpush3.bf16.msra.mxu0 %v12046_v18 }
0x3396   : > { %11134 = vmatprep.subr.bf16.mxu0 %v12249_v0 }
0x3462   : > { %v4440_v7 = vpop.f32.mrb[100].mxu0 }
0x3463   : > { %v4441_v8 = vadd.f32 %v9578_v6, %v4440_v7  ;;  %v11116_v9 = vpop.f32.mrb[101].mxu0 }
0x3464   : > { %v4443_v10 = vpop.f32.mrb[102].mxu0 }
0x3465   : > { %v4444_v11 = vadd.f32 %v9578_v6, %v4443_v10  ;;  %v11117_v12 = vpop.f32.mrb[103].mxu0  ;;  %v4447_v44 = vmax.f32 %v4441_v8, 0.0 }
0x3466   : > { %v12053_v12 = vld [vmem:[%s14456_s3 + $0x220] sm:$0xff]  }
0x3467   : > { %v4448_v13 = vmax.f32 %v4444_v11, 0.0 }
0x3469   : > { %v4449_v43 = vpack.c.bf16 %v4448_v13, %v4447_v44  ;;  %v12054_v44 = vld [vmem:[%s14456_s3 + $0x228] sm:$0xff]   ;;  %v12055_v13 = vld [vmem:[%s14456_s3 + $0x230] sm:$0xff]  }
0x346b   : > { %4451 = vrot.lane.b32.xlu1 %v4449_v43, %s12251_s19 }
0x34dd   : > { %v4452_v14 = vpop.permute.xlu1 %4451 }
0x34de   : > { %v4455_v15 = vsel %vm437_vm2, %v13090_v27, %v4452_v14  ;;  %v12047_v27 = vld [vmem:[%s14458_s5 + $0x1d0] sm:$0xff]   ;;  %v12056_v14 = vld [vmem:[%s14456_s3 + $0x238] sm:$0xff]  }
0x34df   : > { %11127 = vmatmul.mubr.msk.bf16.vlgmr.msra.gmra.mrb[140].mxu1 %vm480_vm3, %v4455_v15  ;;  %11135 = vmatpush3.bf16.msra.mxu0 %v12047_v27 }
0x34e0   : > { %11144 = vmatprep.mubr.msk.bf16.mxu1 %vm12250_vm0, %v12249_v0  ;;  %11136 = vmatprep.subr.bf16.mxu0 %v12249_v0 }
0x34e3   : > { %11137 = vmatpush3.bf16.msra.mxu0 %v12048_v19 }
0x34e4   : > { %11154 = vmatprep.subr.bf16.mxu0 %v12249_v0 }
0x35b2   : > { %v4533_v61 = vpop.f32.mrb[140].mxu1 }
0x35b3   : > { %v4534_v21 = vadd.f32 %v9593_v20, %v4533_v61  ;;  %v11128_v22 = vpop.f32.mrb[141].mxu1 }
0x35b4   : > { %v4536_v23 = vpop.f32.mrb[142].mxu1 }
0x35b5   : > { %v4537_v24 = vadd.f32 %v9593_v20, %v4536_v23  ;;  %v11129_v25 = vpop.f32.mrb[143].mxu1  ;;  %v4540_v26 = vmax.f32 %v4534_v21, 0.0 }
0x35b7   : > { %v4541_v58 = vmax.f32 %v4537_v24, 0.0 }
0x35b9   : > { %v4542_v28 = vpack.c.bf16 %v4541_v58, %v4540_v26 }
0x35bb   : > { %4544 = vrot.lane.b32.xlu0 %v4542_v28, %s12251_s19  ;;  %v12057_v28 = vld [vmem:[%s14458_s5 + $0x1e0] sm:$0xff]  }
0x362d   : > { %v4545_v29 = vpop.permute.xlu0 %4544 }
0x362e   : > { %v4548_v33 = vsel %vm437_vm2, %v12853_v48, %v4545_v29  ;;  %v13376_v48 = vld [vmem:[%s12354_s17] sm:$0xff]   ;;  %v12058_v29 = vld [vmem:[%s14458_s5 + $0x1e8] sm:$0xff]  }
0x362f   : > { %11139 = vmatmul.mubr.msk.bf16.vlgmr.msra.gmra.mrb[104].mxu0 %vm480_vm3, %v4548_v33  ;;  %v12059_v33 = vld [vmem:[%s14458_s5 + $0x1f0] sm:$0xff]  }
0x3630   : > { %11162 = vmatprep.mubr.msk.bf16.mxu0 %vm12250_vm0, %v12249_v0  ;;  %11155 = vmatpush3.bf16.msra.mxu0 %v12049_v45 }
0x3631   : > { %11156 = vmatprep.subr.bf16.mxu0 %v12249_v0 }
0x3634   : > { %11157 = vmatpush3.bf16.msra.mxu0 %v12050_v46 }
0x3635   : > { %11158 = vmatprep.subr.bf16.mxu0 %v12249_v0 }
0x3638   : > { %11159 = vmatpush3.bf16.msra.mxu0 %v12051_v47 }
0x3639   : > { %11160 = vmatprep.subr.bf16.mxu0 %v12249_v0 }
0x363c   : > { %11161 = vmatpush3.bf16.msra.mxu0 %v12052_v49  ;;  %v9657_v49 = vld [vmem:[%s14459_s6 + $0xf] ss:$0 sm:$0xff] }
0x363d   : > { %11178 = vmatprep.subr.bf16.mxu0 %v12249_v0 }
0x3702   : > { %v4626_v34 = vpop.f32.mrb[104].mxu0 }
0x3703   : > { %v4627_v31 = vadd.f32 %v9608_v30, %v4626_v34  ;;  %v11140_v32 = vpop.f32.mrb[105].mxu0  ;;  %v9642_v34 = vld [vmem:[%s14457_s4 + $0x11] ss:$0 sm:$0xff] }
0x3704   : > { %v4629_v35 = vpop.f32.mrb[106].mxu0 }
0x3705   : > { %v4630_v36 = vadd.f32 %v9608_v30, %v4629_v35  ;;  %v11141_v37 = vpop.f32.mrb[107].mxu0  ;;  %v4633_v38 = vmax.f32 %v4627_v31, 0.0  ;;  %v12060_v30 = vld [vmem:[%s14458_s5 + $0x1f8] sm:$0xff]  }
0x3707   : > { %v4634_v39 = vmax.f32 %v4630_v36, 0.0 }
0x3709   : > { %v13371_v40 = vpack.c.bf16 %v4634_v39, %v4633_v38 }
0x370b   : > { %11143 = vmatpush3.bf16.msra.mxu1 %v13371_v40 }
0x370c   : > { %11148 = vmatprep.subr.bf16.mxu1 %v12249_v0 }
0x370e   : > { %11145 = vmatmul.mubr.msk.bf16.vlgmr.msra.gmra.mrb[144].mxu1 %vm335_vm1, %v13376_v48 }
0x370f   : > { %11149 = vmatpush3.bf16.msra.mxu1 %v13371_v40  ;;  %11150 = vmatprep.mubr.msk.bf16.mxu1 %vm12250_vm0, %v12249_v0 }
0x3710   : > { %11166 = vmatprep.subr.bf16.mxu1 %v12249_v0 }
0x3716   : > { %11151 = vmatmul.mubr.msk.bf16.vlgmr.msra.gmra.mrb[148].mxu1 %vm335_vm1, %v13385_v42 }
0x3717   : > { %11168 = vmatprep.mubr.msk.bf16.mxu1 %vm12250_vm0, %v12249_v0 }
0x37e1   : > { %v4670_v16 = vpop.f32.mrb[144].mxu1 }
0x37e2   : > { %v11146_v50 = vpop.f32.mrb[145].mxu1 }
0x37e3   : > { %v4673_v51 = vpop.f32.mrb[146].mxu1 }
0x37e4   : > { %v11147_v52 = vpop.f32.mrb[147].mxu1 }
0x37e9   : > { %v4711_v53 = vpop.f32.mrb[148].mxu1 }
0x37ea   : > { %v11152_v54 = vpop.f32.mrb[149].mxu1 }
0x37eb   : > { %v4714_v55 = vpop.f32.mrb[150].mxu1 }
0x37ec   : > { %v11842_v56 = vpack.i.bf16 %v4714_v55, %v4711_v53  ;;  %v11153_v57 = vpop.f32.mrb[151].mxu1 }
0x37ee   : > { %11843 = vrot.lane.b32.xlu1 %v11842_v56, %s12251_s19 }
0x3860   : > { %v11844_v59 = vpop.permute.xlu1 %11843 }
0x3861   : > { %v11846_v60 = vunpack.i.h.bf16 %v11844_v59  ;;  %v11845_v62 = vunpack.i.l.bf16 %v11844_v59 }
0x3863   : > { %v4727_v63 = vsel %vm437_vm2, %v4673_v51, %v11846_v60  ;;  %v4726_v1 = vsel %vm437_vm2, %v4670_v16, %v11845_v62  ;;  %v12061_v60 = vld [vmem:[%s14456_s3 + $0x240] sm:$0xff]   ;;  %v12062_v62 = vld [vmem:[%s14456_s3 + $0x248] sm:$0xff]  }
0x3864   : > { %v4728_v2 = vpack.c.bf16 %v4727_v63, %v4726_v1  ;;  %v12063_v63 = vld [vmem:[%s14456_s3 + $0x250] sm:$0xff]   ;;  %v12064_v1 = vld [vmem:[%s14456_s3 + $0x258] sm:$0xff]  }
0x3866   : > { %11163 = vmatmul.mubr.msk.bf16.vlgmr.msra.gmra.mrb[108].mxu0 %vm480_vm3, %v4728_v2 }
0x3867   : > { %11186 = vmatprep.mubr.msk.bf16.mxu0 %vm12250_vm0, %v12249_v0  ;;  %11179 = vmatpush3.bf16.msra.mxu0 %v12053_v12 }
0x3868   : > { %11180 = vmatprep.subr.bf16.mxu0 %v12249_v0 }
0x386b   : > { %11181 = vmatpush3.bf16.msra.mxu0 %v12054_v44 }
0x386c   : > { %11182 = vmatprep.subr.bf16.mxu0 %v12249_v0 }
0x386f   : > { %11183 = vmatpush3.bf16.msra.mxu0 %v12055_v13 }
0x3870   : > { %11184 = vmatprep.subr.bf16.mxu0 %v12249_v0 }
0x3873   : > { %11185 = vmatpush3.bf16.msra.mxu0 %v12056_v14  ;;  %v9674_v14 = vld [vmem:[%s14457_s4 + $0x12] ss:$0 sm:$0xff] }
0x3874   : > { %11202 = vmatprep.subr.bf16.mxu0 %v12249_v0 }
0x3939   : > { %v4807_v4 = vpop.f32.mrb[108].mxu0 }
0x393a   : > { %v4808_v41 = vadd.f32 %v9625_v3, %v4807_v4  ;;  %v11164_v5 = vpop.f32.mrb[109].mxu0 }
0x393b   : > { %v4810_v6 = vpop.f32.mrb[110].mxu0 }
0x393c   : > { %v4811_v7 = vadd.f32 %v9625_v3, %v4810_v6  ;;  %v11165_v8 = vpop.f32.mrb[111].mxu0  ;;  %v4814_v9 = vmax.f32 %v4808_v41, 0.0 }
0x393e   : > { %v4815_v10 = vmax.f32 %v4811_v7, 0.0 }
0x3940   : > { %v13416_v11 = vpack.c.bf16 %v4815_v10, %v4814_v9 }
0x3942   : > { %11167 = vmatpush3.bf16.msra.mxu1 %v13416_v11 }
0x3943   : > { %11172 = vmatprep.subr.bf16.mxu1 %v12249_v0 }
0x3945   : > { %11169 = vmatmul.mubr.msk.bf16.vlgmr.msra.gmra.mrb[152].mxu1 %vm335_vm1, %v13376_v48 }
0x3946   : > { %11173 = vmatpush3.bf16.msra.mxu1 %v13416_v11  ;;  %11174 = vmatprep.mubr.msk.bf16.mxu1 %vm12250_vm0, %v12249_v0 }
0x3947   : > { %11190 = vmatprep.subr.bf16.mxu1 %v12249_v0 }
0x394d   : > { %11175 = vmatmul.mubr.msk.bf16.vlgmr.msra.gmra.mrb[156].mxu1 %vm335_vm1, %v13385_v42 }
0x394e   : > { %11198 = vmatprep.mubr.msk.bf16.mxu1 %vm12250_vm0, %v12249_v0  ;;  %11191 = vmatpush3.bf16.msra.mxu1 %v12057_v28 }
0x394f   : > { %11192 = vmatprep.subr.bf16.mxu1 %v12249_v0 }
0x3952   : > { %11193 = vmatpush3.bf16.msra.mxu1 %v12058_v29 }
0x3953   : > { %11194 = vmatprep.subr.bf16.mxu1 %v12249_v0 }
0x3956   : > { %11195 = vmatpush3.bf16.msra.mxu1 %v12059_v33 }
0x3957   : > { %11196 = vmatprep.subr.bf16.mxu1 %v12249_v0 }
0x395a   : > { %11197 = vmatpush3.bf16.msra.mxu1 %v12060_v30 }
0x395b   : > { %11208 = vmatprep.subr.bf16.mxu1 %v12249_v0 }
0x3a18   : > { %v4851_v43 = vpop.f32.mrb[152].mxu1 }
0x3a19   : > { %v11170_v15 = vpop.f32.mrb[153].mxu1 }
0x3a1a   : > { %v4854_v17 = vpop.f32.mrb[154].mxu1 }
0x3a1b   : > { %v11171_v18 = vpop.f32.mrb[155].mxu1 }
0x3a20   : > { %v4892_v27 = vpop.f32.mrb[156].mxu1 }
0x3a21   : > { %v11176_v19 = vpop.f32.mrb[157].mxu1 }
0x3a22   : > { %v4895_v20 = vpop.f32.mrb[158].mxu1 }
0x3a23   : > { %v11847_v61 = vpack.i.bf16 %v4895_v20, %v4892_v27  ;;  %v11177_v21 = vpop.f32.mrb[159].mxu1 }
0x3a25   : > { %11848 = vrot.lane.b32.xlu0 %v11847_v61, %s12251_s19 }
0x3a97   : > { %v11849_v22 = vpop.permute.xlu0 %11848 }
0x3a98   : > { %v11851_v23 = vunpack.i.h.bf16 %v11849_v22  ;;  %v11850_v24 = vunpack.i.l.bf16 %v11849_v22 }
0x3a9a   : > { %v4908_v25 = vsel %vm437_vm2, %v4854_v17, %v11851_v23  ;;  %v4907_v26 = vsel %vm437_vm2, %v4851_v43, %v11850_v24  ;;  %v12065_v23 = vld [vmem:[%s14456_s3 + $0x260] sm:$0xff]   ;;  %v12066_v24 = vld [vmem:[%s14456_s3 + $0x268] sm:$0xff]  }
0x3a9b   : > { %v4909_v58 = vpack.c.bf16 %v4908_v25, %v4907_v26  ;;  %v12067_v25 = vld [vmem:[%s14456_s3 + $0x270] sm:$0xff]  }
0x3a9d   : > { %11187 = vmatmul.mubr.msk.bf16.vlgmr.msra.gmra.mrb[112].mxu0 %vm480_vm3, %v4909_v58  ;;  %v12068_v58 = vld [vmem:[%s14456_s3 + $0x278] sm:$0xff]  }
0x3a9e   : > { %11204 = vmatprep.mubr.msk.bf16.mxu0 %vm12250_vm0, %v12249_v0 }
0x3b70   : > { %v4988_v31 = vpop.f32.mrb[112].mxu0 }
0x3b71   : > { %v4989_v32 = vadd.f32 %v9642_v34, %v4988_v31  ;;  %v11188_v35 = vpop.f32.mrb[113].mxu0 }
0x3b72   : > { %v4991_v36 = vpop.f32.mrb[114].mxu0 }
0x3b73   : > { %v4992_v37 = vadd.f32 %v9642_v34, %v4991_v36  ;;  %v11189_v38 = vpop.f32.mrb[115].mxu0  ;;  %v4995_v39 = vmax.f32 %v4989_v32, 0.0 }
0x3b75   : > { %v4996_v45 = vmax.f32 %v4992_v37, 0.0 }
0x3b77   : > { %v4997_v46 = vpack.c.bf16 %v4996_v45, %v4995_v39 }
0x3b79   : > { %4999 = vrot.lane.b32.xlu1 %v4997_v46, %s12251_s19 }
0x3beb   : > { %v5000_v47 = vpop.permute.xlu1 %4999 }
0x3bec   : > { %v5003_v16 = vsel %vm437_vm2, %v13416_v11, %v5000_v47  ;;  %v12069_v47 = vld [vmem:[%s14458_s5 + $0x200] sm:$0xff]  }
0x3bed   : > { %11199 = vmatmul.mubr.msk.bf16.vlgmr.msra.gmra.mrb[160].mxu1 %vm480_vm3, %v5003_v16  ;;  %v12070_v16 = vld [vmem:[%s14458_s5 + $0x208] sm:$0xff]  }
0x3bee   : > { %11210 = vmatprep.mubr.msk.bf16.mxu1 %vm12250_vm0, %v12249_v0 }
0x3cc0   : > { %v5081_v50 = vpop.f32.mrb[160].mxu1 }
0x3cc1   : > { %v5082_v51 = vadd.f32 %v9657_v49, %v5081_v50  ;;  %v11200_v52 = vpop.f32.mrb[161].mxu1  ;;  %v12072_v50 = vld [vmem:[%s14458_s5 + $0x218] sm:$0xff]  }
0x3cc2   : > { %v5084_v53 = vpop.f32.mrb[162].mxu1 }
0x3cc3   : > { %v5085_v54 = vadd.f32 %v9657_v49, %v5084_v53  ;;  %v11201_v55 = vpop.f32.mrb[163].mxu1  ;;  %v5088_v56 = vmax.f32 %v5082_v51, 0.0  ;;  %v12071_v49 = vld [vmem:[%s14458_s5 + $0x210] sm:$0xff]  }
0x3cc4   : > { %v9691_v51 = vld [vmem:[%s14457_s4 + $0x13] ss:$0 sm:$0xff] }
0x3cc5   : > { %v5089_v57 = vmax.f32 %v5085_v54, 0.0 }
0x3cc7   : > { %v13480_v59 = vpack.c.bf16 %v5089_v57, %v5088_v56 }
0x3cc9   : > { %11203 = vmatpush3.bf16.msra.mxu0 %v13480_v59  ;;  %11209 = vmatpush3.bf16.msra.mxu1 %v13480_v59 }
0x3cca   : > { %11214 = vmatprep.subr.bf16.mxu0 %v12249_v0  ;;  %11226 = vmatprep.subr.bf16.mxu1 %v12249_v0 }
0x3ccc   : > { %11211 = vmatmul.mubr.msk.bf16.vlgmr.msra.gmra.mrb[164].mxu1 %vm335_vm1, %v13385_v42  ;;  %11205 = vmatmul.mubr.msk.bf16.vlgmr.msra.gmra.mrb[116].mxu0 %vm335_vm1, %v13376_v48 }
0x3ccd   : > { %11222 = vmatprep.mubr.msk.bf16.mxu0 %vm12250_vm0, %v12249_v0  ;;  %11228 = vmatprep.mubr.msk.bf16.mxu1 %vm12250_vm0, %v12249_v0 }
0x3cce   : > { %11215 = vmatpush3.bf16.msra.mxu0 %v12061_v60 }
0x3ccf   : > { %11216 = vmatprep.subr.bf16.mxu0 %v12249_v0 }
0x3cd2   : > { %11217 = vmatpush3.bf16.msra.mxu0 %v12062_v62 }
0x3cd3   : > { %11218 = vmatprep.subr.bf16.mxu0 %v12249_v0 }
0x3cd6   : > { %11219 = vmatpush3.bf16.msra.mxu0 %v12063_v63 }
0x3cd7   : > { %11220 = vmatprep.subr.bf16.mxu0 %v12249_v0 }
0x3cda   : > { %11221 = vmatpush3.bf16.msra.mxu0 %v12064_v1 }
0x3cdb   : > { %11238 = vmatprep.subr.bf16.mxu0 %v12249_v0 }
0x3d9f   : > { %v5166_v2 = vpop.f32.mrb[164].mxu1  ;;  %v5125_v3 = vpop.f32.mrb[116].mxu0 }
0x3da0   : > { %v11212_v4 = vpop.f32.mrb[165].mxu1  ;;  %v11206_v41 = vpop.f32.mrb[117].mxu0 }
0x3da1   : > { %v5169_v5 = vpop.f32.mrb[166].mxu1  ;;  %v5128_v6 = vpop.f32.mrb[118].mxu0  ;;  %v12074_v4 = vld [vmem:[%s14458_s5 + $0x228] sm:$0xff]   ;;  %v12075_v41 = vld [vmem:[%s14458_s5 + $0x230] sm:$0xff]  }
0x3da2   : > { %v11852_v7 = vpack.i.bf16 %v5169_v5, %v5166_v2  ;;  %v11213_v8 = vpop.f32.mrb[167].mxu1  ;;  %v11207_v9 = vpop.f32.mrb[119].mxu0  ;;  %v12076_v5 = vld [vmem:[%s14458_s5 + $0x238] sm:$0xff]  }
0x3da4   : > { %11853 = vrot.lane.b32.xlu0 %v11852_v7, %s12251_s19 }
0x3e16   : > { %v11854_v10 = vpop.permute.xlu0 %11853 }
0x3e17   : > { %v11856_v11 = vunpack.i.h.bf16 %v11854_v10  ;;  %v11855_v12 = vunpack.i.l.bf16 %v11854_v10 }
0x3e19   : > { %v5181_v44 = vsel %vm437_vm2, %v5125_v3, %v11855_v12  ;;  %v5182_v13 = vsel %vm437_vm2, %v5128_v6, %v11856_v11  ;;  %v12073_v3 = vld [vmem:[%s14458_s5 + $0x220] sm:$0xff]   ;;  %v9706_v6 = vld [vmem:[%s14459_s6 + $0x10] ss:$0 sm:$0xff] }
0x3e1a   : > { %v5183_v43 = vpack.c.bf16 %v5182_v13, %v5181_v44 }
0x3e1c   : > { %11223 = vmatmul.mubr.msk.bf16.vlgmr.msra.gmra.mrb[120].mxu0 %vm480_vm3, %v5183_v43 }
0x3e1d   : > { %11246 = vmatprep.mubr.msk.bf16.mxu0 %vm12250_vm0, %v12249_v0  ;;  %11239 = vmatpush3.bf16.msra.mxu0 %v12065_v23 }
0x3e1e   : > { %11240 = vmatprep.subr.bf16.mxu0 %v12249_v0 }
0x3e21   : > { %11241 = vmatpush3.bf16.msra.mxu0 %v12066_v24 }
0x3e22   : > { %11242 = vmatprep.subr.bf16.mxu0 %v12249_v0 }
0x3e25   : > { %11243 = vmatpush3.bf16.msra.mxu0 %v12067_v25  ;;  %v12078_v25 = vld [vmem:[%s14456_s3 + $0x288] sm:$0xff]  }
0x3e26   : > { %11244 = vmatprep.subr.bf16.mxu0 %v12249_v0 }
0x3e29   : > { %11245 = vmatpush3.bf16.msra.mxu0 %v12068_v58 }
0x3e2a   : > { %11262 = vmatprep.subr.bf16.mxu0 %v12249_v0 }
0x3eef   : > { %v5262_v15 = vpop.f32.mrb[120].mxu0 }
0x3ef0   : > { %v5263_v17 = vadd.f32 %v9674_v14, %v5262_v15  ;;  %v11224_v18 = vpop.f32.mrb[121].mxu0 }
0x3ef1   : > { %v5265_v27 = vpop.f32.mrb[122].mxu0 }
0x3ef2   : > { %v5266_v19 = vadd.f32 %v9674_v14, %v5265_v27  ;;  %v11225_v20 = vpop.f32.mrb[123].mxu0  ;;  %v5269_v61 = vmax.f32 %v5263_v17, 0.0  ;;  %v9721_v17 = vld [vmem:[%s14459_s6 + $0x11] ss:$0 sm:$0xff] }
0x3ef4   : > { %v5270_v21 = vmax.f32 %v5266_v19, 0.0 }
0x3ef6   : > { %v13519_v22 = vpack.c.bf16 %v5270_v21, %v5269_v61 }
0x3ef8   : > { %11227 = vmatpush3.bf16.msra.mxu1 %v13519_v22 }
0x3ef9   : > { %11232 = vmatprep.subr.bf16.mxu1 %v12249_v0 }
0x3efb   : > { %11229 = vmatmul.mubr.msk.bf16.vlgmr.msra.gmra.mrb[168].mxu1 %vm335_vm1, %v13376_v48 }
0x3efc   : > { %11233 = vmatpush3.bf16.msra.mxu1 %v13519_v22  ;;  %11234 = vmatprep.mubr.msk.bf16.mxu1 %vm12250_vm0, %v12249_v0 }
0x3efd   : > { %11250 = vmatprep.subr.bf16.mxu1 %v12249_v0 }
0x3f03   : > { %11235 = vmatmul.mubr.msk.bf16.vlgmr.msra.gmra.mrb[172].mxu1 %vm335_vm1, %v13385_v42 }
0x3f04   : > { %11258 = vmatprep.mubr.msk.bf16.mxu1 %vm12250_vm0, %v12249_v0  ;;  %11251 = vmatpush3.bf16.msra.mxu1 %v12069_v47 }
0x3f05   : > { %11252 = vmatprep.subr.bf16.mxu1 %v12249_v0 }
0x3f08   : > { %11253 = vmatpush3.bf16.msra.mxu1 %v12070_v16  ;;  %v9738_v16 = vld [vmem:[%s14457_s4 + $0x14] ss:$0 sm:$0xff] }
0x3f09   : > { %11254 = vmatprep.subr.bf16.mxu1 %v12249_v0 }
0x3f0c   : > { %11255 = vmatpush3.bf16.msra.mxu1 %v12071_v49 }
0x3f0d   : > { %11256 = vmatprep.subr.bf16.mxu1 %v12249_v0 }
0x3f10   : > { %11257 = vmatpush3.bf16.msra.mxu1 %v12072_v50 }
0x3f11   : > { %11274 = vmatprep.subr.bf16.mxu1 %v12249_v0 }
0x3fce   : > { %v5306_v26 = vpop.f32.mrb[168].mxu1 }
0x3fcf   : > { %v11230_v28 = vpop.f32.mrb[169].mxu1 }
0x3fd0   : > { %v5309_v29 = vpop.f32.mrb[170].mxu1  ;;  %v12080_v28 = vld [vmem:[%s14456_s3 + $0x298] sm:$0xff]  }
0x3fd1   : > { %v11231_v33 = vpop.f32.mrb[171].mxu1 }
0x3fd6   : > { %v5347_v30 = vpop.f32.mrb[172].mxu1 }
0x3fd7   : > { %v11236_v34 = vpop.f32.mrb[173].mxu1 }
0x3fd8   : > { %v5350_v31 = vpop.f32.mrb[174].mxu1 }
0x3fd9   : > { %v11857_v32 = vpack.i.bf16 %v5350_v31, %v5347_v30  ;;  %v11237_v35 = vpop.f32.mrb[175].mxu1 }
0x3fdb   : > { %11858 = vrot.lane.b32.xlu1 %v11857_v32, %s12251_s19 }
0x404d   : > { %v11859_v36 = vpop.permute.xlu1 %11858 }
0x404e   : > { %v11861_v37 = vunpack.i.h.bf16 %v11859_v36  ;;  %v11860_v38 = vunpack.i.l.bf16 %v11859_v36 }
0x4050   : > { %v5363_v39 = vsel %vm437_vm2, %v5309_v29, %v11861_v37  ;;  %v5362_v45 = vsel %vm437_vm2, %v5306_v26, %v11860_v38  ;;  %v12079_v26 = vld [vmem:[%s14456_s3 + $0x290] sm:$0xff]  }
0x4051   : > { %v5364_v46 = vpack.c.bf16 %v5363_v39, %v5362_v45 }
0x4053   : > { %11247 = vmatmul.mubr.msk.bf16.vlgmr.msra.gmra.mrb[124].mxu0 %vm480_vm3, %v5364_v46 }
0x4054   : > { %11270 = vmatprep.mubr.msk.bf16.mxu0 %vm12250_vm0, %v12249_v0  ;;  %11263 = vmatpush3.bf16.msra.mxu0 %v12073_v3 }
0x4055   : > { %11264 = vmatprep.subr.bf16.mxu0 %v12249_v0 }
0x4058   : > { %11265 = vmatpush3.bf16.msra.mxu0 %v12074_v4 }
0x4059   : > { %11266 = vmatprep.subr.bf16.mxu0 %v12249_v0 }
0x405c   : > { %11267 = vmatpush3.bf16.msra.mxu0 %v12075_v41 }
0x405d   : > { %11268 = vmatprep.subr.bf16.mxu0 %v12249_v0 }
0x4060   : > { %11269 = vmatpush3.bf16.msra.mxu0 %v12076_v5 }
0x4061   : > { %11286 = vmatprep.subr.bf16.mxu0 %v12249_v0 }
0x4126   : > { %v5443_v52 = vpop.f32.mrb[124].mxu0 }
0x4127   : > { %v5444_v53 = vadd.f32 %v9691_v51, %v5443_v52  ;;  %v11248_v54 = vpop.f32.mrb[125].mxu0 }
0x4128   : > { %v5446_v55 = vpop.f32.mrb[126].mxu0 }
0x4129   : > { %v5447_v56 = vadd.f32 %v9691_v51, %v5446_v55  ;;  %v11249_v57 = vpop.f32.mrb[127].mxu0  ;;  %v5450_v60 = vmax.f32 %v5444_v53, 0.0 }
0x412b   : > { %v5451_v62 = vmax.f32 %v5447_v56, 0.0 }
0x412d   : > { %v5452_v63 = vpack.c.bf16 %v5451_v62, %v5450_v60  ;;  %v12081_v60 = vld [vmem:[%s14456_s3 + $0x2a0] sm:$0xff]   ;;  %v12082_v62 = vld [vmem:[%s14456_s3 + $0x2a8] sm:$0xff]  }
0x412f   : > { %5454 = vrot.lane.b32.xlu0 %v5452_v63, %s12251_s19  ;;  %v12083_v63 = vld [vmem:[%s14456_s3 + $0x2b0] sm:$0xff]  }
0x41a1   : > { %v5455_v1 = vpop.permute.xlu0 %5454 }
0x41a2   : > { %v5458_v2 = vsel %vm437_vm2, %v13519_v22, %v5455_v1 }
0x41a3   : > { %11259 = vmatmul.mubr.msk.bf16.vlgmr.msra.gmra.mrb[176].mxu1 %vm480_vm3, %v5458_v2  ;;  %v12084_v2 = vld [vmem:[%s14456_s3 + $0x2b8] sm:$0xff]  }
0x41a4   : > { %11276 = vmatprep.mubr.msk.bf16.mxu1 %vm12250_vm0, %v12249_v0 }
0x4276   : > { %v5536_v7 = vpop.f32.mrb[176].mxu1 }
0x4277   : > { %v5537_v8 = vadd.f32 %v9706_v6, %v5536_v7  ;;  %v11260_v9 = vpop.f32.mrb[177].mxu1 }
0x4278   : > { %v5539_v10 = vpop.f32.mrb[178].mxu1 }
0x4279   : > { %v5540_v11 = vadd.f32 %v9706_v6, %v5539_v10  ;;  %v11261_v12 = vpop.f32.mrb[179].mxu1  ;;  %v5543_v44 = vmax.f32 %v5537_v8, 0.0 }
0x427b   : > { %v5544_v13 = vmax.f32 %v5540_v11, 0.0 }
0x427d   : > { %v5545_v43 = vpack.c.bf16 %v5544_v13, %v5543_v44 }
0x427f   : > { %5547 = vrot.lane.b32.xlu1 %v5545_v43, %s12251_s19 }
0x42f1   : > { %v5548_v14 = vpop.permute.xlu1 %5547 }
0x42f2   : > { %v5551_v15 = vsel %vm437_vm2, %v13480_v59, %v5548_v14  ;;  %v12077_v59 = vld [vmem:[%s14456_s3 + $0x280] sm:$0xff]  }
0x42f3   : > { %11271 = vmatmul.mubr.msk.bf16.vlgmr.msra.gmra.mrb[128].mxu0 %vm480_vm3, %v5551_v15  ;;  %v12085_v14 = vld [vmem:[%s14458_s5 + $0x240] sm:$0xff]   ;;  %v12086_v15 = vld [vmem:[%s14458_s5 + $0x248] sm:$0xff]  }
0x42f4   : > { %11294 = vmatprep.mubr.msk.bf16.mxu0 %vm12250_vm0, %v12249_v0  ;;  %11287 = vmatpush3.bf16.msra.mxu0 %v12077_v59 }
0x42f5   : > { %11288 = vmatprep.subr.bf16.mxu0 %v12249_v0 }
0x42f8   : > { %11289 = vmatpush3.bf16.msra.mxu0 %v12078_v25 }
0x42f9   : > { %11290 = vmatprep.subr.bf16.mxu0 %v12249_v0 }
0x42fc   : > { %11291 = vmatpush3.bf16.msra.mxu0 %v12079_v26 }
0x42fd   : > { %11292 = vmatprep.subr.bf16.mxu0 %v12249_v0 }
0x4300   : > { %11293 = vmatpush3.bf16.msra.mxu0 %v12080_v28 }
0x4301   : > { %11310 = vmatprep.subr.bf16.mxu0 %v12249_v0 }
0x43c6   : > { %v5629_v18 = vpop.f32.mrb[128].mxu0 }
0x43c7   : > { %v5630_v27 = vadd.f32 %v9721_v17, %v5629_v18  ;;  %v11272_v19 = vpop.f32.mrb[129].mxu0  ;;  %v12088_v18 = vld [vmem:[%s14458_s5 + $0x258] sm:$0xff]  }
0x43c8   : > { %v5632_v20 = vpop.f32.mrb[130].mxu0 }
0x43c9   : > { %v5633_v61 = vadd.f32 %v9721_v17, %v5632_v20  ;;  %v11273_v21 = vpop.f32.mrb[131].mxu0  ;;  %v5636_v22 = vmax.f32 %v5630_v27, 0.0  ;;  %v12087_v17 = vld [vmem:[%s14458_s5 + $0x250] sm:$0xff]  }
0x43ca   : > { %v9755_v27 = vld [vmem:[%s14457_s4 + $0x15] ss:$0 sm:$0xff] }
0x43cb   : > { %v5637_v23 = vmax.f32 %v5633_v61, 0.0 }
0x43cd   : > { %v13608_v24 = vpack.c.bf16 %v5637_v23, %v5636_v22 }
0x43cf   : > { %11275 = vmatpush3.bf16.msra.mxu1 %v13608_v24 }
0x43d0   : > { %11280 = vmatprep.subr.bf16.mxu1 %v12249_v0 }
0x43d2   : > { %11277 = vmatmul.mubr.msk.bf16.vlgmr.msra.gmra.mrb[180].mxu1 %vm335_vm1, %v13376_v48 }
0x43d3   : > { %11281 = vmatpush3.bf16.msra.mxu1 %v13608_v24  ;;  %11282 = vmatprep.mubr.msk.bf16.mxu1 %vm12250_vm0, %v12249_v0 }
0x43d4   : > { %11298 = vmatprep.subr.bf16.mxu1 %v12249_v0 }
0x43da   : > { %11283 = vmatmul.mubr.msk.bf16.vlgmr.msra.gmra.mrb[184].mxu1 %vm335_vm1, %v13385_v42 }
0x43db   : > { %11300 = vmatprep.mubr.msk.bf16.mxu1 %vm12250_vm0, %v12249_v0 }
0x44a5   : > { %v5673_v58 = vpop.f32.mrb[180].mxu1 }
0x44a6   : > { %v11278_v29 = vpop.f32.mrb[181].mxu1 }
0x44a7   : > { %v5676_v33 = vpop.f32.mrb[182].mxu1  ;;  %v9770_v29 = vld [vmem:[%s14459_s6 + $0x12] ss:$0 sm:$0xff] }
0x44a8   : > { %v11279_v30 = vpop.f32.mrb[183].mxu1 }
0x44ad   : > { %v5714_v34 = vpop.f32.mrb[184].mxu1 }
0x44ae   : > { %v11284_v31 = vpop.f32.mrb[185].mxu1 }
0x44af   : > { %v5717_v32 = vpop.f32.mrb[186].mxu1 }
0x44b0   : > { %v11862_v35 = vpack.i.bf16 %v5717_v32, %v5714_v34  ;;  %v11285_v36 = vpop.f32.mrb[187].mxu1 }
0x44b2   : > { %11863 = vrot.lane.b32.xlu0 %v11862_v35, %s12251_s19 }
0x4524   : > { %v11864_v37 = vpop.permute.xlu0 %11863 }
0x4525   : > { %v11866_v38 = vunpack.i.h.bf16 %v11864_v37  ;;  %v11865_v39 = vunpack.i.l.bf16 %v11864_v37 }
0x4527   : > { %v5730_v45 = vsel %vm437_vm2, %v5676_v33, %v11866_v38  ;;  %v5729_v46 = vsel %vm437_vm2, %v5673_v58, %v11865_v39  ;;  %v12089_v39 = vld [vmem:[%s14456_s3 + $0x2c0] sm:$0xff]  }
0x4528   : > { %v5731_v47 = vpack.c.bf16 %v5730_v45, %v5729_v46  ;;  %v12090_v45 = vld [vmem:[%s14456_s3 + $0x2c8] sm:$0xff]   ;;  %v12091_v46 = vld [vmem:[%s14456_s3 + $0x2d0] sm:$0xff]  }
0x452a   : > { %11295 = vmatmul.mubr.msk.bf16.vlgmr.msra.gmra.mrb[132].mxu0 %vm480_vm3, %v5731_v47  ;;  %v12092_v47 = vld [vmem:[%s14456_s3 + $0x2d8] sm:$0xff]  }
0x452b   : > { %11318 = vmatprep.mubr.msk.bf16.mxu0 %vm12250_vm0, %v12249_v0  ;;  %11311 = vmatpush3.bf16.msra.mxu0 %v12081_v60 }
0x452c   : > { %11312 = vmatprep.subr.bf16.mxu0 %v12249_v0 }
0x452f   : > { %11313 = vmatpush3.bf16.msra.mxu0 %v12082_v62 }
0x4530   : > { %11314 = vmatprep.subr.bf16.mxu0 %v12249_v0 }
0x4533   : > { %11315 = vmatpush3.bf16.msra.mxu0 %v12083_v63 }
0x4534   : > { %11316 = vmatprep.subr.bf16.mxu0 %v12249_v0 }
0x4537   : > { %11317 = vmatpush3.bf16.msra.mxu0 %v12084_v2 }
0x4538   : > { %11334 = vmatprep.subr.bf16.mxu0 %v12249_v0 }
0x45fd   : > { %v5810_v49 = vpop.f32.mrb[132].mxu0 }
0x45fe   : > { %v5811_v50 = vadd.f32 %v9738_v16, %v5810_v49  ;;  %v11296_v51 = vpop.f32.mrb[133].mxu0 }
0x45ff   : > { %v5813_v52 = vpop.f32.mrb[134].mxu0 }
0x4600   : > { %v5814_v53 = vadd.f32 %v9738_v16, %v5813_v52  ;;  %v11297_v54 = vpop.f32.mrb[135].mxu0  ;;  %v5817_v55 = vmax.f32 %v5811_v50, 0.0 }
0x4602   : > { %v5818_v56 = vmax.f32 %v5814_v53, 0.0 }
0x4604   : > { %v13647_v57 = vpack.c.bf16 %v5818_v56, %v5817_v55 }
0x4606   : > { %11299 = vmatpush3.bf16.msra.mxu1 %v13647_v57 }
0x4607   : > { %11304 = vmatprep.subr.bf16.mxu1 %v12249_v0 }
0x4609   : > { %11301 = vmatmul.mubr.msk.bf16.vlgmr.msra.gmra.mrb[188].mxu1 %vm335_vm1, %v13376_v48 }
0x460a   : > { %11305 = vmatpush3.bf16.msra.mxu1 %v13647_v57  ;;  %11306 = vmatprep.mubr.msk.bf16.mxu1 %vm12250_vm0, %v12249_v0 }
0x460b   : > { %11322 = vmatprep.subr.bf16.mxu1 %v12249_v0 }
0x4611   : > { %11307 = vmatmul.mubr.msk.bf16.vlgmr.msra.gmra.mrb[192].mxu1 %vm335_vm1, %v13385_v42 }
0x4612   : > { %11330 = vmatprep.mubr.msk.bf16.mxu1 %vm12250_vm0, %v12249_v0  ;;  %11323 = vmatpush3.bf16.msra.mxu1 %v12085_v14 }
0x4613   : > { %11324 = vmatprep.subr.bf16.mxu1 %v12249_v0 }
0x4616   : > { %11325 = vmatpush3.bf16.msra.mxu1 %v12086_v15 }
0x4617   : > { %11326 = vmatprep.subr.bf16.mxu1 %v12249_v0 }
0x461a   : > { %11327 = vmatpush3.bf16.msra.mxu1 %v12087_v17 }
0x461b   : > { %11328 = vmatprep.subr.bf16.mxu1 %v12249_v0 }
0x461e   : > { %11329 = vmatpush3.bf16.msra.mxu1 %v12088_v18 }
0x461f   : > { %11340 = vmatprep.subr.bf16.mxu1 %v12249_v0 }
0x46dc   : > { %v5854_v1 = vpop.f32.mrb[188].mxu1 }
0x46dd   : > { %v11302_v3 = vpop.f32.mrb[189].mxu1 }
0x46de   : > { %v5857_v4 = vpop.f32.mrb[190].mxu1  ;;  %v9787_v3 = vld [vmem:[%s14457_s4 + $0x16] ss:$0 sm:$0xff] }
0x46df   : > { %v11303_v41 = vpop.f32.mrb[191].mxu1 }
0x46e4   : > { %v5895_v5 = vpop.f32.mrb[192].mxu1 }
0x46e5   : > { %v11308_v6 = vpop.f32.mrb[193].mxu1 }
0x46e6   : > { %v5898_v7 = vpop.f32.mrb[194].mxu1 }
0x46e7   : > { %v11867_v8 = vpack.i.bf16 %v5898_v7, %v5895_v5  ;;  %v11309_v9 = vpop.f32.mrb[195].mxu1 }
0x46e9   : > { %11868 = vrot.lane.b32.xlu1 %v11867_v8, %s12251_s19 }
0x475b   : > { %v11869_v10 = vpop.permute.xlu1 %11868 }
0x475c   : > { %v11871_v11 = vunpack.i.h.bf16 %v11869_v10  ;;  %v11870_v12 = vunpack.i.l.bf16 %v11869_v10 }
0x475e   : > { %v5911_v44 = vsel %vm437_vm2, %v5857_v4, %v11871_v11  ;;  %v5910_v13 = vsel %vm437_vm2, %v5854_v1, %v11870_v12  ;;  %v12093_v12 = vld [vmem:[%s14456_s3 + $0x2e0] sm:$0xff]  }
0x475f   : > { %v5912_v43 = vpack.c.bf16 %v5911_v44, %v5910_v13  ;;  %v12095_v44 = vld [vmem:[%s14456_s3 + $0x2f0] sm:$0xff]   ;;  %v12096_v13 = vld [vmem:[%s14456_s3 + $0x2f8] sm:$0xff]  }
0x4761   : > { %11319 = vmatmul.mubr.msk.bf16.vlgmr.msra.gmra.mrb[136].mxu0 %vm480_vm3, %v5912_v43 }
0x4762   : > { %11336 = vmatprep.mubr.msk.bf16.mxu0 %vm12250_vm0, %v12249_v0 }
0x4834   : > { %v5991_v19 = vpop.f32.mrb[136].mxu0 }
0x4835   : > { %v5992_v20 = vadd.f32 %v9755_v27, %v5991_v19  ;;  %v11320_v61 = vpop.f32.mrb[137].mxu0 }
0x4836   : > { %v5994_v21 = vpop.f32.mrb[138].mxu0 }
0x4837   : > { %v5995_v22 = vadd.f32 %v9755_v27, %v5994_v21  ;;  %v11321_v23 = vpop.f32.mrb[139].mxu0  ;;  %v5998_v59 = vmax.f32 %v5992_v20, 0.0 }
0x4839   : > { %v5999_v25 = vmax.f32 %v5995_v22, 0.0 }
0x483b   : > { %v6000_v26 = vpack.c.bf16 %v5999_v25, %v5998_v59 }
0x483d   : > { %6002 = vrot.lane.b32.xlu0 %v6000_v26, %s12251_s19  ;;  %v12097_v26 = vld [vmem:[%s14458_s5 + $0x260] sm:$0xff]  }
0x48af   : > { %v6003_v58 = vpop.permute.xlu0 %6002 }
0x48b0   : > { %v6006_v28 = vsel %vm437_vm2, %v13647_v57, %v6003_v58  ;;  %v12098_v58 = vld [vmem:[%s14458_s5 + $0x268] sm:$0xff]  }
0x48b1   : > { %11331 = vmatmul.mubr.msk.bf16.vlgmr.msra.gmra.mrb[196].mxu1 %vm480_vm3, %v6006_v28  ;;  %v12099_v28 = vld [vmem:[%s14458_s5 + $0x270] sm:$0xff]  }
0x48b2   : > { %11342 = vmatprep.mubr.msk.bf16.mxu1 %vm12250_vm0, %v12249_v0 }
0x4984   : > { %v6084_v33 = vpop.f32.mrb[196].mxu1 }
0x4985   : > { %v6085_v30 = vadd.f32 %v9770_v29, %v6084_v33  ;;  %v11332_v34 = vpop.f32.mrb[197].mxu1  ;;  %v9804_v33 = vld [vmem:[%s14457_s4 + $0x17] ss:$0 sm:$0xff] }
0x4986   : > { %v6087_v31 = vpop.f32.mrb[198].mxu1 }
0x4987   : > { %v6088_v32 = vadd.f32 %v9770_v29, %v6087_v31  ;;  %v11333_v35 = vpop.f32.mrb[199].mxu1  ;;  %v6091_v36 = vmax.f32 %v6085_v30, 0.0  ;;  %v12100_v29 = vld [vmem:[%s14458_s5 + $0x278] sm:$0xff]  }
0x4989   : > { %v6092_v37 = vmax.f32 %v6088_v32, 0.0 }
0x498b   : > { %v13711_v38 = vpack.c.bf16 %v6092_v37, %v6091_v36 }
0x498d   : > { %11335 = vmatpush3.bf16.msra.mxu0 %v13711_v38  ;;  %11341 = vmatpush3.bf16.msra.mxu1 %v13711_v38 }
0x498e   : > { %11346 = vmatprep.subr.bf16.mxu0 %v12249_v0  ;;  %11358 = vmatprep.subr.bf16.mxu1 %v12249_v0 }
0x4990   : > { %11343 = vmatmul.mubr.msk.bf16.vlgmr.msra.gmra.mrb[200].mxu1 %vm335_vm1, %v13385_v42  ;;  %11337 = vmatmul.mubr.msk.bf16.vlgmr.msra.gmra.mrb[140].mxu0 %vm335_vm1, %v13376_v48 }
0x4991   : > { %11354 = vmatprep.mubr.msk.bf16.mxu0 %vm12250_vm0, %v12249_v0  ;;  %11360 = vmatprep.mubr.msk.bf16.mxu1 %vm12250_vm0, %v12249_v0 }
0x4992   : > { %11347 = vmatpush3.bf16.msra.mxu0 %v12089_v39 }
0x4993   : > { %11348 = vmatprep.subr.bf16.mxu0 %v12249_v0 }
0x4996   : > { %11349 = vmatpush3.bf16.msra.mxu0 %v12090_v45 }
0x4997   : > { %11350 = vmatprep.subr.bf16.mxu0 %v12249_v0 }
0x499a   : > { %11351 = vmatpush3.bf16.msra.mxu0 %v12091_v46 }
0x499b   : > { %11352 = vmatprep.subr.bf16.mxu0 %v12249_v0 }
0x499e   : > { %11353 = vmatpush3.bf16.msra.mxu0 %v12092_v47 }
0x499f   : > { %11370 = vmatprep.subr.bf16.mxu0 %v12249_v0 }
0x4a63   : > { %v6169_v16 = vpop.f32.mrb[200].mxu1  ;;  %v6128_v49 = vpop.f32.mrb[140].mxu0 }
0x4a64   : > { %v11344_v50 = vpop.f32.mrb[201].mxu1  ;;  %v11338_v51 = vpop.f32.mrb[141].mxu0 }
0x4a65   : > { %v6172_v52 = vpop.f32.mrb[202].mxu1  ;;  %v6131_v53 = vpop.f32.mrb[142].mxu0  ;;  %v12103_v50 = vld [vmem:[%s14458_s5 + $0x290] sm:$0xff]   ;;  %v12104_v51 = vld [vmem:[%s14458_s5 + $0x298] sm:$0xff]  }
0x4a66   : > { %v11872_v54 = vpack.i.bf16 %v6172_v52, %v6169_v16  ;;  %v11345_v55 = vpop.f32.mrb[203].mxu1  ;;  %v11339_v56 = vpop.f32.mrb[143].mxu0  ;;  %v12101_v16 = vld [vmem:[%s14458_s5 + $0x280] sm:$0xff]   ;;  %v9819_v52 = vld [vmem:[%s14459_s6 + $0x13] ss:$0 sm:$0xff] }
0x4a68   : > { %11873 = vrot.lane.b32.xlu1 %v11872_v54, %s12251_s19 }
0x4ada   : > { %v11874_v57 = vpop.permute.xlu1 %11873 }
0x4adb   : > { %v11876_v60 = vunpack.i.h.bf16 %v11874_v57  ;;  %v11875_v62 = vunpack.i.l.bf16 %v11874_v57 }
0x4add   : > { %v6184_v63 = vsel %vm437_vm2, %v6128_v49, %v11875_v62  ;;  %v6185_v1 = vsel %vm437_vm2, %v6131_v53, %v11876_v60  ;;  %v12102_v49 = vld [vmem:[%s14458_s5 + $0x288] sm:$0xff]  }
0x4ade   : > { %v6186_v2 = vpack.c.bf16 %v6185_v1, %v6184_v63 }
0x4ae0   : > { %11355 = vmatmul.mubr.msk.bf16.vlgmr.msra.gmra.mrb[144].mxu0 %vm480_vm3, %v6186_v2 }
0x4ae1   : > { %11378 = vmatprep.mubr.msk.bf16.mxu0 %vm12250_vm0, %v12249_v0  ;;  %11371 = vmatpush3.bf16.msra.mxu0 %v12093_v12 }
0x4ae2   : > { %11372 = vmatprep.subr.bf16.mxu0 %v12249_v0 }
0x4bb3   : > { %v6265_v4 = vpop.f32.mrb[144].mxu0 }
0x4bb4   : > { %v6266_v41 = vadd.f32 %v9787_v3, %v6265_v4  ;;  %v11356_v5 = vpop.f32.mrb[145].mxu0  ;;  %v12105_v4 = vld [vmem:[%s14458_s5 + $0x2a0] sm:$0xff]  }
0x4bb5   : > { %v6268_v6 = vpop.f32.mrb[146].mxu0  ;;  %v12108_v5 = vld [vmem:[%s14458_s5 + $0x2b8] sm:$0xff]  }
0x4bb6   : > { %v6269_v7 = vadd.f32 %v9787_v3, %v6268_v6  ;;  %v11357_v8 = vpop.f32.mrb[147].mxu0  ;;  %v6272_v9 = vmax.f32 %v6266_v41, 0.0  ;;  %v12106_v41 = vld [vmem:[%s14458_s5 + $0x2a8] sm:$0xff]   ;;  %v9834_v6 = vld [vmem:[%s14459_s6 + $0x14] ss:$0 sm:$0xff] }
0x4bb8   : > { %v6273_v10 = vmax.f32 %v6269_v7, 0.0 }
0x4bba   : > { %v13750_v11 = vpack.c.bf16 %v6273_v10, %v6272_v9 }
0x4bbc   : > { %11359 = vmatpush3.bf16.msra.mxu1 %v13750_v11 }
0x4bbd   : > { %11364 = vmatprep.subr.bf16.mxu1 %v12249_v0 }
0x4bbf   : > { %11361 = vmatmul.mubr.msk.bf16.vlgmr.msra.gmra.mrb[204].mxu1 %vm335_vm1, %v13376_v48  ;;  %v12094_v48 = vld [vmem:[%s14456_s3 + $0x2e8] sm:$0xff]  }
0x4bc0   : > { %11365 = vmatpush3.bf16.msra.mxu1 %v13750_v11  ;;  %11366 = vmatprep.mubr.msk.bf16.mxu1 %vm12250_vm0, %v12249_v0 }
0x4bc1   : > { %11382 = vmatprep.subr.bf16.mxu1 %v12249_v0  ;;  %11373 = vmatpush3.bf16.msra.mxu0 %v12094_v48 }
0x4bc2   : > { %11374 = vmatprep.subr.bf16.mxu0 %v12249_v0 }
0x4bc5   : > { %11375 = vmatpush3.bf16.msra.mxu0 %v12095_v44 }
0x4bc6   : > { %11376 = vmatprep.subr.bf16.mxu0 %v12249_v0 }
0x4bc7   : > { %11367 = vmatmul.mubr.msk.bf16.vlgmr.msra.gmra.mrb[208].mxu1 %vm335_vm1, %v13385_v42 }
0x4bc8   : > { %11390 = vmatprep.mubr.msk.bf16.mxu1 %vm12250_vm0, %v12249_v0  ;;  %11383 = vmatpush3.bf16.msra.mxu1 %v12097_v26  ;;  %v12111_v26 = vld [vmem:[%s14456_s3 + $0x310] sm:$0xff]  }
0x4bc9   : > { %11377 = vmatpush3.bf16.msra.mxu0 %v12096_v13  ;;  %11384 = vmatprep.subr.bf16.mxu1 %v12249_v0 }
0x4bca   : > { %11394 = vmatprep.subr.bf16.mxu0 %v12249_v0 }
0x4bcc   : > { %11385 = vmatpush3.bf16.msra.mxu1 %v12098_v58  ;;  %v12112_v58 = vld [vmem:[%s14456_s3 + $0x318] sm:$0xff]  }
0x4bcd   : > { %11386 = vmatprep.subr.bf16.mxu1 %v12249_v0 }
0x4bd0   : > { %11387 = vmatpush3.bf16.msra.mxu1 %v12099_v28 }
0x4bd1   : > { %11388 = vmatprep.subr.bf16.mxu1 %v12249_v0 }
0x4bd4   : > { %11389 = vmatpush3.bf16.msra.mxu1 %v12100_v29 }
0x4bd5   : > { %11406 = vmatprep.subr.bf16.mxu1 %v12249_v0 }
0x4c92   : > { %v6309_v42 = vpop.f32.mrb[204].mxu1 }
0x4c93   : > { %v11362_v43 = vpop.f32.mrb[205].mxu1 }
0x4c94   : > { %v6312_v14 = vpop.f32.mrb[206].mxu1 }
0x4c95   : > { %v11363_v15 = vpop.f32.mrb[207].mxu1 }
0x4c9a   : > { %v6350_v17 = vpop.f32.mrb[208].mxu1 }
0x4c9b   : > { %v11368_v18 = vpop.f32.mrb[209].mxu1 }
0x4c9c   : > { %v6353_v27 = vpop.f32.mrb[210].mxu1 }
0x4c9d   : > { %v11877_v19 = vpack.i.bf16 %v6353_v27, %v6350_v17  ;;  %v11369_v20 = vpop.f32.mrb[211].mxu1 }
0x4c9f   : > { %11878 = vrot.lane.b32.xlu0 %v11877_v19, %s12251_s19 }
0x4d11   : > { %v11879_v61 = vpop.permute.xlu0 %11878 }
0x4d12   : > { %v11881_v21 = vunpack.i.h.bf16 %v11879_v61  ;;  %v11880_v22 = vunpack.i.l.bf16 %v11879_v61 }
0x4d14   : > { %v6366_v23 = vsel %vm437_vm2, %v6312_v14, %v11881_v21  ;;  %v6365_v59 = vsel %vm437_vm2, %v6309_v42, %v11880_v22  ;;  %v9849_v14 = vld [vmem:[%s14459_s6 + $0x15] ss:$0 sm:$0xff]  ;;  %v13871_v22 = vld [vmem:[%s12359_s20] sm:$0xff]  }
0x4d15   : > { %v6367_v25 = vpack.c.bf16 %v6366_v23, %v6365_v59  ;;  %v13876_v23 = vld [vmem:[%s12354_s17] sm:$0xff]   ;;  %s9035_s17 = sshll.u32 %s301_s29, 4  ;;  %s14403_s17 = int_to_ptr.vmem [resolvable:$true] %s9035_s17 }
0x4d16   : > { %v12109_v59 = vld [vmem:[%s14456_s3 + $0x300] sm:$0xff]   ;;  %s12185_s14 = scalar_lea.vmem %s14403_s17, 256  ;;  %p12192_p0 = scmp.lt.s32.totalorder %s14403_s17, %s12190_s16 }
0x4d17   : > { %11379 = vmatmul.mubr.msk.bf16.vlgmr.msra.gmra.mrb[148].mxu0 %vm480_vm3, %v6367_v25  ;;  %v12110_v25 = vld [vmem:[%s14456_s3 + $0x308] sm:$0xff]   ;;  %p12186_p11 = scmp.ne.s32.totalorder %s14403_s17, %s12185_s14  ;;  %p12193_p1 = scmp.lt.s32.totalorder %s12191_s18, %s12185_s14 }
0x4d18   : > { %11402 = vmatprep.mubr.msk.bf16.mxu0 %vm12250_vm0, %v12249_v0  ;;  %11395 = vmatpush3.bf16.msra.mxu0 %v12101_v16 }
0x4d19   : > { %11396 = vmatprep.subr.bf16.mxu0 %v12249_v0  ;;  %p12187_p12 = pnand %p12186_p11, %p12333_p5  ;;  %p12194_p2 = por %p12193_p1, %p12192_p0 }
0x4d1b   : > { %p12188_p13 = pneg %p12187_p12 }
0x4d1c   : > { %11397 = vmatpush3.bf16.msra.mxu0 %v12102_v49  ;;  %v9866_v49 = vld [vmem:[%s14457_s4 + $0x18] ss:$0 sm:$0xff] }
0x4d1d   : > { %11398 = vmatprep.subr.bf16.mxu0 %v12249_v0  ;;  %p12195_p3 = pnand %p12194_p2, %p12188_p13 }
0x4d20   : > { %11399 = vmatpush3.bf16.msra.mxu0 %v12103_v50 }
0x4d21   : > { %11400 = vmatprep.subr.bf16.mxu0 %v12249_v0 }
0x4d24   : > { %11401 = vmatpush3.bf16.msra.mxu0 %v12104_v51 }
0x4d25   : > { %11418 = vmatprep.subr.bf16.mxu0 %v12249_v0 }
0x4dea   : > { %v6446_v30 = vpop.f32.mrb[148].mxu0 }
0x4deb   : > { %v6447_v34 = vadd.f32 %v9804_v33, %v6446_v30  ;;  %v11380_v31 = vpop.f32.mrb[149].mxu0 }
0x4dec   : > { %v6449_v32 = vpop.f32.mrb[150].mxu0 }
0x4ded   : > { %v6450_v35 = vadd.f32 %v9804_v33, %v6449_v32  ;;  %v11381_v36 = vpop.f32.mrb[151].mxu0  ;;  %v6453_v37 = vmax.f32 %v6447_v34, 0.0 }
0x4def   : > { %v6454_v39 = vmax.f32 %v6450_v35, 0.0 }
0x4df1   : > { %v6455_v45 = vpack.c.bf16 %v6454_v39, %v6453_v37 }
0x4df3   : > { %6457 = vrot.lane.b32.xlu1 %v6455_v45, %s12251_s19 }
0x4e65   : > { %v6458_v46 = vpop.permute.xlu1 %6457 }
0x4e66   : > { %v6461_v47 = vsel %vm437_vm2, %v13750_v11, %v6458_v46 }
0x4e67   : > { %11391 = vmatmul.mubr.msk.bf16.vlgmr.msra.gmra.mrb[212].mxu1 %vm480_vm3, %v6461_v47 }
0x4e68   : > { %11414 = vmatprep.mubr.msk.bf16.mxu1 %vm12250_vm0, %v12249_v0  ;;  %11407 = vmatpush3.bf16.msra.mxu1 %v12105_v4 }
0x4e69   : > { %11408 = vmatprep.subr.bf16.mxu1 %v12249_v0 }
0x4e6c   : > { %11409 = vmatpush3.bf16.msra.mxu1 %v12106_v41 }
0x4e6d   : > { %11410 = vmatprep.subr.bf16.mxu1 %v12249_v0 }
0x4f3a   : > { %v6539_v53 = vpop.f32.mrb[212].mxu1 }
0x4f3b   : > { %v6540_v54 = vadd.f32 %v9819_v52, %v6539_v53  ;;  %v11392_v55 = vpop.f32.mrb[213].mxu1 }
0x4f3c   : > { %v6542_v56 = vpop.f32.mrb[214].mxu1 }
0x4f3d   : > { %v6543_v57 = vadd.f32 %v9819_v52, %v6542_v56  ;;  %v11393_v60 = vpop.f32.mrb[215].mxu1  ;;  %v6546_v62 = vmax.f32 %v6540_v54, 0.0 }
0x4f3f   : > { %v6547_v63 = vmax.f32 %v6543_v57, 0.0 }
0x4f41   : > { %v6548_v1 = vpack.c.bf16 %v6547_v63, %v6546_v62  ;;  %v12113_v62 = vld [vmem:[%s14456_s3 + $0x320] sm:$0xff]   ;;  %v12114_v63 = vld [vmem:[%s14456_s3 + $0x328] sm:$0xff]  }
0x4f43   : > { %6550 = vrot.lane.b32.xlu0 %v6548_v1, %s12251_s19  ;;  %v12115_v1 = vld [vmem:[%s14456_s3 + $0x330] sm:$0xff]  }
0x4fb5   : > { %v6551_v2 = vpop.permute.xlu0 %6550 }
0x4fb6   : > { %v6554_v3 = vsel %vm437_vm2, %v13711_v38, %v6551_v2  ;;  %v12107_v38 = vld [vmem:[%s14458_s5 + $0x2b0] sm:$0xff]  }
0x4fb7   : > { %11403 = vmatmul.mubr.msk.bf16.vlgmr.msra.gmra.mrb[152].mxu0 %vm480_vm3, %v6554_v3  ;;  %11411 = vmatpush3.bf16.msra.mxu1 %v12107_v38  ;;  %v12116_v3 = vld [vmem:[%s14456_s3 + $0x338] sm:$0xff]  }
0x4fb8   : > { %11420 = vmatprep.mubr.msk.bf16.mxu0 %vm12250_vm0, %v12249_v0  ;;  %11412 = vmatprep.subr.bf16.mxu1 %v12249_v0 }
0x4fbb   : > { %11413 = vmatpush3.bf16.msra.mxu1 %v12108_v5 }
0x4fbc   : > { %11424 = vmatprep.subr.bf16.mxu1 %v12249_v0 }
0x508a   : > { %v6632_v7 = vpop.f32.mrb[152].mxu0 }
0x508b   : > { %v6633_v8 = vadd.f32 %v9834_v6, %v6632_v7  ;;  %v11404_v9 = vpop.f32.mrb[153].mxu0 }
0x508c   : > { %v6635_v10 = vpop.f32.mrb[154].mxu0 }
0x508d   : > { %v6636_v11 = vadd.f32 %v9834_v6, %v6635_v10  ;;  %v11405_v12 = vpop.f32.mrb[155].mxu0  ;;  %v6639_v48 = vmax.f32 %v6633_v8, 0.0 }
0x508f   : > { %v6640_v44 = vmax.f32 %v6636_v11, 0.0 }
0x5091   : > { %v6641_v42 = vpack.c.bf16 %v6640_v44, %v6639_v48 }
0x5093   : > { %6643 = vrot.lane.b32.xlu1 %v6641_v42, %s12251_s19 }
0x5105   : > { %v6644_v13 = vpop.permute.xlu1 %6643 }
0x5106   : > { %v6647_v43 = vsel %vm437_vm2, %v13608_v24, %v6644_v13  ;;  %v12117_v13 = vld [vmem:[%s14458_s5 + $0x2c0] sm:$0xff]  }
0x5107   : > { %11415 = vmatmul.mubr.msk.bf16.vlgmr.msra.gmra.mrb[216].mxu1 %vm480_vm3, %v6647_v43  ;;  %v12118_v43 = vld [vmem:[%s14458_s5 + $0x2c8] sm:$0xff]  }
0x5108   : > { %11426 = vmatprep.mubr.msk.bf16.mxu1 %vm12250_vm0, %v12249_v0 }
0x51da   : > { %v6725_v15 = vpop.f32.mrb[216].mxu1 }
0x51db   : > { %v6726_v17 = vadd.f32 %v9849_v14, %v6725_v15  ;;  %v11416_v18 = vpop.f32.mrb[217].mxu1  ;;  %v12120_v15 = vld [vmem:[%s14458_s5 + $0x2d8] sm:$0xff]  }
0x51dc   : > { %v6728_v27 = vpop.f32.mrb[218].mxu1 }
0x51dd   : > { %v6729_v19 = vadd.f32 %v9849_v14, %v6728_v27  ;;  %v11417_v20 = vpop.f32.mrb[219].mxu1  ;;  %v6732_v61 = vmax.f32 %v6726_v17, 0.0  ;;  %v12119_v14 = vld [vmem:[%s14458_s5 + $0x2d0] sm:$0xff]   ;;  %v9883_v17 = vld [vmem:[%s14457_s4 + $0x19] ss:$0 sm:$0xff] }
0x51df   : > { %v6733_v21 = vmax.f32 %v6729_v19, 0.0 }
0x51e1   : > { %v13864_v24 = vpack.c.bf16 %v6733_v21, %v6732_v61 }
0x51e3   : > { %11419 = vmatpush3.bf16.msra.mxu0 %v13864_v24  ;;  %11425 = vmatpush3.bf16.msra.mxu1 %v13864_v24 }
0x51e4   : > { %11430 = vmatprep.subr.bf16.mxu0 %v12249_v0  ;;  %11442 = vmatprep.subr.bf16.mxu1 %v12249_v0 }
0x51e6   : > { %11427 = vmatmul.mubr.msk.bf16.vlgmr.msra.gmra.mrb[220].mxu1 %vm335_vm1, %v13871_v22  ;;  %11421 = vmatmul.mubr.msk.bf16.vlgmr.msra.gmra.mrb[156].mxu0 %vm335_vm1, %v13876_v23 }
0x51e7   : > { %11438 = vmatprep.mubr.msk.bf16.mxu0 %vm12250_vm0, %v12249_v0  ;;  %11444 = vmatprep.mubr.msk.bf16.mxu1 %vm12250_vm0, %v12249_v0 }
0x51e8   : > { %11431 = vmatpush3.bf16.msra.mxu0 %v12109_v59 }
0x51e9   : > { %11432 = vmatprep.subr.bf16.mxu0 %v12249_v0 }
0x51ec   : > { %11433 = vmatpush3.bf16.msra.mxu0 %v12110_v25 }
0x51ed   : > { %11434 = vmatprep.subr.bf16.mxu0 %v12249_v0 }
0x51f0   : > { %11435 = vmatpush3.bf16.msra.mxu0 %v12111_v26 }
0x51f1   : > { %11436 = vmatprep.subr.bf16.mxu0 %v12249_v0 }
0x51f4   : > { %11437 = vmatpush3.bf16.msra.mxu0 %v12112_v58 }
0x51f5   : > { %11454 = vmatprep.subr.bf16.mxu0 %v12249_v0 }
0x52b9   : > { %v6810_v28 = vpop.f32.mrb[220].mxu1  ;;  %v6769_v29 = vpop.f32.mrb[156].mxu0 }
0x52ba   : > { %v11428_v33 = vpop.f32.mrb[221].mxu1  ;;  %v11422_v30 = vpop.f32.mrb[157].mxu0 }
0x52bb   : > { %v6813_v34 = vpop.f32.mrb[222].mxu1  ;;  %v6772_v31 = vpop.f32.mrb[158].mxu0 }
0x52bc   : > { %v11882_v32 = vpack.i.bf16 %v6813_v34, %v6810_v28  ;;  %v11429_v35 = vpop.f32.mrb[223].mxu1  ;;  %v11423_v36 = vpop.f32.mrb[159].mxu0 }
0x52be   : > { %11883 = vrot.lane.b32.xlu0 %v11882_v32, %s12251_s19 }
0x5330   : > { %v11884_v37 = vpop.permute.xlu0 %11883 }
0x5331   : > { %v11886_v39 = vunpack.i.h.bf16 %v11884_v37  ;;  %v11885_v45 = vunpack.i.l.bf16 %v11884_v37 }
0x5333   : > { %v6825_v46 = vsel %vm437_vm2, %v6769_v29, %v11885_v45  ;;  %v6826_v47 = vsel %vm437_vm2, %v6772_v31, %v11886_v39  ;;  %v9898_v29 = vld [vmem:[%s14459_s6 + $0x16] ss:$0 sm:$0xff]  ;;  %v12121_v45 = vld [vmem:[%s14456_s3 + $0x340] sm:$0xff]  }
0x5334   : > { %v6827_v16 = vpack.c.bf16 %v6826_v47, %v6825_v46  ;;  %v12122_v46 = vld [vmem:[%s14456_s3 + $0x348] sm:$0xff]   ;;  %v12123_v47 = vld [vmem:[%s14456_s3 + $0x350] sm:$0xff]  }
0x5336   : > { %11439 = vmatmul.mubr.msk.bf16.vlgmr.msra.gmra.mrb[160].mxu0 %vm480_vm3, %v6827_v16  ;;  %v12124_v16 = vld [vmem:[%s14456_s3 + $0x358] sm:$0xff]  }
0x5337   : > { %11462 = vmatprep.mubr.msk.bf16.mxu0 %vm12250_vm0, %v12249_v0  ;;  %11455 = vmatpush3.bf16.msra.mxu0 %v12113_v62 }
0x5338   : > { %11456 = vmatprep.subr.bf16.mxu0 %v12249_v0 }
0x533b   : > { %11457 = vmatpush3.bf16.msra.mxu0 %v12114_v63 }
0x533c   : > { %11458 = vmatprep.subr.bf16.mxu0 %v12249_v0 }
0x533f   : > { %11459 = vmatpush3.bf16.msra.mxu0 %v12115_v1 }
0x5340   : > { %11460 = vmatprep.subr.bf16.mxu0 %v12249_v0 }
0x5343   : > { %11461 = vmatpush3.bf16.msra.mxu0 %v12116_v3 }
0x5344   : > { %11478 = vmatprep.subr.bf16.mxu0 %v12249_v0 }
0x5409   : > { %v6906_v50 = vpop.f32.mrb[160].mxu0 }
0x540a   : > { %v6907_v51 = vadd.f32 %v9866_v49, %v6906_v50  ;;  %v11440_v52 = vpop.f32.mrb[161].mxu0 }
0x540b   : > { %v6909_v53 = vpop.f32.mrb[162].mxu0 }
0x540c   : > { %v6910_v54 = vadd.f32 %v9866_v49, %v6909_v53  ;;  %v11441_v55 = vpop.f32.mrb[163].mxu0  ;;  %v6913_v56 = vmax.f32 %v6907_v51, 0.0 }
0x540e   : > { %v6914_v57 = vmax.f32 %v6910_v54, 0.0 }
0x5410   : > { %v13909_v60 = vpack.c.bf16 %v6914_v57, %v6913_v56 }
0x5412   : > { %11443 = vmatpush3.bf16.msra.mxu1 %v13909_v60 }
0x5413   : > { %11448 = vmatprep.subr.bf16.mxu1 %v12249_v0 }
0x5415   : > { %11445 = vmatmul.mubr.msk.bf16.vlgmr.msra.gmra.mrb[224].mxu1 %vm335_vm1, %v13876_v23 }
0x5416   : > { %11449 = vmatpush3.bf16.msra.mxu1 %v13909_v60  ;;  %11450 = vmatprep.mubr.msk.bf16.mxu1 %vm12250_vm0, %v12249_v0 }
0x5417   : > { %11466 = vmatprep.subr.bf16.mxu1 %v12249_v0 }
0x541d   : > { %11451 = vmatmul.mubr.msk.bf16.vlgmr.msra.gmra.mrb[228].mxu1 %vm335_vm1, %v13871_v22 }
0x541e   : > { %11474 = vmatprep.mubr.msk.bf16.mxu1 %vm12250_vm0, %v12249_v0  ;;  %11467 = vmatpush3.bf16.msra.mxu1 %v12117_v13  ;;  %v12128_v13 = vld [vmem:[%s14456_s3 + $0x378] sm:$0xff]  }
0x541f   : > { %11468 = vmatprep.subr.bf16.mxu1 %v12249_v0 }
0x5422   : > { %11469 = vmatpush3.bf16.msra.mxu1 %v12118_v43 }
0x5423   : > { %11470 = vmatprep.subr.bf16.mxu1 %v12249_v0 }
0x5426   : > { %11471 = vmatpush3.bf16.msra.mxu1 %v12119_v14 }
0x5427   : > { %11472 = vmatprep.subr.bf16.mxu1 %v12249_v0 }
0x542a   : > { %11473 = vmatpush3.bf16.msra.mxu1 %v12120_v15 }
0x542b   : > { %11484 = vmatprep.subr.bf16.mxu1 %v12249_v0 }
0x54e8   : > { %v6950_v2 = vpop.f32.mrb[224].mxu1 }
0x54e9   : > { %v11446_v4 = vpop.f32.mrb[225].mxu1 }
0x54ea   : > { %v6953_v41 = vpop.f32.mrb[226].mxu1  ;;  %v9915_v4 = vld [vmem:[%s14457_s4 + $0x1a] ss:$0 sm:$0xff] }
0x54eb   : > { %v11447_v38 = vpop.f32.mrb[227].mxu1 }
0x54f0   : > { %v6991_v5 = vpop.f32.mrb[228].mxu1 }
0x54f1   : > { %v11452_v6 = vpop.f32.mrb[229].mxu1 }
0x54f2   : > { %v6994_v7 = vpop.f32.mrb[230].mxu1 }
0x54f3   : > { %v11887_v8 = vpack.i.bf16 %v6994_v7, %v6991_v5  ;;  %v11453_v9 = vpop.f32.mrb[231].mxu1 }
0x54f5   : > { %11888 = vrot.lane.b32.xlu1 %v11887_v8, %s12251_s19 }
0x5567   : > { %v11889_v10 = vpop.permute.xlu1 %11888 }
0x5568   : > { %v11891_v11 = vunpack.i.h.bf16 %v11889_v10  ;;  %v11890_v12 = vunpack.i.l.bf16 %v11889_v10 }
0x556a   : > { %v7007_v48 = vsel %vm437_vm2, %v6953_v41, %v11891_v11  ;;  %v7006_v44 = vsel %vm437_vm2, %v6950_v2, %v11890_v12  ;;  %v12125_v12 = vld [vmem:[%s14456_s3 + $0x360] sm:$0xff]  }
0x556b   : > { %v7008_v42 = vpack.c.bf16 %v7007_v48, %v7006_v44  ;;  %v12126_v48 = vld [vmem:[%s14456_s3 + $0x368] sm:$0xff]   ;;  %v12127_v44 = vld [vmem:[%s14456_s3 + $0x370] sm:$0xff]  }
0x556d   : > { %11463 = vmatmul.mubr.msk.bf16.vlgmr.msra.gmra.mrb[164].mxu0 %vm480_vm3, %v7008_v42 }
0x556e   : > { %11480 = vmatprep.mubr.msk.bf16.mxu0 %vm12250_vm0, %v12249_v0 }
0x5640   : > { %v7087_v18 = vpop.f32.mrb[164].mxu0 }
0x5641   : > { %v7088_v27 = vadd.f32 %v9883_v17, %v7087_v18  ;;  %v11464_v19 = vpop.f32.mrb[165].mxu0 }
0x5642   : > { %v7090_v20 = vpop.f32.mrb[166].mxu0 }
0x5643   : > { %v7091_v61 = vadd.f32 %v9883_v17, %v7090_v20  ;;  %v11465_v21 = vpop.f32.mrb[167].mxu0  ;;  %v7094_v59 = vmax.f32 %v7088_v27, 0.0 }
0x5645   : > { %v7095_v25 = vmax.f32 %v7091_v61, 0.0 }
0x5647   : > { %v7096_v26 = vpack.c.bf16 %v7095_v25, %v7094_v59 }
0x5649   : > { %7098 = vrot.lane.b32.xlu0 %v7096_v26, %s12251_s19 }
0x56bb   : > { %v7099_v58 = vpop.permute.xlu0 %7098 }
0x56bc   : > { %v7102_v28 = vsel %vm437_vm2, %v13909_v60, %v7099_v58 }
0x56bd   : > { %11475 = vmatmul.mubr.msk.bf16.vlgmr.msra.gmra.mrb[232].mxu1 %vm480_vm3, %v7102_v28  ;;  %v12129_v28 = vld [vmem:[%s14458_s5 + $0x2e0] sm:$0xff]  }
0x56be   : > { %11486 = vmatprep.mubr.msk.bf16.mxu1 %vm12250_vm0, %v12249_v0 }
0x5790   : > { %v7180_v33 = vpop.f32.mrb[232].mxu1 }
0x5791   : > { %v7181_v30 = vadd.f32 %v9898_v29, %v7180_v33  ;;  %v11476_v34 = vpop.f32.mrb[233].mxu1  ;;  %v12131_v33 = vld [vmem:[%s14458_s5 + $0x2f0] sm:$0xff]  }
0x5792   : > { %v7183_v31 = vpop.f32.mrb[234].mxu1  ;;  %v9932_v34 = vld [vmem:[%s14457_s4 + $0x1b] ss:$0 sm:$0xff] }
0x5793   : > { %v7184_v32 = vadd.f32 %v9898_v29, %v7183_v31  ;;  %v11477_v35 = vpop.f32.mrb[235].mxu1  ;;  %v7187_v36 = vmax.f32 %v7181_v30, 0.0  ;;  %v12130_v29 = vld [vmem:[%s14458_s5 + $0x2e8] sm:$0xff]   ;;  %v12132_v30 = vld [vmem:[%s14458_s5 + $0x2f8] sm:$0xff]  }
0x5795   : > { %v7188_v37 = vmax.f32 %v7184_v32, 0.0 }
0x5797   : > { %v13973_v39 = vpack.c.bf16 %v7188_v37, %v7187_v36 }
0x5799   : > { %11479 = vmatpush3.bf16.msra.mxu0 %v13973_v39  ;;  %11485 = vmatpush3.bf16.msra.mxu1 %v13973_v39 }
0x579a   : > { %11490 = vmatprep.subr.bf16.mxu0 %v12249_v0  ;;  %11502 = vmatprep.subr.bf16.mxu1 %v12249_v0 }
0x579c   : > { %11487 = vmatmul.mubr.msk.bf16.vlgmr.msra.gmra.mrb[236].mxu1 %vm335_vm1, %v13871_v22  ;;  %11481 = vmatmul.mubr.msk.bf16.vlgmr.msra.gmra.mrb[168].mxu0 %vm335_vm1, %v13876_v23 }
0x579d   : > { %11498 = vmatprep.mubr.msk.bf16.mxu0 %vm12250_vm0, %v12249_v0  ;;  %11504 = vmatprep.mubr.msk.bf16.mxu1 %vm12250_vm0, %v12249_v0 }
0x579e   : > { %11491 = vmatpush3.bf16.msra.mxu0 %v12121_v45 }
0x579f   : > { %11492 = vmatprep.subr.bf16.mxu0 %v12249_v0 }
0x57a2   : > { %11493 = vmatpush3.bf16.msra.mxu0 %v12122_v46 }
0x57a3   : > { %11494 = vmatprep.subr.bf16.mxu0 %v12249_v0 }
0x57a6   : > { %11495 = vmatpush3.bf16.msra.mxu0 %v12123_v47 }
0x57a7   : > { %11496 = vmatprep.subr.bf16.mxu0 %v12249_v0 }
0x57aa   : > { %11497 = vmatpush3.bf16.msra.mxu0 %v12124_v16 }
0x57ab   : > { %11514 = vmatprep.subr.bf16.mxu0 %v12249_v0 }
0x586f   : > { %v7265_v49 = vpop.f32.mrb[236].mxu1  ;;  %v7224_v50 = vpop.f32.mrb[168].mxu0 }
0x5870   : > { %v11488_v51 = vpop.f32.mrb[237].mxu1  ;;  %v11482_v52 = vpop.f32.mrb[169].mxu0 }
0x5871   : > { %v7268_v53 = vpop.f32.mrb[238].mxu1  ;;  %v7227_v54 = vpop.f32.mrb[170].mxu0  ;;  %v12133_v51 = vld [vmem:[%s14458_s5 + $0x300] sm:$0xff]   ;;  %v12134_v52 = vld [vmem:[%s14458_s5 + $0x308] sm:$0xff]  }
0x5872   : > { %v11892_v55 = vpack.i.bf16 %v7268_v53, %v7265_v49  ;;  %v11489_v56 = vpop.f32.mrb[239].mxu1  ;;  %v11483_v57 = vpop.f32.mrb[171].mxu0  ;;  %v12135_v53 = vld [vmem:[%s14458_s5 + $0x310] sm:$0xff]  }
0x5874   : > { %11893 = vrot.lane.b32.xlu1 %v11892_v55, %s12251_s19  ;;  %v9947_v55 = vld [vmem:[%s14459_s6 + $0x17] ss:$0 sm:$0xff] }
0x58e6   : > { %v11894_v60 = vpop.permute.xlu1 %11893 }
0x58e7   : > { %v11896_v62 = vunpack.i.h.bf16 %v11894_v60  ;;  %v11895_v63 = vunpack.i.l.bf16 %v11894_v60 }
0x58e9   : > { %v7280_v1 = vsel %vm437_vm2, %v7224_v50, %v11895_v63  ;;  %v7281_v2 = vsel %vm437_vm2, %v7227_v54, %v11896_v62  ;;  %v12136_v54 = vld [vmem:[%s14458_s5 + $0x318] sm:$0xff]  }
0x58ea   : > { %v7282_v3 = vpack.c.bf16 %v7281_v2, %v7280_v1 }
0x58ec   : > { %11499 = vmatmul.mubr.msk.bf16.vlgmr.msra.gmra.mrb[172].mxu0 %vm480_vm3, %v7282_v3 }
0x58ed   : > { %11522 = vmatprep.mubr.msk.bf16.mxu0 %vm12250_vm0, %v12249_v0  ;;  %11515 = vmatpush3.bf16.msra.mxu0 %v12125_v12 }
0x58ee   : > { %11516 = vmatprep.subr.bf16.mxu0 %v12249_v0 }
0x58f1   : > { %11517 = vmatpush3.bf16.msra.mxu0 %v12126_v48 }
0x58f2   : > { %11518 = vmatprep.subr.bf16.mxu0 %v12249_v0 }
0x58f5   : > { %11519 = vmatpush3.bf16.msra.mxu0 %v12127_v44 }
0x58f6   : > { %11520 = vmatprep.subr.bf16.mxu0 %v12249_v0 }
0x58f9   : > { %11521 = vmatpush3.bf16.msra.mxu0 %v12128_v13  ;;  %v12139_v13 = vld [vmem:[%s14456_s3 + $0x390] sm:$0xff]  }
0x58fa   : > { %11538 = vmatprep.subr.bf16.mxu0 %v12249_v0 }
0x59bf   : > { %v7361_v41 = vpop.f32.mrb[172].mxu0 }
0x59c0   : > { %v7362_v38 = vadd.f32 %v9915_v4, %v7361_v41  ;;  %v11500_v5 = vpop.f32.mrb[173].mxu0 }
0x59c1   : > { %v7364_v6 = vpop.f32.mrb[174].mxu0  ;;  %v9962_v5 = vld [vmem:[%s14459_s6 + $0x18] ss:$0 sm:$0xff] }
0x59c2   : > { %v7365_v7 = vadd.f32 %v9915_v4, %v7364_v6  ;;  %v11501_v8 = vpop.f32.mrb[175].mxu0  ;;  %v7368_v9 = vmax.f32 %v7362_v38, 0.0 }
0x59c4   : > { %v7369_v10 = vmax.f32 %v7365_v7, 0.0 }
0x59c6   : > { %v14012_v11 = vpack.c.bf16 %v7369_v10, %v7368_v9 }
0x59c8   : > { %11503 = vmatpush3.bf16.msra.mxu1 %v14012_v11 }
0x59c9   : > { %11508 = vmatprep.subr.bf16.mxu1 %v12249_v0 }
0x59cb   : > { %11505 = vmatmul.mubr.msk.bf16.vlgmr.msra.gmra.mrb[240].mxu1 %vm335_vm1, %v13876_v23 }
0x59cc   : > { %11509 = vmatpush3.bf16.msra.mxu1 %v14012_v11  ;;  %11510 = vmatprep.mubr.msk.bf16.mxu1 %vm12250_vm0, %v12249_v0 }
0x59cd   : > { %11526 = vmatprep.subr.bf16.mxu1 %v12249_v0 }
0x59d3   : > { %11511 = vmatmul.mubr.msk.bf16.vlgmr.msra.gmra.mrb[244].mxu1 %vm335_vm1, %v13871_v22 }
0x59d4   : > { %11534 = vmatprep.mubr.msk.bf16.mxu1 %vm12250_vm0, %v12249_v0  ;;  %11527 = vmatpush3.bf16.msra.mxu1 %v12129_v28 }
0x59d5   : > { %11528 = vmatprep.subr.bf16.mxu1 %v12249_v0 }
0x59d8   : > { %11529 = vmatpush3.bf16.msra.mxu1 %v12130_v29 }
0x59d9   : > { %11530 = vmatprep.subr.bf16.mxu1 %v12249_v0 }
0x59dc   : > { %11531 = vmatpush3.bf16.msra.mxu1 %v12131_v33  ;;  %v9979_v33 = vld [vmem:[%s14457_s4 + $0x1c] ss:$0 sm:$0xff] }
0x59dd   : > { %11532 = vmatprep.subr.bf16.mxu1 %v12249_v0 }
0x59e0   : > { %11533 = vmatpush3.bf16.msra.mxu1 %v12132_v30 }
0x59e1   : > { %11550 = vmatprep.subr.bf16.mxu1 %v12249_v0 }
0x5a9e   : > { %v7405_v42 = vpop.f32.mrb[240].mxu1 }
0x5a9f   : > { %v11506_v43 = vpop.f32.mrb[241].mxu1 }
0x5aa0   : > { %v7408_v14 = vpop.f32.mrb[242].mxu1 }
0x5aa1   : > { %v11507_v15 = vpop.f32.mrb[243].mxu1 }
0x5aa6   : > { %v7446_v17 = vpop.f32.mrb[244].mxu1 }
0x5aa7   : > { %v11512_v18 = vpop.f32.mrb[245].mxu1 }
0x5aa8   : > { %v7449_v27 = vpop.f32.mrb[246].mxu1 }
0x5aa9   : > { %v11897_v19 = vpack.i.bf16 %v7449_v27, %v7446_v17  ;;  %v11513_v20 = vpop.f32.mrb[247].mxu1 }
0x5aab   : > { %11898 = vrot.lane.b32.xlu0 %v11897_v19, %s12251_s19 }
0x5b1d   : > { %v11899_v61 = vpop.permute.xlu0 %11898 }
0x5b1e   : > { %v11901_v21 = vunpack.i.h.bf16 %v11899_v61  ;;  %v11900_v59 = vunpack.i.l.bf16 %v11899_v61 }
0x5b20   : > { %v7462_v25 = vsel %vm437_vm2, %v7408_v14, %v11901_v21  ;;  %v7461_v26 = vsel %vm437_vm2, %v7405_v42, %v11900_v59  ;;  %v12138_v42 = vld [vmem:[%s14456_s3 + $0x388] sm:$0xff]   ;;  %v12140_v14 = vld [vmem:[%s14456_s3 + $0x398] sm:$0xff]  }
0x5b21   : > { %v7463_v58 = vpack.c.bf16 %v7462_v25, %v7461_v26 }
0x5b23   : > { %11523 = vmatmul.mubr.msk.bf16.vlgmr.msra.gmra.mrb[176].mxu0 %vm480_vm3, %v7463_v58 }
0x5b24   : > { %11546 = vmatprep.mubr.msk.bf16.mxu0 %vm12250_vm0, %v12249_v0  ;;  %11539 = vmatpush3.bf16.msra.mxu0 %v12133_v51  ;;  %v12144_v51 = vld [vmem:[%s14456_s3 + $0x3b8] sm:$0xff]  }
0x5b25   : > { %11540 = vmatprep.subr.bf16.mxu0 %v12249_v0 }
0x5b28   : > { %11541 = vmatpush3.bf16.msra.mxu0 %v12134_v52 }
0x5b29   : > { %11542 = vmatprep.subr.bf16.mxu0 %v12249_v0 }
0x5b2c   : > { %11543 = vmatpush3.bf16.msra.mxu0 %v12135_v53 }
0x5b2d   : > { %11544 = vmatprep.subr.bf16.mxu0 %v12249_v0 }
0x5b30   : > { %11545 = vmatpush3.bf16.msra.mxu0 %v12136_v54 }
0x5b31   : > { %11562 = vmatprep.subr.bf16.mxu0 %v12249_v0 }
0x5bf6   : > { %v7542_v31 = vpop.f32.mrb[176].mxu0 }
0x5bf7   : > { %v7543_v32 = vadd.f32 %v9932_v34, %v7542_v31  ;;  %v11524_v35 = vpop.f32.mrb[177].mxu0 }
0x5bf8   : > { %v7545_v36 = vpop.f32.mrb[178].mxu0 }
0x5bf9   : > { %v7546_v37 = vadd.f32 %v9932_v34, %v7545_v36  ;;  %v11525_v45 = vpop.f32.mrb[179].mxu0  ;;  %v7549_v46 = vmax.f32 %v7543_v32, 0.0 }
0x5bfb   : > { %v7550_v47 = vmax.f32 %v7546_v37, 0.0 }
0x5bfd   : > { %v7551_v16 = vpack.c.bf16 %v7550_v47, %v7549_v46  ;;  %v12141_v47 = vld [vmem:[%s14456_s3 + $0x3a0] sm:$0xff]  }
0x5bff   : > { %7553 = vrot.lane.b32.xlu1 %v7551_v16, %s12251_s19  ;;  %v12142_v16 = vld [vmem:[%s14456_s3 + $0x3a8] sm:$0xff]  }
0x5c71   : > { %v7554_v49 = vpop.permute.xlu1 %7553 }
0x5c72   : > { %v7557_v50 = vsel %vm437_vm2, %v14012_v11, %v7554_v49  ;;  %v12143_v49 = vld [vmem:[%s14456_s3 + $0x3b0] sm:$0xff]  }
0x5c73   : > { %11535 = vmatmul.mubr.msk.bf16.vlgmr.msra.gmra.mrb[248].mxu1 %vm480_vm3, %v7557_v50 }
0x5c74   : > { %11552 = vmatprep.mubr.msk.bf16.mxu1 %vm12250_vm0, %v12249_v0 }
0x5d46   : > { %v7635_v56 = vpop.f32.mrb[248].mxu1 }
0x5d47   : > { %v7636_v57 = vadd.f32 %v9947_v55, %v7635_v56  ;;  %v11536_v60 = vpop.f32.mrb[249].mxu1 }
0x5d48   : > { %v7638_v62 = vpop.f32.mrb[250].mxu1 }
0x5d49   : > { %v7639_v63 = vadd.f32 %v9947_v55, %v7638_v62  ;;  %v11537_v1 = vpop.f32.mrb[251].mxu1  ;;  %v7642_v2 = vmax.f32 %v7636_v57, 0.0 }
0x5d4b   : > { %v7643_v3 = vmax.f32 %v7639_v63, 0.0 }
0x5d4d   : > { %v7644_v4 = vpack.c.bf16 %v7643_v3, %v7642_v2 }
0x5d4f   : > { %7646 = vrot.lane.b32.xlu0 %v7644_v4, %s12251_s19 }
0x5dc1   : > { %v7647_v41 = vpop.permute.xlu0 %7646 }
0x5dc2   : > { %v7650_v38 = vsel %vm437_vm2, %v13973_v39, %v7647_v41  ;;  %v12137_v39 = vld [vmem:[%s14456_s3 + $0x380] sm:$0xff]  }
0x5dc3   : > { %11547 = vmatmul.mubr.msk.bf16.vlgmr.msra.gmra.mrb[180].mxu0 %vm480_vm3, %v7650_v38  ;;  %v12145_v38 = vld [vmem:[%s14458_s5 + $0x320] sm:$0xff]  }
0x5dc4   : > { %11570 = vmatprep.mubr.msk.bf16.mxu0 %vm12250_vm0, %v12249_v0  ;;  %11563 = vmatpush3.bf16.msra.mxu0 %v12137_v39 }
0x5dc5   : > { %11564 = vmatprep.subr.bf16.mxu0 %v12249_v0 }
0x5dc8   : > { %11565 = vmatpush3.bf16.msra.mxu0 %v12138_v42 }
0x5dc9   : > { %11566 = vmatprep.subr.bf16.mxu0 %v12249_v0 }
0x5dcc   : > { %11567 = vmatpush3.bf16.msra.mxu0 %v12139_v13 }
0x5dcd   : > { %11568 = vmatprep.subr.bf16.mxu0 %v12249_v0 }
0x5dd0   : > { %11569 = vmatpush3.bf16.msra.mxu0 %v12140_v14 }
0x5dd1   : > { %11586 = vmatprep.subr.bf16.mxu0 %v12249_v0 }
0x5e96   : > { %v7728_v6 = vpop.f32.mrb[180].mxu0 }
0x5e97   : > { %v7729_v7 = vadd.f32 %v9962_v5, %v7728_v6  ;;  %v11548_v8 = vpop.f32.mrb[181].mxu0  ;;  %v12147_v6 = vld [vmem:[%s14458_s5 + $0x330] sm:$0xff]  }
0x5e98   : > { %v7731_v9 = vpop.f32.mrb[182].mxu0  ;;  %v9996_v8 = vld [vmem:[%s14457_s4 + $0x1d] ss:$0 sm:$0xff] }
0x5e99   : > { %v7732_v10 = vadd.f32 %v9962_v5, %v7731_v9  ;;  %v11549_v11 = vpop.f32.mrb[183].mxu0  ;;  %v7735_v12 = vmax.f32 %v7729_v7, 0.0  ;;  %v12146_v5 = vld [vmem:[%s14458_s5 + $0x328] sm:$0xff]   ;;  %v12148_v7 = vld [vmem:[%s14458_s5 + $0x338] sm:$0xff]  }
0x5e9b   : > { %v7736_v48 = vmax.f32 %v7732_v10, 0.0 }
0x5e9d   : > { %v14101_v44 = vpack.c.bf16 %v7736_v48, %v7735_v12 }
0x5e9f   : > { %11551 = vmatpush3.bf16.msra.mxu1 %v14101_v44 }
0x5ea0   : > { %11556 = vmatprep.subr.bf16.mxu1 %v12249_v0 }
0x5ea2   : > { %11553 = vmatmul.mubr.msk.bf16.vlgmr.msra.gmra.mrb[252].mxu1 %vm335_vm1, %v13876_v23 }
0x5ea3   : > { %11557 = vmatpush3.bf16.msra.mxu1 %v14101_v44  ;;  %11558 = vmatprep.mubr.msk.bf16.mxu1 %vm12250_vm0, %v12249_v0 }
0x5ea4   : > { %11574 = vmatprep.subr.bf16.mxu1 %v12249_v0 }
0x5eaa   : > { %11559 = vmatmul.mubr.msk.bf16.vlgmr.msra.gmra.mrb[0].mxu1 %vm335_vm1, %v13871_v22 }
0x5eab   : > { %11576 = vmatprep.mubr.msk.bf16.mxu1 %vm12250_vm0, %v12249_v0 }
0x5f75   : > { %v7772_v43 = vpop.f32.mrb[252].mxu1 }
0x5f76   : > { %v11554_v15 = vpop.f32.mrb[253].mxu1 }
0x5f77   : > { %v7775_v17 = vpop.f32.mrb[254].mxu1 }
0x5f78   : > { %v11555_v18 = vpop.f32.mrb[255].mxu1 }
0x5f7d   : > { %v7813_v27 = vpop.f32.mrb[0].mxu1 }
0x5f7e   : > { %v11560_v19 = vpop.f32.mrb[1].mxu1 }
0x5f7f   : > { %v7816_v20 = vpop.f32.mrb[2].mxu1 }
0x5f80   : > { %v11902_v61 = vpack.i.bf16 %v7816_v20, %v7813_v27  ;;  %v11561_v21 = vpop.f32.mrb[3].mxu1 }
0x5f82   : > { %11903 = vrot.lane.b32.xlu1 %v11902_v61, %s12251_s19 }
0x5ff4   : > { %v11904_v59 = vpop.permute.xlu1 %11903 }
0x5ff5   : > { %v11906_v25 = vunpack.i.h.bf16 %v11904_v59  ;;  %v11905_v26 = vunpack.i.l.bf16 %v11904_v59 }
0x5ff7   : > { %v7829_v58 = vsel %vm437_vm2, %v7775_v17, %v11906_v25  ;;  %v7828_v28 = vsel %vm437_vm2, %v7772_v43, %v11905_v26  ;;  %v10011_v17 = vld [vmem:[%s14459_s6 + $0x19] ss:$0 sm:$0xff] }
0x5ff8   : > { %v7830_v29 = vpack.c.bf16 %v7829_v58, %v7828_v28  ;;  %v12149_v58 = vld [vmem:[%s14456_s3 + $0x3c0] sm:$0xff]   ;;  %v12150_v28 = vld [vmem:[%s14456_s3 + $0x3c8] sm:$0xff]  }
0x5ffa   : > { %11571 = vmatmul.mubr.msk.bf16.vlgmr.msra.gmra.mrb[184].mxu0 %vm480_vm3, %v7830_v29  ;;  %v12151_v29 = vld [vmem:[%s14456_s3 + $0x3d0] sm:$0xff]  }
0x5ffb   : > { %11594 = vmatprep.mubr.msk.bf16.mxu0 %vm12250_vm0, %v12249_v0  ;;  %11587 = vmatpush3.bf16.msra.mxu0 %v12141_v47 }
0x5ffc   : > { %11588 = vmatprep.subr.bf16.mxu0 %v12249_v0 }
0x5fff   : > { %11589 = vmatpush3.bf16.msra.mxu0 %v12142_v16 }
0x6000   : > { %11590 = vmatprep.subr.bf16.mxu0 %v12249_v0 }
0x6003   : > { %11591 = vmatpush3.bf16.msra.mxu0 %v12143_v49 }
0x6004   : > { %11592 = vmatprep.subr.bf16.mxu0 %v12249_v0 }
0x6007   : > { %11593 = vmatpush3.bf16.msra.mxu0 %v12144_v51 }
0x6008   : > { %11610 = vmatprep.subr.bf16.mxu0 %v12249_v0 }
0x60cd   : > { %v7909_v30 = vpop.f32.mrb[184].mxu0 }
0x60ce   : > { %v7910_v34 = vadd.f32 %v9979_v33, %v7909_v30  ;;  %v11572_v31 = vpop.f32.mrb[185].mxu0 }
0x60cf   : > { %v7912_v32 = vpop.f32.mrb[186].mxu0 }
0x60d0   : > { %v7913_v35 = vadd.f32 %v9979_v33, %v7912_v32  ;;  %v11573_v36 = vpop.f32.mrb[187].mxu0  ;;  %v7916_v37 = vmax.f32 %v7910_v34, 0.0  ;;  %v12152_v33 = vld [vmem:[%s14456_s3 + $0x3d8] sm:$0xff]  }
0x60d2   : > { %v7917_v45 = vmax.f32 %v7913_v35, 0.0 }
0x60d4   : > { %v14140_v46 = vpack.c.bf16 %v7917_v45, %v7916_v37 }
0x60d6   : > { %11575 = vmatpush3.bf16.msra.mxu1 %v14140_v46 }
0x60d7   : > { %11580 = vmatprep.subr.bf16.mxu1 %v12249_v0 }
0x60d9   : > { %11577 = vmatmul.mubr.msk.bf16.vlgmr.msra.gmra.mrb[4].mxu1 %vm335_vm1, %v13876_v23 }
0x60da   : > { %11581 = vmatpush3.bf16.msra.mxu1 %v14140_v46  ;;  %11582 = vmatprep.mubr.msk.bf16.mxu1 %vm12250_vm0, %v12249_v0 }
0x60db   : > { %11598 = vmatprep.subr.bf16.mxu1 %v12249_v0 }
0x60e1   : > { %11583 = vmatmul.mubr.msk.bf16.vlgmr.msra.gmra.mrb[8].mxu1 %vm335_vm1, %v13871_v22 }
0x60e2   : > { %11606 = vmatprep.mubr.msk.bf16.mxu1 %vm12250_vm0, %v12249_v0  ;;  %11599 = vmatpush3.bf16.msra.mxu1 %v12145_v38 }
0x60e3   : > { %11600 = vmatprep.subr.bf16.mxu1 %v12249_v0 }
0x60e6   : > { %11601 = vmatpush3.bf16.msra.mxu1 %v12146_v5 }
0x60e7   : > { %11602 = vmatprep.subr.bf16.mxu1 %v12249_v0 }
0x60ea   : > { %11603 = vmatpush3.bf16.msra.mxu1 %v12147_v6 }
0x60eb   : > { %11604 = vmatprep.subr.bf16.mxu1 %v12249_v0 }
0x60ee   : > { %11605 = vmatpush3.bf16.msra.mxu1 %v12148_v7 }
0x60ef   : > { %11616 = vmatprep.subr.bf16.mxu1 %v12249_v0 }
0x61ac   : > { %v7953_v50 = vpop.f32.mrb[4].mxu1 }
0x61ad   : > { %v11578_v52 = vpop.f32.mrb[5].mxu1 }
0x61ae   : > { %v7956_v53 = vpop.f32.mrb[6].mxu1 }
0x61af   : > { %v11579_v54 = vpop.f32.mrb[7].mxu1 }
0x61b4   : > { %v7994_v55 = vpop.f32.mrb[8].mxu1 }
0x61b5   : > { %v11584_v56 = vpop.f32.mrb[9].mxu1 }
0x61b6   : > { %v7997_v57 = vpop.f32.mrb[10].mxu1 }
0x61b7   : > { %v11907_v60 = vpack.i.bf16 %v7997_v57, %v7994_v55  ;;  %v11585_v62 = vpop.f32.mrb[11].mxu1 }
0x61b9   : > { %11908 = vrot.lane.b32.xlu0 %v11907_v60, %s12251_s19 }
0x622b   : > { %v11909_v63 = vpop.permute.xlu0 %11908 }
0x622c   : > { %v11911_v1 = vunpack.i.h.bf16 %v11909_v63  ;;  %v11910_v2 = vunpack.i.l.bf16 %v11909_v63 }
0x622e   : > { %v8010_v3 = vsel %vm437_vm2, %v7956_v53, %v11911_v1  ;;  %v8009_v4 = vsel %vm437_vm2, %v7953_v50, %v11910_v2  ;;  %v10028_v53 = vld [vmem:[%s14457_s4 + $0x1e] ss:$0 sm:$0xff] }
0x622f   : > { %v8011_v41 = vpack.c.bf16 %v8010_v3, %v8009_v4  ;;  %v12153_v3 = vld [vmem:[%s14456_s3 + $0x3e0] sm:$0xff]   ;;  %v12155_v4 = vld [vmem:[%s14456_s3 + $0x3f0] sm:$0xff]  }
0x6231   : > { %11595 = vmatmul.mubr.msk.bf16.vlgmr.msra.gmra.mrb[188].mxu0 %vm480_vm3, %v8011_v41  ;;  %v12156_v41 = vld [vmem:[%s14456_s3 + $0x3f8] sm:$0xff]  }
0x6232   : > { %11612 = vmatprep.mubr.msk.bf16.mxu0 %vm12250_vm0, %v12249_v0 }
0x6304   : > { %v8090_v9 = vpop.f32.mrb[188].mxu0 }
0x6305   : > { %v8091_v10 = vadd.f32 %v9996_v8, %v8090_v9  ;;  %v11596_v11 = vpop.f32.mrb[189].mxu0 }
0x6306   : > { %v8093_v12 = vpop.f32.mrb[190].mxu0 }
0x6307   : > { %v8094_v48 = vadd.f32 %v9996_v8, %v8093_v12  ;;  %v11597_v39 = vpop.f32.mrb[191].mxu0  ;;  %v8097_v42 = vmax.f32 %v8091_v10, 0.0 }
0x6309   : > { %v8098_v13 = vmax.f32 %v8094_v48, 0.0 }
0x630b   : > { %v8099_v43 = vpack.c.bf16 %v8098_v13, %v8097_v42 }
0x630d   : > { %8101 = vrot.lane.b32.xlu1 %v8099_v43, %s12251_s19 }
0x637f   : > { %v8102_v14 = vpop.permute.xlu1 %8101 }
0x6380   : > { %v8105_v15 = vsel %vm437_vm2, %v14140_v46, %v8102_v14  ;;  %v12157_v14 = vld [vmem:[%s14458_s5 + $0x340] sm:$0xff]  }
0x6381   : > { %11607 = vmatmul.mubr.msk.bf16.vlgmr.msra.gmra.mrb[12].mxu1 %vm480_vm3, %v8105_v15  ;;  %v12158_v15 = vld [vmem:[%s14458_s5 + $0x348] sm:$0xff]  }
0x6382   : > { %11618 = vmatprep.mubr.msk.bf16.mxu1 %vm12250_vm0, %v12249_v0 }
0x6454   : > { %v8183_v18 = vpop.f32.mrb[12].mxu1 }
0x6455   : > { %v8184_v27 = vadd.f32 %v10011_v17, %v8183_v18  ;;  %v11608_v19 = vpop.f32.mrb[13].mxu1  ;;  %v12160_v18 = vld [vmem:[%s14458_s5 + $0x358] sm:$0xff]  }
0x6456   : > { %v8186_v20 = vpop.f32.mrb[14].mxu1 }
0x6457   : > { %v8187_v61 = vadd.f32 %v10011_v17, %v8186_v20  ;;  %v11609_v21 = vpop.f32.mrb[15].mxu1  ;;  %v8190_v59 = vmax.f32 %v8184_v27, 0.0  ;;  %v12159_v17 = vld [vmem:[%s14458_s5 + $0x350] sm:$0xff]   ;;  %v10045_v27 = vld [vmem:[%s14457_s4 + $0x1f] ss:$0 sm:$0xff] }
0x6459   : > { %v8191_v25 = vmax.f32 %v8187_v61, 0.0 }
0x645b   : > { %v14204_v26 = vpack.c.bf16 %v8191_v25, %v8190_v59 }
0x645d   : > { %11611 = vmatpush3.bf16.msra.mxu0 %v14204_v26  ;;  %11617 = vmatpush3.bf16.msra.mxu1 %v14204_v26 }
0x645e   : > { %11622 = vmatprep.subr.bf16.mxu0 %v12249_v0  ;;  %11634 = vmatprep.subr.bf16.mxu1 %v12249_v0 }
0x6460   : > { %11619 = vmatmul.mubr.msk.bf16.vlgmr.msra.gmra.mrb[16].mxu1 %vm335_vm1, %v13871_v22  ;;  %11613 = vmatmul.mubr.msk.bf16.vlgmr.msra.gmra.mrb[192].mxu0 %vm335_vm1, %v13876_v23 }
0x6461   : > { %11630 = vmatprep.mubr.msk.bf16.mxu0 %vm12250_vm0, %v12249_v0  ;;  %11636 = vmatprep.mubr.msk.bf16.mxu1 %vm12250_vm0, %v12249_v0 }
0x6462   : > { %11623 = vmatpush3.bf16.msra.mxu0 %v12149_v58 }
0x6463   : > { %11624 = vmatprep.subr.bf16.mxu0 %v12249_v0 }
0x6466   : > { %11625 = vmatpush3.bf16.msra.mxu0 %v12150_v28 }
0x6467   : > { %11626 = vmatprep.subr.bf16.mxu0 %v12249_v0 }
0x646a   : > { %11627 = vmatpush3.bf16.msra.mxu0 %v12151_v29 }
0x646b   : > { %11628 = vmatprep.subr.bf16.mxu0 %v12249_v0 }
0x646e   : > { %11629 = vmatpush3.bf16.msra.mxu0 %v12152_v33 }
0x646f   : > { %11646 = vmatprep.subr.bf16.mxu0 %v12249_v0 }
0x6533   : > { %v8268_v30 = vpop.f32.mrb[16].mxu1  ;;  %v8227_v34 = vpop.f32.mrb[192].mxu0 }
0x6534   : > { %v11620_v31 = vpop.f32.mrb[17].mxu1  ;;  %v11614_v32 = vpop.f32.mrb[193].mxu0 }
0x6535   : > { %v8271_v35 = vpop.f32.mrb[18].mxu1  ;;  %v8230_v36 = vpop.f32.mrb[194].mxu0  ;;  %v12162_v31 = vld [vmem:[%s14458_s5 + $0x368] sm:$0xff]   ;;  %v12163_v32 = vld [vmem:[%s14458_s5 + $0x370] sm:$0xff]  }
0x6536   : > { %v11912_v37 = vpack.i.bf16 %v8271_v35, %v8268_v30  ;;  %v11621_v45 = vpop.f32.mrb[19].mxu1  ;;  %v11615_v46 = vpop.f32.mrb[195].mxu0  ;;  %v12164_v35 = vld [vmem:[%s14458_s5 + $0x378] sm:$0xff]  }
0x6538   : > { %11913 = vrot.lane.b32.xlu0 %v11912_v37, %s12251_s19 }
0x65aa   : > { %v11914_v47 = vpop.permute.xlu0 %11913 }
0x65ab   : > { %v11916_v16 = vunpack.i.h.bf16 %v11914_v47  ;;  %v11915_v49 = vunpack.i.l.bf16 %v11914_v47 }
0x65ad   : > { %v8283_v50 = vsel %vm437_vm2, %v8227_v34, %v11915_v49  ;;  %v8284_v51 = vsel %vm437_vm2, %v8230_v36, %v11916_v16  ;;  %v12161_v34 = vld [vmem:[%s14458_s5 + $0x360] sm:$0xff]   ;;  %v10060_v36 = vld [vmem:[%s14459_s6 + $0x1a] ss:$0 sm:$0xff] }
0x65ae   : > { %v8285_v52 = vpack.c.bf16 %v8284_v51, %v8283_v50 }
0x65b0   : > { %11631 = vmatmul.mubr.msk.bf16.vlgmr.msra.gmra.mrb[196].mxu0 %vm480_vm3, %v8285_v52 }
0x65b1   : > { %11654 = vmatprep.mubr.msk.bf16.mxu0 %vm12250_vm0, %v12249_v0  ;;  %11647 = vmatpush3.bf16.msra.mxu0 %v12153_v3 }
0x65b2   : > { %11648 = vmatprep.subr.bf16.mxu0 %v12249_v0 }
0x6683   : > { %v8364_v54 = vpop.f32.mrb[196].mxu0 }
0x6684   : > { %v8365_v55 = vadd.f32 %v10028_v53, %v8364_v54  ;;  %v11632_v56 = vpop.f32.mrb[197].mxu0 }
0x6685   : > { %v8367_v57 = vpop.f32.mrb[198].mxu0  ;;  %v12166_v56 = vld [vmem:[%s14458_s5 + $0x388] sm:$0xff]  }
0x6686   : > { %v8368_v60 = vadd.f32 %v10028_v53, %v8367_v57  ;;  %v11633_v62 = vpop.f32.mrb[199].mxu0  ;;  %v8371_v63 = vmax.f32 %v8365_v55, 0.0  ;;  %v12165_v55 = vld [vmem:[%s14458_s5 + $0x380] sm:$0xff]   ;;  %v12168_v57 = vld [vmem:[%s14458_s5 + $0x398] sm:$0xff]  }
0x6688   : > { %v8372_v1 = vmax.f32 %v8368_v60, 0.0  ;;  %v10075_v60 = vld [vmem:[%s14459_s6 + $0x1b] ss:$0 sm:$0xff] }
0x668a   : > { %v14243_v2 = vpack.c.bf16 %v8372_v1, %v8371_v63 }
0x668c   : > { %11635 = vmatpush3.bf16.msra.mxu1 %v14243_v2 }
0x668d   : > { %11640 = vmatprep.subr.bf16.mxu1 %v12249_v0 }
0x668f   : > { %11637 = vmatmul.mubr.msk.bf16.vlgmr.msra.gmra.mrb[20].mxu1 %vm335_vm1, %v13876_v23  ;;  %v12154_v23 = vld [vmem:[%s14456_s3 + $0x3e8] sm:$0xff]  }
0x6690   : > { %11641 = vmatpush3.bf16.msra.mxu1 %v14243_v2  ;;  %11642 = vmatprep.mubr.msk.bf16.mxu1 %vm12250_vm0, %v12249_v0 }
0x6691   : > { %11658 = vmatprep.subr.bf16.mxu1 %v12249_v0  ;;  %11649 = vmatpush3.bf16.msra.mxu0 %v12154_v23 }
0x6692   : > { %11650 = vmatprep.subr.bf16.mxu0 %v12249_v0 }
0x6695   : > { %11651 = vmatpush3.bf16.msra.mxu0 %v12155_v4 }
0x6696   : > { %11652 = vmatprep.subr.bf16.mxu0 %v12249_v0 }
0x6697   : > { %11643 = vmatmul.mubr.msk.bf16.vlgmr.msra.gmra.mrb[24].mxu1 %vm335_vm1, %v13871_v22 }
0x6698   : > { %11666 = vmatprep.mubr.msk.bf16.mxu1 %vm12250_vm0, %v12249_v0  ;;  %11659 = vmatpush3.bf16.msra.mxu1 %v12157_v14 }
0x6699   : > { %11653 = vmatpush3.bf16.msra.mxu0 %v12156_v41  ;;  %11660 = vmatprep.subr.bf16.mxu1 %v12249_v0 }
0x669a   : > { %11670 = vmatprep.subr.bf16.mxu0 %v12249_v0 }
0x669c   : > { %11661 = vmatpush3.bf16.msra.mxu1 %v12158_v15 }
0x669d   : > { %11662 = vmatprep.subr.bf16.mxu1 %v12249_v0 }
0x66a0   : > { %11663 = vmatpush3.bf16.msra.mxu1 %v12159_v17 }
0x66a1   : > { %11664 = vmatprep.subr.bf16.mxu1 %v12249_v0 }
0x66a4   : > { %11665 = vmatpush3.bf16.msra.mxu1 %v12160_v18  ;;  %v12173_v18 = vld [vmem:[%s14458_s5 + $0x3c0] sm:$0xff]  }
0x66a5   : > { %11682 = vmatprep.subr.bf16.mxu1 %v12249_v0 }
0x6762   : > { %v8408_v22 = vpop.f32.mrb[20].mxu1 }
0x6763   : > { %v11638_v38 = vpop.f32.mrb[21].mxu1 }
0x6764   : > { %v8411_v5 = vpop.f32.mrb[22].mxu1 }
0x6765   : > { %v11639_v6 = vpop.f32.mrb[23].mxu1 }
0x6766   : > { %v12169_v6 = vld [vmem:[%s14458_s5 + $0x3a0] sm:$0xff]  }
0x676a   : > { %v8449_v7 = vpop.f32.mrb[24].mxu1 }
0x676b   : > { %v11644_v8 = vpop.f32.mrb[25].mxu1 }
0x676c   : > { %v8452_v9 = vpop.f32.mrb[26].mxu1  ;;  %v12172_v8 = vld [vmem:[%s14458_s5 + $0x3b8] sm:$0xff]  }
0x676d   : > { %v11917_v10 = vpack.i.bf16 %v8452_v9, %v8449_v7  ;;  %v11645_v11 = vpop.f32.mrb[27].mxu1  ;;  %v12170_v7 = vld [vmem:[%s14458_s5 + $0x3a8] sm:$0xff]   ;;  %v10090_v9 = vld [vmem:[%s14459_s6 + $0x1c] ss:$0 sm:$0xff] }
0x676f   : > { %11918 = vrot.lane.b32.xlu1 %v11917_v10, %s12251_s19 }
0x67e1   : > { %v11919_v12 = vpop.permute.xlu1 %11918 }
0x67e2   : > { %v11921_v48 = vunpack.i.h.bf16 %v11919_v12  ;;  %v11920_v39 = vunpack.i.l.bf16 %v11919_v12 }
0x67e4   : > { %v8465_v42 = vsel %vm437_vm2, %v8411_v5, %v11921_v48  ;;  %v8464_v13 = vsel %vm437_vm2, %v8408_v22, %v11920_v39 }
0x67e5   : > { %v8466_v43 = vpack.c.bf16 %v8465_v42, %v8464_v13 }
0x67e7   : > { %11655 = vmatmul.mubr.msk.bf16.vlgmr.msra.gmra.mrb[200].mxu0 %vm480_vm3, %v8466_v43 }
0x67e8   : > { %11678 = vmatprep.mubr.msk.bf16.mxu0 %vm12250_vm0, %v12249_v0  ;;  %11671 = vmatpush3.bf16.msra.mxu0 %v12161_v34 }
0x67e9   : > { %11672 = vmatprep.subr.bf16.mxu0 %v12249_v0 }
0x67ec   : > { %11673 = vmatpush3.bf16.msra.mxu0 %v12162_v31  ;;  %v10120_v31 = vld [vmem:[%s14459_s6 + $0x1e] ss:$0 sm:$0xff] }
0x67ed   : > { %11674 = vmatprep.subr.bf16.mxu0 %v12249_v0 }
0x67f0   : > { %11675 = vmatpush3.bf16.msra.mxu0 %v12163_v32 }
0x67f1   : > { %11676 = vmatprep.subr.bf16.mxu0 %v12249_v0 }
0x67f4   : > { %11677 = vmatpush3.bf16.msra.mxu0 %v12164_v35 }
0x67f5   : > { %11694 = vmatprep.subr.bf16.mxu0 %v12249_v0 }
0x68ba   : > { %v8545_v19 = vpop.f32.mrb[200].mxu0 }
0x68bb   : > { %v8546_v20 = vadd.f32 %v10045_v27, %v8545_v19  ;;  %v11656_v61 = vpop.f32.mrb[201].mxu0  ;;  %v12175_v19 = vld [vmem:[%s14458_s5 + $0x3d0] sm:$0xff]  }
0x68bc   : > { %v8548_v21 = vpop.f32.mrb[202].mxu0 }
0x68bd   : > { %v8549_v59 = vadd.f32 %v10045_v27, %v8548_v21  ;;  %v11657_v25 = vpop.f32.mrb[203].mxu0  ;;  %v8552_v58 = vmax.f32 %v8546_v20, 0.0  ;;  %v12174_v27 = vld [vmem:[%s14458_s5 + $0x3c8] sm:$0xff]   ;;  %v10105_v20 = vld [vmem:[%s14459_s6 + $0x1d] ss:$0 sm:$0xff] }
0x68bf   : > { %v8553_v28 = vmax.f32 %v8549_v59, 0.0 }
0x68c1   : > { %v8554_v29 = vpack.c.bf16 %v8553_v28, %v8552_v58 }
0x68c3   : > { %8556 = vrot.lane.b32.xlu0 %v8554_v29, %s12251_s19 }
0x6935   : > { %v8557_v33 = vpop.permute.xlu0 %8556 }
0x6936   : > { %v8560_v30 = vsel %vm437_vm2, %v14243_v2, %v8557_v33 }
0x6937   : > { %11667 = vmatmul.mubr.msk.bf16.vlgmr.msra.gmra.mrb[28].mxu1 %vm480_vm3, %v8560_v30 }
0x6938   : > { %11690 = vmatprep.mubr.msk.bf16.mxu1 %vm12250_vm0, %v12249_v0  ;;  %11683 = vmatpush3.bf16.msra.mxu1 %v12165_v55 }
0x6939   : > { %11684 = vmatprep.subr.bf16.mxu1 %v12249_v0 }
0x693c   : > { %11685 = vmatpush3.bf16.msra.mxu1 %v12166_v56 }
0x693d   : > { %11686 = vmatprep.subr.bf16.mxu1 %v12249_v0 }
0x6a0a   : > { %v8638_v37 = vpop.f32.mrb[28].mxu1 }
0x6a0b   : > { %v8639_v45 = vadd.f32 %v10060_v36, %v8638_v37  ;;  %v11668_v46 = vpop.f32.mrb[29].mxu1 }
0x6a0c   : > { %v8641_v47 = vpop.f32.mrb[30].mxu1 }
0x6a0d   : > { %v8642_v16 = vadd.f32 %v10060_v36, %v8641_v47  ;;  %v11669_v49 = vpop.f32.mrb[31].mxu1  ;;  %v8645_v50 = vmax.f32 %v8639_v45, 0.0 }
0x6a0f   : > { %v8646_v51 = vmax.f32 %v8642_v16, 0.0 }
0x6a11   : > { %v8647_v52 = vpack.c.bf16 %v8646_v51, %v8645_v50 }
0x6a13   : > { %8649 = vrot.lane.b32.xlu1 %v8647_v52, %s12251_s19 }
0x6a85   : > { %v8650_v53 = vpop.permute.xlu1 %8649 }
0x6a86   : > { %v8653_v54 = vsel %vm437_vm2, %v14204_v26, %v8650_v53  ;;  %v12167_v26 = vld [vmem:[%s14458_s5 + $0x390] sm:$0xff]  }
0x6a87   : > { %11679 = vmatmul.mubr.msk.bf16.vlgmr.msra.gmra.mrb[204].mxu0 %vm480_vm3, %v8653_v54  ;;  %11687 = vmatpush3.bf16.msra.mxu1 %v12167_v26 }
0x6a88   : > { %11702 = vmatprep.mubr.msk.bf16.mxu0 %vm12250_vm0, %v12249_v0  ;;  %11688 = vmatprep.subr.bf16.mxu1 %v12249_v0 }
0x6a89   : > { %11695 = vmatpush3.bf16.msra.mxu0 %v12169_v6 }
0x6a8a   : > { %11696 = vmatprep.subr.bf16.mxu0 %v12249_v0 }
0x6a8b   : > { %11689 = vmatpush3.bf16.msra.mxu1 %v12168_v57 }
0x6a8c   : > { %11706 = vmatprep.subr.bf16.mxu1 %v12249_v0 }
0x6a8d   : > { %11697 = vmatpush3.bf16.msra.mxu0 %v12170_v7 }
0x6a8e   : > { %11698 = vmatprep.subr.bf16.mxu0 %v12249_v0 }
0x6b5a   : > { %v8731_v62 = vpop.f32.mrb[204].mxu0 }
0x6b5b   : > { %v8732_v63 = vadd.f32 %v10075_v60, %v8731_v62  ;;  %v11680_v1 = vpop.f32.mrb[205].mxu0 }
0x6b5c   : > { %v8734_v2 = vpop.f32.mrb[206].mxu0 }
0x6b5d   : > { %v8735_v3 = vadd.f32 %v10075_v60, %v8734_v2  ;;  %v11681_v23 = vpop.f32.mrb[207].mxu0  ;;  %v8738_v4 = vmax.f32 %v8732_v63, 0.0 }
0x6b5f   : > { %v8739_v22 = vmax.f32 %v8735_v3, 0.0 }
0x6b61   : > { %v8740_v41 = vpack.c.bf16 %v8739_v22, %v8738_v4 }
0x6b63   : > { %8742 = vrot.lane.b32.xlu0 %v8740_v41, %s12251_s19 }
0x6bd5   : > { %v8743_v38 = vpop.permute.xlu0 %8742 }
0x6bd6   : > { %v8746_v5 = vsel %vm437_vm2, %v14101_v44, %v8743_v38  ;;  %v12171_v44 = vld [vmem:[%s14458_s5 + $0x3b0] sm:$0xff]  }
0x6bd7   : > { %11691 = vmatmul.mubr.msk.bf16.vlgmr.msra.gmra.mrb[32].mxu1 %vm480_vm3, %v8746_v5  ;;  %11699 = vmatpush3.bf16.msra.mxu0 %v12171_v44 }
0x6bd8   : > { %11714 = vmatprep.mubr.msk.bf16.mxu1 %vm12250_vm0, %v12249_v0  ;;  %11700 = vmatprep.subr.bf16.mxu0 %v12249_v0 }
0x6bd9   : > { %11707 = vmatpush3.bf16.msra.mxu1 %v12173_v18 }
0x6bda   : > { %11708 = vmatprep.subr.bf16.mxu1 %v12249_v0 }
0x6bdb   : > { %11701 = vmatpush3.bf16.msra.mxu0 %v12172_v8 }
0x6bdd   : > { %11709 = vmatpush3.bf16.msra.mxu1 %v12174_v27 }
0x6bde   : > { %11710 = vmatprep.subr.bf16.mxu1 %v12249_v0 }
0x6be1   : > { %11711 = vmatpush3.bf16.msra.mxu1 %v12175_v19 }
0x6be2   : > { %11712 = vmatprep.subr.bf16.mxu1 %v12249_v0 }
0x6caa   : > { %v8824_v10 = vpop.f32.mrb[32].mxu1 }
0x6cab   : > { %v8825_v11 = vadd.f32 %v10090_v9, %v8824_v10  ;;  %v11692_v12 = vpop.f32.mrb[33].mxu1 }
0x6cac   : > { %v8827_v48 = vpop.f32.mrb[34].mxu1 }
0x6cad   : > { %v8828_v39 = vadd.f32 %v10090_v9, %v8827_v48  ;;  %v11693_v42 = vpop.f32.mrb[35].mxu1  ;;  %v8831_v13 = vmax.f32 %v8825_v11, 0.0 }
0x6caf   : > { %v8832_v43 = vmax.f32 %v8828_v39, 0.0 }
0x6cb1   : > { %v8833_v14 = vpack.c.bf16 %v8832_v43, %v8831_v13 }
0x6cb3   : > { %8835 = vrot.lane.b32.xlu1 %v8833_v14, %s12251_s19 }
0x6d25   : > { %v8836_v15 = vpop.permute.xlu1 %8835 }
0x6d26   : > { %v8839_v17 = vsel %vm437_vm2, %v13864_v24, %v8836_v15  ;;  %v12176_v24 = vld [vmem:[%s14458_s5 + $0x3d8] sm:$0xff]  }
0x6d27   : > { %11703 = vmatmul.mubr.msk.bf16.vlgmr.msra.gmra.mrb[208].mxu0 %vm480_vm3, %v8839_v17  ;;  %11713 = vmatpush3.bf16.msra.mxu1 %v12176_v24 }
0x6dfa   : > { %v8917_v61 = vpop.f32.mrb[208].mxu0 }
0x6dfb   : > { %v8918_v21 = vadd.f32 %v10105_v20, %v8917_v61  ;;  %v11704_v59 = vpop.f32.mrb[209].mxu0 }
0x6dfc   : > { %v8920_v25 = vpop.f32.mrb[210].mxu0 }
0x6dfd   : > { %v8921_v58 = vadd.f32 %v10105_v20, %v8920_v25  ;;  %v11705_v28 = vpop.f32.mrb[211].mxu0  ;;  %v8924_v29 = vmax.f32 %v8918_v21, 0.0 }
0x6dff   : > { %v8925_v33 = vmax.f32 %v8921_v58, 0.0 }
0x6e01   : > { %v8926_v30 = vpack.c.bf16 %v8925_v33, %v8924_v29 }
0x6e03   : > { %8928 = vrot.lane.b32.xlu0 %v8926_v30, %s12251_s19 }
0x6e75   : > { %v8929_v34 = vpop.permute.xlu0 %8928 }
0x6e76   : > { %v8932_v0 = vsel %vm437_vm2, %v13371_v40, %v8929_v34 }
0x6e77   : > { %11715 = vmatmul.mubr.msk.bf16.vlgmr.msra.gmra.mrb[36].mxu1 %vm480_vm3, %v8932_v0 }
0x6f4a   : > { %v9010_v32 = vpop.f32.mrb[36].mxu1 }
0x6f4b   : > { %v9011_v35 = vadd.f32 %v10120_v31, %v9010_v32  ;;  %v11716_v36 = vpop.f32.mrb[37].mxu1 }
0x6f4c   : > { %v9013_v37 = vpop.f32.mrb[38].mxu1 }
0x6f4d   : > { %v9017_v45 = vmax.f32 %v9011_v35, 0.0  ;;  %v9014_v46 = vadd.f32 %v10120_v31, %v9013_v37  ;;  %v11717_v47 = vpop.f32.mrb[39].mxu1 }
0x6f4f   : > { %9019 = vst.msk [vmem:[%s301_s29] sm:$0xff] %vm437_vm2, %v9017_v45  ;;  %v9018_v40 = vmax.f32 %v9014_v46, 0.0 }
0x6f51   : > { %9020 = vst.msk [vmem:[%s301_s29 + $0x8] sm:$0xff] %vm437_vm2, %v9018_v40 }
0x6f52   : > { %12198 = shalt.err (!%p12195_p3)
}
0x6f53   : > { %s12199_s21 = scalar_lea.hbm %s14408_s13, 256  ;;  %s12203_s20 = scalar_lea.hbm %s14460_s7, 512 }
0x6f54   : > { %p12200_p4 = scmp.ne.s32.totalorder %s14408_s13, %s12199_s21  ;;  %p12204_p9 = scmp.lt.u32.totalorder %s14408_s13, %s14460_s7 }
0x6f55   : > { %p12205_p10 = scmp.lt.u32.totalorder %s12203_s20, %s12199_s21  ;;  %p12207_p12 = scmp.lt.u32.totalorder %s12199_s21, %s14408_s13 }
0x6f56   : > { %p12201_p7 = pnand %p12200_p4, %p12333_p5 }
0x6f57   : > { %p12206_p11 = por %p12205_p10, %p12204_p9 }
0x6f58   : > { %p12202_p8 = pneg %p12201_p7 }
0x6f59   : > { %p12208_p13 = por %p12207_p12, %p12206_p11 }
0x6f5b   : > { %p12209_p0 = pnand %p12208_p13, %p12202_p8 }
0x6f5d   : > { %12212 = shalt.err (!%p12209_p0)
}
0x6f5e   : > { %s12253_s19 = smov 128   ;;  %s12254_s9 = smov 8  }
0x6f5f   : > { %11718 = dma.vmem_to_hbm [thread:$0]  (%p12333_p5), %s14403_s17, 256, %s14408_s13, %s14412_s28, %s12253_s19, %s12253_s19, %s12254_s9  }
0x6f60 PF: > { %p11724_p1 = scmp.ge.s32.totalorder %s12247_s27, 2  ;;  %s9050_s14 = sand.u32 1, %s12235_s24  }
0x6f61   : > { %s9051_s15 = scalar_lea.sflag [#allocation3], %s9050_s14 }
0x6f62   : > { %p11721_p2 = pnand %p11724_p1, %p12337_p6 }
0x6f64   : > { %12230 = dma.done.wait (!%p11721_p2), %s9051_s15, 256  }
0x6f65   : > { %12232 = vsyncadd (!%p11721_p2), %s9051_s15, 4294967040  ;;  %p17_p3 = scmp.ge.s32.totalorder %s12320_s30, 4   ;;  %s14463_s24 = smov %s12239_s25 }
0x6f66   : > { %s14464_s25 = smov %s12243_s26  ;;  %s14465_s26 = smov %s12331_s10 }
0x6f67   : > { %s14466_s27 = smov %s12320_s30  ;;  %19 = sbr.rel (!%p17_p3) target bundleno = 3 (0x3), region = 211 }
0x6f6e   :  { %9056 = vsyncpa [#allocation3], 1 }
0x6f6f   :  { %9058 = vsyncpa [#allocation3 + $0x1], 1 }

</bundles_post_ra>
